<compile_context>
chip_gen: v7x
topology: tpu7x:2x2x1
jax: 0.10.0
libtpu: 0.0.40
codegen_flags: <defaults>
</compile_context>

<pallas_src>
import functools

import jax
import jax.numpy as jnp
from jax import lax
from jax.experimental import pallas as pl
from jax.experimental.pallas import tpu as pltpu

# Make the pure-JAX reference / one-time precompute use full-f32 matmuls so the 1e-5
# comparison against the kernel's f32 MXU dots is meaningful.
jax.config.update("jax_default_matmul_precision", "highest")

LANE = 128
SUBLANE = 8
MXU_DOT_DTYPE = jnp.float32   # jnp.bfloat16 on v5e/v6e/v7x when MXU-bound (tolerance ~1e-2)


def rnn_kernel(a_ref, w_ref, b_ref, out_ref):
    # a_ref:   (S, Bp, Hp) f32  layer-0 pre-activations (x_t W_ih0^T + b_ih0 + b_hh0), time-major
    # w_ref:   (4, Hp, Hp)      [W_hh0^T, W_ih1^T, W_hh1^T, W_lin^T], zero-padded lane-dense
    # b_ref:   (2, Hp)     f32  [b_ih1 + b_hh1, b_lin], zero-padded
    # out_ref: (Bp, Hp)    f32  final Linear output (first O lanes valid), unmasked lane-dense store
    S, Bp, Hp = a_ref.shape
    wdt = w_ref.dtype

    # Loop-invariant loads / broadcasts hoisted out of the unrolled recurrence.
    whh0 = w_ref[0]
    wih1 = w_ref[1]
    whh1 = w_ref[2]
    b1 = jnp.broadcast_to(b_ref[0:1, :], (Bp, Hp))

    h0 = jnp.zeros((Bp, Hp), jnp.float32)             # init_hidden = zeros for both layers

    def step(t, carry):
        h1, h2 = carry
        a = a_ref[t]                                   # (Bp, Hp): one lane-dense vreg load
        # layer 0: h1_t = tanh(x_t W_ih0^T + b_ih0 + b_hh0 + h1_{t-1} W_hh0^T)
        h1 = jnp.tanh(a + jnp.dot(h1.astype(wdt), whh0,
                                  preferred_element_type=jnp.float32))
        # layer 1: h2_t = tanh(h1_t W_ih1^T + h2_{t-1} W_hh1^T + b_ih1 + b_hh1)
        h2 = jnp.tanh(jnp.dot(h1.astype(wdt), wih1, preferred_element_type=jnp.float32)
                      + jnp.dot(h2.astype(wdt), whh1, preferred_element_type=jnp.float32)
                      + b1)
        return h1, h2

    # Fully unrolled in-kernel time loop (S is small -> full LLO scheduler visibility).
    # TODO(synk): for large S use unroll=4..8 and a time-chunked grid instead.
    _, h2 = lax.fori_loop(0, S, step, (h0, h0), unroll=True)

    # out = Linear(out[:, -1, :]) on the top layer's last hidden state.
    out_ref[...] = (
        jnp.dot(h2.astype(wdt), w_ref[3], preferred_element_type=jnp.float32)
        + b_ref[1:2, :]
    )


def prepare_params(params, dot_dtype=MXU_DOT_DTYPE):
    """One-time, parameter-only preprocessing (run at init, NOT per forward call)."""
    H = params["w_hh0_t"].shape[0]
    O = params["w_lin_t"].shape[1]
    Hp = ((max(H, O) + LANE - 1) // LANE) * LANE
    Hp = max(Hp, LANE)

    b0 = params["b_ih0"] + params["b_hh0"]            # (1, H)
    b1 = params["b_ih1"] + params["b_hh1"]            # (1, H)

    # Fold the layer-0 input projection into the embedding table: the per-call gather then
    # directly yields layer-0 pre-activations.
    emb_proj = jnp.dot(params["embedding"], params["w_ih0_t"],
                       preferred_element_type=jnp.float32) + b0        # (V, H)
    emb_proj = jnp.pad(emb_proj, ((0, 0), (0, Hp - H))).astype(jnp.float32)   # (V, Hp)

    def pad_sq(w):                                    # zero-pad to (Hp, Hp); exact, lane-dense
        return jnp.pad(w, ((0, Hp - w.shape[0]), (0, Hp - w.shape[1])))

    w_slab = jnp.stack([pad_sq(params["w_hh0_t"]),
                        pad_sq(params["w_ih1_t"]),
                        pad_sq(params["w_hh1_t"]),
                        pad_sq(params["w_lin_t"])]).astype(dot_dtype)   # (4, Hp, Hp)

    b_slab = jnp.stack([jnp.pad(b1[0], (0, Hp - H)),
                        jnp.pad(params["b_lin"][0], (0, Hp - O))]
                       ).astype(jnp.float32)                            # (2, Hp)
    return emb_proj, w_slab, b_slab


@functools.partial(jax.jit, static_argnames=("output_dim",))
def recurrent_network_forward(tokens, emb_proj, w_slab, b_slab, *, output_dim):
    """tokens: (B, S) int32.  emb_proj/w_slab/b_slab from prepare_params."""
    B, S = tokens.shape
    Hp = emb_proj.shape[1]
    Bp = max(SUBLANE, ((B + SUBLANE - 1) // SUBLANE) * SUBLANE)

    # Embedding lookup (gather) is glue; done in plain JAX.  Transpose the int32 tokens so the
    # gather lands directly in time-major layout (no f32 transpose HLO).
    a = jnp.take(emb_proj, tokens.T, axis=0)                 # (S, B, Hp) layer-0 pre-activations
    a = jnp.pad(a, ((0, 0), (0, Bp - B), (0, 0)))            # (S, Bp, Hp); pad rows stay 0

    vmem = pl.BlockSpec(memory_space=pltpu.MemorySpace.VMEM)  # whole array resident in VMEM
    out_padded = pl.pallas_call(
        rnn_kernel,
        out_shape=jax.ShapeDtypeStruct((Bp, Hp), jnp.float32),
        in_specs=[vmem, vmem, vmem],
        out_specs=vmem,
    )(a, w_slab, b_slab)
    return out_padded[:B, :output_dim]


def reference_forward(tokens, params):
    """Pure-JAX reference mirroring the PyTorch module semantics (unprepared params)."""
    emb = params["embedding"]
    x = jnp.take(emb, tokens, axis=0).astype(jnp.float32)    # (B, S, D_in)
    B, S, _ = x.shape
    H = params["w_hh0_t"].shape[0]
    h1 = jnp.zeros((B, H), jnp.float32)
    h2 = jnp.zeros((B, H), jnp.float32)
    for t in range(S):
        xt = x[:, t, :]
        h1 = jnp.tanh(xt @ params["w_ih0_t"] + params["b_ih0"]
                      + h1 @ params["w_hh0_t"] + params["b_hh0"])
        h2 = jnp.tanh(h1 @ params["w_ih1_t"] + params["b_ih1"]
                      + h2 @ params["w_hh1_t"] + params["b_hh1"])
    return h2 @ params["w_lin_t"] + params["b_lin"]


def init_params(key, vocab, input_dim, hidden_dim, output_dim):
    ks = jax.random.split(key, 12)
    bound_rnn = 1.0 / jnp.sqrt(hidden_dim)
    bound_lin = 1.0 / jnp.sqrt(hidden_dim)
    u = lambda k, shape, b: jax.random.uniform(k, shape, jnp.float32, -b, b)
    return {
        # "pretrained" word embeddings (synthetic, deterministic)
        "embedding": jax.random.normal(ks[0], (vocab, input_dim), jnp.float32),
        # nn.RNN layer 0 (stored transposed: (in, out))
        "w_ih0_t": u(ks[1], (input_dim, hidden_dim), bound_rnn),
        "w_hh0_t": u(ks[2], (hidden_dim, hidden_dim), bound_rnn),
        "b_ih0":  u(ks[3], (1, hidden_dim), bound_rnn),
        "b_hh0":  u(ks[4], (1, hidden_dim), bound_rnn),
        # nn.RNN layer 1
        "w_ih1_t": u(ks[5], (hidden_dim, hidden_dim), bound_rnn),
        "w_hh1_t": u(ks[6], (hidden_dim, hidden_dim), bound_rnn),
        "b_ih1":  u(ks[7], (1, hidden_dim), bound_rnn),
        "b_hh1":  u(ks[8], (1, hidden_dim), bound_rnn),
        # nn.Linear(hidden_dim, output_dim)
        "w_lin_t": u(ks[9], (hidden_dim, output_dim), bound_lin),
        "b_lin":  u(ks[10], (1, output_dim), bound_lin),
    }


if __name__ == "__main__":
    # Small, module-consistent shapes.
    B, S = 2, 8            # batch, sequence length
    VOCAB = 20
    INPUT_DIM = 16         # embedding dim == RNN input_dim
    HIDDEN_DIM = 32
    OUTPUT_DIM = 4

    key = jax.random.PRNGKey(0)
    k_tok, k_par = jax.random.split(key)
    tokens = jax.random.randint(k_tok, (B, S), 0, VOCAB, dtype=jnp.int32)
    params = init_params(k_par, VOCAB, INPUT_DIM, HIDDEN_DIM, OUTPUT_DIM)

    # One-time parameter preprocessing (projected embedding table + packed weight/bias slabs).
    emb_proj, w_slab, b_slab = prepare_params(params)

    out = recurrent_network_forward(tokens, emb_proj, w_slab, b_slab, output_dim=OUTPUT_DIM)
    out = jax.block_until_ready(out)

    ref = reference_forward(tokens, params)
    assert out.shape == (B, OUTPUT_DIM), out.shape
    assert jnp.allclose(out, ref, atol=1e-5, rtol=1e-5), (out, ref)

    print("KERNEL_OK")
</pallas_src>

<mosaic_0001>
module attributes {stable_mosaic.version = 11 : i64} {
  func.func @rnn_kernel(%arg0: memref<8x8x128xf32, #tpu.memory_space<vmem>>, %arg1: memref<4x128x128xf32, #tpu.memory_space<vmem>>, %arg2: memref<2x128xf32, #tpu.memory_space<vmem>>, %arg3: memref<8x128xf32, #tpu.memory_space<vmem>>) attributes {dimension_semantics = [], scalar_prefetch = 0 : i64, scratch_operands = 0 : i64, tpu.core_type = #tpu.core_type<tc>} {
    %c0 = arith.constant 0 : index
    %c0_0 = arith.constant 0 : index
    %c0_1 = arith.constant 0 : index
    %0 = vector.load %arg1[%c0, %c0_0, %c0_1] : memref<4x128x128xf32, #tpu.memory_space<vmem>>, vector<1x128x128xf32>
    %1 = vector.shape_cast %0 : vector<1x128x128xf32> to vector<128x128xf32>
    %c1 = arith.constant 1 : index
    %c0_2 = arith.constant 0 : index
    %c0_3 = arith.constant 0 : index
    %2 = vector.load %arg1[%c1, %c0_2, %c0_3] : memref<4x128x128xf32, #tpu.memory_space<vmem>>, vector<1x128x128xf32>
    %3 = vector.shape_cast %2 : vector<1x128x128xf32> to vector<128x128xf32>
    %c2 = arith.constant 2 : index
    %c0_4 = arith.constant 0 : index
    %c0_5 = arith.constant 0 : index
    %4 = vector.load %arg1[%c2, %c0_4, %c0_5] : memref<4x128x128xf32, #tpu.memory_space<vmem>>, vector<1x128x128xf32>
    %5 = vector.shape_cast %4 : vector<1x128x128xf32> to vector<128x128xf32>
    %c0_6 = arith.constant 0 : index
    %c0_7 = arith.constant 0 : index
    %6 = vector.load %arg2[%c0_6, %c0_7] : memref<2x128xf32, #tpu.memory_space<vmem>>, vector<1x128xf32>
    %7 = vector.shape_cast %6 : vector<1x128xf32> to vector<1x128xf32>
    %8 = vector.broadcast %7 : vector<1x128xf32> to vector<8x128xf32>
    %cst = arith.constant 0.000000e+00 : f32
    %9 = vector.broadcast %cst : f32 to vector<8x128xf32>
    %c0_i32 = arith.constant 0 : i32
    %10 = arith.index_cast %c0_i32 : i32 to index
    %c0_8 = arith.constant 0 : index
    %c0_9 = arith.constant 0 : index
    %11 = vector.load %arg0[%10, %c0_8, %c0_9] : memref<8x8x128xf32, #tpu.memory_space<vmem>>, vector<1x8x128xf32>
    %12 = vector.shape_cast %11 : vector<1x8x128xf32> to vector<8x128xf32>
    %cst_10 = arith.constant dense<0.000000e+00> : vector<8x128xf32>
    %13 = tpu.matmul %9, %1, %cst_10 {dimension_numbers = #tpu.dot_dimension_numbers<[1], [0], [0], [1], [0, 0, 1, 1], [], []>, precision = #tpu.contract_precision<fp32>} : vector<8x128xf32>, vector<128x128xf32>, vector<8x128xf32> -> vector<8x128xf32>
    %14 = arith.addf %12, %13 : vector<8x128xf32>
    %15 = math.tanh %14 : vector<8x128xf32>
    %cst_11 = arith.constant dense<0.000000e+00> : vector<8x128xf32>
    %16 = tpu.matmul %15, %3, %cst_11 {dimension_numbers = #tpu.dot_dimension_numbers<[1], [0], [0], [1], [0, 0, 1, 1], [], []>, precision = #tpu.contract_precision<fp32>} : vector<8x128xf32>, vector<128x128xf32>, vector<8x128xf32> -> vector<8x128xf32>
    %cst_12 = arith.constant dense<0.000000e+00> : vector<8x128xf32>
    %17 = tpu.matmul %9, %5, %cst_12 {dimension_numbers = #tpu.dot_dimension_numbers<[1], [0], [0], [1], [0, 0, 1, 1], [], []>, precision = #tpu.contract_precision<fp32>} : vector<8x128xf32>, vector<128x128xf32>, vector<8x128xf32> -> vector<8x128xf32>
    %18 = arith.addf %16, %17 : vector<8x128xf32>
    %19 = arith.addf %18, %8 : vector<8x128xf32>
    %20 = math.tanh %19 : vector<8x128xf32>
    %c1_i32 = arith.constant 1 : i32
    %21 = arith.index_cast %c1_i32 : i32 to index
    %c0_13 = arith.constant 0 : index
    %c0_14 = arith.constant 0 : index
    %22 = vector.load %arg0[%21, %c0_13, %c0_14] : memref<8x8x128xf32, #tpu.memory_space<vmem>>, vector<1x8x128xf32>
    %23 = vector.shape_cast %22 : vector<1x8x128xf32> to vector<8x128xf32>
    %cst_15 = arith.constant dense<0.000000e+00> : vector<8x128xf32>
    %24 = tpu.matmul %15, %1, %cst_15 {dimension_numbers = #tpu.dot_dimension_numbers<[1], [0], [0], [1], [0, 0, 1, 1], [], []>, precision = #tpu.contract_precision<fp32>} : vector<8x128xf32>, vector<128x128xf32>, vector<8x128xf32> -> vector<8x128xf32>
    %25 = arith.addf %23, %24 : vector<8x128xf32>
    %26 = math.tanh %25 : vector<8x128xf32>
    %cst_16 = arith.constant dense<0.000000e+00> : vector<8x128xf32>
    %27 = tpu.matmul %26, %3, %cst_16 {dimension_numbers = #tpu.dot_dimension_numbers<[1], [0], [0], [1], [0, 0, 1, 1], [], []>, precision = #tpu.contract_precision<fp32>} : vector<8x128xf32>, vector<128x128xf32>, vector<8x128xf32> -> vector<8x128xf32>
    %cst_17 = arith.constant dense<0.000000e+00> : vector<8x128xf32>
    %28 = tpu.matmul %20, %5, %cst_17 {dimension_numbers = #tpu.dot_dimension_numbers<[1], [0], [0], [1], [0, 0, 1, 1], [], []>, precision = #tpu.contract_precision<fp32>} : vector<8x128xf32>, vector<128x128xf32>, vector<8x128xf32> -> vector<8x128xf32>
    %29 = arith.addf %27, %28 : vector<8x128xf32>
    %30 = arith.addf %29, %8 : vector<8x128xf32>
    %31 = math.tanh %30 : vector<8x128xf32>
    %c2_i32 = arith.constant 2 : i32
    %32 = arith.index_cast %c2_i32 : i32 to index
    %c0_18 = arith.constant 0 : index
    %c0_19 = arith.constant 0 : index
    %33 = vector.load %arg0[%32, %c0_18, %c0_19] : memref<8x8x128xf32, #tpu.memory_space<vmem>>, vector<1x8x128xf32>
    %34 = vector.shape_cast %33 : vector<1x8x128xf32> to vector<8x128xf32>
    %cst_20 = arith.constant dense<0.000000e+00> : vector<8x128xf32>
    %35 = tpu.matmul %26, %1, %cst_20 {dimension_numbers = #tpu.dot_dimension_numbers<[1], [0], [0], [1], [0, 0, 1, 1], [], []>, precision = #tpu.contract_precision<fp32>} : vector<8x128xf32>, vector<128x128xf32>, vector<8x128xf32> -> vector<8x128xf32>
    %36 = arith.addf %34, %35 : vector<8x128xf32>
    %37 = math.tanh %36 : vector<8x128xf32>
    %cst_21 = arith.constant dense<0.000000e+00> : vector<8x128xf32>
    %38 = tpu.matmul %37, %3, %cst_21 {dimension_numbers = #tpu.dot_dimension_numbers<[1], [0], [0], [1], [0, 0, 1, 1], [], []>, precision = #tpu.contract_precision<fp32>} : vector<8x128xf32>, vector<128x128xf32>, vector<8x128xf32> -> vector<8x128xf32>
    %cst_22 = arith.constant dense<0.000000e+00> : vector<8x128xf32>
    %39 = tpu.matmul %31, %5, %cst_22 {dimension_numbers = #tpu.dot_dimension_numbers<[1], [0], [0], [1], [0, 0, 1, 1], [], []>, precision = #tpu.contract_precision<fp32>} : vector<8x128xf32>, vector<128x128xf32>, vector<8x128xf32> -> vector<8x128xf32>
    %40 = arith.addf %38, %39 : vector<8x128xf32>
    %41 = arith.addf %40, %8 : vector<8x128xf32>
    %42 = math.tanh %41 : vector<8x128xf32>
    %c3_i32 = arith.constant 3 : i32
    %43 = arith.index_cast %c3_i32 : i32 to index
    %c0_23 = arith.constant 0 : index
    %c0_24 = arith.constant 0 : index
    %44 = vector.load %arg0[%43, %c0_23, %c0_24] : memref<8x8x128xf32, #tpu.memory_space<vmem>>, vector<1x8x128xf32>
    %45 = vector.shape_cast %44 : vector<1x8x128xf32> to vector<8x128xf32>
    %cst_25 = arith.constant dense<0.000000e+00> : vector<8x128xf32>
    %46 = tpu.matmul %37, %1, %cst_25 {dimension_numbers = #tpu.dot_dimension_numbers<[1], [0], [0], [1], [0, 0, 1, 1], [], []>, precision = #tpu.contract_precision<fp32>} : vector<8x128xf32>, vector<128x128xf32>, vector<8x128xf32> -> vector<8x128xf32>
    %47 = arith.addf %45, %46 : vector<8x128xf32>
    %48 = math.tanh %47 : vector<8x128xf32>
    %cst_26 = arith.constant dense<0.000000e+00> : vector<8x128xf32>
    %49 = tpu.matmul %48, %3, %cst_26 {dimension_numbers = #tpu.dot_dimension_numbers<[1], [0], [0], [1], [0, 0, 1, 1], [], []>, precision = #tpu.contract_precision<fp32>} : vector<8x128xf32>, vector<128x128xf32>, vector<8x128xf32> -> vector<8x128xf32>
    %cst_27 = arith.constant dense<0.000000e+00> : vector<8x128xf32>
    %50 = tpu.matmul %42, %5, %cst_27 {dimension_numbers = #tpu.dot_dimension_numbers<[1], [0], [0], [1], [0, 0, 1, 1], [], []>, precision = #tpu.contract_precision<fp32>} : vector<8x128xf32>, vector<128x128xf32>, vector<8x128xf32> -> vector<8x128xf32>
    %51 = arith.addf %49, %50 : vector<8x128xf32>
    %52 = arith.addf %51, %8 : vector<8x128xf32>
    %53 = math.tanh %52 : vector<8x128xf32>
    %c4_i32 = arith.constant 4 : i32
    %54 = arith.index_cast %c4_i32 : i32 to index
    %c0_28 = arith.constant 0 : index
    %c0_29 = arith.constant 0 : index
    %55 = vector.load %arg0[%54, %c0_28, %c0_29] : memref<8x8x128xf32, #tpu.memory_space<vmem>>, vector<1x8x128xf32>
    %56 = vector.shape_cast %55 : vector<1x8x128xf32> to vector<8x128xf32>
    %cst_30 = arith.constant dense<0.000000e+00> : vector<8x128xf32>
    %57 = tpu.matmul %48, %1, %cst_30 {dimension_numbers = #tpu.dot_dimension_numbers<[1], [0], [0], [1], [0, 0, 1, 1], [], []>, precision = #tpu.contract_precision<fp32>} : vector<8x128xf32>, vector<128x128xf32>, vector<8x128xf32> -> vector<8x128xf32>
    %58 = arith.addf %56, %57 : vector<8x128xf32>
    %59 = math.tanh %58 : vector<8x128xf32>
    %cst_31 = arith.constant dense<0.000000e+00> : vector<8x128xf32>
    %60 = tpu.matmul %59, %3, %cst_31 {dimension_numbers = #tpu.dot_dimension_numbers<[1], [0], [0], [1], [0, 0, 1, 1], [], []>, precision = #tpu.contract_precision<fp32>} : vector<8x128xf32>, vector<128x128xf32>, vector<8x128xf32> -> vector<8x128xf32>
    %cst_32 = arith.constant dense<0.000000e+00> : vector<8x128xf32>
    %61 = tpu.matmul %53, %5, %cst_32 {dimension_numbers = #tpu.dot_dimension_numbers<[1], [0], [0], [1], [0, 0, 1, 1], [], []>, precision = #tpu.contract_precision<fp32>} : vector<8x128xf32>, vector<128x128xf32>, vector<8x128xf32> -> vector<8x128xf32>
    %62 = arith.addf %60, %61 : vector<8x128xf32>
    %63 = arith.addf %62, %8 : vector<8x128xf32>
    %64 = math.tanh %63 : vector<8x128xf32>
    %c5_i32 = arith.constant 5 : i32
    %65 = arith.index_cast %c5_i32 : i32 to index
    %c0_33 = arith.constant 0 : index
    %c0_34 = arith.constant 0 : index
    %66 = vector.load %arg0[%65, %c0_33, %c0_34] : memref<8x8x128xf32, #tpu.memory_space<vmem>>, vector<1x8x128xf32>
    %67 = vector.shape_cast %66 : vector<1x8x128xf32> to vector<8x128xf32>
    %cst_35 = arith.constant dense<0.000000e+00> : vector<8x128xf32>
    %68 = tpu.matmul %59, %1, %cst_35 {dimension_numbers = #tpu.dot_dimension_numbers<[1], [0], [0], [1], [0, 0, 1, 1], [], []>, precision = #tpu.contract_precision<fp32>} : vector<8x128xf32>, vector<128x128xf32>, vector<8x128xf32> -> vector<8x128xf32>
    %69 = arith.addf %67, %68 : vector<8x128xf32>
    %70 = math.tanh %69 : vector<8x128xf32>
    %cst_36 = arith.constant dense<0.000000e+00> : vector<8x128xf32>
    %71 = tpu.matmul %70, %3, %cst_36 {dimension_numbers = #tpu.dot_dimension_numbers<[1], [0], [0], [1], [0, 0, 1, 1], [], []>, precision = #tpu.contract_precision<fp32>} : vector<8x128xf32>, vector<128x128xf32>, vector<8x128xf32> -> vector<8x128xf32>
    %cst_37 = arith.constant dense<0.000000e+00> : vector<8x128xf32>
    %72 = tpu.matmul %64, %5, %cst_37 {dimension_numbers = #tpu.dot_dimension_numbers<[1], [0], [0], [1], [0, 0, 1, 1], [], []>, precision = #tpu.contract_precision<fp32>} : vector<8x128xf32>, vector<128x128xf32>, vector<8x128xf32> -> vector<8x128xf32>
    %73 = arith.addf %71, %72 : vector<8x128xf32>
    %74 = arith.addf %73, %8 : vector<8x128xf32>
    %75 = math.tanh %74 : vector<8x128xf32>
    %c6_i32 = arith.constant 6 : i32
    %76 = arith.index_cast %c6_i32 : i32 to index
    %c0_38 = arith.constant 0 : index
    %c0_39 = arith.constant 0 : index
    %77 = vector.load %arg0[%76, %c0_38, %c0_39] : memref<8x8x128xf32, #tpu.memory_space<vmem>>, vector<1x8x128xf32>
    %78 = vector.shape_cast %77 : vector<1x8x128xf32> to vector<8x128xf32>
    %cst_40 = arith.constant dense<0.000000e+00> : vector<8x128xf32>
    %79 = tpu.matmul %70, %1, %cst_40 {dimension_numbers = #tpu.dot_dimension_numbers<[1], [0], [0], [1], [0, 0, 1, 1], [], []>, precision = #tpu.contract_precision<fp32>} : vector<8x128xf32>, vector<128x128xf32>, vector<8x128xf32> -> vector<8x128xf32>
    %80 = arith.addf %78, %79 : vector<8x128xf32>
    %81 = math.tanh %80 : vector<8x128xf32>
    %cst_41 = arith.constant dense<0.000000e+00> : vector<8x128xf32>
    %82 = tpu.matmul %81, %3, %cst_41 {dimension_numbers = #tpu.dot_dimension_numbers<[1], [0], [0], [1], [0, 0, 1, 1], [], []>, precision = #tpu.contract_precision<fp32>} : vector<8x128xf32>, vector<128x128xf32>, vector<8x128xf32> -> vector<8x128xf32>
    %cst_42 = arith.constant dense<0.000000e+00> : vector<8x128xf32>
    %83 = tpu.matmul %75, %5, %cst_42 {dimension_numbers = #tpu.dot_dimension_numbers<[1], [0], [0], [1], [0, 0, 1, 1], [], []>, precision = #tpu.contract_precision<fp32>} : vector<8x128xf32>, vector<128x128xf32>, vector<8x128xf32> -> vector<8x128xf32>
    %84 = arith.addf %82, %83 : vector<8x128xf32>
    %85 = arith.addf %84, %8 : vector<8x128xf32>
    %86 = math.tanh %85 : vector<8x128xf32>
    %c7_i32 = arith.constant 7 : i32
    %87 = arith.index_cast %c7_i32 : i32 to index
    %c0_43 = arith.constant 0 : index
    %c0_44 = arith.constant 0 : index
    %88 = vector.load %arg0[%87, %c0_43, %c0_44] : memref<8x8x128xf32, #tpu.memory_space<vmem>>, vector<1x8x128xf32>
    %89 = vector.shape_cast %88 : vector<1x8x128xf32> to vector<8x128xf32>
    %cst_45 = arith.constant dense<0.000000e+00> : vector<8x128xf32>
    %90 = tpu.matmul %81, %1, %cst_45 {dimension_numbers = #tpu.dot_dimension_numbers<[1], [0], [0], [1], [0, 0, 1, 1], [], []>, precision = #tpu.contract_precision<fp32>} : vector<8x128xf32>, vector<128x128xf32>, vector<8x128xf32> -> vector<8x128xf32>
    %91 = arith.addf %89, %90 : vector<8x128xf32>
    %92 = math.tanh %91 : vector<8x128xf32>
    %cst_46 = arith.constant dense<0.000000e+00> : vector<8x128xf32>
    %93 = tpu.matmul %92, %3, %cst_46 {dimension_numbers = #tpu.dot_dimension_numbers<[1], [0], [0], [1], [0, 0, 1, 1], [], []>, precision = #tpu.contract_precision<fp32>} : vector<8x128xf32>, vector<128x128xf32>, vector<8x128xf32> -> vector<8x128xf32>
    %cst_47 = arith.constant dense<0.000000e+00> : vector<8x128xf32>
    %94 = tpu.matmul %86, %5, %cst_47 {dimension_numbers = #tpu.dot_dimension_numbers<[1], [0], [0], [1], [0, 0, 1, 1], [], []>, precision = #tpu.contract_precision<fp32>} : vector<8x128xf32>, vector<128x128xf32>, vector<8x128xf32> -> vector<8x128xf32>
    %95 = arith.addf %93, %94 : vector<8x128xf32>
    %96 = arith.addf %95, %8 : vector<8x128xf32>
    %97 = math.tanh %96 : vector<8x128xf32>
    %c8_i32 = arith.constant 8 : i32
    %c3 = arith.constant 3 : index
    %c0_48 = arith.constant 0 : index
    %c0_49 = arith.constant 0 : index
    %98 = vector.load %arg1[%c3, %c0_48, %c0_49] : memref<4x128x128xf32, #tpu.memory_space<vmem>>, vector<1x128x128xf32>
    %99 = vector.shape_cast %98 : vector<1x128x128xf32> to vector<128x128xf32>
    %cst_50 = arith.constant dense<0.000000e+00> : vector<8x128xf32>
    %100 = tpu.matmul %97, %99, %cst_50 {dimension_numbers = #tpu.dot_dimension_numbers<[1], [0], [0], [1], [0, 0, 1, 1], [], []>, precision = #tpu.contract_precision<fp32>} : vector<8x128xf32>, vector<128x128xf32>, vector<8x128xf32> -> vector<8x128xf32>
    %c1_51 = arith.constant 1 : index
    %c0_52 = arith.constant 0 : index
    %101 = vector.load %arg2[%c1_51, %c0_52] : memref<2x128xf32, #tpu.memory_space<vmem>>, vector<1x128xf32>
    %102 = vector.broadcast %101 : vector<1x128xf32> to vector<8x128xf32>
    %103 = arith.addf %100, %102 : vector<8x128xf32>
    %c0_53 = arith.constant 0 : index
    %c0_54 = arith.constant 0 : index
    %104 = vector.load %arg3[%c0_53, %c0_54] : memref<8x128xf32, #tpu.memory_space<vmem>>, vector<8x128xf32>
    tpu.vector_store %arg3[%c0_53, %c0_54], %103 {strides = array<i32>} : memref<8x128xf32, #tpu.memory_space<vmem>>, vector<8x128xf32>,
    return
  }
}

</mosaic_0001>

<bundles_post_ra>
// kernel: recurrent_network_forward.1
= control target key start
LH: loop header
LB: loop body
LE: loop exit
PB: predicated region body
PF: predicated region fallthrough
CT: control target
= control target key end

     0   :  { %8 = vsyncpa [#allocation3], 0  ;;  %s27642_s12 = smov [#allocation2]   ;;  %s31443_s0 = inlined_call_operand.vmem [shape: f32[8,8,128], index: 0, kind: input, shape index: {}]   ;;  %s31444_s1 = inlined_call_operand.hbm [shape: f32[4,128,128], index: 1, kind: input, shape index: {}]   ;;  %s31445_s2 = inlined_call_operand.vmem [shape: f32[2,128], index: 2, kind: input, shape index: {}]   ;;  %s31446_s3 = inlined_call_operand.vmem [shape: f32[8,128], index: 3, kind: output, shape index: {}]  }
   0x1   :  { %s16_s13 = sshll.u32 %s27642_s12, 4  ;;  %s27618_s16 = scalar_lea.hbm %s31444_s1, 8192  ;;  %s17_s13 = int_to_ptr.vmem [resolvable:$true] %s16_s13 }
   0x2   :  { %p27619_p0 = scmp.ne.s32.totalorder %s31444_s1, %s27618_s16  ;;  %p27622_p1 = scmp.lt.u32.totalorder %s27618_s16, %s31444_s1 }
   0x4   :  { %p27624_p2 = pnand %p27622_p1, %p27619_p0 }
   0x6   :  { %27627 = shalt.err (!%p27624_p2)
}
   0x7   :  { %s27628_s21 = scalar_lea.vmem %s17_s13, 8192  ;;  %p27633_p4 = scmp.lt.s32.totalorder %s17_s13, %s17_s13 }
   0x8   :  { %p27629_p3 = scmp.ne.s32.totalorder %s17_s13, %s27628_s21  ;;  %p27634_p5 = scmp.lt.s32.totalorder %s27628_s21, %s27628_s21 }
   0xa   :  { %p27635_p6 = por %p27634_p5, %p27633_p4 }
   0xc   :  { %p27636_p7 = pnand %p27635_p6, %p27629_p3 }
   0xe   :  { %27639 = shalt.err (!%p27636_p7)
}
   0xf   :  { %s27643_s22 = smov 128   ;;  %s27644_s23 = smov 8  }
  0x10   :  { %22 = dma.hbm_to_vmem [thread:$0]  %s31444_s1, 8192, %s17_s13, [#allocation3], %s27643_s22, %s27643_s22, %s27644_s23  }
  0x11   :  { %27640 = dma.done.wait [#allocation3], 8192  }
  0x12   :  { %27641 = vsyncadd [#allocation3], 4294959104  ;;  %v31465_v0 = vmov 0.0|0.0   ;;  %vm27646_vm0 = vmmov 0   ;;  %v31453_v1 = vmov 0.0   ;;  %v28_v2 = vld [vmem:[#allocation2] sm:$0xff] }
  0x13   :  { %23966 = vmatprep.subr.bf16.mxu1 %v31465_v0  ;;  %18748 = vmatprep.mubr.msk.f32.mxu1 %vm27646_vm0, %v31453_v1  ;;  %v29_v3 = vld [vmem:[#allocation2 + $0x8] sm:$0xff]  ;;  %v30_v4 = vld [vmem:[#allocation2 + $0x10] sm:$0xff]  ;;  %v85_v5 = vand.u32 4294901760, %v28_v2  ;;  %v31_v7 = vld [vmem:[#allocation2 + $0x18] sm:$0xff] }
  0x14   :  { %24110 = vmatprep.subr.bf16.mxu0 %v31465_v0  ;;  %18958 = vmatprep.mubr.msk.f32.mxu0 %vm27646_vm0, %v31453_v1  ;;  %v88_v6 = vand.u32 4294901760, %v29_v3  ;;  %v91_v8 = vand.u32 4294901760, %v30_v4  ;;  %v94_v9 = vand.u32 4294901760, %v31_v7  ;;  %v32_v10 = vld [vmem:[#allocation2 + $0x20] sm:$0xff]  ;;  %v33_v11 = vld [vmem:[#allocation2 + $0x28] sm:$0xff]  ;;  %v34_v16 = vld [vmem:[#allocation2 + $0x30] sm:$0xff] }
  0x15   :  { %v97_v14 = vand.u32 4294901760, %v32_v10  ;;  %v100_v15 = vand.u32 4294901760, %v33_v11  ;;  %v35_v17 = vld [vmem:[#allocation2 + $0x38] sm:$0xff]  ;;  %v103_v19 = vand.u32 4294901760, %v34_v16  ;;  %v36_v21 = vld [vmem:[#allocation2 + $0x40] sm:$0xff]  ;;  %v37_v22 = vld [vmem:[#allocation2 + $0x48] sm:$0xff]  ;;  %v27700_v36 = vsub.f32 %v28_v2, %v85_v5 }
  0x16   :  { %v27686_v12 = vpack.c.bf16 %v88_v6, %v85_v5  ;;  %v27689_v13 = vpack.c.bf16 %v94_v9, %v91_v8  ;;  %v106_v20 = vand.u32 4294901760, %v35_v17  ;;  %v38_v23 = vld [vmem:[#allocation2 + $0x50] sm:$0xff]  ;;  %v39_v24 = vld [vmem:[#allocation2 + $0x58] sm:$0xff]  ;;  %v40_v25 = vld [vmem:[#allocation2 + $0x60] sm:$0xff]  ;;  %v109_v28 = vand.u32 4294901760, %v36_v21 }
  0x17   :  { %v27693_v18 = vpack.c.bf16 %v100_v15, %v97_v14  ;;  %v41_v26 = vld [vmem:[#allocation2 + $0x68] sm:$0xff]  ;;  %v112_v29 = vand.u32 4294901760, %v37_v22  ;;  %v42_v30 = vld [vmem:[#allocation2 + $0x70] sm:$0xff]  ;;  %v43_v31 = vld [vmem:[#allocation2 + $0x78] sm:$0xff]  ;;  %v115_v32 = vand.u32 4294901760, %v38_v23  ;;  %v118_v33 = vand.u32 4294901760, %v39_v24 }
  0x18   :  { %31698 = vst [vmem:[#allocation5_spill] sm:$0xff] %v27686_v12  ;;  %23968 = vmatpush3.bf16.msra.mxu1 %v27686_v12  ;;  %31699 = vst [vmem:[#allocation6_spill] sm:$0xff] %v27689_v13  ;;  %v27697_v27 = vpack.c.bf16 %v106_v20, %v103_v19  ;;  %v121_v34 = vand.u32 4294901760, %v40_v25  ;;  %v124_v35 = vand.u32 4294901760, %v41_v26  ;;  %v127_v37 = vand.u32 4294901760, %v42_v30 }
  0x19   :  { %23969 = vmatprep.subr.bf16.mxu1 %v31465_v0  ;;  %31700 = vst [vmem:[#allocation7_spill] sm:$0xff] %v27693_v18  ;;  %v130_v38 = vand.u32 4294901760, %v43_v31  ;;  %v27702_v39 = vsub.f32 %v29_v3, %v88_v6  ;;  %v27704_v40 = vsub.f32 %v30_v4, %v91_v8  ;;  %v27707_v41 = vpack.c.bf16 %v112_v29, %v109_v28 }
  0x1a   :  { %31701 = vst [vmem:[#allocation8_spill] sm:$0xff] %v27697_v27  ;;  %v27710_v42 = vpack.c.bf16 %v118_v33, %v115_v32  ;;  %v27712_v43 = vpack.c.bf16 %v124_v35, %v121_v34  ;;  %v173_v44 = vand.u32 4294901760, %v27700_v36  ;;  %v27715_v45 = vsub.f32 %v31_v7, %v94_v9 }
  0x1b   :  { %31702 = vst [vmem:[#allocation9_spill] sm:$0xff] %v27707_v41  ;;  %v27717_v46 = vsub.f32 %v32_v10, %v97_v14  ;;  %v27719_v47 = vpack.c.bf16 %v130_v38, %v127_v37  ;;  %v180_v48 = vand.u32 4294901760, %v27702_v39  ;;  %v187_v49 = vand.u32 4294901760, %v27704_v40 }
  0x1c   :  { %23971 = vmatpush3.bf16.msra.mxu1 %v27689_v13  ;;  %31703 = vst [vmem:[#allocation10_spill] sm:$0xff] %v27710_v42  ;;  %31704 = vst [vmem:[#allocation11_spill] sm:$0xff] %v27712_v43  ;;  %v27723_v50 = vsub.f32 %v33_v11, %v100_v15  ;;  %v27726_v51 = vsub.f32 %v34_v16, %v103_v19  ;;  %v27728_v52 = vsub.f32 %v35_v17, %v106_v20 }
  0x1d   :  { %23972 = vmatprep.subr.bf16.mxu1 %v31465_v0  ;;  %31705 = vst [vmem:[#allocation12_spill] sm:$0xff] %v27719_v47  ;;  %v27730_v53 = vsub.f32 %v36_v21, %v109_v28  ;;  %v27732_v54 = vsub.f32 %v37_v22, %v112_v29  ;;  %v27735_v55 = vsub.f32 %v38_v23, %v115_v32  ;;  %v194_v60 = vand.u32 4294901760, %v27715_v45 }
  0x1e   :  { %v27737_v56 = vsub.f32 %v39_v24, %v118_v33  ;;  %v27739_v57 = vsub.f32 %v40_v25, %v121_v34  ;;  %v27741_v58 = vsub.f32 %v41_v26, %v124_v35  ;;  %v174_v59 = vsub.f32 %v27700_v36, %v173_v44 }
  0x1f   :  { %v201_v61 = vand.u32 4294901760, %v27717_v46  ;;  %v27746_v62 = vsub.f32 %v42_v30, %v127_v37  ;;  %v181_v63 = vsub.f32 %v27702_v39, %v180_v48  ;;  %v188_v2 = vsub.f32 %v27704_v40, %v187_v49 }
  0x20   :  { %23974 = vmatpush3.bf16.msra.mxu1 %v27693_v18  ;;  %v208_v3 = vand.u32 4294901760, %v27723_v50  ;;  %v27751_v4 = vsub.f32 %v43_v31, %v130_v38  ;;  %v215_v5 = vand.u32 4294901760, %v27726_v51  ;;  %v222_v6 = vand.u32 4294901760, %v27728_v52 }
  0x21   :  { %23975 = vmatprep.subr.bf16.mxu1 %v31465_v0  ;;  %v229_v7 = vand.u32 4294901760, %v27730_v53  ;;  %v236_v8 = vand.u32 4294901760, %v27732_v54  ;;  %v243_v9 = vand.u32 4294901760, %v27735_v55  ;;  %v250_v10 = vand.u32 4294901760, %v27737_v56 }
  0x22   :  { %v257_v11 = vand.u32 4294901760, %v27739_v57  ;;  %v264_v14 = vand.u32 4294901760, %v27741_v58  ;;  %v271_v15 = vand.u32 4294901760, %v27746_v62  ;;  %v27764_v16 = vpack.c.bf16 %v180_v48, %v173_v44 }
  0x23   :  { %v27766_v17 = vpack.c.bf16 %v194_v60, %v187_v49  ;;  %v27768_v19 = vpack.c.bf16 %v208_v3, %v201_v61  ;;  %v278_v20 = vand.u32 4294901760, %v27751_v4  ;;  %v27771_v21 = vpack.c.bf16 %v222_v6, %v215_v5 }
  0x24   :  { %23977 = vmatpush3.bf16.msra.mxu1 %v27697_v27  ;;  %31706 = vst [vmem:[#allocation13_spill] sm:$0xff] %v27764_v16  ;;  %v27773_v22 = vpack.c.bf16 %v236_v8, %v229_v7  ;;  %v27775_v23 = vpack.c.bf16 %v250_v10, %v243_v9  ;;  %v175_v24 = vand.u32 4294901760, %v174_v59  ;;  %v182_v25 = vand.u32 4294901760, %v181_v63 }
  0x25   :  { %23978 = vmatprep.subr.bf16.mxu1 %v31465_v0  ;;  %31707 = vst [vmem:[#allocation14_spill] sm:$0xff] %v27766_v17  ;;  %31708 = vst [vmem:[#allocation15_spill] sm:$0xff] %v27768_v19  ;;  %v195_v26 = vsub.f32 %v27715_v45, %v194_v60  ;;  %v27779_v28 = vpack.c.bf16 %v264_v14, %v257_v11  ;;  %v27782_v29 = vpack.c.bf16 %v278_v20, %v271_v15 }
  0x26   :  { %31709 = vst [vmem:[#allocation16_spill] sm:$0xff] %v27771_v21  ;;  %31710 = vst [vmem:[#allocation17_spill] sm:$0xff] %v27773_v22  ;;  %v202_v30 = vsub.f32 %v27717_v46, %v201_v61  ;;  %v27786_v31 = vpack.c.bf16 %v182_v25, %v175_v24  ;;  %v189_v32 = vand.u32 4294901760, %v188_v2  ;;  %v209_v34 = vsub.f32 %v27723_v50, %v208_v3 }
  0x27   :  { %31711 = vst [vmem:[#allocation18_spill] sm:$0xff] %v27775_v23  ;;  %31712 = vst [vmem:[#allocation19_spill] sm:$0xff] %v27779_v28  ;;  %v196_v33 = vand.u32 4294901760, %v195_v26  ;;  %v216_v35 = vsub.f32 %v27726_v51, %v215_v5  ;;  %v223_v37 = vsub.f32 %v27728_v52, %v222_v6  ;;  %v230_v61 = vsub.f32 %v27730_v53, %v229_v7 }
  0x28   :  { %23980 = vmatpush3.bf16.msra.mxu1 %v27707_v41  ;;  %31713 = vst [vmem:[#allocation20_spill] sm:$0xff] %v27782_v29  ;;  %31714 = vst [vmem:[#allocation21_spill] sm:$0xff] %v27786_v31  ;;  %v203_v44 = vand.u32 4294901760, %v202_v30  ;;  %v210_v48 = vand.u32 4294901760, %v209_v34  ;;  %v237_v63 = vsub.f32 %v27732_v54, %v236_v8  ;;  %v244_v6 = vsub.f32 %v27735_v55, %v243_v9 }
  0x29   :  { %23981 = vmatprep.subr.bf16.mxu1 %v31465_v0  ;;  %v27794_v38 = vpack.c.bf16 %v196_v33, %v189_v32  ;;  %v217_v49 = vand.u32 4294901760, %v216_v35  ;;  %v224_v59 = vand.u32 4294901760, %v223_v37  ;;  %v231_v3 = vand.u32 4294901760, %v230_v61  ;;  %v27931_v61 = vld [vmem:[#allocation2 + $0x130] sm:$0xff] }
  0x2a   :  { %v27800_v60 = vpack.c.bf16 %v210_v48, %v203_v44  ;;  %v238_v5 = vand.u32 4294901760, %v237_v63  ;;  %v251_v24 = vsub.f32 %v27737_v56, %v250_v10  ;;  %v258_v25 = vsub.f32 %v27739_v57, %v257_v11  ;;  %v27917_v44 = vld [vmem:[#allocation2 + $0x128] sm:$0xff]  ;;  %v27933_v63 = vld [vmem:[#allocation2 + $0x138] sm:$0xff] }
  0x2b   :  { %31715 = vst [vmem:[#allocation22_spill] sm:$0xff] %v27794_v38  ;;  %v27805_v2 = vpack.c.bf16 %v224_v59, %v217_v49  ;;  %v245_v8 = vand.u32 4294901760, %v244_v6  ;;  %v265_v30 = vsub.f32 %v27741_v58, %v264_v14  ;;  %v272_v33 = vsub.f32 %v27746_v62, %v271_v15 }
  0x2c   :  { %23983 = vmatpush3.bf16.msra.mxu1 %v27710_v42  ;;  %31716 = vst [vmem:[#allocation23_spill] sm:$0xff] %v27800_v60  ;;  %v27813_v7 = vpack.c.bf16 %v238_v5, %v231_v3  ;;  %v252_v26 = vand.u32 4294901760, %v251_v24  ;;  %v259_v32 = vand.u32 4294901760, %v258_v25  ;;  %v279_v11 = vsub.f32 %v27751_v4, %v278_v20  ;;  %v27947_v24 = vld [vmem:[#allocation2 + $0x140] sm:$0xff]  ;;  %v27949_v25 = vld [vmem:[#allocation2 + $0x148] sm:$0xff] }
  0x2d   :  { %23984 = vmatprep.subr.bf16.mxu1 %v31465_v0  ;;  %31717 = vst [vmem:[#allocation24_spill] sm:$0xff] %v27805_v2  ;;  %v266_v10 = vand.u32 4294901760, %v265_v30  ;;  %v273_v35 = vand.u32 4294901760, %v272_v33  ;;  %v27834_v15 = vpack.c.bf16 %v27702_v39, %v27700_v36  ;;  %v27841_v20 = vpack.c.bf16 %v27715_v45, %v27704_v40 }
  0x2e   :  { %31718 = vst [vmem:[#allocation25_spill] sm:$0xff] %v27813_v7  ;;  %v27818_v9 = vpack.c.bf16 %v252_v26, %v245_v8  ;;  %v280_v14 = vand.u32 4294901760, %v279_v11  ;;  %v27849_v36 = vpack.c.bf16 %v27723_v50, %v27717_v46  ;;  %v27855_v39 = vpack.c.bf16 %v27728_v52, %v27726_v51  ;;  %v27894_v51 = vld [vmem:[#allocation2 + $0x100] sm:$0xff]  ;;  %v27896_v52 = vld [vmem:[#allocation2 + $0x108] sm:$0xff] }
  0x2f   :  { %v27824_v34 = vpack.c.bf16 %v266_v10, %v259_v32  ;;  %31722 = vst [vmem:[#allocation29_spill] sm:$0xff] %v27834_v15  ;;  %31723 = vst [vmem:[#allocation30_spill] sm:$0xff] %v27841_v20  ;;  %v27861_v40 = vpack.c.bf16 %v27732_v54, %v27730_v53  ;;  %v27867_v45 = vpack.c.bf16 %v27737_v56, %v27735_v55  ;;  %v27899_v53 = vld [vmem:[#allocation2 + $0x110] sm:$0xff]  ;;  %v27901_v54 = vld [vmem:[#allocation2 + $0x118] sm:$0xff]  ;;  %v715_v55 = vand.u32 4294901760, %v27894_v51 }
  0x30   :  { %23986 = vmatpush3.bf16.msra.mxu1 %v27712_v43  ;;  %31719 = vst [vmem:[#allocation26_spill] sm:$0xff] %v27818_v9  ;;  %v27828_v37 = vpack.c.bf16 %v280_v14, %v273_v35  ;;  %31724 = vst [vmem:[#allocation31_spill] sm:$0xff] %v27849_v36  ;;  %v27873_v46 = vpack.c.bf16 %v27741_v58, %v27739_v57  ;;  %v27879_v50 = vpack.c.bf16 %v27751_v4, %v27746_v62  ;;  %v27915_v4 = vld [vmem:[#allocation2 + $0x120] sm:$0xff]  ;;  %v27963_v32 = vld [vmem:[#allocation2 + $0x150] sm:$0xff] }
  0x31   :  { %23987 = vmatprep.subr.bf16.mxu1 %v31465_v0  ;;  %31720 = vst [vmem:[#allocation27_spill] sm:$0xff] %v27824_v34  ;;  %31725 = vst [vmem:[#allocation32_spill] sm:$0xff] %v27855_v39  ;;  %v718_v56 = vand.u32 4294901760, %v27896_v52  ;;  %v31458_v58 = vand.u32 4294901760, %v27899_v53  ;;  %v31457_v62 = vand.u32 4294901760, %v27901_v54  ;;  %v31452_v49 = vand.u32 4294901760, %v27915_v4 }
  0x32   :  { %31721 = vst [vmem:[#allocation28_spill] sm:$0xff] %v27828_v37  ;;  %31726 = vst [vmem:[#allocation33_spill] sm:$0xff] %v27861_v40  ;;  %v31451_v59 = vand.u32 4294901760, %v27917_v44  ;;  %v31450_v5 = vand.u32 4294901760, %v27931_v61  ;;  %v31447_v6 = vand.u32 4294901760, %v27933_v63  ;;  %v31449_v26 = vand.u32 4294901760, %v27947_v24 }
  0x33   :  { %31727 = vst [vmem:[#allocation34_spill] sm:$0xff] %v27867_v45  ;;  %31728 = vst [vmem:[#allocation35_spill] sm:$0xff] %v27873_v46  ;;  %v27911_v57 = vpack.c.bf16 %v718_v56, %v715_v55  ;;  %v27924_v48 = vpack.c.bf16 %v31457_v62, %v31458_v58  ;;  %v31448_v30 = vand.u32 4294901760, %v27949_v25  ;;  %v27965_v10 = vld [vmem:[#allocation2 + $0x158] sm:$0xff]  ;;  %v31456_v11 = vand.u32 4294901760, %v27963_v32  ;;  %v27982_v14 = vld [vmem:[#allocation2 + $0x160] sm:$0xff] }
  0x34   :  { %23989 = vmatpush3.bf16.msra.mxu1 %v27719_v47  ;;  %31729 = vst [vmem:[#allocation36_spill] sm:$0xff] %v27879_v50  ;;  %v27940_v3 = vpack.c.bf16 %v31451_v59, %v31452_v49  ;;  %v27956_v8 = vpack.c.bf16 %v31447_v6, %v31450_v5  ;;  %v31455_v35 = vand.u32 4294901760, %v27965_v10  ;;  %v27984_v6 = vld [vmem:[#allocation2 + $0x168] sm:$0xff]  ;;  %v27998_v59 = vld [vmem:[#allocation2 + $0x170] sm:$0xff]  ;;  %v28000_v49 = vld [vmem:[#allocation2 + $0x178] sm:$0xff]  ;;  %v28019_v58 = vsub.f32 %v27894_v51, %v715_v55 }
  0x35   :  { %23990 = vmatprep.subr.bf16.mxu1 %v31465_v0  ;;  %31730 = vst [vmem:[#allocation37_spill] sm:$0xff] %v27911_v57  ;;  %24112 = vmatpush3.bf16.msra.mxu0 %v27911_v57  ;;  %31731 = vst [vmem:[#allocation38_spill] sm:$0xff] %v27924_v48  ;;  %v27973_v33 = vpack.c.bf16 %v31448_v30, %v31449_v26  ;;  %v751_v26 = vand.u32 4294901760, %v27982_v14  ;;  %v754_v5 = vand.u32 4294901760, %v27984_v6  ;;  %v31739_v51 = vand.u32 4294901760, %v27901_v54 }
  0x36   :  { %24113 = vmatprep.subr.bf16.mxu0 %v31465_v0  ;;  %31732 = vst [vmem:[#allocation39_spill] sm:$0xff] %v27940_v3  ;;  %31733 = vst [vmem:[#allocation40_spill] sm:$0xff] %v27956_v8  ;;  %v27991_v30 = vpack.c.bf16 %v31455_v35, %v31456_v11  ;;  %v757_v35 = vand.u32 4294901760, %v27998_v59  ;;  %v760_v11 = vand.u32 4294901760, %v28000_v49 }
  0x37   :  { %18749 = vmatmul.mubr.f32.vlgmr.msra.gmra.mrb[0].mxu1 %v31453_v1  ;;  %31734 = vst [vmem:[#allocation41_spill] sm:$0xff] %v27973_v33  ;;  %v28038_v55 = vsub.f32 %v27901_v54, %v31739_v51  ;;  %v31745_v51 = vand.u32 4294901760, %v27917_v44 }
  0x38   :  { %23992 = vmatpush3.bf16.msra.mxu1 %v27786_v31  ;;  %18783 = vmatprep.mubr.msk.f32.mxu1 %vm27646_vm0, %v31453_v1  ;;  %31735 = vst [vmem:[#allocation42_spill] sm:$0xff] %v27991_v30  ;;  %v28011_v62 = vpack.c.bf16 %v760_v11, %v757_v35 }
  0x39   :  { %23993 = vmatprep.subr.bf16.mxu1 %v31465_v0  ;;  %24115 = vmatpush3.bf16.msra.mxu0 %v27924_v48 }
  0x3a   :  { %24116 = vmatprep.subr.bf16.mxu0 %v31465_v0  ;;  %31737 = vst [vmem:[#allocation44_spill] sm:$0xff] %v28011_v62 }
  0x3c   :  { %23995 = vmatpush3.bf16.msra.mxu1 %v27794_v38 }
  0x3d   :  { %23996 = vmatprep.subr.bf16.mxu1 %v31465_v0  ;;  %24118 = vmatpush3.bf16.msra.mxu0 %v27940_v3 }
  0x3e   :  { %24119 = vmatprep.subr.bf16.mxu0 %v31465_v0 }
  0x40   :  { %23998 = vmatpush3.bf16.msra.mxu1 %v27800_v60 }
  0x41   :  { %23999 = vmatprep.subr.bf16.mxu1 %v31465_v0  ;;  %24121 = vmatpush3.bf16.msra.mxu0 %v27956_v8 }
  0x42   :  { %24122 = vmatprep.subr.bf16.mxu0 %v31465_v0 }
  0x44   :  { %24001 = vmatpush3.bf16.msra.mxu1 %v27805_v2 }
  0x45   :  { %24002 = vmatprep.subr.bf16.mxu1 %v31465_v0  ;;  %24124 = vmatpush3.bf16.msra.mxu0 %v27973_v33 }
  0x46   :  { %24125 = vmatprep.subr.bf16.mxu0 %v31465_v0 }
  0x48   :  { %24004 = vmatpush3.bf16.msra.mxu1 %v27813_v7 }
  0x49   :  { %24005 = vmatprep.subr.bf16.mxu1 %v31465_v0  ;;  %24127 = vmatpush3.bf16.msra.mxu0 %v27991_v30 }
  0x4a   :  { %24128 = vmatprep.subr.bf16.mxu0 %v31465_v0 }
  0x4c   :  { %24007 = vmatpush3.bf16.msra.mxu1 %v27818_v9 }
  0x4d   :  { %24008 = vmatprep.subr.bf16.mxu1 %v31465_v0 }
  0x50   :  { %24010 = vmatpush3.bf16.msra.mxu1 %v27824_v34 }
  0x51   :  { %24011 = vmatprep.subr.bf16.mxu1 %v31465_v0 }
  0x54   :  { %24013 = vmatpush3.bf16.msra.mxu1 %v27828_v37 }
  0x55   :  { %24014 = vmatprep.subr.bf16.mxu1 %v31465_v0 }
  0x57   :  { %18784 = vmatmul.mubr.f32.vlgmr.msra.gmra.mrb[2].mxu1 %v31453_v1 }
  0x58   :  { %24016 = vmatpush3.bf16.msra.mxu1 %v27834_v15  ;;  %18818 = vmatprep.mubr.msk.f32.mxu1 %vm27646_vm0, %v31453_v1 }
  0x59   :  { %24017 = vmatprep.subr.bf16.mxu1 %v31465_v0 }
  0x5c   :  { %24019 = vmatpush3.bf16.msra.mxu1 %v27841_v20 }
  0x5d   :  { %24020 = vmatprep.subr.bf16.mxu1 %v31465_v0 }
  0x60   :  { %24022 = vmatpush3.bf16.msra.mxu1 %v27849_v36 }
  0x61   :  { %24023 = vmatprep.subr.bf16.mxu1 %v31465_v0 }
  0x64   :  { %24025 = vmatpush3.bf16.msra.mxu1 %v27855_v39 }
  0x65   :  { %24026 = vmatprep.subr.bf16.mxu1 %v31465_v0 }
  0x68   :  { %24028 = vmatpush3.bf16.msra.mxu1 %v27861_v40 }
  0x69   :  { %24029 = vmatprep.subr.bf16.mxu1 %v31465_v0 }
  0x6c   :  { %24031 = vmatpush3.bf16.msra.mxu1 %v27867_v45 }
  0x6d   :  { %24032 = vmatprep.subr.bf16.mxu1 %v31465_v0 }
  0x70   :  { %24034 = vmatpush3.bf16.msra.mxu1 %v27873_v46 }
  0x71   :  { %24035 = vmatprep.subr.bf16.mxu1 %v31465_v0 }
  0x74   :  { %24037 = vmatpush3.bf16.msra.mxu1 %v27879_v50 }
  0x75   :  { %24038 = vmatprep.subr.bf16.mxu1 %v31465_v0 }
  0x77   :  { %18819 = vmatmul.mubr.f32.vlgmr.msra.gmra.mrb[4].mxu1 %v31453_v1 }
  0x78   :  { %24040 = vmatpush3.bf16.msra.mxu1 %v27686_v12  ;;  %18853 = vmatprep.mubr.msk.f32.mxu1 %vm27646_vm0, %v31453_v1 }
  0x79   :  { %24041 = vmatprep.subr.bf16.mxu1 %v31465_v0 }
  0x7c   :  { %24043 = vmatpush3.bf16.msra.mxu1 %v27689_v13 }
  0x7d   :  { %24044 = vmatprep.subr.bf16.mxu1 %v31465_v0 }
  0x80   :  { %24046 = vmatpush3.bf16.msra.mxu1 %v27693_v18 }
  0x81   :  { %24047 = vmatprep.subr.bf16.mxu1 %v31465_v0 }
  0x84   :  { %24049 = vmatpush3.bf16.msra.mxu1 %v27697_v27 }
  0x85   :  { %24050 = vmatprep.subr.bf16.mxu1 %v31465_v0 }
  0x88   :  { %24052 = vmatpush3.bf16.msra.mxu1 %v27707_v41 }
  0x89   :  { %24053 = vmatprep.subr.bf16.mxu1 %v31465_v0 }
  0x8c   :  { %24055 = vmatpush3.bf16.msra.mxu1 %v27710_v42 }
  0x8d   :  { %24056 = vmatprep.subr.bf16.mxu1 %v31465_v0 }
  0x90   :  { %24058 = vmatpush3.bf16.msra.mxu1 %v27712_v43 }
  0x91   :  { %24059 = vmatprep.subr.bf16.mxu1 %v31465_v0 }
  0x94   :  { %24061 = vmatpush3.bf16.msra.mxu1 %v27719_v47 }
  0x95   :  { %24062 = vmatprep.subr.bf16.mxu1 %v31465_v0 }
  0x97   :  { %18854 = vmatmul.mubr.f32.vlgmr.msra.gmra.mrb[6].mxu1 %v31453_v1 }
  0x98   :  { %24064 = vmatpush3.bf16.msra.mxu1 %v27764_v16  ;;  %18888 = vmatprep.mubr.msk.f32.mxu1 %vm27646_vm0, %v31453_v1  ;;  %v28003_v1 = vpack.c.bf16 %v754_v5, %v751_v26 }
  0x99   :  { %24065 = vmatprep.subr.bf16.mxu1 %v31465_v0 }
  0x9a   :  { %31736 = vst [vmem:[#allocation43_spill] sm:$0xff] %v28003_v1  ;;  %24130 = vmatpush3.bf16.msra.mxu0 %v28003_v1 }
  0x9b   :  { %24131 = vmatprep.subr.bf16.mxu0 %v31465_v0 }
  0x9c   :  { %24067 = vmatpush3.bf16.msra.mxu1 %v27766_v17 }
  0x9d   :  { %24068 = vmatprep.subr.bf16.mxu1 %v31465_v0 }
  0x9e   :  { %24133 = vmatpush3.bf16.msra.mxu0 %v28011_v62 }
  0x9f   :  { %24158 = vmatprep.subr.bf16.mxu0 %v31465_v0 }
  0xa0   :  { %24070 = vmatpush3.bf16.msra.mxu1 %v27768_v19  ;;  %v28024_v19 = vsub.f32 %v27896_v52, %v718_v56  ;;  %v31741_v56 = vmov 0.0  }
  0xa1   :  { %24071 = vmatprep.subr.bf16.mxu1 %v31465_v0  ;;  %18959 = vmatmul.mubr.f32.vlgmr.msra.gmra.mrb[0].mxu0 %v31741_v56 }
  0xa2   :  { %v28042_v52 = vpack.c.bf16 %v28024_v19, %v28019_v58  ;;  %19028 = vmatprep.mubr.msk.f32.mxu0 %vm27646_vm0, %v31741_v56 }
  0xa4   :  { %24073 = vmatpush3.bf16.msra.mxu1 %v27771_v21  ;;  %v31738_v21 = vand.u32 4294901760, %v27899_v53  ;;  %31740 = vst [vmem:[#allocation45_spill] sm:$0xff] %v28042_v52  ;;  %24160 = vmatpush3.bf16.msra.mxu0 %v28042_v52 }
  0xa5   :  { %24074 = vmatprep.subr.bf16.mxu1 %v31465_v0 }
  0xa6   :  { %v28033_v17 = vsub.f32 %v27899_v53, %v31738_v21  ;;  %v31743_v21 = vmov 0.0|0.0   ;;  %v31744_v53 = vand.u32 4294901760, %v27915_v4 }
  0xa7   :  { %24161 = vmatprep.subr.bf16.mxu0 %v31743_v21 }
  0xa8   :  { %24076 = vmatpush3.bf16.msra.mxu1 %v27773_v22  ;;  %v28056_v54 = vsub.f32 %v27915_v4, %v31744_v53  ;;  %v28061_v22 = vsub.f32 %v27917_v44, %v31745_v51  ;;  %v31747_v4 = vand.u32 4294901760, %v27931_v61  ;;  %v31748_v53 = vand.u32 4294901760, %v27933_v63 }
  0xa9   :  { %24077 = vmatprep.subr.bf16.mxu1 %v31465_v0  ;;  %v28048_v0 = vpack.c.bf16 %v28038_v55, %v28033_v17 }
  0xaa   :  { %v28068_v52 = vpack.c.bf16 %v28061_v22, %v28056_v54  ;;  %v28076_v44 = vsub.f32 %v27931_v61, %v31747_v4  ;;  %v28081_v51 = vsub.f32 %v27933_v63, %v31748_v53  ;;  %v31750_v61 = vand.u32 4294901760, %v27947_v24 }
  0xab   :  { %31742 = vst [vmem:[#allocation46_spill] sm:$0xff] %v28048_v0  ;;  %24163 = vmatpush3.bf16.msra.mxu0 %v28048_v0  ;;  %v31751_v63 = vand.u32 4294901760, %v27949_v25 }
  0xac   :  { %24079 = vmatpush3.bf16.msra.mxu1 %v27775_v23  ;;  %31746 = vst [vmem:[#allocation47_spill] sm:$0xff] %v28068_v52  ;;  %24164 = vmatprep.subr.bf16.mxu0 %v31743_v21  ;;  %v28086_v0 = vpack.c.bf16 %v28081_v51, %v28076_v44  ;;  %v28094_v4 = vsub.f32 %v27947_v24, %v31750_v61  ;;  %v31753_v24 = vand.u32 4294901760, %v27963_v32  ;;  %v31754_v61 = vand.u32 4294901760, %v27965_v10 }
  0xad   :  { %24080 = vmatprep.subr.bf16.mxu1 %v31743_v21  ;;  %v28099_v53 = vsub.f32 %v27949_v25, %v31751_v63 }
  0xae   :  { %31749 = vst [vmem:[#allocation48_spill] sm:$0xff] %v28086_v0  ;;  %v28114_v25 = vsub.f32 %v27963_v32, %v31753_v24  ;;  %v28119_v63 = vsub.f32 %v27965_v10, %v31754_v61  ;;  %v28131_v32 = vsub.f32 %v27982_v14, %v751_v26  ;;  %v28134_v10 = vsub.f32 %v27984_v6, %v754_v5 }
  0xaf   :  { %24166 = vmatpush3.bf16.msra.mxu0 %v28068_v52  ;;  %v28105_v52 = vpack.c.bf16 %v28099_v53, %v28094_v4  ;;  %v28145_v61 = vsub.f32 %v27998_v59, %v757_v35  ;;  %v28148_v26 = vsub.f32 %v28000_v49, %v760_v11  ;;  %v803_v6 = vand.u32 4294901760, %v28019_v58 }
  0xb0   :  { %24082 = vmatpush3.bf16.msra.mxu1 %v27779_v28  ;;  %24167 = vmatprep.subr.bf16.mxu0 %v31743_v21  ;;  %v28139_v24 = vpack.c.bf16 %v28134_v10, %v28131_v32  ;;  %v810_v59 = vand.u32 4294901760, %v28024_v19  ;;  %v817_v49 = vand.u32 4294901760, %v28033_v17  ;;  %v824_v11 = vand.u32 4294901760, %v28038_v55 }
  0xb1   :  { %24083 = vmatprep.subr.bf16.mxu1 %v31743_v21  ;;  %31752 = vst [vmem:[#allocation49_spill] sm:$0xff] %v28105_v52  ;;  %v28153_v5 = vpack.c.bf16 %v28148_v26, %v28145_v61  ;;  %v852_v28 = vand.u32 4294901760, %v28081_v51 }
  0xb2   :  { %31756 = vst [vmem:[#allocation51_spill] sm:$0xff] %v28139_v24  ;;  %v28166_v35 = vpack.c.bf16 %v810_v59, %v803_v6  ;;  %v28170_v14 = vpack.c.bf16 %v824_v11, %v817_v49 }
  0xb3   :  { %24169 = vmatpush3.bf16.msra.mxu0 %v28086_v0  ;;  %v28125_v0 = vpack.c.bf16 %v28119_v63, %v28114_v25  ;;  %31757 = vst [vmem:[#allocation52_spill] sm:$0xff] %v28153_v5 }
  0xb4   :  { %24085 = vmatpush3.bf16.msra.mxu1 %v27782_v29  ;;  %24170 = vmatprep.subr.bf16.mxu0 %v31743_v21  ;;  %31758 = vst [vmem:[#allocation53_spill] sm:$0xff] %v28166_v35  ;;  %31759 = vst [vmem:[#allocation54_spill] sm:$0xff] %v28170_v14  ;;  %v825_v29 = vsub.f32 %v28038_v55, %v824_v11  ;;  %v859_v11 = vand.u32 4294901760, %v28094_v4 }
  0xb5   :  { %24086 = vmatprep.subr.bf16.mxu1 %v31743_v21  ;;  %31755 = vst [vmem:[#allocation50_spill] sm:$0xff] %v28125_v0 }
  0xb7   :  { %18889 = vmatmul.mubr.f32.vlgmr.msra.gmra.mrb[8].mxu1 %v31741_v56  ;;  %24172 = vmatpush3.bf16.msra.mxu0 %v28105_v52  ;;  %v838_v52 = vand.u32 4294901760, %v28061_v22 }
  0xb8   :  { %24088 = vmatpush3.bf16.msra.mxu1 %v27686_v12  ;;  %18923 = vmatprep.mubr.msk.f32.mxu1 %vm27646_vm0, %v31741_v56 }
  0xb9   :  { %24089 = vmatprep.subr.bf16.mxu1 %v31743_v21  ;;  %24173 = vmatprep.subr.bf16.mxu0 %v31743_v21 }
  0xbb   :  { %24175 = vmatpush3.bf16.msra.mxu0 %v28125_v0  ;;  %v831_v0 = vand.u32 4294901760, %v28056_v54 }
  0xbc   :  { %24091 = vmatpush3.bf16.msra.mxu1 %v27689_v13  ;;  %24176 = vmatprep.subr.bf16.mxu0 %v31743_v21 }
  0xbd   :  { %24092 = vmatprep.subr.bf16.mxu1 %v31743_v21 }
  0xbf   :  { %24178 = vmatpush3.bf16.msra.mxu0 %v28139_v24  ;;  %v811_v24 = vsub.f32 %v28024_v19, %v810_v59  ;;  %v845_v59 = vand.u32 4294901760, %v28076_v44 }
  0xc0   :  { %24094 = vmatpush3.bf16.msra.mxu1 %v27693_v18  ;;  %24179 = vmatprep.subr.bf16.mxu0 %v31743_v21 }
  0xc1   :  { %24095 = vmatprep.subr.bf16.mxu1 %v31743_v21  ;;  %v28192_v55 = vpack.c.bf16 %v852_v28, %v845_v59 }
  0xc3   :  { %24181 = vmatpush3.bf16.msra.mxu0 %v28153_v5  ;;  %v804_v5 = vsub.f32 %v28019_v58, %v803_v6  ;;  %v28184_v58 = vpack.c.bf16 %v838_v52, %v831_v0  ;;  %v812_v6 = vand.u32 4294901760, %v811_v24  ;;  %31761 = vst [vmem:[#allocation56_spill] sm:$0xff] %v28192_v55  ;;  %v832_v24 = vsub.f32 %v28056_v54, %v831_v0 }
  0xc4   :  { %24097 = vmatpush3.bf16.msra.mxu1 %v27697_v27  ;;  %24206 = vmatprep.subr.bf16.mxu0 %v31743_v21  ;;  %v853_v54 = vsub.f32 %v28081_v51, %v852_v28 }
  0xc5   :  { %24098 = vmatprep.subr.bf16.mxu1 %v31743_v21  ;;  %31760 = vst [vmem:[#allocation55_spill] sm:$0xff] %v28184_v58  ;;  %v805_v19 = vand.u32 4294901760, %v804_v5  ;;  %v839_v5 = vsub.f32 %v28061_v22, %v838_v52  ;;  %v833_v0 = vand.u32 4294901760, %v832_v24  ;;  %v846_v52 = vsub.f32 %v28076_v44, %v845_v59 }
  0xc6   :  { %19029 = vmatmul.mubr.f32.vlgmr.msra.gmra.mrb[2].mxu0 %v31741_v56  ;;  %v854_v51 = vand.u32 4294901760, %v853_v54 }
  0xc7   :  { %24208 = vmatpush3.bf16.msra.mxu0 %v28166_v35  ;;  %19098 = vmatprep.mubr.msk.f32.mxu0 %vm27646_vm0, %v31741_v56  ;;  %v818_v35 = vsub.f32 %v28033_v17, %v817_v49  ;;  %v826_v17 = vand.u32 4294901760, %v825_v29  ;;  %v28195_v49 = vpack.c.bf16 %v812_v6, %v805_v19  ;;  %v866_v29 = vand.u32 4294901760, %v28099_v53 }
  0xc8   :  { %24100 = vmatpush3.bf16.msra.mxu1 %v27707_v41  ;;  %24209 = vmatprep.subr.bf16.mxu0 %v31743_v21  ;;  %v840_v22 = vand.u32 4294901760, %v839_v5  ;;  %v880_v6 = vand.u32 4294901760, %v28119_v63  ;;  %v847_v44 = vand.u32 4294901760, %v846_v52  ;;  %v887_v5 = vand.u32 4294901760, %v28131_v32 }
  0xc9   :  { %24101 = vmatprep.subr.bf16.mxu1 %v31743_v21  ;;  %v819_v23 = vand.u32 4294901760, %v818_v35  ;;  %31762 = vst [vmem:[#allocation57_spill] sm:$0xff] %v28195_v49  ;;  %v28207_v19 = vpack.c.bf16 %v866_v29, %v859_v11  ;;  %v867_v59 = vsub.f32 %v28099_v53, %v866_v29  ;;  %v901_v52 = vand.u32 4294901760, %v28145_v61 }
  0xca   :  { %v28223_v28 = vpack.c.bf16 %v840_v22, %v833_v0  ;;  %v28236_v22 = vpack.c.bf16 %v854_v51, %v847_v44 }
  0xcb   :  { %24211 = vmatpush3.bf16.msra.mxu0 %v28170_v14  ;;  %v28204_v35 = vpack.c.bf16 %v826_v17, %v819_v23  ;;  %31764 = vst [vmem:[#allocation59_spill] sm:$0xff] %v28207_v19  ;;  %v873_v23 = vand.u32 4294901760, %v28114_v25  ;;  %v860_v17 = vsub.f32 %v28094_v4, %v859_v11  ;;  %v894_v4 = vand.u32 4294901760, %v28134_v10 }
  0xcc   :  { %24103 = vmatpush3.bf16.msra.mxu1 %v27710_v42  ;;  %24212 = vmatprep.subr.bf16.mxu0 %v31743_v21  ;;  %31766 = vst [vmem:[#allocation61_spill] sm:$0xff] %v28223_v28  ;;  %31768 = vst [vmem:[#allocation63_spill] sm:$0xff] %v28236_v22  ;;  %v868_v29 = vand.u32 4294901760, %v867_v59 }
  0xcd   :  { %24104 = vmatprep.subr.bf16.mxu1 %v31743_v21  ;;  %31763 = vst [vmem:[#allocation58_spill] sm:$0xff] %v28204_v35  ;;  %v28220_v24 = vpack.c.bf16 %v880_v6, %v873_v23  ;;  %v874_v11 = vsub.f32 %v28114_v25, %v873_v23  ;;  %v28233_v0 = vpack.c.bf16 %v894_v4, %v887_v5  ;;  %v861_v53 = vand.u32 4294901760, %v860_v17 }
  0xce   :  { %v908_v25 = vand.u32 4294901760, %v28148_v26  ;;  %v888_v17 = vsub.f32 %v28131_v32, %v887_v5  ;;  %v895_v44 = vsub.f32 %v28134_v10, %v894_v4 }
  0xcf   :  { %24214 = vmatpush3.bf16.msra.mxu0 %v28184_v58  ;;  %31765 = vst [vmem:[#allocation60_spill] sm:$0xff] %v28220_v24  ;;  %31767 = vst [vmem:[#allocation62_spill] sm:$0xff] %v28233_v0  ;;  %v875_v54 = vand.u32 4294901760, %v874_v11  ;;  %v902_v11 = vsub.f32 %v28145_v61, %v901_v52 }
  0xd0   :  { %24106 = vmatpush3.bf16.msra.mxu1 %v27712_v43  ;;  %24215 = vmatprep.subr.bf16.mxu0 %v31743_v21  ;;  %v28243_v23 = vpack.c.bf16 %v908_v25, %v901_v52  ;;  %v896_v59 = vand.u32 4294901760, %v895_v44  ;;  %v46_v52 = vld [vmem:[#allocation2 + $0x88] sm:$0xff] }
  0xd1   :  { %24107 = vmatprep.subr.bf16.mxu1 %v31743_v21  ;;  %v903_v10 = vand.u32 4294901760, %v902_v11 }
  0xd2   :  { %31769 = vst [vmem:[#allocation64_spill] sm:$0xff] %v28243_v23 }
  0xd3   :  { %24217 = vmatpush3.bf16.msra.mxu0 %v28192_v55 }
  0xd4   :  { %24109 = vmatpush3.bf16.msra.mxu1 %v27719_v47  ;;  %24218 = vmatprep.subr.bf16.mxu0 %v31743_v21 }
  0xd5   :  { %24134 = vmatprep.subr.bf16.mxu1 %v31743_v21 }
  0xd7   :  { %18924 = vmatmul.mubr.f32.vlgmr.msra.gmra.mrb[10].mxu1 %v31741_v56  ;;  %24220 = vmatpush3.bf16.msra.mxu0 %v28207_v19  ;;  %v881_v19 = vsub.f32 %v28119_v63, %v880_v6  ;;  %v28246_v6 = vpack.c.bf16 %v868_v29, %v861_v53  ;;  %v909_v53 = vsub.f32 %v28148_v26, %v908_v25  ;;  %v45_v29 = vld [vmem:[#allocation2 + $0x80] sm:$0xff]  ;;  %v47_v25 = vld [vmem:[#allocation2 + $0x90] sm:$0xff] }
  0xd8   :  { %24136 = vmatpush3.bf16.msra.mxu1 %v28195_v49  ;;  %18993 = vmatprep.mubr.msk.f32.mxu1 %vm27646_vm0, %v31741_v56 }
  0xd9   :  { %24137 = vmatprep.subr.bf16.mxu1 %v31743_v21  ;;  %24221 = vmatprep.subr.bf16.mxu0 %v31743_v21  ;;  %v882_v63 = vand.u32 4294901760, %v881_v19  ;;  %31770 = vst [vmem:[#allocation65_spill] sm:$0xff] %v28246_v6  ;;  %v889_v19 = vand.u32 4294901760, %v888_v17  ;;  %v910_v5 = vand.u32 4294901760, %v909_v53  ;;  %v48_v17 = vld [vmem:[#allocation2 + $0x98] sm:$0xff]  ;;  %v49_v53 = vld [vmem:[#allocation2 + $0xa0] sm:$0xff] }
  0xdb   :  { %24223 = vmatpush3.bf16.msra.mxu0 %v28220_v24  ;;  %v28252_v51 = vpack.c.bf16 %v882_v63, %v875_v54  ;;  %v28264_v32 = vpack.c.bf16 %v896_v59, %v889_v19  ;;  %v28268_v61 = vpack.c.bf16 %v910_v5, %v903_v10  ;;  %v1343_v54 = vand.u32 4294901760, %v45_v29  ;;  %v50_v10 = vld [vmem:[#allocation2 + $0xa8] sm:$0xff] }
  0xdc   :  { %24139 = vmatpush3.bf16.msra.mxu1 %v28204_v35  ;;  %24224 = vmatprep.subr.bf16.mxu0 %v31743_v21  ;;  %v1346_v63 = vand.u32 4294901760, %v46_v52  ;;  %v1349_v19 = vand.u32 4294901760, %v47_v25  ;;  %v1352_v59 = vand.u32 4294901760, %v48_v17  ;;  %v1355_v5 = vand.u32 4294901760, %v49_v53 }
  0xdd   :  { %24140 = vmatprep.subr.bf16.mxu1 %v31743_v21  ;;  %31771 = vst [vmem:[#allocation66_spill] sm:$0xff] %v28252_v51  ;;  %31772 = vst [vmem:[#allocation67_spill] sm:$0xff] %v28264_v32 }
  0xde   :  { %31773 = vst [vmem:[#allocation68_spill] sm:$0xff] %v28268_v61  ;;  %v28288_v44 = vpack.c.bf16 %v1346_v63, %v1343_v54  ;;  %v28291_v11 = vpack.c.bf16 %v1352_v59, %v1349_v19 }
  0xdf   :  { %24226 = vmatpush3.bf16.msra.mxu0 %v28233_v0  ;;  %v52_v0 = vld [vmem:[#allocation2 + $0xb8] sm:$0xff] }
  0xe0   :  { %24142 = vmatpush3.bf16.msra.mxu1 %v28223_v28  ;;  %24227 = vmatprep.subr.bf16.mxu0 %v31743_v21  ;;  %v1364_v58 = vand.u32 4294901760, %v52_v0 }
  0xe1   :  { %24143 = vmatprep.subr.bf16.mxu1 %v31743_v21 }
  0xe3   :  { %24229 = vmatpush3.bf16.msra.mxu0 %v28243_v23  ;;  %v51_v23 = vld [vmem:[#allocation2 + $0xb0] sm:$0xff] }
  0xe4   :  { %24145 = vmatpush3.bf16.msra.mxu1 %v28236_v22  ;;  %24254 = vmatprep.subr.bf16.mxu0 %v31743_v21  ;;  %v1361_v55 = vand.u32 4294901760, %v51_v23  ;;  %v28326_v22 = vsub.f32 %v47_v25, %v1349_v19 }
  0xe5   :  { %24146 = vmatprep.subr.bf16.mxu1 %v31743_v21 }
  0xe6   :  { %19099 = vmatmul.mubr.f32.vlgmr.msra.gmra.mrb[4].mxu0 %v31741_v56  ;;  %v28307_v14 = vpack.c.bf16 %v1364_v58, %v1361_v55 }
  0xe7   :  { %19168 = vmatprep.mubr.msk.f32.mxu0 %vm27646_vm0, %v31741_v56  ;;  %24256 = vmatpush3.bf16.msra.mxu0 %v28288_v44 }
  0xe8   :  { %24148 = vmatpush3.bf16.msra.mxu1 %v28246_v6  ;;  %24257 = vmatprep.subr.bf16.mxu0 %v31743_v21 }
  0xe9   :  { %24149 = vmatprep.subr.bf16.mxu1 %v31743_v21 }
  0xeb   :  { %24259 = vmatpush3.bf16.msra.mxu0 %v28291_v11 }
  0xec   :  { %24151 = vmatpush3.bf16.msra.mxu1 %v28252_v51  ;;  %24260 = vmatprep.subr.bf16.mxu0 %v31743_v21 }
  0xed   :  { %24152 = vmatprep.subr.bf16.mxu1 %v31743_v21 }
  0xf0   :  { %24154 = vmatpush3.bf16.msra.mxu1 %v28264_v32  ;;  %v28320_v32 = vsub.f32 %v46_v52, %v1346_v63 }
  0xf1   :  { %24155 = vmatprep.subr.bf16.mxu1 %v31743_v21 }
  0xf2   :  { %v31774_v25 = vand.u32 4294901760, %v28320_v32 }
  0xf4   :  { %24157 = vmatpush3.bf16.msra.mxu1 %v28268_v61  ;;  %v28318_v61 = vsub.f32 %v45_v29, %v1343_v54 }
  0xf5   :  { %24182 = vmatprep.subr.bf16.mxu1 %v31743_v21 }
  0xf6   :  { %v31521_v51 = vand.u32 4294901760, %v28318_v61 }
  0xf7   :  { %18994 = vmatmul.mubr.f32.vlgmr.msra.gmra.mrb[12].mxu1 %v31741_v56 }
  0xf8   :  { %24184 = vmatpush3.bf16.msra.mxu1 %v27911_v57  ;;  %19063 = vmatprep.mubr.msk.f32.mxu1 %vm27646_vm0, %v31741_v56  ;;  %v1437_v6 = vsub.f32 %v28318_v61, %v31521_v51 }
  0xf9   :  { %24185 = vmatprep.subr.bf16.mxu1 %v31743_v21 }
  0xfc   :  { %24187 = vmatpush3.bf16.msra.mxu1 %v27924_v48 }
  0xfd   :  { %24188 = vmatprep.subr.bf16.mxu1 %v31743_v21 }
 0x100   :  { %24190 = vmatpush3.bf16.msra.mxu1 %v27940_v3 }
 0x101   :  { %24191 = vmatprep.subr.bf16.mxu1 %v31743_v21 }
 0x104   :  { %24193 = vmatpush3.bf16.msra.mxu1 %v27956_v8 }
 0x105   :  { %24194 = vmatprep.subr.bf16.mxu1 %v31743_v21 }
 0x108   :  { %24196 = vmatpush3.bf16.msra.mxu1 %v27973_v33 }
 0x109   :  { %24197 = vmatprep.subr.bf16.mxu1 %v31743_v21 }
 0x10a   :  { %v166_v26 = vpop.f32.mrb[0].mxu1 }
 0x10b   :  { %v18750_v4 = vpop.f32.mrb[1].mxu1 }
 0x10c   :  { %24199 = vmatpush3.bf16.msra.mxu1 %v27991_v30  ;;  %v1358_v4 = vand.u32 4294901760, %v50_v10 }
 0x10d   :  { %24200 = vmatprep.subr.bf16.mxu1 %v31743_v21 }
 0x10e   :  { %v28299_v24 = vpack.c.bf16 %v1358_v4, %v1355_v5  ;;  %v28333_v29 = vsub.f32 %v50_v10, %v1358_v4  ;;  %v54_v10 = vld [vmem:[#allocation2 + $0xc8] sm:$0xff]  ;;  %v28349_v4 = vsub.f32 %v51_v23, %v1361_v55 }
 0x10f   :  { %v1370_v51 = vand.u32 4294901760, %v54_v10 }
 0x110   :  { %24202 = vmatpush3.bf16.msra.mxu1 %v28003_v1  ;;  %24262 = vmatpush3.bf16.msra.mxu0 %v28299_v24 }
 0x111   :  { %24203 = vmatprep.subr.bf16.mxu1 %v31743_v21  ;;  %24263 = vmatprep.subr.bf16.mxu0 %v31743_v21 }
 0x114   :  { %24205 = vmatpush3.bf16.msra.mxu1 %v28011_v62  ;;  %24265 = vmatpush3.bf16.msra.mxu0 %v28307_v14 }
 0x115   :  { %24230 = vmatprep.subr.bf16.mxu1 %v31743_v21  ;;  %24266 = vmatprep.subr.bf16.mxu0 %v31743_v21 }
 0x117   :  { %19064 = vmatmul.mubr.f32.vlgmr.msra.gmra.mrb[14].mxu1 %v31741_v56 }
 0x118   :  { %24232 = vmatpush3.bf16.msra.mxu1 %v27911_v57  ;;  %19133 = vmatprep.mubr.msk.f32.mxu1 %vm27646_vm0, %v31741_v56 }
 0x119   :  { %24233 = vmatprep.subr.bf16.mxu1 %v31743_v21 }
 0x11c   :  { %24235 = vmatpush3.bf16.msra.mxu1 %v27924_v48  ;;  %v28328_v48 = vsub.f32 %v48_v17, %v1352_v59  ;;  %v1444_v17 = vsub.f32 %v28320_v32, %v31774_v25  ;;  %v1438_v25 = vand.u32 4294901760, %v1437_v6  ;;  %v31775_v59 = vand.u32 4294901760, %v28326_v22 }
 0x11d   :  { %24236 = vmatprep.subr.bf16.mxu1 %v31743_v21  ;;  %v31538_v6 = vand.u32 4294901760, %v28349_v4 }
 0x11e   :  { %v1445_v19 = vand.u32 4294901760, %v1444_v17 }
 0x120   :  { %24238 = vmatpush3.bf16.msra.mxu1 %v27940_v3  ;;  %v28331_v3 = vsub.f32 %v49_v53, %v1355_v5  ;;  %v53_v53 = vld [vmem:[#allocation2 + $0xc0] sm:$0xff]  ;;  %v56_v5 = vld [vmem:[#allocation2 + $0xd8] sm:$0xff]  ;;  %v28376_v35 = vpack.c.bf16 %v1445_v19, %v1438_v25 }
 0x121   :  { %24239 = vmatprep.subr.bf16.mxu1 %v31743_v21  ;;  %v1376_v57 = vand.u32 4294901760, %v56_v5 }
 0x122   :  { %31779 = vst [vmem:[#allocation69_spill] sm:$0xff] %v28376_v35 }
 0x124   :  { %24241 = vmatpush3.bf16.msra.mxu1 %v27956_v8  ;;  %v55_v8 = vld [vmem:[#allocation2 + $0xd0] sm:$0xff] }
 0x125   :  { %24242 = vmatprep.subr.bf16.mxu1 %v31743_v21  ;;  %v1373_v28 = vand.u32 4294901760, %v55_v8 }
 0x128   :  { %24244 = vmatpush3.bf16.msra.mxu1 %v27973_v33  ;;  %v31776_v33 = vand.u32 4294901760, %v28328_v48 }
 0x129   :  { %24245 = vmatprep.subr.bf16.mxu1 %v31743_v21 }
 0x12a   :  { %v316_v52 = vpop.f32.mrb[2].mxu1 }
 0x12b   :  { %v28335_v54 = vadd.f32 %v316_v52, %v166_v26  ;;  %v18785_v63 = vpop.f32.mrb[3].mxu1  ;;  %v28351_v52 = vsub.f32 %v52_v0, %v1364_v58  ;;  %v1458_v26 = vsub.f32 %v28328_v48, %v31776_v33  ;;  %v31777_v58 = vand.u32 4294901760, %v28331_v3 }
 0x12c   :  { %24247 = vmatpush3.bf16.msra.mxu1 %v27991_v30  ;;  %v1367_v63 = vand.u32 4294901760, %v53_v53  ;;  %v1451_v30 = vsub.f32 %v28326_v22, %v31775_v59  ;;  %v31778_v0 = vand.u32 4294901760, %v28333_v29  ;;  %v28373_v33 = vsub.f32 %v54_v10, %v1370_v51  ;;  %v58_v10 = vld [vmem:[#allocation2 + $0xe8] sm:$0xff] }
 0x12d   :  { %24248 = vmatprep.subr.bf16.mxu1 %v31743_v21  ;;  %v1465_v55 = vsub.f32 %v28331_v3, %v31777_v58  ;;  %v1459_v49 = vand.u32 4294901760, %v1458_v26 }
 0x12e   :  { %v1472_v23 = vsub.f32 %v28333_v29, %v31778_v0  ;;  %v28369_v59 = vpack.c.bf16 %v1370_v51, %v1367_v63  ;;  %v1452_v58 = vand.u32 4294901760, %v1451_v30  ;;  %v57_v51 = vld [vmem:[#allocation2 + $0xe0] sm:$0xff]  ;;  %v28387_v30 = vpack.c.bf16 %v1376_v57, %v1373_v28 }
 0x12f   :  { %v1466_v0 = vand.u32 4294901760, %v1465_v55  ;;  %v31551_v25 = vand.u32 4294901760, %v28373_v33  ;;  %v28392_v55 = vsub.f32 %v55_v8, %v1373_v28  ;;  %v1379_v50 = vand.u32 4294901760, %v57_v51 }
 0x130   :  { %24250 = vmatpush3.bf16.msra.mxu1 %v28003_v1  ;;  %v28371_v1 = vsub.f32 %v53_v53, %v1367_v63  ;;  %24268 = vmatpush3.bf16.msra.mxu0 %v28369_v59  ;;  %v1473_v17 = vand.u32 4294901760, %v1472_v23  ;;  %v1479_v53 = vsub.f32 %v28349_v4, %v31538_v6  ;;  %v31780_v63 = vand.u32 4294901760, %v28351_v52  ;;  %v59_v6 = vld [vmem:[#allocation2 + $0xf0] sm:$0xff] }
 0x131   :  { %24251 = vmatprep.subr.bf16.mxu1 %v31743_v21  ;;  %24269 = vmatprep.subr.bf16.mxu0 %v31743_v21  ;;  %v28394_v23 = vsub.f32 %v56_v5, %v1376_v57  ;;  %v28397_v16 = vpack.c.bf16 %v1459_v49, %v1452_v58  ;;  %v1385_v28 = vand.u32 4294901760, %v59_v6 }
 0x132   :  { %v1486_v19 = vsub.f32 %v28351_v52, %v31780_v63  ;;  %v1382_v63 = vand.u32 4294901760, %v58_v10  ;;  %v28401_v46 = vpack.c.bf16 %v1473_v17, %v1466_v0  ;;  %v1480_v26 = vand.u32 4294901760, %v1479_v53 }
 0x133   :  { %31781 = vst [vmem:[#allocation70_spill] sm:$0xff] %v28397_v16  ;;  %v31783_v49 = vand.u32 4294901760, %v28371_v1  ;;  %v1500_v17 = vsub.f32 %v28373_v33, %v31551_v25  ;;  %v31785_v53 = vand.u32 4294901760, %v28392_v55  ;;  %v28437_v40 = vsub.f32 %v59_v6, %v1385_v28 }
 0x134   :  { %24253 = vmatpush3.bf16.msra.mxu1 %v28011_v62  ;;  %v60_v62 = vld [vmem:[#allocation2 + $0xf8] sm:$0xff]  ;;  %24271 = vmatpush3.bf16.msra.mxu0 %v28387_v30  ;;  %31782 = vst [vmem:[#allocation71_spill] sm:$0xff] %v28401_v46  ;;  %v1487_v8 = vand.u32 4294901760, %v1486_v19  ;;  %v28404_v57 = vpack.c.bf16 %v1382_v63, %v1379_v50  ;;  %v28417_v19 = vsub.f32 %v57_v51, %v1379_v50  ;;  %v31786_v50 = vand.u32 4294901760, %v28394_v23 }
 0x135   :  { %24278 = vmatprep.subr.bf16.mxu1 %v31743_v21  ;;  %24272 = vmatprep.subr.bf16.mxu0 %v31743_v21  ;;  %v1388_v5 = vand.u32 4294901760, %v60_v62  ;;  %v1493_v58 = vsub.f32 %v28371_v1, %v31783_v49  ;;  %v1501_v0 = vand.u32 4294901760, %v1500_v17 }
 0x136   :  { %v28426_v49 = vpack.c.bf16 %v1487_v8, %v1480_v26  ;;  %v1514_v51 = vsub.f32 %v28394_v23, %v31786_v50 }
 0x137   :  { %19134 = vmatmul.mubr.f32.vlgmr.msra.gmra.mrb[16].mxu1 %v31741_v56  ;;  %v28421_v45 = vpack.c.bf16 %v1388_v5, %v1385_v28  ;;  %v1494_v25 = vand.u32 4294901760, %v1493_v58  ;;  %v28439_v26 = vsub.f32 %v60_v62, %v1388_v5  ;;  %v31560_v28 = vand.u32 4294901760, %v28437_v40 }
 0x138   :  { %24280 = vmatpush3.bf16.msra.mxu1 %v28376_v35  ;;  %19203 = vmatprep.mubr.msk.f32.mxu1 %vm27646_vm0, %v31741_v56  ;;  %v28419_v35 = vsub.f32 %v58_v10, %v1382_v63  ;;  %31784 = vst [vmem:[#allocation72_spill] sm:$0xff] %v28426_v49  ;;  %v31557_v10 = vand.u32 4294901760, %v28417_v19  ;;  %v1515_v17 = vand.u32 4294901760, %v1514_v51 }
 0x139   :  { %24281 = vmatprep.subr.bf16.mxu1 %v31743_v21  ;;  %24274 = vmatpush3.bf16.msra.mxu0 %v28404_v57  ;;  %v28444_v8 = vpack.c.bf16 %v1501_v0, %v1494_v25  ;;  %v31561_v25 = vand.u32 4294901760, %v28439_v26  ;;  %v1535_v51 = vsub.f32 %v28437_v40, %v31560_v28 }
 0x13a   :  { %24275 = vmatprep.subr.bf16.mxu0 %v31743_v21  ;;  %v31556_v63 = vand.u32 4294901760, %v28419_v35  ;;  %v1521_v62 = vsub.f32 %v28417_v19, %v31557_v10 }
 0x13b   :  { %31787 = vst [vmem:[#allocation73_spill] sm:$0xff] %v28444_v8 }
 0x13c   :  { %24283 = vmatpush3.bf16.msra.mxu1 %v28397_v16  ;;  %v1507_v16 = vsub.f32 %v28392_v55, %v31785_v53  ;;  %v28448_v53 = vpack.c.bf16 %v28320_v32, %v28318_v61  ;;  %v1528_v6 = vsub.f32 %v28419_v35, %v31556_v63  ;;  %v1522_v0 = vand.u32 4294901760, %v1521_v62 }
 0x13d   :  { %24284 = vmatprep.subr.bf16.mxu1 %v31743_v21  ;;  %24277 = vmatpush3.bf16.msra.mxu0 %v28421_v45  ;;  %v1542_v63 = vsub.f32 %v28439_v26, %v31561_v25  ;;  %v28485_v25 = vpack.c.bf16 %v28351_v52, %v28349_v4 }
 0x13e   :  { %24302 = vmatprep.subr.bf16.mxu0 %v31743_v21  ;;  %v1508_v58 = vand.u32 4294901760, %v1507_v16  ;;  %31788 = vst [vmem:[#allocation74_spill] sm:$0xff] %v28448_v53  ;;  %v28462_v16 = vpack.c.bf16 %v28328_v48, %v28326_v22  ;;  %v1529_v50 = vand.u32 4294901760, %v1528_v6  ;;  %v1536_v6 = vand.u32 4294901760, %v1535_v51 }
 0x13f   :  { %v1543_v28 = vand.u32 4294901760, %v1542_v63  ;;  %31793 = vst [vmem:[#allocation79_spill] sm:$0xff] %v28485_v25  ;;  %v28503_v63 = vpack.c.bf16 %v28419_v35, %v28417_v19 }
 0x140   :  { %24286 = vmatpush3.bf16.msra.mxu1 %v28401_v46  ;;  %31789 = vst [vmem:[#allocation75_spill] sm:$0xff] %v28462_v16  ;;  %v28464_v5 = vpack.c.bf16 %v1515_v17, %v1508_v58  ;;  %v28480_v62 = vpack.c.bf16 %v1529_v50, %v1522_v0 }
 0x141   :  { %24287 = vmatprep.subr.bf16.mxu1 %v31743_v21  ;;  %31797 = vst [vmem:[#allocation83_spill] sm:$0xff] %v28503_v63 }
 0x142   :  { %31790 = vst [vmem:[#allocation76_spill] sm:$0xff] %v28464_v5  ;;  %31792 = vst [vmem:[#allocation78_spill] sm:$0xff] %v28480_v62 }
 0x144   :  { %24289 = vmatpush3.bf16.msra.mxu1 %v28426_v49  ;;  %v28476_v49 = vpack.c.bf16 %v28333_v29, %v28331_v3 }
 0x145   :  { %24290 = vmatprep.subr.bf16.mxu1 %v31743_v21 }
 0x146   :  { %31791 = vst [vmem:[#allocation77_spill] sm:$0xff] %v28476_v49 }
 0x148   :  { %24292 = vmatpush3.bf16.msra.mxu1 %v28444_v8  ;;  %v28488_v8 = vpack.c.bf16 %v1543_v28, %v1536_v6  ;;  %v28507_v28 = vpack.c.bf16 %v28439_v26, %v28437_v40 }
 0x149   :  { %24293 = vmatprep.subr.bf16.mxu1 %v31743_v21 }
 0x14a   :  { %v418_v10 = vpop.f32.mrb[4].mxu1  ;;  %31794 = vst [vmem:[#allocation80_spill] sm:$0xff] %v28488_v8  ;;  %31798 = vst [vmem:[#allocation84_spill] sm:$0xff] %v28507_v28 }
 0x14b   :  { %v419_v58 = vadd.f32 %v418_v10, %v28335_v54  ;;  %v18820_v17 = vpop.f32.mrb[5].mxu1  ;;  %v28493_v54 = vpack.c.bf16 %v28373_v33, %v28371_v1  ;;  %v28499_v10 = vpack.c.bf16 %v28394_v23, %v28392_v55 }
 0x14c   :  { %24295 = vmatpush3.bf16.msra.mxu1 %v28464_v5 }
 0x14d   :  { %24296 = vmatprep.subr.bf16.mxu1 %v31743_v21  ;;  %31795 = vst [vmem:[#allocation81_spill] sm:$0xff] %v28493_v54  ;;  %31796 = vst [vmem:[#allocation82_spill] sm:$0xff] %v28499_v10 }
 0x150   :  { %24298 = vmatpush3.bf16.msra.mxu1 %v28480_v62  ;;  %v83_v62 = vld [vmem:[%s31443_s0] sm:$0xff] }
 0x151   :  { %24299 = vmatprep.subr.bf16.mxu1 %v31743_v21 }
 0x154   :  { %24301 = vmatpush3.bf16.msra.mxu1 %v28488_v8 }
 0x155   :  { %24326 = vmatprep.subr.bf16.mxu1 %v31743_v21 }
 0x16a   :  { %v504_v0 = vpop.f32.mrb[6].mxu1 }
 0x16b   :  { %v505_v50 = vadd.f32 %v504_v0, %v419_v58  ;;  %v18855_v51 = vpop.f32.mrb[7].mxu1 }
 0x174   :  { %v796_v20 = vpop.f32.mrb[0].mxu0 }
 0x175   :  { %v18960_v15 = vpop.f32.mrb[1].mxu0 }
 0x18a   :  { %v622_v17 = vpop.f32.mrb[8].mxu1 }
 0x18b   :  { %v623_v6 = vadd.f32 %v622_v17, %v505_v50  ;;  %v18890_v8 = vpop.f32.mrb[9].mxu1  ;;  %v31802_v17 = vand.u32 4294901760, %v28326_v22 }
 0x199   :  { %v1048_v43 = vpop.f32.mrb[2].mxu0 }
 0x19a   :  { %v19030_v58 = vpop.f32.mrb[3].mxu0 }
 0x1aa   :  { %v708_v5 = vpop.f32.mrb[10].mxu1 }
 0x1ab   :  { %v709_v46 = vadd.f32 %v708_v5, %v623_v6  ;;  %v18925_v39 = vpop.f32.mrb[11].mxu1  ;;  %v31803_v6 = vand.u32 4294901760, %v28328_v48 }
 0x1ad   :  { %v712_v36 = vadd.f32 %v709_v46, %v83_v62  ;;  %v28584_v58 = vpack.c.bf16 %v31803_v6, %v31802_v17  ;;  %v31824_v6 = vld [vmem:[#allocation11_spill] sm:$0xff] }
 0x1af   :  { %27583 = vtanh.f32 %v712_v36  ;;  %31804 = vst [vmem:[#allocation86_spill] sm:$0xff] %v28584_v58 }
 0x1b9   :  { %v27584_v47 = vpop.eup %27583  ;;  %v28521_v39 = vpop.f32.mrb[4].mxu0 }
 0x1ba   :  { %v28512_v37 = vand.u32 4294901760, %v27584_v47  ;;  %v19100_v36 = vpop.f32.mrb[5].mxu0 }
 0x1bc   :  { %v28515_v0 = vsub.f32 %v27584_v47, %v28512_v37  ;;  %19204 = vmatmul.mubr.f32.vlgmr.msra.gmra.mrb[18].mxu1 %v28512_v37 }
 0x1bd   :  { %24328 = vmatpush3.bf16.msra.mxu1 %v28288_v44  ;;  %19273 = vmatprep.mubr.msk.f32.mxu1 %vm27646_vm0, %v31741_v56 }
 0x1be   :  { %24329 = vmatprep.subr.bf16.mxu1 %v31743_v21  ;;  %v28525_v15 = vand.u32 4294901760, %v28515_v0 }
 0x1c0   :  { %v1426_v46 = vsub.f32 %v28515_v0, %v28525_v15 }
 0x1c1   :  { %24331 = vmatpush3.bf16.msra.mxu1 %v28291_v11 }
 0x1c2   :  { %24332 = vmatprep.subr.bf16.mxu1 %v31743_v21  ;;  %v28531_v47 = vand.u32 4294901760, %v1426_v46 }
 0x1c4   :  { %19169 = vmatmul.mubr.f32.vlgmr.msra.gmra.mrb[6].mxu0 %v28531_v47 }
 0x1c5   :  { %24304 = vmatpush3.bf16.msra.mxu0 %v28448_v53  ;;  %24334 = vmatpush3.bf16.msra.mxu1 %v28299_v24 }
 0x1c6   :  { %24305 = vmatprep.subr.bf16.mxu0 %v31743_v21  ;;  %24335 = vmatprep.subr.bf16.mxu1 %v31743_v21 }
 0x1c7   :  { %19238 = vmatprep.mubr.msk.f32.mxu0 %vm27646_vm0, %v31741_v56 }
 0x1c9   :  { %24307 = vmatpush3.bf16.msra.mxu0 %v28462_v16  ;;  %24337 = vmatpush3.bf16.msra.mxu1 %v28307_v14 }
 0x1ca   :  { %24308 = vmatprep.subr.bf16.mxu0 %v31743_v21  ;;  %24338 = vmatprep.subr.bf16.mxu1 %v31743_v21  ;;  %v946_v8 = vpop.f32.mrb[12].mxu1 }
 0x1cb   :  { %v947_v5 = vadd.f32 %v946_v8, %v796_v20  ;;  %v18995_v62 = vpop.f32.mrb[13].mxu1  ;;  %v31800_v20 = vand.u32 4294901760, %v28320_v32  ;;  %v31805_v32 = vand.u32 4294901760, %v28331_v3  ;;  %v31808_v8 = vand.u32 4294901760, %v28349_v4 }
 0x1cc   :  { %v31811_v62 = vand.u32 4294901760, %v28371_v1  ;;  %v31814_v4 = vand.u32 4294901760, %v28392_v55  ;;  %v31817_v1 = vand.u32 4294901760, %v28417_v19  ;;  %v31820_v55 = vand.u32 4294901760, %v28437_v40 }
 0x1cd   :  { %24310 = vmatpush3.bf16.msra.mxu0 %v28476_v49  ;;  %24340 = vmatpush3.bf16.msra.mxu1 %v28369_v59  ;;  %v1049_v50 = vadd.f32 %v1048_v43, %v947_v5  ;;  %v31799_v43 = vand.u32 4294901760, %v28318_v61  ;;  %v31806_v61 = vand.u32 4294901760, %v28333_v29  ;;  %v31809_v5 = vand.u32 4294901760, %v28351_v52 }
 0x1ce   :  { %24311 = vmatprep.subr.bf16.mxu0 %v31743_v21  ;;  %24341 = vmatprep.subr.bf16.mxu1 %v31743_v21  ;;  %v31815_v52 = vand.u32 4294901760, %v28394_v23  ;;  %v31821_v23 = vand.u32 4294901760, %v28439_v26  ;;  %v31823_v26 = vld [vmem:[#allocation28_spill] sm:$0xff] }
 0x1cf   :  { %v28573_v51 = vpack.c.bf16 %v31800_v20, %v31799_v43  ;;  %v28596_v22 = vpack.c.bf16 %v31806_v61, %v31805_v32  ;;  %v28606_v3 = vpack.c.bf16 %v31809_v5, %v31808_v8  ;;  %v31825_v32 = vld [vmem:[#allocation12_spill] sm:$0xff]  ;;  %v31826_v61 = vld [vmem:[#allocation29_spill] sm:$0xff]  ;;  %v31831_v8 = vld [vmem:[#allocation34_spill] sm:$0xff] }
 0x1d0   :  { %v28648_v17 = vpack.c.bf16 %v31821_v23, %v31820_v55  ;;  %v31832_v5 = vld [vmem:[#allocation35_spill] sm:$0xff]  ;;  %v31842_v55 = vld [vmem:[#allocation20_spill] sm:$0xff]  ;;  %v31843_v23 = vld [vmem:[#allocation58_spill] sm:$0xff] }
 0x1d1   :  { %24313 = vmatpush3.bf16.msra.mxu0 %v28485_v25  ;;  %24343 = vmatpush3.bf16.msra.mxu1 %v28387_v30  ;;  %31801 = vst [vmem:[#allocation85_spill] sm:$0xff] %v28573_v51  ;;  %31807 = vst [vmem:[#allocation87_spill] sm:$0xff] %v28596_v22 }
 0x1d2   :  { %24314 = vmatprep.subr.bf16.mxu0 %v31743_v21  ;;  %24344 = vmatprep.subr.bf16.mxu1 %v31743_v21  ;;  %31810 = vst [vmem:[#allocation88_spill] sm:$0xff] %v28606_v3  ;;  %31822 = vst [vmem:[#allocation92_spill] sm:$0xff] %v28648_v17 }
 0x1d5   :  { %24316 = vmatpush3.bf16.msra.mxu0 %v28493_v54  ;;  %24346 = vmatpush3.bf16.msra.mxu1 %v28404_v57 }
 0x1d6   :  { %24317 = vmatprep.subr.bf16.mxu0 %v31743_v21  ;;  %24347 = vmatprep.subr.bf16.mxu1 %v31743_v21 }
 0x1d9   :  { %24319 = vmatpush3.bf16.msra.mxu0 %v28499_v10  ;;  %24349 = vmatpush3.bf16.msra.mxu1 %v28421_v45 }
 0x1da   :  { %24320 = vmatprep.subr.bf16.mxu0 %v31743_v21  ;;  %24374 = vmatprep.subr.bf16.mxu1 %v31743_v21 }
 0x1dc   :  { %19274 = vmatmul.mubr.f32.vlgmr.msra.gmra.mrb[20].mxu1 %v28525_v15 }
 0x1dd   :  { %24322 = vmatpush3.bf16.msra.mxu0 %v28503_v63  ;;  %24376 = vmatpush3.bf16.msra.mxu1 %v28288_v44 }
 0x1de   :  { %24323 = vmatprep.subr.bf16.mxu0 %v31743_v21  ;;  %24377 = vmatprep.subr.bf16.mxu1 %v31743_v21 }
 0x1df   :  { %19343 = vmatprep.mubr.msk.f32.mxu1 %vm27646_vm0, %v31741_v56 }
 0x1e1   :  { %24325 = vmatpush3.bf16.msra.mxu0 %v28507_v28  ;;  %24379 = vmatpush3.bf16.msra.mxu1 %v28291_v11 }
 0x1e2   :  { %24350 = vmatprep.subr.bf16.mxu0 %v31743_v21  ;;  %24380 = vmatprep.subr.bf16.mxu1 %v31743_v21 }
 0x1e4   :  { %19239 = vmatmul.mubr.f32.vlgmr.msra.gmra.mrb[8].mxu0 %v28515_v0 }
 0x1e5   :  { %24352 = vmatpush3.bf16.msra.mxu0 %v28573_v51  ;;  %24382 = vmatpush3.bf16.msra.mxu1 %v28299_v24 }
 0x1e6   :  { %24353 = vmatprep.subr.bf16.mxu0 %v31743_v21  ;;  %24383 = vmatprep.subr.bf16.mxu1 %v31743_v21 }
 0x1e7   :  { %19308 = vmatprep.mubr.msk.f32.mxu0 %vm27646_vm0, %v31741_v56 }
 0x1e9   :  { %24355 = vmatpush3.bf16.msra.mxu0 %v28584_v58  ;;  %24385 = vmatpush3.bf16.msra.mxu1 %v28307_v14 }
 0x1ea   :  { %24356 = vmatprep.subr.bf16.mxu0 %v31743_v21  ;;  %24386 = vmatprep.subr.bf16.mxu1 %v31743_v21  ;;  %v1134_v48 = vpop.f32.mrb[14].mxu1 }
 0x1eb   :  { %v1135_v36 = vadd.f32 %v1134_v48, %v1049_v50  ;;  %v19065_v46 = vpop.f32.mrb[15].mxu1  ;;  %v31812_v50 = vand.u32 4294901760, %v28373_v33  ;;  %v31818_v33 = vand.u32 4294901760, %v28419_v35  ;;  %v31827_v48 = vld [vmem:[#allocation30_spill] sm:$0xff] }
 0x1ec   :  { %v31830_v46 = vld [vmem:[#allocation33_spill] sm:$0xff] }
 0x1ed   :  { %24358 = vmatpush3.bf16.msra.mxu0 %v28596_v22  ;;  %24388 = vmatpush3.bf16.msra.mxu1 %v28369_v59  ;;  %v1253_v29 = vadd.f32 %v28521_v39, %v1135_v36  ;;  %v28617_v43 = vpack.c.bf16 %v31812_v50, %v31811_v62  ;;  %v28627_v39 = vpack.c.bf16 %v31815_v52, %v31814_v4  ;;  %v31829_v36 = vld [vmem:[#allocation32_spill] sm:$0xff]  ;;  %v31835_v62 = vld [vmem:[#allocation14_spill] sm:$0xff]  ;;  %v31838_v4 = vld [vmem:[#allocation17_spill] sm:$0xff] }
 0x1ee   :  { %24359 = vmatprep.subr.bf16.mxu0 %v31743_v21  ;;  %24389 = vmatprep.subr.bf16.mxu1 %v31743_v21  ;;  %v28637_v20 = vpack.c.bf16 %v31818_v33, %v31817_v1  ;;  %v31837_v50 = vld [vmem:[#allocation16_spill] sm:$0xff]  ;;  %v31839_v52 = vld [vmem:[#allocation18_spill] sm:$0xff]  ;;  %v31840_v1 = vld [vmem:[#allocation19_spill] sm:$0xff] }
 0x1ef   :  { %31813 = vst [vmem:[#allocation89_spill] sm:$0xff] %v28617_v43  ;;  %31816 = vst [vmem:[#allocation90_spill] sm:$0xff] %v28627_v39  ;;  %v31841_v33 = vld [vmem:[#allocation57_spill] sm:$0xff] }
 0x1f0   :  { %31819 = vst [vmem:[#allocation91_spill] sm:$0xff] %v28637_v20 }
 0x1f1   :  { %24361 = vmatpush3.bf16.msra.mxu0 %v28606_v3  ;;  %24391 = vmatpush3.bf16.msra.mxu1 %v28387_v30 }
 0x1f2   :  { %24362 = vmatprep.subr.bf16.mxu0 %v31743_v21  ;;  %24392 = vmatprep.subr.bf16.mxu1 %v31743_v21 }
 0x1f5   :  { %24364 = vmatpush3.bf16.msra.mxu0 %v28617_v43  ;;  %24394 = vmatpush3.bf16.msra.mxu1 %v28404_v57 }
 0x1f6   :  { %24365 = vmatprep.subr.bf16.mxu0 %v31743_v21  ;;  %24395 = vmatprep.subr.bf16.mxu1 %v31743_v21 }
 0x1f9   :  { %24367 = vmatpush3.bf16.msra.mxu0 %v28627_v39  ;;  %24397 = vmatpush3.bf16.msra.mxu1 %v28421_v45 }
 0x1fa   :  { %24368 = vmatprep.subr.bf16.mxu0 %v31743_v21  ;;  %24422 = vmatprep.subr.bf16.mxu1 %v31743_v21 }
 0x1fc   :  { %19344 = vmatmul.mubr.f32.vlgmr.msra.gmra.mrb[22].mxu1 %v28512_v37 }
 0x1fd   :  { %24370 = vmatpush3.bf16.msra.mxu0 %v28637_v20  ;;  %24424 = vmatpush3.bf16.msra.mxu1 %v27786_v31 }
 0x1fe   :  { %24371 = vmatprep.subr.bf16.mxu0 %v31743_v21  ;;  %24425 = vmatprep.subr.bf16.mxu1 %v31743_v21 }
 0x1ff   :  { %19413 = vmatprep.mubr.msk.f32.mxu1 %vm27646_vm0, %v31741_v56 }
 0x201   :  { %24373 = vmatpush3.bf16.msra.mxu0 %v28648_v17  ;;  %24427 = vmatpush3.bf16.msra.mxu1 %v27794_v38 }
 0x202   :  { %24398 = vmatprep.subr.bf16.mxu0 %v31743_v21  ;;  %24428 = vmatprep.subr.bf16.mxu1 %v31743_v21 }
 0x204   :  { %19309 = vmatmul.mubr.f32.vlgmr.msra.gmra.mrb[10].mxu0 %v28512_v37 }
 0x205   :  { %24400 = vmatpush3.bf16.msra.mxu0 %v27686_v12  ;;  %24430 = vmatpush3.bf16.msra.mxu1 %v27800_v60 }
 0x206   :  { %24401 = vmatprep.subr.bf16.mxu0 %v31743_v21  ;;  %24431 = vmatprep.subr.bf16.mxu1 %v31743_v21 }
 0x207   :  { %19378 = vmatprep.mubr.msk.f32.mxu0 %vm27646_vm0, %v31741_v56 }
 0x209   :  { %24403 = vmatpush3.bf16.msra.mxu0 %v27689_v13  ;;  %24433 = vmatpush3.bf16.msra.mxu1 %v27805_v2 }
 0x20a   :  { %24404 = vmatprep.subr.bf16.mxu0 %v31743_v21  ;;  %24434 = vmatprep.subr.bf16.mxu1 %v31743_v21  ;;  %v1338_v40 = vpop.f32.mrb[16].mxu1 }
 0x20b   :  { %v28669_v35 = vadd.f32 %v1338_v40, %v1253_v29  ;;  %v19135_v19 = vpop.f32.mrb[17].mxu1  ;;  %v31833_v29 = vld [vmem:[#allocation36_spill] sm:$0xff]  ;;  %v31844_v40 = vld [vmem:[#allocation37_spill] sm:$0xff] }
 0x20c   :  { %v31845_v19 = vld [vmem:[#allocation61_spill] sm:$0xff] }
 0x20d   :  { %24406 = vmatpush3.bf16.msra.mxu0 %v27693_v18  ;;  %24436 = vmatpush3.bf16.msra.mxu1 %v27813_v7 }
 0x20e   :  { %24407 = vmatprep.subr.bf16.mxu0 %v31743_v21  ;;  %24437 = vmatprep.subr.bf16.mxu1 %v31743_v21 }
 0x211   :  { %24409 = vmatpush3.bf16.msra.mxu0 %v27697_v27  ;;  %24439 = vmatpush3.bf16.msra.mxu1 %v27818_v9 }
 0x212   :  { %24410 = vmatprep.subr.bf16.mxu0 %v31743_v21  ;;  %24440 = vmatprep.subr.bf16.mxu1 %v31743_v21 }
 0x215   :  { %24412 = vmatpush3.bf16.msra.mxu0 %v27707_v41  ;;  %24442 = vmatpush3.bf16.msra.mxu1 %v27824_v34 }
 0x216   :  { %24413 = vmatprep.subr.bf16.mxu0 %v31743_v21  ;;  %24443 = vmatprep.subr.bf16.mxu1 %v31743_v21 }
 0x219   :  { %24415 = vmatpush3.bf16.msra.mxu0 %v27710_v42  ;;  %24445 = vmatpush3.bf16.msra.mxu1 %v31823_v26 }
 0x21a   :  { %24416 = vmatprep.subr.bf16.mxu0 %v31743_v21  ;;  %24470 = vmatprep.subr.bf16.mxu1 %v31743_v21 }
 0x21c   :  { %19414 = vmatmul.mubr.f32.vlgmr.msra.gmra.mrb[24].mxu1 %v28512_v37 }
 0x21d   :  { %24418 = vmatpush3.bf16.msra.mxu0 %v31824_v6  ;;  %24472 = vmatpush3.bf16.msra.mxu1 %v27686_v12 }
 0x21e   :  { %24419 = vmatprep.subr.bf16.mxu0 %v31743_v21  ;;  %24473 = vmatprep.subr.bf16.mxu1 %v31743_v21 }
 0x21f   :  { %19483 = vmatprep.mubr.msk.f32.mxu1 %vm27646_vm0, %v31741_v56 }
 0x221   :  { %24421 = vmatpush3.bf16.msra.mxu0 %v31825_v32  ;;  %24475 = vmatpush3.bf16.msra.mxu1 %v27689_v13 }
 0x222   :  { %24446 = vmatprep.subr.bf16.mxu0 %v31743_v21  ;;  %24476 = vmatprep.subr.bf16.mxu1 %v31743_v21 }
 0x224   :  { %19379 = vmatmul.mubr.f32.vlgmr.msra.gmra.mrb[12].mxu0 %v28531_v47  ;;  %v31828_v47 = vld [vmem:[#allocation31_spill] sm:$0xff] }
 0x225   :  { %24448 = vmatpush3.bf16.msra.mxu0 %v31826_v61  ;;  %24478 = vmatpush3.bf16.msra.mxu1 %v27693_v18 }
 0x226   :  { %24449 = vmatprep.subr.bf16.mxu0 %v31743_v21  ;;  %24479 = vmatprep.subr.bf16.mxu1 %v31743_v21 }
 0x227   :  { %19448 = vmatprep.mubr.msk.f32.mxu0 %vm27646_vm0, %v31741_v56 }
 0x229   :  { %24451 = vmatpush3.bf16.msra.mxu0 %v31827_v48  ;;  %24481 = vmatpush3.bf16.msra.mxu1 %v27697_v27 }
 0x22a   :  { %24452 = vmatprep.subr.bf16.mxu0 %v31743_v21  ;;  %24482 = vmatprep.subr.bf16.mxu1 %v31743_v21 }
 0x22d   :  { %24454 = vmatpush3.bf16.msra.mxu0 %v31828_v47  ;;  %24484 = vmatpush3.bf16.msra.mxu1 %v27707_v41 }
 0x22e   :  { %24455 = vmatprep.subr.bf16.mxu0 %v31743_v21  ;;  %24485 = vmatprep.subr.bf16.mxu1 %v31743_v21 }
 0x231   :  { %24457 = vmatpush3.bf16.msra.mxu0 %v31829_v36  ;;  %24487 = vmatpush3.bf16.msra.mxu1 %v27710_v42 }
 0x232   :  { %24458 = vmatprep.subr.bf16.mxu0 %v31743_v21  ;;  %24488 = vmatprep.subr.bf16.mxu1 %v31743_v21 }
 0x235   :  { %24460 = vmatpush3.bf16.msra.mxu0 %v31830_v46  ;;  %24490 = vmatpush3.bf16.msra.mxu1 %v31824_v6 }
 0x236   :  { %24461 = vmatprep.subr.bf16.mxu0 %v31743_v21  ;;  %24491 = vmatprep.subr.bf16.mxu1 %v31743_v21 }
 0x239   :  { %24463 = vmatpush3.bf16.msra.mxu0 %v31831_v8  ;;  %24493 = vmatpush3.bf16.msra.mxu1 %v31825_v32 }
 0x23a   :  { %24464 = vmatprep.subr.bf16.mxu0 %v31743_v21  ;;  %24518 = vmatprep.subr.bf16.mxu1 %v31743_v21 }
 0x23c   :  { %19484 = vmatmul.mubr.f32.vlgmr.msra.gmra.mrb[26].mxu1 %v28525_v15  ;;  %v31834_v15 = vld [vmem:[#allocation13_spill] sm:$0xff] }
 0x23d   :  { %24466 = vmatpush3.bf16.msra.mxu0 %v31832_v5  ;;  %24520 = vmatpush3.bf16.msra.mxu1 %v27686_v12 }
 0x23e   :  { %24467 = vmatprep.subr.bf16.mxu0 %v31743_v21  ;;  %24521 = vmatprep.subr.bf16.mxu1 %v31743_v21 }
 0x23f   :  { %19553 = vmatprep.mubr.msk.f32.mxu1 %vm27646_vm0, %v31741_v56 }
 0x241   :  { %24469 = vmatpush3.bf16.msra.mxu0 %v31833_v29  ;;  %24523 = vmatpush3.bf16.msra.mxu1 %v27689_v13 }
 0x242   :  { %24494 = vmatprep.subr.bf16.mxu0 %v31743_v21  ;;  %24524 = vmatprep.subr.bf16.mxu1 %v31743_v21 }
 0x244   :  { %19449 = vmatmul.mubr.f32.vlgmr.msra.gmra.mrb[14].mxu0 %v28515_v0  ;;  %v31836_v0 = vld [vmem:[#allocation15_spill] sm:$0xff] }
 0x245   :  { %24496 = vmatpush3.bf16.msra.mxu0 %v31834_v15  ;;  %24526 = vmatpush3.bf16.msra.mxu1 %v27693_v18 }
 0x246   :  { %24497 = vmatprep.subr.bf16.mxu0 %v31743_v21  ;;  %24527 = vmatprep.subr.bf16.mxu1 %v31743_v21 }
 0x247   :  { %19518 = vmatprep.mubr.msk.f32.mxu0 %vm27646_vm0, %v31741_v56 }
 0x249   :  { %24499 = vmatpush3.bf16.msra.mxu0 %v31835_v62  ;;  %24529 = vmatpush3.bf16.msra.mxu1 %v27697_v27 }
 0x24a   :  { %24500 = vmatprep.subr.bf16.mxu0 %v31743_v21  ;;  %24530 = vmatprep.subr.bf16.mxu1 %v31743_v21 }
 0x24d   :  { %24502 = vmatpush3.bf16.msra.mxu0 %v31836_v0  ;;  %24532 = vmatpush3.bf16.msra.mxu1 %v27707_v41 }
 0x24e   :  { %24503 = vmatprep.subr.bf16.mxu0 %v31743_v21  ;;  %24533 = vmatprep.subr.bf16.mxu1 %v31743_v21 }
 0x251   :  { %24505 = vmatpush3.bf16.msra.mxu0 %v31837_v50  ;;  %24535 = vmatpush3.bf16.msra.mxu1 %v27710_v42  ;;  %v31857_v50 = vld [vmem:[#allocation44_spill] sm:$0xff] }
 0x252   :  { %24506 = vmatprep.subr.bf16.mxu0 %v31743_v21  ;;  %24536 = vmatprep.subr.bf16.mxu1 %v31743_v21 }
 0x255   :  { %24508 = vmatpush3.bf16.msra.mxu0 %v31838_v4  ;;  %24538 = vmatpush3.bf16.msra.mxu1 %v31824_v6  ;;  %v31855_v4 = vld [vmem:[#allocation68_spill] sm:$0xff] }
 0x256   :  { %24509 = vmatprep.subr.bf16.mxu0 %v31743_v21  ;;  %24539 = vmatprep.subr.bf16.mxu1 %v31743_v21 }
 0x259   :  { %24511 = vmatpush3.bf16.msra.mxu0 %v31839_v52  ;;  %24541 = vmatpush3.bf16.msra.mxu1 %v31825_v32  ;;  %v31853_v52 = vld [vmem:[#allocation67_spill] sm:$0xff] }
 0x25a   :  { %24512 = vmatprep.subr.bf16.mxu0 %v31743_v21  ;;  %24566 = vmatprep.subr.bf16.mxu1 %v31743_v21 }
 0x25c   :  { %19554 = vmatmul.mubr.f32.vlgmr.msra.gmra.mrb[28].mxu1 %v28512_v37 }
 0x25d   :  { %24514 = vmatpush3.bf16.msra.mxu0 %v31840_v1  ;;  %24568 = vmatpush3.bf16.msra.mxu1 %v31841_v33  ;;  %v31849_v33 = vld [vmem:[#allocation65_spill] sm:$0xff]  ;;  %v31851_v1 = vld [vmem:[#allocation66_spill] sm:$0xff] }
 0x25e   :  { %24515 = vmatprep.subr.bf16.mxu0 %v31743_v21  ;;  %24569 = vmatprep.subr.bf16.mxu1 %v31743_v21 }
 0x25f   :  { %19623 = vmatprep.mubr.msk.f32.mxu1 %vm27646_vm0, %v31741_v56 }
 0x261   :  { %24517 = vmatpush3.bf16.msra.mxu0 %v31842_v55  ;;  %24571 = vmatpush3.bf16.msra.mxu1 %v31843_v23  ;;  %v31846_v55 = vld [vmem:[#allocation38_spill] sm:$0xff]  ;;  %v31847_v23 = vld [vmem:[#allocation63_spill] sm:$0xff] }
 0x262   :  { %24542 = vmatprep.subr.bf16.mxu0 %v31743_v21  ;;  %24572 = vmatprep.subr.bf16.mxu1 %v31743_v21 }
 0x264   :  { %19519 = vmatmul.mubr.f32.vlgmr.msra.gmra.mrb[16].mxu0 %v28512_v37  ;;  %v31848_v37 = vld [vmem:[#allocation39_spill] sm:$0xff] }
 0x265   :  { %24544 = vmatpush3.bf16.msra.mxu0 %v31844_v40  ;;  %24574 = vmatpush3.bf16.msra.mxu1 %v31845_v19  ;;  %v31850_v19 = vld [vmem:[#allocation40_spill] sm:$0xff] }
 0x266   :  { %24545 = vmatprep.subr.bf16.mxu0 %v31743_v21  ;;  %24575 = vmatprep.subr.bf16.mxu1 %v31743_v21 }
 0x267   :  { %19588 = vmatprep.mubr.msk.f32.mxu0 %vm27646_vm0, %v31741_v56 }
 0x269   :  { %24547 = vmatpush3.bf16.msra.mxu0 %v31846_v55  ;;  %24577 = vmatpush3.bf16.msra.mxu1 %v31847_v23  ;;  %v31852_v23 = vld [vmem:[#allocation41_spill] sm:$0xff] }
 0x26a   :  { %24548 = vmatprep.subr.bf16.mxu0 %v31743_v21  ;;  %24578 = vmatprep.subr.bf16.mxu1 %v31743_v21 }
 0x26d   :  { %24550 = vmatpush3.bf16.msra.mxu0 %v31848_v37  ;;  %24580 = vmatpush3.bf16.msra.mxu1 %v31849_v33  ;;  %v31854_v33 = vld [vmem:[#allocation42_spill] sm:$0xff] }
 0x26e   :  { %24551 = vmatprep.subr.bf16.mxu0 %v31743_v21  ;;  %24581 = vmatprep.subr.bf16.mxu1 %v31743_v21 }
 0x271   :  { %24553 = vmatpush3.bf16.msra.mxu0 %v31850_v19  ;;  %24583 = vmatpush3.bf16.msra.mxu1 %v31851_v1  ;;  %v31856_v1 = vld [vmem:[#allocation43_spill] sm:$0xff] }
 0x272   :  { %24554 = vmatprep.subr.bf16.mxu0 %v31743_v21  ;;  %24584 = vmatprep.subr.bf16.mxu1 %v31743_v21 }
 0x275   :  { %24556 = vmatpush3.bf16.msra.mxu0 %v31852_v23  ;;  %24586 = vmatpush3.bf16.msra.mxu1 %v31853_v52 }
 0x276   :  { %24557 = vmatprep.subr.bf16.mxu0 %v31743_v21  ;;  %24587 = vmatprep.subr.bf16.mxu1 %v31743_v21 }
 0x279   :  { %24559 = vmatpush3.bf16.msra.mxu0 %v31854_v33  ;;  %24589 = vmatpush3.bf16.msra.mxu1 %v31855_v4 }
 0x27a   :  { %24560 = vmatprep.subr.bf16.mxu0 %v31743_v21  ;;  %24614 = vmatprep.subr.bf16.mxu1 %v31743_v21 }
 0x27d   :  { %24562 = vmatpush3.bf16.msra.mxu0 %v31856_v1 }
 0x27e   :  { %24563 = vmatprep.subr.bf16.mxu0 %v31743_v21 }
 0x281   :  { %24565 = vmatpush3.bf16.msra.mxu0 %v31857_v50 }
 0x282   :  { %24590 = vmatprep.subr.bf16.mxu0 %v31743_v21 }
 0x28f   :  { %v1580_v52 = vpop.f32.mrb[18].mxu1 }
 0x290   :  { %v19205_v0 = vpop.f32.mrb[19].mxu1 }
 0x291   :  { %v28809_v0 = vld [vmem:[%s31445_s2] ss:$0 sm:$0xff] }
 0x297   :  { %v1429_v62 = vpop.f32.mrb[6].mxu0 }
 0x298   :  { %v1430_v15 = vadd.f32 %v1429_v62, %v28669_v35  ;;  %v19170_v29 = vpop.f32.mrb[7].mxu0  ;;  %v31861_v62 = vld [vmem:[#allocation48_spill] sm:$0xff] }
 0x29a   :  { %v1581_v5 = vadd.f32 %v1580_v52, %v1430_v15  ;;  %v31860_v15 = vld [vmem:[#allocation47_spill] sm:$0xff]  ;;  %v31863_v52 = vld [vmem:[#allocation50_spill] sm:$0xff] }
 0x2af   :  { %v1773_v4 = vpop.f32.mrb[20].mxu1 }
 0x2b0   :  { %v19275_v8 = vpop.f32.mrb[21].mxu1 }
 0x2b7   :  { %v1684_v46 = vpop.f32.mrb[8].mxu0 }
 0x2b8   :  { %v1685_v36 = vadd.f32 %v1684_v46, %v1581_v5  ;;  %v19240_v47 = vpop.f32.mrb[9].mxu0  ;;  %v31859_v46 = vld [vmem:[#allocation46_spill] sm:$0xff] }
 0x2ba   :  { %v1774_v48 = vadd.f32 %v1773_v4, %v1685_v36  ;;  %v31862_v4 = vld [vmem:[#allocation49_spill] sm:$0xff] }
 0x2cf   :  { %v1979_v61 = vpop.f32.mrb[22].mxu1 }
 0x2d0   :  { %v19345_v32 = vpop.f32.mrb[23].mxu1 }
 0x2d7   :  { %v1892_v6 = vpop.f32.mrb[10].mxu0 }
 0x2d8   :  { %v1893_v26 = vadd.f32 %v1892_v6, %v1774_v48  ;;  %v19310_v42 = vpop.f32.mrb[11].mxu0 }
 0x2da   :  { %v1980_v34 = vadd.f32 %v1979_v61, %v1893_v26  ;;  %v31858_v61 = vld [vmem:[#allocation45_spill] sm:$0xff] }
 0x2dc   :  { %v1983_v35 = vadd.f32 %v28809_v0, %v1980_v34 }
 0x2de   :  { %27585 = vtanh.f32 %v1983_v35  ;;  %v31864_v35 = vld [vmem:[#allocation51_spill] sm:$0xff] }
 0x2e8   :  { %v27586_v29 = vpop.eup %27585 }
 0x2e9   :  { %v28812_v8 = vand.u32 4294901760, %v27586_v29 }
 0x2eb   :  { %19624 = vmatmul.mubr.f32.vlgmr.msra.gmra.mrb[30].mxu1 %v28812_v8  ;;  %v2712_v47 = vsub.f32 %v27586_v29, %v28812_v8 }
 0x2ec   :  { %24616 = vmatpush3.bf16.msra.mxu1 %v31844_v40  ;;  %19693 = vmatprep.mubr.msk.f32.mxu1 %vm27646_vm0, %v31741_v56 }
 0x2ed   :  { %24617 = vmatprep.subr.bf16.mxu1 %v31743_v21  ;;  %v2713_v42 = vand.u32 4294901760, %v2712_v47 }
 0x2ef   :  { %v2225_v6 = vpop.f32.mrb[24].mxu1  ;;  %v2714_v26 = vsub.f32 %v2712_v47, %v2713_v42 }
 0x2f0   :  { %24619 = vmatpush3.bf16.msra.mxu1 %v31846_v55  ;;  %v19415_v34 = vpop.f32.mrb[25].mxu1 }
 0x2f1   :  { %24620 = vmatprep.subr.bf16.mxu1 %v31743_v21  ;;  %v2715_v32 = vand.u32 4294901760, %v2714_v26 }
 0x2f3   :  { %19589 = vmatmul.mubr.f32.vlgmr.msra.gmra.mrb[18].mxu0 %v2715_v32 }
 0x2f4   :  { %24592 = vmatpush3.bf16.msra.mxu0 %v31858_v61  ;;  %24622 = vmatpush3.bf16.msra.mxu1 %v31848_v37 }
 0x2f5   :  { %24593 = vmatprep.subr.bf16.mxu0 %v31743_v21  ;;  %24623 = vmatprep.subr.bf16.mxu1 %v31743_v21 }
 0x2f6   :  { %19658 = vmatprep.mubr.msk.f32.mxu0 %vm27646_vm0, %v31741_v56 }
 0x2f7   :  { %v2074_v48 = vpop.f32.mrb[12].mxu0 }
 0x2f8   :  { %v2226_v36 = vadd.f32 %v2225_v6, %v2074_v48  ;;  %24595 = vmatpush3.bf16.msra.mxu0 %v31859_v46  ;;  %24625 = vmatpush3.bf16.msra.mxu1 %v31850_v19  ;;  %v19380_v5 = vpop.f32.mrb[13].mxu0  ;;  %v31865_v6 = vld [vmem:[#allocation52_spill] sm:$0xff]  ;;  %v31867_v48 = vld [vmem:[#allocation54_spill] sm:$0xff] }
 0x2f9   :  { %24596 = vmatprep.subr.bf16.mxu0 %v31743_v21  ;;  %24626 = vmatprep.subr.bf16.mxu1 %v31743_v21 }
 0x2fc   :  { %24598 = vmatpush3.bf16.msra.mxu0 %v31860_v15  ;;  %24628 = vmatpush3.bf16.msra.mxu1 %v31852_v23 }
 0x2fd   :  { %24599 = vmatprep.subr.bf16.mxu0 %v31743_v21  ;;  %24629 = vmatprep.subr.bf16.mxu1 %v31743_v21 }
 0x300   :  { %24601 = vmatpush3.bf16.msra.mxu0 %v31861_v62  ;;  %24631 = vmatpush3.bf16.msra.mxu1 %v31854_v33 }
 0x301   :  { %24602 = vmatprep.subr.bf16.mxu0 %v31743_v21  ;;  %24632 = vmatprep.subr.bf16.mxu1 %v31743_v21 }
 0x304   :  { %24604 = vmatpush3.bf16.msra.mxu0 %v31862_v4  ;;  %24634 = vmatpush3.bf16.msra.mxu1 %v31856_v1 }
 0x305   :  { %24605 = vmatprep.subr.bf16.mxu0 %v31743_v21  ;;  %24635 = vmatprep.subr.bf16.mxu1 %v31743_v21 }
 0x308   :  { %24607 = vmatpush3.bf16.msra.mxu0 %v31863_v52  ;;  %24637 = vmatpush3.bf16.msra.mxu1 %v31857_v50 }
 0x309   :  { %24608 = vmatprep.subr.bf16.mxu0 %v31743_v21  ;;  %24662 = vmatprep.subr.bf16.mxu1 %v31743_v21 }
 0x30b   :  { %19694 = vmatmul.mubr.f32.vlgmr.msra.gmra.mrb[32].mxu1 %v2713_v42  ;;  %v31866_v42 = vld [vmem:[#allocation53_spill] sm:$0xff] }
 0x30c   :  { %24610 = vmatpush3.bf16.msra.mxu0 %v31864_v35  ;;  %24664 = vmatpush3.bf16.msra.mxu1 %v31844_v40 }
 0x30d   :  { %24611 = vmatprep.subr.bf16.mxu0 %v31743_v21  ;;  %24665 = vmatprep.subr.bf16.mxu1 %v31743_v21 }
 0x30e   :  { %19763 = vmatprep.mubr.msk.f32.mxu1 %vm27646_vm0, %v31741_v56 }
 0x30f   :  { %v2418_v29 = vpop.f32.mrb[26].mxu1 }
 0x310   :  { %24613 = vmatpush3.bf16.msra.mxu0 %v31865_v6  ;;  %24667 = vmatpush3.bf16.msra.mxu1 %v31846_v55  ;;  %v19485_v26 = vpop.f32.mrb[27].mxu1 }
 0x311   :  { %24638 = vmatprep.subr.bf16.mxu0 %v31743_v21  ;;  %24668 = vmatprep.subr.bf16.mxu1 %v31743_v21  ;;  %v31868_v26 = vld [vmem:[#allocation55_spill] sm:$0xff] }
 0x313   :  { %19659 = vmatmul.mubr.f32.vlgmr.msra.gmra.mrb[20].mxu0 %v2712_v47 }
 0x314   :  { %24640 = vmatpush3.bf16.msra.mxu0 %v31866_v42  ;;  %24670 = vmatpush3.bf16.msra.mxu1 %v31848_v37  ;;  %v31869_v42 = vld [vmem:[#allocation56_spill] sm:$0xff] }
 0x315   :  { %24641 = vmatprep.subr.bf16.mxu0 %v31743_v21  ;;  %24671 = vmatprep.subr.bf16.mxu1 %v31743_v21 }
 0x316   :  { %19728 = vmatprep.mubr.msk.f32.mxu0 %vm27646_vm0, %v31741_v56 }
 0x317   :  { %v2329_v34 = vpop.f32.mrb[14].mxu0 }
 0x318   :  { %v2330_v32 = vadd.f32 %v2329_v34, %v2226_v36  ;;  %24643 = vmatpush3.bf16.msra.mxu0 %v31867_v48  ;;  %24673 = vmatpush3.bf16.msra.mxu1 %v31850_v19  ;;  %v19450_v5 = vpop.f32.mrb[15].mxu0  ;;  %v31870_v36 = vld [vmem:[#allocation59_spill] sm:$0xff]  ;;  %v31872_v34 = vld [vmem:[#allocation62_spill] sm:$0xff]  ;;  %v31878_v48 = vld [vmem:[#allocation73_spill] sm:$0xff] }
 0x319   :  { %24644 = vmatprep.subr.bf16.mxu0 %v31743_v21  ;;  %24674 = vmatprep.subr.bf16.mxu1 %v31743_v21 }
 0x31a   :  { %v2419_v47 = vadd.f32 %v2418_v29, %v2330_v32  ;;  %v31871_v29 = vld [vmem:[#allocation60_spill] sm:$0xff]  ;;  %v31873_v32 = vld [vmem:[#allocation69_spill] sm:$0xff] }
 0x31c   :  { %24646 = vmatpush3.bf16.msra.mxu0 %v31868_v26  ;;  %24676 = vmatpush3.bf16.msra.mxu1 %v31852_v23 }
 0x31d   :  { %24647 = vmatprep.subr.bf16.mxu0 %v31743_v21  ;;  %24677 = vmatprep.subr.bf16.mxu1 %v31743_v21 }
 0x320   :  { %24649 = vmatpush3.bf16.msra.mxu0 %v31869_v42  ;;  %24679 = vmatpush3.bf16.msra.mxu1 %v31854_v33 }
 0x321   :  { %24650 = vmatprep.subr.bf16.mxu0 %v31743_v21  ;;  %24680 = vmatprep.subr.bf16.mxu1 %v31743_v21 }
 0x324   :  { %24652 = vmatpush3.bf16.msra.mxu0 %v31870_v36  ;;  %24682 = vmatpush3.bf16.msra.mxu1 %v31856_v1  ;;  %v31875_v36 = vld [vmem:[#allocation70_spill] sm:$0xff] }
 0x325   :  { %24653 = vmatprep.subr.bf16.mxu0 %v31743_v21  ;;  %24683 = vmatprep.subr.bf16.mxu1 %v31743_v21 }
 0x328   :  { %24655 = vmatpush3.bf16.msra.mxu0 %v31871_v29  ;;  %24685 = vmatpush3.bf16.msra.mxu1 %v31857_v50  ;;  %v31874_v29 = vld [vmem:[#allocation64_spill] sm:$0xff] }
 0x329   :  { %24656 = vmatprep.subr.bf16.mxu0 %v31743_v21  ;;  %24710 = vmatprep.subr.bf16.mxu1 %v31743_v21 }
 0x32b   :  { %19764 = vmatmul.mubr.f32.vlgmr.msra.gmra.mrb[34].mxu1 %v28812_v8 }
 0x32c   :  { %24658 = vmatpush3.bf16.msra.mxu0 %v31872_v34  ;;  %24712 = vmatpush3.bf16.msra.mxu1 %v31873_v32  ;;  %v31876_v32 = vld [vmem:[#allocation71_spill] sm:$0xff] }
 0x32d   :  { %24659 = vmatprep.subr.bf16.mxu0 %v31743_v21  ;;  %24713 = vmatprep.subr.bf16.mxu1 %v31743_v21 }
 0x32e   :  { %19833 = vmatprep.mubr.msk.f32.mxu1 %vm27646_vm0, %v31741_v56 }
 0x32f   :  { %v2624_v5 = vpop.f32.mrb[28].mxu1 }
 0x330   :  { %24661 = vmatpush3.bf16.msra.mxu0 %v31874_v29  ;;  %24715 = vmatpush3.bf16.msra.mxu1 %v31875_v36  ;;  %v19555_v42 = vpop.f32.mrb[29].mxu1 }
 0x331   :  { %24686 = vmatprep.subr.bf16.mxu0 %v31743_v21  ;;  %24716 = vmatprep.subr.bf16.mxu1 %v31743_v21  ;;  %v31877_v42 = vld [vmem:[#allocation72_spill] sm:$0xff] }
 0x333   :  { %19729 = vmatmul.mubr.f32.vlgmr.msra.gmra.mrb[22].mxu0 %v28812_v8  ;;  %v16158_v8 = vld [vmem:[%s31443_s0 + $0x8] sm:$0xff] }
 0x334   :  { %24688 = vmatpush3.bf16.msra.mxu0 %v28288_v44  ;;  %24718 = vmatpush3.bf16.msra.mxu1 %v31876_v32 }
 0x335   :  { %24689 = vmatprep.subr.bf16.mxu0 %v31743_v21  ;;  %24719 = vmatprep.subr.bf16.mxu1 %v31743_v21 }
 0x336   :  { %19798 = vmatprep.mubr.msk.f32.mxu0 %vm27646_vm0, %v31741_v56 }
 0x337   :  { %v2537_v29 = vpop.f32.mrb[16].mxu0 }
 0x338   :  { %v2538_v36 = vadd.f32 %v2537_v29, %v2419_v47  ;;  %24691 = vmatpush3.bf16.msra.mxu0 %v28291_v11  ;;  %24721 = vmatpush3.bf16.msra.mxu1 %v31877_v42  ;;  %v19520_v34 = vpop.f32.mrb[17].mxu0  ;;  %v31879_v47 = vld [vmem:[#allocation76_spill] sm:$0xff] }
 0x339   :  { %24692 = vmatprep.subr.bf16.mxu0 %v31743_v21  ;;  %24722 = vmatprep.subr.bf16.mxu1 %v31743_v21 }
 0x33a   :  { %v2625_v32 = vadd.f32 %v2624_v5, %v2538_v36  ;;  %v31880_v36 = vld [vmem:[#allocation78_spill] sm:$0xff] }
 0x33c   :  { %v2628_v26 = vadd.f32 %v16158_v8, %v2625_v32  ;;  %24694 = vmatpush3.bf16.msra.mxu0 %v28299_v24  ;;  %24724 = vmatpush3.bf16.msra.mxu1 %v31878_v48 }
 0x33d   :  { %24695 = vmatprep.subr.bf16.mxu0 %v31743_v21  ;;  %24725 = vmatprep.subr.bf16.mxu1 %v31743_v21 }
 0x33e   :  { %27587 = vtanh.f32 %v2628_v26  ;;  %v31881_v26 = vld [vmem:[#allocation80_spill] sm:$0xff] }
 0x340   :  { %24697 = vmatpush3.bf16.msra.mxu0 %v28307_v14  ;;  %24727 = vmatpush3.bf16.msra.mxu1 %v31879_v47 }
 0x341   :  { %24698 = vmatprep.subr.bf16.mxu0 %v31743_v21  ;;  %24728 = vmatprep.subr.bf16.mxu1 %v31743_v21 }
 0x344   :  { %24700 = vmatpush3.bf16.msra.mxu0 %v28369_v59  ;;  %24730 = vmatpush3.bf16.msra.mxu1 %v31880_v36 }
 0x345   :  { %24701 = vmatprep.subr.bf16.mxu0 %v31743_v21  ;;  %24731 = vmatprep.subr.bf16.mxu1 %v31743_v21 }
 0x348   :  { %v27588_v29 = vpop.eup %27587  ;;  %24703 = vmatpush3.bf16.msra.mxu0 %v28387_v30  ;;  %24733 = vmatpush3.bf16.msra.mxu1 %v31881_v26 }
 0x349   :  { %v28923_v34 = vand.u32 4294901760, %v27588_v29  ;;  %24704 = vmatprep.subr.bf16.mxu0 %v31743_v21  ;;  %24758 = vmatprep.subr.bf16.mxu1 %v31743_v21 }
 0x34b   :  { %19834 = vmatmul.mubr.f32.vlgmr.msra.gmra.mrb[36].mxu1 %v28923_v34  ;;  %v28929_v32 = vsub.f32 %v27588_v29, %v28923_v34 }
 0x34c   :  { %24706 = vmatpush3.bf16.msra.mxu0 %v28404_v57  ;;  %24760 = vmatpush3.bf16.msra.mxu1 %v28288_v44 }
 0x34d   :  { %24707 = vmatprep.subr.bf16.mxu0 %v31743_v21  ;;  %24761 = vmatprep.subr.bf16.mxu1 %v31743_v21  ;;  %v28936_v5 = vand.u32 4294901760, %v28929_v32 }
 0x34e   :  { %19903 = vmatprep.mubr.msk.f32.mxu1 %vm27646_vm0, %v31741_v56 }
 0x34f   :  { %v3355_v8 = vsub.f32 %v28929_v32, %v28936_v5 }
 0x350   :  { %24709 = vmatpush3.bf16.msra.mxu0 %v28421_v45  ;;  %24763 = vmatpush3.bf16.msra.mxu1 %v28291_v11 }
 0x351   :  { %24734 = vmatprep.subr.bf16.mxu0 %v31743_v21  ;;  %24764 = vmatprep.subr.bf16.mxu1 %v31743_v21  ;;  %v28946_v29 = vand.u32 4294901760, %v3355_v8  ;;  %v31882_v8 = vld [vmem:[#allocation27_spill] sm:$0xff] }
 0x353   :  { %19799 = vmatmul.mubr.f32.vlgmr.msra.gmra.mrb[24].mxu0 %v28946_v29 }
 0x354   :  { %24736 = vmatpush3.bf16.msra.mxu0 %v28448_v53  ;;  %24766 = vmatpush3.bf16.msra.mxu1 %v28299_v24 }
 0x355   :  { %24737 = vmatprep.subr.bf16.mxu0 %v31743_v21  ;;  %24767 = vmatprep.subr.bf16.mxu1 %v31743_v21 }
 0x356   :  { %19868 = vmatprep.mubr.msk.f32.mxu0 %vm27646_vm0, %v31741_v56 }
 0x358   :  { %24739 = vmatpush3.bf16.msra.mxu0 %v28462_v16  ;;  %24769 = vmatpush3.bf16.msra.mxu1 %v28307_v14 }
 0x359   :  { %24740 = vmatprep.subr.bf16.mxu0 %v31743_v21  ;;  %24770 = vmatprep.subr.bf16.mxu1 %v31743_v21 }
 0x35c   :  { %24742 = vmatpush3.bf16.msra.mxu0 %v28476_v49  ;;  %24772 = vmatpush3.bf16.msra.mxu1 %v28369_v59 }
 0x35d   :  { %24743 = vmatprep.subr.bf16.mxu0 %v31743_v21  ;;  %24773 = vmatprep.subr.bf16.mxu1 %v31743_v21 }
 0x360   :  { %24745 = vmatpush3.bf16.msra.mxu0 %v28485_v25  ;;  %24775 = vmatpush3.bf16.msra.mxu1 %v28387_v30 }
 0x361   :  { %24746 = vmatprep.subr.bf16.mxu0 %v31743_v21  ;;  %24776 = vmatprep.subr.bf16.mxu1 %v31743_v21 }
 0x364   :  { %24748 = vmatpush3.bf16.msra.mxu0 %v28493_v54  ;;  %24778 = vmatpush3.bf16.msra.mxu1 %v28404_v57 }
 0x365   :  { %24749 = vmatprep.subr.bf16.mxu0 %v31743_v21  ;;  %24779 = vmatprep.subr.bf16.mxu1 %v31743_v21 }
 0x368   :  { %24751 = vmatpush3.bf16.msra.mxu0 %v28499_v10  ;;  %24781 = vmatpush3.bf16.msra.mxu1 %v28421_v45 }
 0x369   :  { %24752 = vmatprep.subr.bf16.mxu0 %v31743_v21  ;;  %24806 = vmatprep.subr.bf16.mxu1 %v31743_v21 }
 0x36b   :  { %19904 = vmatmul.mubr.f32.vlgmr.msra.gmra.mrb[38].mxu1 %v28936_v5 }
 0x36c   :  { %24754 = vmatpush3.bf16.msra.mxu0 %v28503_v63  ;;  %24808 = vmatpush3.bf16.msra.mxu1 %v28288_v44 }
 0x36d   :  { %24755 = vmatprep.subr.bf16.mxu0 %v31743_v21  ;;  %24809 = vmatprep.subr.bf16.mxu1 %v31743_v21 }
 0x36e   :  { %19973 = vmatprep.mubr.msk.f32.mxu1 %vm27646_vm0, %v31741_v56 }
 0x370   :  { %24757 = vmatpush3.bf16.msra.mxu0 %v28507_v28  ;;  %24811 = vmatpush3.bf16.msra.mxu1 %v28291_v11 }
 0x371   :  { %24782 = vmatprep.subr.bf16.mxu0 %v31743_v21  ;;  %24812 = vmatprep.subr.bf16.mxu1 %v31743_v21 }
 0x373   :  { %19869 = vmatmul.mubr.f32.vlgmr.msra.gmra.mrb[26].mxu0 %v28929_v32 }
 0x374   :  { %24784 = vmatpush3.bf16.msra.mxu0 %v28573_v51  ;;  %24814 = vmatpush3.bf16.msra.mxu1 %v28299_v24 }
 0x375   :  { %24785 = vmatprep.subr.bf16.mxu0 %v31743_v21  ;;  %24815 = vmatprep.subr.bf16.mxu1 %v31743_v21 }
 0x376   :  { %19938 = vmatprep.mubr.msk.f32.mxu0 %vm27646_vm0, %v31741_v56 }
 0x378   :  { %24787 = vmatpush3.bf16.msra.mxu0 %v28584_v58  ;;  %24817 = vmatpush3.bf16.msra.mxu1 %v28307_v14 }
 0x379   :  { %24788 = vmatprep.subr.bf16.mxu0 %v31743_v21  ;;  %24818 = vmatprep.subr.bf16.mxu1 %v31743_v21 }
 0x37c   :  { %24790 = vmatpush3.bf16.msra.mxu0 %v28596_v22  ;;  %24820 = vmatpush3.bf16.msra.mxu1 %v28369_v59 }
 0x37d   :  { %24791 = vmatprep.subr.bf16.mxu0 %v31743_v21  ;;  %24821 = vmatprep.subr.bf16.mxu1 %v31743_v21 }
 0x380   :  { %24793 = vmatpush3.bf16.msra.mxu0 %v28606_v3  ;;  %24823 = vmatpush3.bf16.msra.mxu1 %v28387_v30 }
 0x381   :  { %24794 = vmatprep.subr.bf16.mxu0 %v31743_v21  ;;  %24824 = vmatprep.subr.bf16.mxu1 %v31743_v21 }
 0x384   :  { %24796 = vmatpush3.bf16.msra.mxu0 %v28617_v43  ;;  %24826 = vmatpush3.bf16.msra.mxu1 %v28404_v57 }
 0x385   :  { %24797 = vmatprep.subr.bf16.mxu0 %v31743_v21  ;;  %24827 = vmatprep.subr.bf16.mxu1 %v31743_v21 }
 0x388   :  { %24799 = vmatpush3.bf16.msra.mxu0 %v28627_v39  ;;  %24829 = vmatpush3.bf16.msra.mxu1 %v28421_v45 }
 0x389   :  { %24800 = vmatprep.subr.bf16.mxu0 %v31743_v21  ;;  %24854 = vmatprep.subr.bf16.mxu1 %v31743_v21 }
 0x38b   :  { %19974 = vmatmul.mubr.f32.vlgmr.msra.gmra.mrb[40].mxu1 %v28923_v34 }
 0x38c   :  { %24802 = vmatpush3.bf16.msra.mxu0 %v28637_v20  ;;  %24856 = vmatpush3.bf16.msra.mxu1 %v27786_v31 }
 0x38d   :  { %24803 = vmatprep.subr.bf16.mxu0 %v31743_v21  ;;  %24857 = vmatprep.subr.bf16.mxu1 %v31743_v21 }
 0x38e   :  { %20043 = vmatprep.mubr.msk.f32.mxu1 %vm27646_vm0, %v31741_v56 }
 0x390   :  { %24805 = vmatpush3.bf16.msra.mxu0 %v28648_v17  ;;  %24859 = vmatpush3.bf16.msra.mxu1 %v27794_v38  ;;  %v31890_v17 = vld [vmem:[#allocation32_spill] sm:$0xff] }
 0x391   :  { %24830 = vmatprep.subr.bf16.mxu0 %v31743_v21  ;;  %24860 = vmatprep.subr.bf16.mxu1 %v31743_v21 }
 0x393   :  { %19939 = vmatmul.mubr.f32.vlgmr.msra.gmra.mrb[28].mxu0 %v28923_v34 }
 0x394   :  { %24832 = vmatpush3.bf16.msra.mxu0 %v27686_v12  ;;  %24862 = vmatpush3.bf16.msra.mxu1 %v27800_v60  ;;  %v31888_v60 = vld [vmem:[#allocation30_spill] sm:$0xff] }
 0x395   :  { %24833 = vmatprep.subr.bf16.mxu0 %v31743_v21  ;;  %24863 = vmatprep.subr.bf16.mxu1 %v31743_v21 }
 0x396   :  { %20008 = vmatprep.mubr.msk.f32.mxu0 %vm27646_vm0, %v31741_v56 }
 0x398   :  { %24835 = vmatpush3.bf16.msra.mxu0 %v27689_v13  ;;  %24865 = vmatpush3.bf16.msra.mxu1 %v27805_v2  ;;  %v31884_v2 = vld [vmem:[#allocation28_spill] sm:$0xff] }
 0x399   :  { %24836 = vmatprep.subr.bf16.mxu0 %v31743_v21  ;;  %24866 = vmatprep.subr.bf16.mxu1 %v31743_v21 }
 0x39c   :  { %24838 = vmatpush3.bf16.msra.mxu0 %v27693_v18  ;;  %24868 = vmatpush3.bf16.msra.mxu1 %v27813_v7  ;;  %v31883_v7 = vld [vmem:[#allocation10_spill] sm:$0xff] }
 0x39d   :  { %24839 = vmatprep.subr.bf16.mxu0 %v31743_v21  ;;  %24869 = vmatprep.subr.bf16.mxu1 %v31743_v21 }
 0x3a0   :  { %24841 = vmatpush3.bf16.msra.mxu0 %v27697_v27  ;;  %24871 = vmatpush3.bf16.msra.mxu1 %v27818_v9  ;;  %v31885_v9 = vld [vmem:[#allocation11_spill] sm:$0xff] }
 0x3a1   :  { %24842 = vmatprep.subr.bf16.mxu0 %v31743_v21  ;;  %24872 = vmatprep.subr.bf16.mxu1 %v31743_v21 }
 0x3a4   :  { %24844 = vmatpush3.bf16.msra.mxu0 %v27707_v41  ;;  %24874 = vmatpush3.bf16.msra.mxu1 %v31882_v8  ;;  %v31886_v8 = vld [vmem:[#allocation12_spill] sm:$0xff] }
 0x3a5   :  { %24845 = vmatprep.subr.bf16.mxu0 %v31743_v21  ;;  %24875 = vmatprep.subr.bf16.mxu1 %v31743_v21 }
 0x3a8   :  { %24847 = vmatpush3.bf16.msra.mxu0 %v31883_v7  ;;  %24877 = vmatpush3.bf16.msra.mxu1 %v31884_v2  ;;  %v31887_v2 = vld [vmem:[#allocation29_spill] sm:$0xff] }
 0x3a9   :  { %24848 = vmatprep.subr.bf16.mxu0 %v31743_v21  ;;  %24902 = vmatprep.subr.bf16.mxu1 %v31743_v21 }
 0x3ab   :  { %20044 = vmatmul.mubr.f32.vlgmr.msra.gmra.mrb[42].mxu1 %v28923_v34 }
 0x3ac   :  { %24850 = vmatpush3.bf16.msra.mxu0 %v31885_v9  ;;  %24904 = vmatpush3.bf16.msra.mxu1 %v27686_v12 }
 0x3ad   :  { %24851 = vmatprep.subr.bf16.mxu0 %v31743_v21  ;;  %24905 = vmatprep.subr.bf16.mxu1 %v31743_v21 }
 0x3ae   :  { %20113 = vmatprep.mubr.msk.f32.mxu1 %vm27646_vm0, %v31741_v56 }
 0x3b0   :  { %24853 = vmatpush3.bf16.msra.mxu0 %v31886_v8  ;;  %24907 = vmatpush3.bf16.msra.mxu1 %v27689_v13 }
 0x3b1   :  { %24878 = vmatprep.subr.bf16.mxu0 %v31743_v21  ;;  %24908 = vmatprep.subr.bf16.mxu1 %v31743_v21 }
 0x3b3   :  { %20009 = vmatmul.mubr.f32.vlgmr.msra.gmra.mrb[30].mxu0 %v28946_v29  ;;  %v31889_v29 = vld [vmem:[#allocation31_spill] sm:$0xff] }
 0x3b4   :  { %24880 = vmatpush3.bf16.msra.mxu0 %v31887_v2  ;;  %24910 = vmatpush3.bf16.msra.mxu1 %v27693_v18 }
 0x3b5   :  { %24881 = vmatprep.subr.bf16.mxu0 %v31743_v21  ;;  %24911 = vmatprep.subr.bf16.mxu1 %v31743_v21 }
 0x3b6   :  { %20078 = vmatprep.mubr.msk.f32.mxu0 %vm27646_vm0, %v31741_v56 }
 0x3b8   :  { %24883 = vmatpush3.bf16.msra.mxu0 %v31888_v60  ;;  %24913 = vmatpush3.bf16.msra.mxu1 %v27697_v27  ;;  %v31891_v60 = vld [vmem:[#allocation33_spill] sm:$0xff] }
 0x3b9   :  { %24884 = vmatprep.subr.bf16.mxu0 %v31743_v21  ;;  %24914 = vmatprep.subr.bf16.mxu1 %v31743_v21 }
 0x3bc   :  { %24886 = vmatpush3.bf16.msra.mxu0 %v31889_v29  ;;  %24916 = vmatpush3.bf16.msra.mxu1 %v27707_v41 }
 0x3bd   :  { %24887 = vmatprep.subr.bf16.mxu0 %v31743_v21  ;;  %24917 = vmatprep.subr.bf16.mxu1 %v31743_v21 }
 0x3be   :  { %v2868_v2 = vpop.f32.mrb[30].mxu1 }
 0x3bf   :  { %v19625_v38 = vpop.f32.mrb[31].mxu1 }
 0x3c0   :  { %24889 = vmatpush3.bf16.msra.mxu0 %v31890_v17  ;;  %24919 = vmatpush3.bf16.msra.mxu1 %v31883_v7  ;;  %v31892_v38 = vld [vmem:[#allocation34_spill] sm:$0xff]  ;;  %v31902_v17 = vld [vmem:[#allocation57_spill] sm:$0xff] }
 0x3c1   :  { %24890 = vmatprep.subr.bf16.mxu0 %v31743_v21  ;;  %24920 = vmatprep.subr.bf16.mxu1 %v31743_v21 }
 0x3c4   :  { %24892 = vmatpush3.bf16.msra.mxu0 %v31891_v60  ;;  %24922 = vmatpush3.bf16.msra.mxu1 %v31885_v9  ;;  %v31893_v60 = vld [vmem:[#allocation35_spill] sm:$0xff] }
 0x3c5   :  { %24893 = vmatprep.subr.bf16.mxu0 %v31743_v21  ;;  %24923 = vmatprep.subr.bf16.mxu1 %v31743_v21 }
 0x3c6   :  { %v2717_v29 = vpop.f32.mrb[18].mxu0 }
 0x3c7   :  { %v2869_v31 = vadd.f32 %v2868_v2, %v2717_v29  ;;  %v19590_v20 = vpop.f32.mrb[19].mxu0  ;;  %v31894_v2 = vld [vmem:[#allocation36_spill] sm:$0xff] }
 0x3c8   :  { %24895 = vmatpush3.bf16.msra.mxu0 %v31892_v38  ;;  %24925 = vmatpush3.bf16.msra.mxu1 %v31886_v8  ;;  %v31895_v20 = vld [vmem:[#allocation13_spill] sm:$0xff] }
 0x3c9   :  { %24896 = vmatprep.subr.bf16.mxu0 %v31743_v21  ;;  %24950 = vmatprep.subr.bf16.mxu1 %v31743_v21 }
 0x3cb   :  { %20114 = vmatmul.mubr.f32.vlgmr.msra.gmra.mrb[44].mxu1 %v28936_v5  ;;  %v31896_v5 = vld [vmem:[#allocation14_spill] sm:$0xff] }
 0x3cc   :  { %24898 = vmatpush3.bf16.msra.mxu0 %v31893_v60  ;;  %24952 = vmatpush3.bf16.msra.mxu1 %v27686_v12 }
 0x3cd   :  { %24899 = vmatprep.subr.bf16.mxu0 %v31743_v21  ;;  %24953 = vmatprep.subr.bf16.mxu1 %v31743_v21 }
 0x3ce   :  { %20183 = vmatprep.mubr.msk.f32.mxu1 %vm27646_vm0, %v31741_v56 }
 0x3d0   :  { %24901 = vmatpush3.bf16.msra.mxu0 %v31894_v2  ;;  %24955 = vmatpush3.bf16.msra.mxu1 %v27689_v13  ;;  %v31898_v2 = vld [vmem:[#allocation16_spill] sm:$0xff] }
 0x3d1   :  { %24926 = vmatprep.subr.bf16.mxu0 %v31743_v21  ;;  %24956 = vmatprep.subr.bf16.mxu1 %v31743_v21 }
 0x3d3   :  { %20079 = vmatmul.mubr.f32.vlgmr.msra.gmra.mrb[32].mxu0 %v28929_v32  ;;  %v31897_v32 = vld [vmem:[#allocation15_spill] sm:$0xff] }
 0x3d4   :  { %24928 = vmatpush3.bf16.msra.mxu0 %v31895_v20  ;;  %24958 = vmatpush3.bf16.msra.mxu1 %v27693_v18 }
 0x3d5   :  { %24929 = vmatprep.subr.bf16.mxu0 %v31743_v21  ;;  %24959 = vmatprep.subr.bf16.mxu1 %v31743_v21 }
 0x3d6   :  { %20148 = vmatprep.mubr.msk.f32.mxu0 %vm27646_vm0, %v31741_v56 }
 0x3d8   :  { %24931 = vmatpush3.bf16.msra.mxu0 %v31896_v5  ;;  %24961 = vmatpush3.bf16.msra.mxu1 %v27697_v27  ;;  %v31899_v5 = vld [vmem:[#allocation17_spill] sm:$0xff] }
 0x3d9   :  { %24932 = vmatprep.subr.bf16.mxu0 %v31743_v21  ;;  %24962 = vmatprep.subr.bf16.mxu1 %v31743_v21 }
 0x3dc   :  { %24934 = vmatpush3.bf16.msra.mxu0 %v31897_v32  ;;  %24964 = vmatpush3.bf16.msra.mxu1 %v27707_v41 }
 0x3dd   :  { %24935 = vmatprep.subr.bf16.mxu0 %v31743_v21  ;;  %24965 = vmatprep.subr.bf16.mxu1 %v31743_v21 }
 0x3de   :  { %v3061_v29 = vpop.f32.mrb[32].mxu1 }
 0x3df   :  { %v19695_v20 = vpop.f32.mrb[33].mxu1 }
 0x3e0   :  { %24937 = vmatpush3.bf16.msra.mxu0 %v31898_v2  ;;  %24967 = vmatpush3.bf16.msra.mxu1 %v31883_v7  ;;  %v31900_v20 = vld [vmem:[#allocation18_spill] sm:$0xff] }
 0x3e1   :  { %24938 = vmatprep.subr.bf16.mxu0 %v31743_v21  ;;  %24968 = vmatprep.subr.bf16.mxu1 %v31743_v21 }
 0x3e4   :  { %24940 = vmatpush3.bf16.msra.mxu0 %v31899_v5  ;;  %24970 = vmatpush3.bf16.msra.mxu1 %v31885_v9  ;;  %v31901_v5 = vld [vmem:[#allocation19_spill] sm:$0xff] }
 0x3e5   :  { %24941 = vmatprep.subr.bf16.mxu0 %v31743_v21  ;;  %24971 = vmatprep.subr.bf16.mxu1 %v31743_v21 }
 0x3e6   :  { %v2972_v32 = vpop.f32.mrb[20].mxu0 }
 0x3e7   :  { %v2973_v60 = vadd.f32 %v2972_v32, %v2869_v31  ;;  %v19660_v38 = vpop.f32.mrb[21].mxu0  ;;  %v31903_v31 = vld [vmem:[#allocation20_spill] sm:$0xff]  ;;  %v31906_v32 = vld [vmem:[#allocation63_spill] sm:$0xff] }
 0x3e8   :  { %24943 = vmatpush3.bf16.msra.mxu0 %v31900_v20  ;;  %24973 = vmatpush3.bf16.msra.mxu1 %v31886_v8  ;;  %v31904_v38 = vld [vmem:[#allocation58_spill] sm:$0xff] }
 0x3e9   :  { %24944 = vmatprep.subr.bf16.mxu0 %v31743_v21  ;;  %v3062_v2 = vadd.f32 %v3061_v29, %v2973_v60  ;;  %24998 = vmatprep.subr.bf16.mxu1 %v31743_v21  ;;  %v31905_v60 = vld [vmem:[#allocation61_spill] sm:$0xff] }
 0x3eb   :  { %20184 = vmatmul.mubr.f32.vlgmr.msra.gmra.mrb[46].mxu1 %v28923_v34 }
 0x3ec   :  { %24946 = vmatpush3.bf16.msra.mxu0 %v31901_v5  ;;  %25000 = vmatpush3.bf16.msra.mxu1 %v31902_v17 }
 0x3ed   :  { %24947 = vmatprep.subr.bf16.mxu0 %v31743_v21  ;;  %25001 = vmatprep.subr.bf16.mxu1 %v31743_v21 }
 0x3ee   :  { %20253 = vmatprep.mubr.msk.f32.mxu1 %vm27646_vm0, %v31741_v56 }
 0x3f0   :  { %24949 = vmatpush3.bf16.msra.mxu0 %v31903_v31  ;;  %25003 = vmatpush3.bf16.msra.mxu1 %v31904_v38  ;;  %v31908_v38 = vld [vmem:[#allocation66_spill] sm:$0xff] }
 0x3f1   :  { %24974 = vmatprep.subr.bf16.mxu0 %v31743_v21  ;;  %25004 = vmatprep.subr.bf16.mxu1 %v31743_v21 }
 0x3f3   :  { %20149 = vmatmul.mubr.f32.vlgmr.msra.gmra.mrb[34].mxu0 %v28923_v34  ;;  %v31907_v34 = vld [vmem:[#allocation65_spill] sm:$0xff] }
 0x3f4   :  { %24976 = vmatpush3.bf16.msra.mxu0 %v31844_v40  ;;  %25006 = vmatpush3.bf16.msra.mxu1 %v31905_v60 }
 0x3f5   :  { %24977 = vmatprep.subr.bf16.mxu0 %v31743_v21  ;;  %25007 = vmatprep.subr.bf16.mxu1 %v31743_v21 }
 0x3f6   :  { %20218 = vmatprep.mubr.msk.f32.mxu0 %vm27646_vm0, %v31741_v56 }
 0x3f8   :  { %24979 = vmatpush3.bf16.msra.mxu0 %v31846_v55  ;;  %25009 = vmatpush3.bf16.msra.mxu1 %v31906_v32  ;;  %v31909_v32 = vld [vmem:[#allocation67_spill] sm:$0xff] }
 0x3f9   :  { %24980 = vmatprep.subr.bf16.mxu0 %v31743_v21  ;;  %25010 = vmatprep.subr.bf16.mxu1 %v31743_v21 }
 0x3fc   :  { %24982 = vmatpush3.bf16.msra.mxu0 %v31848_v37  ;;  %25012 = vmatpush3.bf16.msra.mxu1 %v31907_v34 }
 0x3fd   :  { %24983 = vmatprep.subr.bf16.mxu0 %v31743_v21  ;;  %25013 = vmatprep.subr.bf16.mxu1 %v31743_v21 }
 0x3fe   :  { %v3267_v29 = vpop.f32.mrb[34].mxu1 }
 0x3ff   :  { %v19765_v60 = vpop.f32.mrb[35].mxu1 }
 0x400   :  { %24985 = vmatpush3.bf16.msra.mxu0 %v31850_v19  ;;  %25015 = vmatpush3.bf16.msra.mxu1 %v31908_v38  ;;  %v31910_v60 = vld [vmem:[#allocation68_spill] sm:$0xff] }
 0x401   :  { %24986 = vmatprep.subr.bf16.mxu0 %v31743_v21  ;;  %25016 = vmatprep.subr.bf16.mxu1 %v31743_v21 }
 0x404   :  { %24988 = vmatpush3.bf16.msra.mxu0 %v31852_v23  ;;  %25018 = vmatpush3.bf16.msra.mxu1 %v31909_v32 }
 0x405   :  { %24989 = vmatprep.subr.bf16.mxu0 %v31743_v21  ;;  %25019 = vmatprep.subr.bf16.mxu1 %v31743_v21 }
 0x406   :  { %v3180_v34 = vpop.f32.mrb[22].mxu0 }
 0x407   :  { %v3181_v31 = vadd.f32 %v3180_v34, %v3062_v2  ;;  %v19730_v17 = vpop.f32.mrb[23].mxu0 }
 0x408   :  { %24991 = vmatpush3.bf16.msra.mxu0 %v31854_v33  ;;  %25021 = vmatpush3.bf16.msra.mxu1 %v31910_v60 }
 0x409   :  { %v3268_v38 = vadd.f32 %v3267_v29, %v3181_v31  ;;  %24992 = vmatprep.subr.bf16.mxu0 %v31743_v21  ;;  %25046 = vmatprep.subr.bf16.mxu1 %v31743_v21 }
 0x40c   :  { %24994 = vmatpush3.bf16.msra.mxu0 %v31856_v1 }
 0x40d   :  { %24995 = vmatprep.subr.bf16.mxu0 %v31743_v21 }
 0x410   :  { %24997 = vmatpush3.bf16.msra.mxu0 %v31857_v50 }
 0x411   :  { %25022 = vmatprep.subr.bf16.mxu0 %v31743_v21 }
 0x41e   :  { %v3509_v32 = vpop.f32.mrb[36].mxu1 }
 0x41f   :  { %v19835_v2 = vpop.f32.mrb[37].mxu1 }
 0x426   :  { %v3358_v17 = vpop.f32.mrb[24].mxu0 }
 0x427   :  { %v3359_v34 = vadd.f32 %v3358_v17, %v3268_v38  ;;  %v19800_v5 = vpop.f32.mrb[25].mxu0 }
 0x429   :  { %v3510_v20 = vadd.f32 %v3509_v32, %v3359_v34  ;;  %v31912_v32 = vld [vmem:[#allocation54_spill] sm:$0xff]  ;;  %v31913_v34 = vld [vmem:[#allocation55_spill] sm:$0xff] }
 0x43e   :  { %v3702_v60 = vpop.f32.mrb[38].mxu1 }
 0x43f   :  { %v19905_v31 = vpop.f32.mrb[39].mxu1 }
 0x440   :  { %v31914_v31 = vld [vmem:[#allocation56_spill] sm:$0xff] }
 0x446   :  { %v3613_v29 = vpop.f32.mrb[26].mxu0 }
 0x447   :  { %v3614_v8 = vadd.f32 %v3613_v29, %v3510_v20  ;;  %v19870_v9 = vpop.f32.mrb[27].mxu0  ;;  %v31915_v29 = vld [vmem:[#allocation59_spill] sm:$0xff] }
 0x449   :  { %v3703_v7 = vadd.f32 %v3702_v60, %v3614_v8  ;;  %v31911_v8 = vld [vmem:[#allocation53_spill] sm:$0xff] }
 0x45e   :  { %v3908_v41 = vpop.f32.mrb[40].mxu1 }
 0x45f   :  { %v19975_v27 = vpop.f32.mrb[41].mxu1 }
 0x466   :  { %v3821_v18 = vpop.f32.mrb[28].mxu0 }
 0x467   :  { %v3822_v13 = vadd.f32 %v3821_v18, %v3703_v7  ;;  %v19940_v12 = vpop.f32.mrb[29].mxu0 }
 0x469   :  { %v3909_v39 = vadd.f32 %v3908_v41, %v3822_v13 }
 0x46b   :  { %v3912_v43 = vadd.f32 %v28809_v0, %v3909_v39 }
 0x46d   :  { %27589 = vtanh.f32 %v3912_v43 }
 0x477   :  { %v27590_v2 = vpop.eup %27589 }
 0x478   :  { %v29170_v3 = vand.u32 4294901760, %v27590_v2 }
 0x47a   :  { %20254 = vmatmul.mubr.f32.vlgmr.msra.gmra.mrb[48].mxu1 %v29170_v3  ;;  %v4641_v5 = vsub.f32 %v27590_v2, %v29170_v3  ;;  %v31916_v2 = vld [vmem:[#allocation60_spill] sm:$0xff] }
 0x47b   :  { %25048 = vmatpush3.bf16.msra.mxu1 %v31844_v40  ;;  %20323 = vmatprep.mubr.msk.f32.mxu1 %vm27646_vm0, %v31741_v56 }
 0x47c   :  { %25049 = vmatprep.subr.bf16.mxu1 %v31743_v21  ;;  %v4642_v18 = vand.u32 4294901760, %v4641_v5 }
 0x47e   :  { %v4154_v12 = vpop.f32.mrb[42].mxu1  ;;  %v4643_v13 = vsub.f32 %v4641_v5, %v4642_v18 }
 0x47f   :  { %25051 = vmatpush3.bf16.msra.mxu1 %v31846_v55  ;;  %v20045_v27 = vpop.f32.mrb[43].mxu1 }
 0x480   :  { %25052 = vmatprep.subr.bf16.mxu1 %v31743_v21  ;;  %v4644_v41 = vand.u32 4294901760, %v4643_v13  ;;  %v31919_v13 = vld [vmem:[#allocation64_spill] sm:$0xff]  ;;  %v31920_v27 = vld [vmem:[#allocation70_spill] sm:$0xff] }
 0x482   :  { %20219 = vmatmul.mubr.f32.vlgmr.msra.gmra.mrb[36].mxu0 %v4644_v41 }
 0x483   :  { %25024 = vmatpush3.bf16.msra.mxu0 %v31858_v61  ;;  %25054 = vmatpush3.bf16.msra.mxu1 %v31848_v37 }
 0x484   :  { %25025 = vmatprep.subr.bf16.mxu0 %v31743_v21  ;;  %25055 = vmatprep.subr.bf16.mxu1 %v31743_v21 }
 0x485   :  { %20288 = vmatprep.mubr.msk.f32.mxu0 %vm27646_vm0, %v31741_v56 }
 0x486   :  { %v4003_v7 = vpop.f32.mrb[30].mxu0 }
 0x487   :  { %v4155_v9 = vadd.f32 %v4154_v12, %v4003_v7  ;;  %25027 = vmatpush3.bf16.msra.mxu0 %v31859_v46  ;;  %25057 = vmatpush3.bf16.msra.mxu1 %v31850_v19  ;;  %v20010_v43 = vpop.f32.mrb[31].mxu0  ;;  %v31921_v7 = vld [vmem:[#allocation71_spill] sm:$0xff] }
 0x488   :  { %25028 = vmatprep.subr.bf16.mxu0 %v31743_v21  ;;  %25058 = vmatprep.subr.bf16.mxu1 %v31743_v21 }
 0x48b   :  { %25030 = vmatpush3.bf16.msra.mxu0 %v31860_v15  ;;  %25060 = vmatpush3.bf16.msra.mxu1 %v31852_v23 }
 0x48c   :  { %25031 = vmatprep.subr.bf16.mxu0 %v31743_v21  ;;  %25061 = vmatprep.subr.bf16.mxu1 %v31743_v21 }
 0x48f   :  { %25033 = vmatpush3.bf16.msra.mxu0 %v31861_v62  ;;  %25063 = vmatpush3.bf16.msra.mxu1 %v31854_v33 }
 0x490   :  { %25034 = vmatprep.subr.bf16.mxu0 %v31743_v21  ;;  %25064 = vmatprep.subr.bf16.mxu1 %v31743_v21 }
 0x493   :  { %25036 = vmatpush3.bf16.msra.mxu0 %v31862_v4  ;;  %25066 = vmatpush3.bf16.msra.mxu1 %v31856_v1 }
 0x494   :  { %25037 = vmatprep.subr.bf16.mxu0 %v31743_v21  ;;  %25067 = vmatprep.subr.bf16.mxu1 %v31743_v21 }
 0x497   :  { %25039 = vmatpush3.bf16.msra.mxu0 %v31863_v52  ;;  %25069 = vmatpush3.bf16.msra.mxu1 %v31857_v50 }
 0x498   :  { %25040 = vmatprep.subr.bf16.mxu0 %v31743_v21  ;;  %25094 = vmatprep.subr.bf16.mxu1 %v31743_v21 }
 0x49a   :  { %20324 = vmatmul.mubr.f32.vlgmr.msra.gmra.mrb[50].mxu1 %v4642_v18  ;;  %v31918_v18 = vld [vmem:[#allocation69_spill] sm:$0xff] }
 0x49b   :  { %25042 = vmatpush3.bf16.msra.mxu0 %v31864_v35  ;;  %25096 = vmatpush3.bf16.msra.mxu1 %v31844_v40 }
 0x49c   :  { %25043 = vmatprep.subr.bf16.mxu0 %v31743_v21  ;;  %25097 = vmatprep.subr.bf16.mxu1 %v31743_v21 }
 0x49d   :  { %20393 = vmatprep.mubr.msk.f32.mxu1 %vm27646_vm0, %v31741_v56 }
 0x49e   :  { %v4347_v39 = vpop.f32.mrb[44].mxu1 }
 0x49f   :  { %25045 = vmatpush3.bf16.msra.mxu0 %v31865_v6  ;;  %25099 = vmatpush3.bf16.msra.mxu1 %v31846_v55  ;;  %v20115_v0 = vpop.f32.mrb[45].mxu1 }
 0x4a0   :  { %25070 = vmatprep.subr.bf16.mxu0 %v31743_v21  ;;  %25100 = vmatprep.subr.bf16.mxu1 %v31743_v21 }
 0x4a2   :  { %20289 = vmatmul.mubr.f32.vlgmr.msra.gmra.mrb[38].mxu0 %v4641_v5  ;;  %v31917_v5 = vld [vmem:[#allocation62_spill] sm:$0xff] }
 0x4a3   :  { %25072 = vmatpush3.bf16.msra.mxu0 %v31911_v8  ;;  %25102 = vmatpush3.bf16.msra.mxu1 %v31848_v37 }
 0x4a4   :  { %25073 = vmatprep.subr.bf16.mxu0 %v31743_v21  ;;  %25103 = vmatprep.subr.bf16.mxu1 %v31743_v21 }
 0x4a5   :  { %20358 = vmatprep.mubr.msk.f32.mxu0 %vm27646_vm0, %v31741_v56 }
 0x4a6   :  { %v4258_v20 = vpop.f32.mrb[32].mxu0 }
 0x4a7   :  { %v4259_v38 = vadd.f32 %v4258_v20, %v4155_v9  ;;  %25075 = vmatpush3.bf16.msra.mxu0 %v31912_v32  ;;  %25105 = vmatpush3.bf16.msra.mxu1 %v31850_v19  ;;  %v20080_v60 = vpop.f32.mrb[33].mxu0 }
 0x4a8   :  { %25076 = vmatprep.subr.bf16.mxu0 %v31743_v21  ;;  %25106 = vmatprep.subr.bf16.mxu1 %v31743_v21 }
 0x4a9   :  { %v4348_v17 = vadd.f32 %v4347_v39, %v4259_v38 }
 0x4ab   :  { %25078 = vmatpush3.bf16.msra.mxu0 %v31913_v34  ;;  %25108 = vmatpush3.bf16.msra.mxu1 %v31852_v23 }
 0x4ac   :  { %25079 = vmatprep.subr.bf16.mxu0 %v31743_v21  ;;  %25109 = vmatprep.subr.bf16.mxu1 %v31743_v21 }
 0x4af   :  { %25081 = vmatpush3.bf16.msra.mxu0 %v31914_v31  ;;  %25111 = vmatpush3.bf16.msra.mxu1 %v31854_v33 }
 0x4b0   :  { %25082 = vmatprep.subr.bf16.mxu0 %v31743_v21  ;;  %25112 = vmatprep.subr.bf16.mxu1 %v31743_v21 }
 0x4b3   :  { %25084 = vmatpush3.bf16.msra.mxu0 %v31915_v29  ;;  %25114 = vmatpush3.bf16.msra.mxu1 %v31856_v1 }
 0x4b4   :  { %25085 = vmatprep.subr.bf16.mxu0 %v31743_v21  ;;  %25115 = vmatprep.subr.bf16.mxu1 %v31743_v21 }
 0x4b7   :  { %25087 = vmatpush3.bf16.msra.mxu0 %v31916_v2  ;;  %25117 = vmatpush3.bf16.msra.mxu1 %v31857_v50 }
 0x4b8   :  { %25088 = vmatprep.subr.bf16.mxu0 %v31743_v21  ;;  %25142 = vmatprep.subr.bf16.mxu1 %v31743_v21 }
 0x4ba   :  { %20394 = vmatmul.mubr.f32.vlgmr.msra.gmra.mrb[52].mxu1 %v29170_v3 }
 0x4bb   :  { %25090 = vmatpush3.bf16.msra.mxu0 %v31917_v5  ;;  %25144 = vmatpush3.bf16.msra.mxu1 %v31918_v18 }
 0x4bc   :  { %25091 = vmatprep.subr.bf16.mxu0 %v31743_v21  ;;  %25145 = vmatprep.subr.bf16.mxu1 %v31743_v21 }
 0x4bd   :  { %20463 = vmatprep.mubr.msk.f32.mxu1 %vm27646_vm0, %v31741_v56 }
 0x4be   :  { %v4553_v12 = vpop.f32.mrb[46].mxu1 }
 0x4bf   :  { %25093 = vmatpush3.bf16.msra.mxu0 %v31919_v13  ;;  %25147 = vmatpush3.bf16.msra.mxu1 %v31920_v27  ;;  %v20185_v41 = vpop.f32.mrb[47].mxu1 }
 0x4c0   :  { %25118 = vmatprep.subr.bf16.mxu0 %v31743_v21  ;;  %25148 = vmatprep.subr.bf16.mxu1 %v31743_v21 }
 0x4c2   :  { %20359 = vmatmul.mubr.f32.vlgmr.msra.gmra.mrb[40].mxu0 %v29170_v3  ;;  %v16159_v3 = vld [vmem:[%s31443_s0 + $0x10] sm:$0xff] }
 0x4c3   :  { %25120 = vmatpush3.bf16.msra.mxu0 %v28288_v44  ;;  %25150 = vmatpush3.bf16.msra.mxu1 %v31921_v7 }
 0x4c4   :  { %25121 = vmatprep.subr.bf16.mxu0 %v31743_v21  ;;  %25151 = vmatprep.subr.bf16.mxu1 %v31743_v21 }
 0x4c5   :  { %20428 = vmatprep.mubr.msk.f32.mxu0 %vm27646_vm0, %v31741_v56 }
 0x4c6   :  { %v4466_v9 = vpop.f32.mrb[34].mxu0 }
 0x4c7   :  { %v4467_v43 = vadd.f32 %v4466_v9, %v4348_v17  ;;  %25123 = vmatpush3.bf16.msra.mxu0 %v28291_v11  ;;  %25153 = vmatpush3.bf16.msra.mxu1 %v31877_v42  ;;  %v20150_v39 = vpop.f32.mrb[35].mxu0 }
 0x4c8   :  { %25124 = vmatprep.subr.bf16.mxu0 %v31743_v21  ;;  %25154 = vmatprep.subr.bf16.mxu1 %v31743_v21  ;;  %v31923_v39 = vld [vmem:[#allocation89_spill] sm:$0xff] }
 0x4c9   :  { %v4554_v0 = vadd.f32 %v4553_v12, %v4467_v43  ;;  %v31922_v43 = vld [vmem:[#allocation88_spill] sm:$0xff] }
 0x4cb   :  { %v4557_v20 = vadd.f32 %v16159_v3, %v4554_v0  ;;  %25126 = vmatpush3.bf16.msra.mxu0 %v28299_v24  ;;  %25156 = vmatpush3.bf16.msra.mxu1 %v31878_v48  ;;  %v31924_v3 = vld [vmem:[#allocation90_spill] sm:$0xff]  ;;  %v31925_v0 = vld [vmem:[#allocation91_spill] sm:$0xff] }
 0x4cc   :  { %25127 = vmatprep.subr.bf16.mxu0 %v31743_v21  ;;  %25157 = vmatprep.subr.bf16.mxu1 %v31743_v21 }
 0x4cd   :  { %27591 = vtanh.f32 %v4557_v20  ;;  %v31926_v20 = vld [vmem:[#allocation21_spill] sm:$0xff] }
 0x4cf   :  { %25129 = vmatpush3.bf16.msra.mxu0 %v28307_v14  ;;  %25159 = vmatpush3.bf16.msra.mxu1 %v31879_v47 }
 0x4d0   :  { %25130 = vmatprep.subr.bf16.mxu0 %v31743_v21  ;;  %25160 = vmatprep.subr.bf16.mxu1 %v31743_v21 }
 0x4d3   :  { %25132 = vmatpush3.bf16.msra.mxu0 %v28369_v59  ;;  %25162 = vmatpush3.bf16.msra.mxu1 %v31880_v36 }
 0x4d4   :  { %25133 = vmatprep.subr.bf16.mxu0 %v31743_v21  ;;  %25163 = vmatprep.subr.bf16.mxu1 %v31743_v21 }
 0x4d7   :  { %v27592_v38 = vpop.eup %27591  ;;  %25135 = vmatpush3.bf16.msra.mxu0 %v28387_v30  ;;  %25165 = vmatpush3.bf16.msra.mxu1 %v31881_v26 }
 0x4d8   :  { %v29281_v60 = vand.u32 4294901760, %v27592_v38  ;;  %25136 = vmatprep.subr.bf16.mxu0 %v31743_v21  ;;  %25190 = vmatprep.subr.bf16.mxu1 %v31743_v21 }
 0x4da   :  { %20464 = vmatmul.mubr.f32.vlgmr.msra.gmra.mrb[54].mxu1 %v29281_v60  ;;  %v29287_v17 = vsub.f32 %v27592_v38, %v29281_v60  ;;  %v31927_v38 = vld [vmem:[#allocation92_spill] sm:$0xff] }
 0x4db   :  { %25138 = vmatpush3.bf16.msra.mxu0 %v28404_v57  ;;  %25192 = vmatpush3.bf16.msra.mxu1 %v28288_v44 }
 0x4dc   :  { %25139 = vmatprep.subr.bf16.mxu0 %v31743_v21  ;;  %25193 = vmatprep.subr.bf16.mxu1 %v31743_v21  ;;  %v29294_v12 = vand.u32 4294901760, %v29287_v17 }
 0x4dd   :  { %20533 = vmatprep.mubr.msk.f32.mxu1 %vm27646_vm0, %v31741_v56 }
 0x4de   :  { %v5284_v41 = vsub.f32 %v29287_v17, %v29294_v12 }
 0x4df   :  { %25141 = vmatpush3.bf16.msra.mxu0 %v28421_v45  ;;  %25195 = vmatpush3.bf16.msra.mxu1 %v28291_v11 }
 0x4e0   :  { %25166 = vmatprep.subr.bf16.mxu0 %v31743_v21  ;;  %25196 = vmatprep.subr.bf16.mxu1 %v31743_v21  ;;  %v29304_v9 = vand.u32 4294901760, %v5284_v41  ;;  %v31928_v41 = vld [vmem:[#allocation22_spill] sm:$0xff] }
 0x4e2   :  { %20429 = vmatmul.mubr.f32.vlgmr.msra.gmra.mrb[42].mxu0 %v29304_v9 }
 0x4e3   :  { %25168 = vmatpush3.bf16.msra.mxu0 %v28448_v53  ;;  %25198 = vmatpush3.bf16.msra.mxu1 %v28299_v24 }
 0x4e4   :  { %25169 = vmatprep.subr.bf16.mxu0 %v31743_v21  ;;  %25199 = vmatprep.subr.bf16.mxu1 %v31743_v21 }
 0x4e5   :  { %20498 = vmatprep.mubr.msk.f32.mxu0 %vm27646_vm0, %v31741_v56 }
 0x4e7   :  { %25171 = vmatpush3.bf16.msra.mxu0 %v28462_v16  ;;  %25201 = vmatpush3.bf16.msra.mxu1 %v28307_v14 }
 0x4e8   :  { %25172 = vmatprep.subr.bf16.mxu0 %v31743_v21  ;;  %25202 = vmatprep.subr.bf16.mxu1 %v31743_v21 }
 0x4eb   :  { %25174 = vmatpush3.bf16.msra.mxu0 %v28476_v49  ;;  %25204 = vmatpush3.bf16.msra.mxu1 %v28369_v59 }
 0x4ec   :  { %25175 = vmatprep.subr.bf16.mxu0 %v31743_v21  ;;  %25205 = vmatprep.subr.bf16.mxu1 %v31743_v21 }
 0x4ef   :  { %25177 = vmatpush3.bf16.msra.mxu0 %v28485_v25  ;;  %25207 = vmatpush3.bf16.msra.mxu1 %v28387_v30 }
 0x4f0   :  { %25178 = vmatprep.subr.bf16.mxu0 %v31743_v21  ;;  %25208 = vmatprep.subr.bf16.mxu1 %v31743_v21 }
 0x4f3   :  { %25180 = vmatpush3.bf16.msra.mxu0 %v28493_v54  ;;  %25210 = vmatpush3.bf16.msra.mxu1 %v28404_v57 }
 0x4f4   :  { %25181 = vmatprep.subr.bf16.mxu0 %v31743_v21  ;;  %25211 = vmatprep.subr.bf16.mxu1 %v31743_v21 }
 0x4f7   :  { %25183 = vmatpush3.bf16.msra.mxu0 %v28499_v10  ;;  %25213 = vmatpush3.bf16.msra.mxu1 %v28421_v45 }
 0x4f8   :  { %25184 = vmatprep.subr.bf16.mxu0 %v31743_v21  ;;  %25238 = vmatprep.subr.bf16.mxu1 %v31743_v21 }
 0x4fa   :  { %20534 = vmatmul.mubr.f32.vlgmr.msra.gmra.mrb[56].mxu1 %v29294_v12 }
 0x4fb   :  { %25186 = vmatpush3.bf16.msra.mxu0 %v28503_v63  ;;  %25240 = vmatpush3.bf16.msra.mxu1 %v28288_v44  ;;  %v31946_v63 = vld [vmem:[#allocation32_spill] sm:$0xff] }
 0x4fc   :  { %25187 = vmatprep.subr.bf16.mxu0 %v31743_v21  ;;  %25241 = vmatprep.subr.bf16.mxu1 %v31743_v21 }
 0x4fd   :  { %20603 = vmatprep.mubr.msk.f32.mxu1 %vm27646_vm0, %v31741_v56 }
 0x4ff   :  { %25189 = vmatpush3.bf16.msra.mxu0 %v28507_v28  ;;  %25243 = vmatpush3.bf16.msra.mxu1 %v28291_v11 }
 0x500   :  { %25214 = vmatprep.subr.bf16.mxu0 %v31743_v21  ;;  %25244 = vmatprep.subr.bf16.mxu1 %v31743_v21 }
 0x502   :  { %20499 = vmatmul.mubr.f32.vlgmr.msra.gmra.mrb[44].mxu0 %v29287_v17 }
 0x503   :  { %25216 = vmatpush3.bf16.msra.mxu0 %v28573_v51  ;;  %25246 = vmatpush3.bf16.msra.mxu1 %v28299_v24  ;;  %v31944_v51 = vld [vmem:[#allocation30_spill] sm:$0xff] }
 0x504   :  { %25217 = vmatprep.subr.bf16.mxu0 %v31743_v21  ;;  %25247 = vmatprep.subr.bf16.mxu1 %v31743_v21 }
 0x505   :  { %20568 = vmatprep.mubr.msk.f32.mxu0 %vm27646_vm0, %v31741_v56 }
 0x507   :  { %25219 = vmatpush3.bf16.msra.mxu0 %v28584_v58  ;;  %25249 = vmatpush3.bf16.msra.mxu1 %v28307_v14  ;;  %v31940_v58 = vld [vmem:[#allocation28_spill] sm:$0xff] }
 0x508   :  { %25220 = vmatprep.subr.bf16.mxu0 %v31743_v21  ;;  %25250 = vmatprep.subr.bf16.mxu1 %v31743_v21 }
 0x50b   :  { %25222 = vmatpush3.bf16.msra.mxu0 %v28596_v22  ;;  %25252 = vmatpush3.bf16.msra.mxu1 %v28369_v59  ;;  %v31938_v22 = vld [vmem:[#allocation27_spill] sm:$0xff] }
 0x50c   :  { %25223 = vmatprep.subr.bf16.mxu0 %v31743_v21  ;;  %25253 = vmatprep.subr.bf16.mxu1 %v31743_v21 }
 0x50f   :  { %25225 = vmatpush3.bf16.msra.mxu0 %v31922_v43  ;;  %25255 = vmatpush3.bf16.msra.mxu1 %v28387_v30  ;;  %v31936_v43 = vld [vmem:[#allocation26_spill] sm:$0xff] }
 0x510   :  { %25226 = vmatprep.subr.bf16.mxu0 %v31743_v21  ;;  %25256 = vmatprep.subr.bf16.mxu1 %v31743_v21 }
 0x513   :  { %25228 = vmatpush3.bf16.msra.mxu0 %v31923_v39  ;;  %25258 = vmatpush3.bf16.msra.mxu1 %v28404_v57  ;;  %v31934_v39 = vld [vmem:[#allocation25_spill] sm:$0xff] }
 0x514   :  { %25229 = vmatprep.subr.bf16.mxu0 %v31743_v21  ;;  %25259 = vmatprep.subr.bf16.mxu1 %v31743_v21 }
 0x517   :  { %25231 = vmatpush3.bf16.msra.mxu0 %v31924_v3  ;;  %25261 = vmatpush3.bf16.msra.mxu1 %v28421_v45  ;;  %v31933_v3 = vld [vmem:[#allocation7_spill] sm:$0xff] }
 0x518   :  { %25232 = vmatprep.subr.bf16.mxu0 %v31743_v21  ;;  %25286 = vmatprep.subr.bf16.mxu1 %v31743_v21 }
 0x51a   :  { %20604 = vmatmul.mubr.f32.vlgmr.msra.gmra.mrb[58].mxu1 %v29281_v60 }
 0x51b   :  { %25234 = vmatpush3.bf16.msra.mxu0 %v31925_v0  ;;  %25288 = vmatpush3.bf16.msra.mxu1 %v31926_v20  ;;  %v31929_v0 = vld [vmem:[#allocation5_spill] sm:$0xff]  ;;  %v31930_v20 = vld [vmem:[#allocation23_spill] sm:$0xff] }
 0x51c   :  { %25235 = vmatprep.subr.bf16.mxu0 %v31743_v21  ;;  %25289 = vmatprep.subr.bf16.mxu1 %v31743_v21 }
 0x51d   :  { %20673 = vmatprep.mubr.msk.f32.mxu1 %vm27646_vm0, %v31741_v56 }
 0x51f   :  { %25237 = vmatpush3.bf16.msra.mxu0 %v31927_v38  ;;  %25291 = vmatpush3.bf16.msra.mxu1 %v31928_v41  ;;  %v31931_v38 = vld [vmem:[#allocation6_spill] sm:$0xff]  ;;  %v31932_v41 = vld [vmem:[#allocation24_spill] sm:$0xff] }
 0x520   :  { %25262 = vmatprep.subr.bf16.mxu0 %v31743_v21  ;;  %25292 = vmatprep.subr.bf16.mxu1 %v31743_v21 }
 0x522   :  { %20569 = vmatmul.mubr.f32.vlgmr.msra.gmra.mrb[46].mxu0 %v29281_v60 }
 0x523   :  { %25264 = vmatpush3.bf16.msra.mxu0 %v31929_v0  ;;  %25294 = vmatpush3.bf16.msra.mxu1 %v31930_v20  ;;  %v31935_v20 = vld [vmem:[#allocation8_spill] sm:$0xff] }
 0x524   :  { %25265 = vmatprep.subr.bf16.mxu0 %v31743_v21  ;;  %25295 = vmatprep.subr.bf16.mxu1 %v31743_v21 }
 0x525   :  { %20638 = vmatprep.mubr.msk.f32.mxu0 %vm27646_vm0, %v31741_v56 }
 0x527   :  { %25267 = vmatpush3.bf16.msra.mxu0 %v31931_v38  ;;  %25297 = vmatpush3.bf16.msra.mxu1 %v31932_v41  ;;  %v31937_v41 = vld [vmem:[#allocation9_spill] sm:$0xff] }
 0x528   :  { %25268 = vmatprep.subr.bf16.mxu0 %v31743_v21  ;;  %25298 = vmatprep.subr.bf16.mxu1 %v31743_v21 }
 0x52b   :  { %25270 = vmatpush3.bf16.msra.mxu0 %v31933_v3  ;;  %25300 = vmatpush3.bf16.msra.mxu1 %v31934_v39  ;;  %v31939_v39 = vld [vmem:[#allocation10_spill] sm:$0xff] }
 0x52c   :  { %25271 = vmatprep.subr.bf16.mxu0 %v31743_v21  ;;  %25301 = vmatprep.subr.bf16.mxu1 %v31743_v21 }
 0x52f   :  { %25273 = vmatpush3.bf16.msra.mxu0 %v31935_v20  ;;  %25303 = vmatpush3.bf16.msra.mxu1 %v31936_v43  ;;  %v31941_v43 = vld [vmem:[#allocation11_spill] sm:$0xff] }
 0x530   :  { %25274 = vmatprep.subr.bf16.mxu0 %v31743_v21  ;;  %25304 = vmatprep.subr.bf16.mxu1 %v31743_v21 }
 0x533   :  { %25276 = vmatpush3.bf16.msra.mxu0 %v31937_v41  ;;  %25306 = vmatpush3.bf16.msra.mxu1 %v31938_v22  ;;  %v31942_v22 = vld [vmem:[#allocation12_spill] sm:$0xff] }
 0x534   :  { %25277 = vmatprep.subr.bf16.mxu0 %v31743_v21  ;;  %25307 = vmatprep.subr.bf16.mxu1 %v31743_v21 }
 0x537   :  { %25279 = vmatpush3.bf16.msra.mxu0 %v31939_v39  ;;  %25309 = vmatpush3.bf16.msra.mxu1 %v31940_v58  ;;  %v31943_v58 = vld [vmem:[#allocation29_spill] sm:$0xff] }
 0x538   :  { %25280 = vmatprep.subr.bf16.mxu0 %v31743_v21  ;;  %25334 = vmatprep.subr.bf16.mxu1 %v31743_v21 }
 0x53a   :  { %20674 = vmatmul.mubr.f32.vlgmr.msra.gmra.mrb[60].mxu1 %v29281_v60 }
 0x53b   :  { %25282 = vmatpush3.bf16.msra.mxu0 %v31941_v43  ;;  %25336 = vmatpush3.bf16.msra.mxu1 %v31929_v0 }
 0x53c   :  { %25283 = vmatprep.subr.bf16.mxu0 %v31743_v21  ;;  %25337 = vmatprep.subr.bf16.mxu1 %v31743_v21 }
 0x53d   :  { %20743 = vmatprep.mubr.msk.f32.mxu1 %vm27646_vm0, %v31741_v56 }
 0x53f   :  { %25285 = vmatpush3.bf16.msra.mxu0 %v31942_v22  ;;  %25339 = vmatpush3.bf16.msra.mxu1 %v31931_v38 }
 0x540   :  { %25310 = vmatprep.subr.bf16.mxu0 %v31743_v21  ;;  %25340 = vmatprep.subr.bf16.mxu1 %v31743_v21 }
 0x542   :  { %20639 = vmatmul.mubr.f32.vlgmr.msra.gmra.mrb[48].mxu0 %v29304_v9  ;;  %v31945_v9 = vld [vmem:[#allocation31_spill] sm:$0xff] }
 0x543   :  { %25312 = vmatpush3.bf16.msra.mxu0 %v31943_v58  ;;  %25342 = vmatpush3.bf16.msra.mxu1 %v31933_v3 }
 0x544   :  { %25313 = vmatprep.subr.bf16.mxu0 %v31743_v21  ;;  %25343 = vmatprep.subr.bf16.mxu1 %v31743_v21 }
 0x545   :  { %20708 = vmatprep.mubr.msk.f32.mxu0 %vm27646_vm0, %v31741_v56 }
 0x547   :  { %25315 = vmatpush3.bf16.msra.mxu0 %v31944_v51  ;;  %25345 = vmatpush3.bf16.msra.mxu1 %v31935_v20  ;;  %v31947_v51 = vld [vmem:[#allocation33_spill] sm:$0xff] }
 0x548   :  { %25316 = vmatprep.subr.bf16.mxu0 %v31743_v21  ;;  %25346 = vmatprep.subr.bf16.mxu1 %v31743_v21 }
 0x54b   :  { %25318 = vmatpush3.bf16.msra.mxu0 %v31945_v9  ;;  %25348 = vmatpush3.bf16.msra.mxu1 %v31937_v41 }
 0x54c   :  { %25319 = vmatprep.subr.bf16.mxu0 %v31743_v21  ;;  %25349 = vmatprep.subr.bf16.mxu1 %v31743_v21 }
 0x54d   :  { %v4797_v58 = vpop.f32.mrb[48].mxu1 }
 0x54e   :  { %v20255_v28 = vpop.f32.mrb[49].mxu1 }
 0x54f   :  { %25321 = vmatpush3.bf16.msra.mxu0 %v31946_v63  ;;  %25351 = vmatpush3.bf16.msra.mxu1 %v31939_v39  ;;  %v31948_v28 = vld [vmem:[#allocation34_spill] sm:$0xff]  ;;  %v31958_v63 = vld [vmem:[#allocation57_spill] sm:$0xff] }
 0x550   :  { %25322 = vmatprep.subr.bf16.mxu0 %v31743_v21  ;;  %25352 = vmatprep.subr.bf16.mxu1 %v31743_v21 }
 0x553   :  { %25324 = vmatpush3.bf16.msra.mxu0 %v31947_v51  ;;  %25354 = vmatpush3.bf16.msra.mxu1 %v31941_v43  ;;  %v31949_v51 = vld [vmem:[#allocation35_spill] sm:$0xff] }
 0x554   :  { %25325 = vmatprep.subr.bf16.mxu0 %v31743_v21  ;;  %25355 = vmatprep.subr.bf16.mxu1 %v31743_v21 }
 0x555   :  { %v4646_v9 = vpop.f32.mrb[36].mxu0 }
 0x556   :  { %v4798_v10 = vadd.f32 %v4797_v58, %v4646_v9  ;;  %v20220_v54 = vpop.f32.mrb[37].mxu0  ;;  %v31951_v58 = vld [vmem:[#allocation13_spill] sm:$0xff] }
 0x557   :  { %25327 = vmatpush3.bf16.msra.mxu0 %v31948_v28  ;;  %25357 = vmatpush3.bf16.msra.mxu1 %v31942_v22  ;;  %v31950_v54 = vld [vmem:[#allocation36_spill] sm:$0xff] }
 0x558   :  { %25328 = vmatprep.subr.bf16.mxu0 %v31743_v21  ;;  %25382 = vmatprep.subr.bf16.mxu1 %v31743_v21 }
 0x55a   :  { %20744 = vmatmul.mubr.f32.vlgmr.msra.gmra.mrb[62].mxu1 %v29294_v12  ;;  %v31952_v12 = vld [vmem:[#allocation14_spill] sm:$0xff] }
 0x55b   :  { %25330 = vmatpush3.bf16.msra.mxu0 %v31949_v51  ;;  %25384 = vmatpush3.bf16.msra.mxu1 %v31929_v0 }
 0x55c   :  { %25331 = vmatprep.subr.bf16.mxu0 %v31743_v21  ;;  %25385 = vmatprep.subr.bf16.mxu1 %v31743_v21 }
 0x55d   :  { %20813 = vmatprep.mubr.msk.f32.mxu1 %vm27646_vm0, %v31741_v56 }
 0x55f   :  { %25333 = vmatpush3.bf16.msra.mxu0 %v31950_v54  ;;  %25387 = vmatpush3.bf16.msra.mxu1 %v31931_v38  ;;  %v31954_v54 = vld [vmem:[#allocation16_spill] sm:$0xff] }
 0x560   :  { %25358 = vmatprep.subr.bf16.mxu0 %v31743_v21  ;;  %25388 = vmatprep.subr.bf16.mxu1 %v31743_v21 }
 0x562   :  { %20709 = vmatmul.mubr.f32.vlgmr.msra.gmra.mrb[50].mxu0 %v29287_v17  ;;  %v31953_v17 = vld [vmem:[#allocation15_spill] sm:$0xff] }
 0x563   :  { %25360 = vmatpush3.bf16.msra.mxu0 %v31951_v58  ;;  %25390 = vmatpush3.bf16.msra.mxu1 %v31933_v3 }
 0x564   :  { %25361 = vmatprep.subr.bf16.mxu0 %v31743_v21  ;;  %25391 = vmatprep.subr.bf16.mxu1 %v31743_v21 }
 0x565   :  { %20778 = vmatprep.mubr.msk.f32.mxu0 %vm27646_vm0, %v31741_v56 }
 0x567   :  { %25363 = vmatpush3.bf16.msra.mxu0 %v31952_v12  ;;  %25393 = vmatpush3.bf16.msra.mxu1 %v31935_v20  ;;  %v31955_v12 = vld [vmem:[#allocation17_spill] sm:$0xff] }
 0x568   :  { %25364 = vmatprep.subr.bf16.mxu0 %v31743_v21  ;;  %25394 = vmatprep.subr.bf16.mxu1 %v31743_v21 }
 0x56b   :  { %25366 = vmatpush3.bf16.msra.mxu0 %v31953_v17  ;;  %25396 = vmatpush3.bf16.msra.mxu1 %v31937_v41 }
 0x56c   :  { %25367 = vmatprep.subr.bf16.mxu0 %v31743_v21  ;;  %25397 = vmatprep.subr.bf16.mxu1 %v31743_v21 }
 0x56d   :  { %v4990_v9 = vpop.f32.mrb[50].mxu1 }
 0x56e   :  { %v20325_v58 = vpop.f32.mrb[51].mxu1 }
 0x56f   :  { %25369 = vmatpush3.bf16.msra.mxu0 %v31954_v54  ;;  %25399 = vmatpush3.bf16.msra.mxu1 %v31939_v39  ;;  %v31956_v58 = vld [vmem:[#allocation18_spill] sm:$0xff] }
 0x570   :  { %25370 = vmatprep.subr.bf16.mxu0 %v31743_v21  ;;  %25400 = vmatprep.subr.bf16.mxu1 %v31743_v21 }
 0x573   :  { %25372 = vmatpush3.bf16.msra.mxu0 %v31955_v12  ;;  %25402 = vmatpush3.bf16.msra.mxu1 %v31941_v43  ;;  %v31957_v12 = vld [vmem:[#allocation19_spill] sm:$0xff] }
 0x574   :  { %25373 = vmatprep.subr.bf16.mxu0 %v31743_v21  ;;  %25403 = vmatprep.subr.bf16.mxu1 %v31743_v21 }
 0x575   :  { %v4901_v17 = vpop.f32.mrb[38].mxu0 }
 0x576   :  { %v4902_v51 = vadd.f32 %v4901_v17, %v4798_v10  ;;  %v20290_v28 = vpop.f32.mrb[39].mxu0  ;;  %v31959_v10 = vld [vmem:[#allocation20_spill] sm:$0xff]  ;;  %v31962_v17 = vld [vmem:[#allocation63_spill] sm:$0xff] }
 0x577   :  { %25375 = vmatpush3.bf16.msra.mxu0 %v31956_v58  ;;  %25405 = vmatpush3.bf16.msra.mxu1 %v31942_v22  ;;  %v31960_v28 = vld [vmem:[#allocation58_spill] sm:$0xff] }
 0x578   :  { %25376 = vmatprep.subr.bf16.mxu0 %v31743_v21  ;;  %v4991_v54 = vadd.f32 %v4990_v9, %v4902_v51  ;;  %25430 = vmatprep.subr.bf16.mxu1 %v31743_v21  ;;  %v31961_v51 = vld [vmem:[#allocation61_spill] sm:$0xff] }
 0x57a   :  { %20814 = vmatmul.mubr.f32.vlgmr.msra.gmra.mrb[64].mxu1 %v29281_v60 }
 0x57b   :  { %25378 = vmatpush3.bf16.msra.mxu0 %v31957_v12  ;;  %25432 = vmatpush3.bf16.msra.mxu1 %v31958_v63 }
 0x57c   :  { %25379 = vmatprep.subr.bf16.mxu0 %v31743_v21  ;;  %25433 = vmatprep.subr.bf16.mxu1 %v31743_v21 }
 0x57d   :  { %20883 = vmatprep.mubr.msk.f32.mxu1 %vm27646_vm0, %v31741_v56 }
 0x57f   :  { %25381 = vmatpush3.bf16.msra.mxu0 %v31959_v10  ;;  %25435 = vmatpush3.bf16.msra.mxu1 %v31960_v28  ;;  %v31964_v28 = vld [vmem:[#allocation66_spill] sm:$0xff] }
 0x580   :  { %25406 = vmatprep.subr.bf16.mxu0 %v31743_v21  ;;  %25436 = vmatprep.subr.bf16.mxu1 %v31743_v21 }
 0x582   :  { %20779 = vmatmul.mubr.f32.vlgmr.msra.gmra.mrb[52].mxu0 %v29281_v60  ;;  %v31963_v60 = vld [vmem:[#allocation65_spill] sm:$0xff] }
 0x583   :  { %25408 = vmatpush3.bf16.msra.mxu0 %v31844_v40  ;;  %25438 = vmatpush3.bf16.msra.mxu1 %v31961_v51 }
 0x584   :  { %25409 = vmatprep.subr.bf16.mxu0 %v31743_v21  ;;  %25439 = vmatprep.subr.bf16.mxu1 %v31743_v21 }
 0x585   :  { %20848 = vmatprep.mubr.msk.f32.mxu0 %vm27646_vm0, %v31741_v56 }
 0x587   :  { %25411 = vmatpush3.bf16.msra.mxu0 %v31846_v55  ;;  %25441 = vmatpush3.bf16.msra.mxu1 %v31962_v17  ;;  %v31965_v17 = vld [vmem:[#allocation67_spill] sm:$0xff] }
 0x588   :  { %25412 = vmatprep.subr.bf16.mxu0 %v31743_v21  ;;  %25442 = vmatprep.subr.bf16.mxu1 %v31743_v21 }
 0x58b   :  { %25414 = vmatpush3.bf16.msra.mxu0 %v31848_v37  ;;  %25444 = vmatpush3.bf16.msra.mxu1 %v31963_v60 }
 0x58c   :  { %25415 = vmatprep.subr.bf16.mxu0 %v31743_v21  ;;  %25445 = vmatprep.subr.bf16.mxu1 %v31743_v21 }
 0x58d   :  { %v5196_v9 = vpop.f32.mrb[52].mxu1 }
 0x58e   :  { %v20395_v51 = vpop.f32.mrb[53].mxu1 }
 0x58f   :  { %25417 = vmatpush3.bf16.msra.mxu0 %v31850_v19  ;;  %25447 = vmatpush3.bf16.msra.mxu1 %v31964_v28  ;;  %v31966_v51 = vld [vmem:[#allocation68_spill] sm:$0xff] }
 0x590   :  { %25418 = vmatprep.subr.bf16.mxu0 %v31743_v21  ;;  %25448 = vmatprep.subr.bf16.mxu1 %v31743_v21 }
 0x593   :  { %25420 = vmatpush3.bf16.msra.mxu0 %v31852_v23  ;;  %25450 = vmatpush3.bf16.msra.mxu1 %v31965_v17 }
 0x594   :  { %25421 = vmatprep.subr.bf16.mxu0 %v31743_v21  ;;  %25451 = vmatprep.subr.bf16.mxu1 %v31743_v21 }
 0x595   :  { %v5109_v60 = vpop.f32.mrb[40].mxu0 }
 0x596   :  { %v5110_v10 = vadd.f32 %v5109_v60, %v4991_v54  ;;  %v20360_v63 = vpop.f32.mrb[41].mxu0 }
 0x597   :  { %25423 = vmatpush3.bf16.msra.mxu0 %v31854_v33  ;;  %25453 = vmatpush3.bf16.msra.mxu1 %v31966_v51 }
 0x598   :  { %v5197_v28 = vadd.f32 %v5196_v9, %v5110_v10  ;;  %25424 = vmatprep.subr.bf16.mxu0 %v31743_v21  ;;  %25478 = vmatprep.subr.bf16.mxu1 %v31743_v21 }
 0x59b   :  { %25426 = vmatpush3.bf16.msra.mxu0 %v31856_v1 }
 0x59c   :  { %25427 = vmatprep.subr.bf16.mxu0 %v31743_v21 }
 0x59f   :  { %25429 = vmatpush3.bf16.msra.mxu0 %v31857_v50 }
 0x5a0   :  { %25454 = vmatprep.subr.bf16.mxu0 %v31743_v21 }
 0x5ad   :  { %v5438_v17 = vpop.f32.mrb[54].mxu1 }
 0x5ae   :  { %v20465_v54 = vpop.f32.mrb[55].mxu1 }
 0x5af   :  { %v29530_v54 = vld [vmem:[%s31445_s2] ss:$0 sm:$0xff] }
 0x5b5   :  { %v5287_v63 = vpop.f32.mrb[42].mxu0 }
 0x5b6   :  { %v5288_v60 = vadd.f32 %v5287_v63, %v5197_v28  ;;  %v20430_v12 = vpop.f32.mrb[43].mxu0 }
 0x5b8   :  { %v5439_v58 = vadd.f32 %v5438_v17, %v5288_v60 }
 0x5cd   :  { %v5631_v51 = vpop.f32.mrb[56].mxu1 }
 0x5ce   :  { %v20535_v10 = vpop.f32.mrb[57].mxu1 }
 0x5d5   :  { %v5542_v9 = vpop.f32.mrb[44].mxu0 }
 0x5d6   :  { %v5543_v22 = vadd.f32 %v5542_v9, %v5439_v58  ;;  %v20500_v43 = vpop.f32.mrb[45].mxu0 }
 0x5d8   :  { %v5632_v39 = vadd.f32 %v5631_v51, %v5543_v22 }
 0x5ed   :  { %v5837_v41 = vpop.f32.mrb[58].mxu1 }
 0x5ee   :  { %v20605_v20 = vpop.f32.mrb[59].mxu1 }
 0x5f5   :  { %v5750_v3 = vpop.f32.mrb[46].mxu0 }
 0x5f6   :  { %v5751_v38 = vadd.f32 %v5750_v3, %v5632_v39  ;;  %v20570_v0 = vpop.f32.mrb[47].mxu0 }
 0x5f8   :  { %v5838_v25 = vadd.f32 %v5837_v41, %v5751_v38 }
 0x5fa   :  { %v5841_v12 = vadd.f32 %v29530_v54, %v5838_v25 }
 0x5fc   :  { %27593 = vtanh.f32 %v5841_v12 }
 0x606   :  { %v27594_v28 = vpop.eup %27593 }
 0x607   :  { %v29533_v17 = vand.u32 4294901760, %v27594_v28 }
 0x609   :  { %20884 = vmatmul.mubr.f32.vlgmr.msra.gmra.mrb[66].mxu1 %v29533_v17  ;;  %v6570_v22 = vsub.f32 %v27594_v28, %v29533_v17 }
 0x60a   :  { %25480 = vmatpush3.bf16.msra.mxu1 %v31844_v40  ;;  %20953 = vmatprep.mubr.msk.f32.mxu1 %vm27646_vm0, %v31741_v56 }
 0x60b   :  { %25481 = vmatprep.subr.bf16.mxu1 %v31743_v21  ;;  %v6571_v43 = vand.u32 4294901760, %v6570_v22 }
 0x60d   :  { %v6083_v39 = vpop.f32.mrb[60].mxu1  ;;  %v6572_v3 = vsub.f32 %v6570_v22, %v6571_v43 }
 0x60e   :  { %25483 = vmatpush3.bf16.msra.mxu1 %v31846_v55  ;;  %v20675_v25 = vpop.f32.mrb[61].mxu1 }
 0x60f   :  { %25484 = vmatprep.subr.bf16.mxu1 %v31743_v21  ;;  %v6573_v0 = vand.u32 4294901760, %v6572_v3 }
 0x611   :  { %20849 = vmatmul.mubr.f32.vlgmr.msra.gmra.mrb[54].mxu0 %v6573_v0 }
 0x612   :  { %25456 = vmatpush3.bf16.msra.mxu0 %v31858_v61  ;;  %25486 = vmatpush3.bf16.msra.mxu1 %v31848_v37 }
 0x613   :  { %25457 = vmatprep.subr.bf16.mxu0 %v31743_v21  ;;  %25487 = vmatprep.subr.bf16.mxu1 %v31743_v21 }
 0x614   :  { %20918 = vmatprep.mubr.msk.f32.mxu0 %vm27646_vm0, %v31741_v56 }
 0x615   :  { %v5932_v20 = vpop.f32.mrb[48].mxu0 }
 0x616   :  { %v6084_v38 = vadd.f32 %v6083_v39, %v5932_v20  ;;  %25459 = vmatpush3.bf16.msra.mxu0 %v31859_v46  ;;  %25489 = vmatpush3.bf16.msra.mxu1 %v31850_v19  ;;  %v20640_v41 = vpop.f32.mrb[49].mxu0 }
 0x617   :  { %25460 = vmatprep.subr.bf16.mxu0 %v31743_v21  ;;  %25490 = vmatprep.subr.bf16.mxu1 %v31743_v21 }
 0x61a   :  { %25462 = vmatpush3.bf16.msra.mxu0 %v31860_v15  ;;  %25492 = vmatpush3.bf16.msra.mxu1 %v31852_v23 }
 0x61b   :  { %25463 = vmatprep.subr.bf16.mxu0 %v31743_v21  ;;  %25493 = vmatprep.subr.bf16.mxu1 %v31743_v21 }
 0x61e   :  { %25465 = vmatpush3.bf16.msra.mxu0 %v31861_v62  ;;  %25495 = vmatpush3.bf16.msra.mxu1 %v31854_v33 }
 0x61f   :  { %25466 = vmatprep.subr.bf16.mxu0 %v31743_v21  ;;  %25496 = vmatprep.subr.bf16.mxu1 %v31743_v21 }
 0x622   :  { %25468 = vmatpush3.bf16.msra.mxu0 %v31862_v4  ;;  %25498 = vmatpush3.bf16.msra.mxu1 %v31856_v1 }
 0x623   :  { %25469 = vmatprep.subr.bf16.mxu0 %v31743_v21  ;;  %25499 = vmatprep.subr.bf16.mxu1 %v31743_v21 }
 0x626   :  { %25471 = vmatpush3.bf16.msra.mxu0 %v31863_v52  ;;  %25501 = vmatpush3.bf16.msra.mxu1 %v31857_v50 }
 0x627   :  { %25472 = vmatprep.subr.bf16.mxu0 %v31743_v21  ;;  %25526 = vmatprep.subr.bf16.mxu1 %v31743_v21 }
 0x629   :  { %20954 = vmatmul.mubr.f32.vlgmr.msra.gmra.mrb[68].mxu1 %v6571_v43 }
 0x62a   :  { %25474 = vmatpush3.bf16.msra.mxu0 %v31864_v35  ;;  %25528 = vmatpush3.bf16.msra.mxu1 %v31844_v40 }
 0x62b   :  { %25475 = vmatprep.subr.bf16.mxu0 %v31743_v21  ;;  %25529 = vmatprep.subr.bf16.mxu1 %v31743_v21 }
 0x62c   :  { %21023 = vmatprep.mubr.msk.f32.mxu1 %vm27646_vm0, %v31741_v56 }
 0x62d   :  { %v6276_v58 = vpop.f32.mrb[62].mxu1 }
 0x62e   :  { %25477 = vmatpush3.bf16.msra.mxu0 %v31865_v6  ;;  %25531 = vmatpush3.bf16.msra.mxu1 %v31846_v55  ;;  %v20745_v51 = vpop.f32.mrb[63].mxu1 }
 0x62f   :  { %25502 = vmatprep.subr.bf16.mxu0 %v31743_v21  ;;  %25532 = vmatprep.subr.bf16.mxu1 %v31743_v21 }
 0x631   :  { %20919 = vmatmul.mubr.f32.vlgmr.msra.gmra.mrb[56].mxu0 %v6570_v22 }
 0x632   :  { %25504 = vmatpush3.bf16.msra.mxu0 %v31911_v8  ;;  %25534 = vmatpush3.bf16.msra.mxu1 %v31848_v37 }
 0x633   :  { %25505 = vmatprep.subr.bf16.mxu0 %v31743_v21  ;;  %25535 = vmatprep.subr.bf16.mxu1 %v31743_v21 }
 0x634   :  { %20988 = vmatprep.mubr.msk.f32.mxu0 %vm27646_vm0, %v31741_v56 }
 0x635   :  { %v6187_v63 = vpop.f32.mrb[50].mxu0 }
 0x636   :  { %v6188_v60 = vadd.f32 %v6187_v63, %v6084_v38  ;;  %25507 = vmatpush3.bf16.msra.mxu0 %v31912_v32  ;;  %25537 = vmatpush3.bf16.msra.mxu1 %v31850_v19  ;;  %v20710_v10 = vpop.f32.mrb[51].mxu0  ;;  %v31967_v63 = vld [vmem:[#allocation79_spill] sm:$0xff] }
 0x637   :  { %25508 = vmatprep.subr.bf16.mxu0 %v31743_v21  ;;  %25538 = vmatprep.subr.bf16.mxu1 %v31743_v21  ;;  %v31969_v10 = vld [vmem:[#allocation82_spill] sm:$0xff] }
 0x638   :  { %v6277_v9 = vadd.f32 %v6276_v58, %v6188_v60  ;;  %v31968_v60 = vld [vmem:[#allocation81_spill] sm:$0xff] }
 0x63a   :  { %25510 = vmatpush3.bf16.msra.mxu0 %v31913_v34  ;;  %25540 = vmatpush3.bf16.msra.mxu1 %v31852_v23 }
 0x63b   :  { %25511 = vmatprep.subr.bf16.mxu0 %v31743_v21  ;;  %25541 = vmatprep.subr.bf16.mxu1 %v31743_v21 }
 0x63e   :  { %25513 = vmatpush3.bf16.msra.mxu0 %v31914_v31  ;;  %25543 = vmatpush3.bf16.msra.mxu1 %v31854_v33 }
 0x63f   :  { %25514 = vmatprep.subr.bf16.mxu0 %v31743_v21  ;;  %25544 = vmatprep.subr.bf16.mxu1 %v31743_v21 }
 0x642   :  { %25516 = vmatpush3.bf16.msra.mxu0 %v31915_v29  ;;  %25546 = vmatpush3.bf16.msra.mxu1 %v31856_v1 }
 0x643   :  { %25517 = vmatprep.subr.bf16.mxu0 %v31743_v21  ;;  %25547 = vmatprep.subr.bf16.mxu1 %v31743_v21 }
 0x646   :  { %25519 = vmatpush3.bf16.msra.mxu0 %v31916_v2  ;;  %25549 = vmatpush3.bf16.msra.mxu1 %v31857_v50 }
 0x647   :  { %25520 = vmatprep.subr.bf16.mxu0 %v31743_v21  ;;  %25574 = vmatprep.subr.bf16.mxu1 %v31743_v21 }
 0x649   :  { %21024 = vmatmul.mubr.f32.vlgmr.msra.gmra.mrb[70].mxu1 %v29533_v17 }
 0x64a   :  { %25522 = vmatpush3.bf16.msra.mxu0 %v31917_v5  ;;  %25576 = vmatpush3.bf16.msra.mxu1 %v31918_v18 }
 0x64b   :  { %25523 = vmatprep.subr.bf16.mxu0 %v31743_v21  ;;  %25577 = vmatprep.subr.bf16.mxu1 %v31743_v21 }
 0x64c   :  { %21093 = vmatprep.mubr.msk.f32.mxu1 %vm27646_vm0, %v31741_v56 }
 0x64d   :  { %v6482_v12 = vpop.f32.mrb[64].mxu1 }
 0x64e   :  { %25525 = vmatpush3.bf16.msra.mxu0 %v31919_v13  ;;  %25579 = vmatpush3.bf16.msra.mxu1 %v31920_v27  ;;  %v20815_v28 = vpop.f32.mrb[65].mxu1 }
 0x64f   :  { %25550 = vmatprep.subr.bf16.mxu0 %v31743_v21  ;;  %25580 = vmatprep.subr.bf16.mxu1 %v31743_v21  ;;  %v31972_v28 = vld [vmem:[#allocation85_spill] sm:$0xff] }
 0x651   :  { %20989 = vmatmul.mubr.f32.vlgmr.msra.gmra.mrb[58].mxu0 %v29533_v17  ;;  %v16160_v17 = vld [vmem:[%s31443_s0 + $0x18] sm:$0xff] }
 0x652   :  { %25552 = vmatpush3.bf16.msra.mxu0 %v28288_v44  ;;  %25582 = vmatpush3.bf16.msra.mxu1 %v31921_v7 }
 0x653   :  { %25553 = vmatprep.subr.bf16.mxu0 %v31743_v21  ;;  %25583 = vmatprep.subr.bf16.mxu1 %v31743_v21 }
 0x654   :  { %21058 = vmatprep.mubr.msk.f32.mxu0 %vm27646_vm0, %v31741_v56 }
 0x655   :  { %v6395_v22 = vpop.f32.mrb[52].mxu0 }
 0x656   :  { %v6396_v43 = vadd.f32 %v6395_v22, %v6277_v9  ;;  %25555 = vmatpush3.bf16.msra.mxu0 %v28291_v11  ;;  %25585 = vmatpush3.bf16.msra.mxu1 %v31877_v42  ;;  %v20780_v39 = vpop.f32.mrb[53].mxu0  ;;  %v31970_v9 = vld [vmem:[#allocation83_spill] sm:$0xff]  ;;  %v31973_v22 = vld [vmem:[#allocation86_spill] sm:$0xff] }
 0x657   :  { %25556 = vmatprep.subr.bf16.mxu0 %v31743_v21  ;;  %25586 = vmatprep.subr.bf16.mxu1 %v31743_v21  ;;  %v31975_v39 = vld [vmem:[#allocation88_spill] sm:$0xff] }
 0x658   :  { %v6483_v3 = vadd.f32 %v6482_v12, %v6396_v43  ;;  %v31971_v12 = vld [vmem:[#allocation84_spill] sm:$0xff]  ;;  %v31974_v43 = vld [vmem:[#allocation87_spill] sm:$0xff] }
 0x65a   :  { %v6486_v25 = vadd.f32 %v16160_v17, %v6483_v3  ;;  %25558 = vmatpush3.bf16.msra.mxu0 %v28299_v24  ;;  %25588 = vmatpush3.bf16.msra.mxu1 %v31878_v48  ;;  %v31976_v17 = vld [vmem:[#allocation89_spill] sm:$0xff]  ;;  %v31977_v3 = vld [vmem:[#allocation90_spill] sm:$0xff] }
 0x65b   :  { %25559 = vmatprep.subr.bf16.mxu0 %v31743_v21  ;;  %25589 = vmatprep.subr.bf16.mxu1 %v31743_v21 }
 0x65c   :  { %27595 = vtanh.f32 %v6486_v25  ;;  %v31978_v25 = vld [vmem:[#allocation91_spill] sm:$0xff] }
 0x65e   :  { %25561 = vmatpush3.bf16.msra.mxu0 %v28307_v14  ;;  %25591 = vmatpush3.bf16.msra.mxu1 %v31879_v47 }
 0x65f   :  { %25562 = vmatprep.subr.bf16.mxu0 %v31743_v21  ;;  %25592 = vmatprep.subr.bf16.mxu1 %v31743_v21 }
 0x662   :  { %25564 = vmatpush3.bf16.msra.mxu0 %v28369_v59  ;;  %25594 = vmatpush3.bf16.msra.mxu1 %v31880_v36 }
 0x663   :  { %25565 = vmatprep.subr.bf16.mxu0 %v31743_v21  ;;  %25595 = vmatprep.subr.bf16.mxu1 %v31743_v21 }
 0x666   :  { %v27596_v0 = vpop.eup %27595  ;;  %25567 = vmatpush3.bf16.msra.mxu0 %v28387_v30  ;;  %25597 = vmatpush3.bf16.msra.mxu1 %v31881_v26 }
 0x667   :  { %v29644_v20 = vand.u32 4294901760, %v27596_v0  ;;  %25568 = vmatprep.subr.bf16.mxu0 %v31743_v21  ;;  %25622 = vmatprep.subr.bf16.mxu1 %v31743_v21 }
 0x669   :  { %21094 = vmatmul.mubr.f32.vlgmr.msra.gmra.mrb[72].mxu1 %v29644_v20  ;;  %v29650_v38 = vsub.f32 %v27596_v0, %v29644_v20  ;;  %v31979_v0 = vld [vmem:[#allocation21_spill] sm:$0xff] }
 0x66a   :  { %25570 = vmatpush3.bf16.msra.mxu0 %v28404_v57  ;;  %25624 = vmatpush3.bf16.msra.mxu1 %v28288_v44 }
 0x66b   :  { %25571 = vmatprep.subr.bf16.mxu0 %v31743_v21  ;;  %25625 = vmatprep.subr.bf16.mxu1 %v31743_v21  ;;  %v29657_v41 = vand.u32 4294901760, %v29650_v38 }
 0x66c   :  { %21163 = vmatprep.mubr.msk.f32.mxu1 %vm27646_vm0, %v31741_v56 }
 0x66d   :  { %v7213_v58 = vsub.f32 %v29650_v38, %v29657_v41 }
 0x66e   :  { %25573 = vmatpush3.bf16.msra.mxu0 %v28421_v45  ;;  %25627 = vmatpush3.bf16.msra.mxu1 %v28291_v11 }
 0x66f   :  { %25598 = vmatprep.subr.bf16.mxu0 %v31743_v21  ;;  %25628 = vmatprep.subr.bf16.mxu1 %v31743_v21  ;;  %v29667_v51 = vand.u32 4294901760, %v7213_v58  ;;  %v31980_v58 = vld [vmem:[#allocation92_spill] sm:$0xff] }
 0x671   :  { %21059 = vmatmul.mubr.f32.vlgmr.msra.gmra.mrb[60].mxu0 %v29667_v51 }
 0x672   :  { %25600 = vmatpush3.bf16.msra.mxu0 %v28448_v53  ;;  %25630 = vmatpush3.bf16.msra.mxu1 %v28299_v24 }
 0x673   :  { %25601 = vmatprep.subr.bf16.mxu0 %v31743_v21  ;;  %25631 = vmatprep.subr.bf16.mxu1 %v31743_v21 }
 0x674   :  { %21128 = vmatprep.mubr.msk.f32.mxu0 %vm27646_vm0, %v31741_v56 }
 0x676   :  { %25603 = vmatpush3.bf16.msra.mxu0 %v28462_v16  ;;  %25633 = vmatpush3.bf16.msra.mxu1 %v28307_v14 }
 0x677   :  { %25604 = vmatprep.subr.bf16.mxu0 %v31743_v21  ;;  %25634 = vmatprep.subr.bf16.mxu1 %v31743_v21 }
 0x67a   :  { %25606 = vmatpush3.bf16.msra.mxu0 %v28476_v49  ;;  %25636 = vmatpush3.bf16.msra.mxu1 %v28369_v59 }
 0x67b   :  { %25607 = vmatprep.subr.bf16.mxu0 %v31743_v21  ;;  %25637 = vmatprep.subr.bf16.mxu1 %v31743_v21 }
 0x67e   :  { %25609 = vmatpush3.bf16.msra.mxu0 %v31967_v63  ;;  %25639 = vmatpush3.bf16.msra.mxu1 %v28387_v30 }
 0x67f   :  { %25610 = vmatprep.subr.bf16.mxu0 %v31743_v21  ;;  %25640 = vmatprep.subr.bf16.mxu1 %v31743_v21 }
 0x682   :  { %25612 = vmatpush3.bf16.msra.mxu0 %v31968_v60  ;;  %25642 = vmatpush3.bf16.msra.mxu1 %v28404_v57 }
 0x683   :  { %25613 = vmatprep.subr.bf16.mxu0 %v31743_v21  ;;  %25643 = vmatprep.subr.bf16.mxu1 %v31743_v21 }
 0x686   :  { %25615 = vmatpush3.bf16.msra.mxu0 %v31969_v10  ;;  %25645 = vmatpush3.bf16.msra.mxu1 %v28421_v45  ;;  %v31999_v10 = vld [vmem:[#allocation32_spill] sm:$0xff] }
 0x687   :  { %25616 = vmatprep.subr.bf16.mxu0 %v31743_v21  ;;  %25670 = vmatprep.subr.bf16.mxu1 %v31743_v21 }
 0x689   :  { %21164 = vmatmul.mubr.f32.vlgmr.msra.gmra.mrb[74].mxu1 %v29657_v41 }
 0x68a   :  { %25618 = vmatpush3.bf16.msra.mxu0 %v31970_v9  ;;  %25672 = vmatpush3.bf16.msra.mxu1 %v28288_v44 }
 0x68b   :  { %25619 = vmatprep.subr.bf16.mxu0 %v31743_v21  ;;  %25673 = vmatprep.subr.bf16.mxu1 %v31743_v21 }
 0x68c   :  { %21233 = vmatprep.mubr.msk.f32.mxu1 %vm27646_vm0, %v31741_v56 }
 0x68e   :  { %25621 = vmatpush3.bf16.msra.mxu0 %v31971_v12  ;;  %25675 = vmatpush3.bf16.msra.mxu1 %v28291_v11  ;;  %v31997_v12 = vld [vmem:[#allocation30_spill] sm:$0xff] }
 0x68f   :  { %25646 = vmatprep.subr.bf16.mxu0 %v31743_v21  ;;  %25676 = vmatprep.subr.bf16.mxu1 %v31743_v21 }
 0x691   :  { %21129 = vmatmul.mubr.f32.vlgmr.msra.gmra.mrb[62].mxu0 %v29650_v38 }
 0x692   :  { %25648 = vmatpush3.bf16.msra.mxu0 %v31972_v28  ;;  %25678 = vmatpush3.bf16.msra.mxu1 %v28299_v24  ;;  %v31993_v28 = vld [vmem:[#allocation28_spill] sm:$0xff] }
 0x693   :  { %25649 = vmatprep.subr.bf16.mxu0 %v31743_v21  ;;  %25679 = vmatprep.subr.bf16.mxu1 %v31743_v21 }
 0x694   :  { %21198 = vmatprep.mubr.msk.f32.mxu0 %vm27646_vm0, %v31741_v56 }
 0x696   :  { %25651 = vmatpush3.bf16.msra.mxu0 %v31973_v22  ;;  %25681 = vmatpush3.bf16.msra.mxu1 %v28307_v14  ;;  %v31991_v22 = vld [vmem:[#allocation27_spill] sm:$0xff] }
 0x697   :  { %25652 = vmatprep.subr.bf16.mxu0 %v31743_v21  ;;  %25682 = vmatprep.subr.bf16.mxu1 %v31743_v21 }
 0x69a   :  { %25654 = vmatpush3.bf16.msra.mxu0 %v31974_v43  ;;  %25684 = vmatpush3.bf16.msra.mxu1 %v28369_v59  ;;  %v31989_v43 = vld [vmem:[#allocation26_spill] sm:$0xff] }
 0x69b   :  { %25655 = vmatprep.subr.bf16.mxu0 %v31743_v21  ;;  %25685 = vmatprep.subr.bf16.mxu1 %v31743_v21 }
 0x69e   :  { %25657 = vmatpush3.bf16.msra.mxu0 %v31975_v39  ;;  %25687 = vmatpush3.bf16.msra.mxu1 %v28387_v30  ;;  %v31987_v39 = vld [vmem:[#allocation25_spill] sm:$0xff] }
 0x69f   :  { %25658 = vmatprep.subr.bf16.mxu0 %v31743_v21  ;;  %25688 = vmatprep.subr.bf16.mxu1 %v31743_v21 }
 0x6a2   :  { %25660 = vmatpush3.bf16.msra.mxu0 %v31976_v17  ;;  %25690 = vmatpush3.bf16.msra.mxu1 %v28404_v57  ;;  %v31986_v17 = vld [vmem:[#allocation7_spill] sm:$0xff] }
 0x6a3   :  { %25661 = vmatprep.subr.bf16.mxu0 %v31743_v21  ;;  %25691 = vmatprep.subr.bf16.mxu1 %v31743_v21 }
 0x6a6   :  { %25663 = vmatpush3.bf16.msra.mxu0 %v31977_v3  ;;  %25693 = vmatpush3.bf16.msra.mxu1 %v28421_v45  ;;  %v31981_v3 = vld [vmem:[#allocation22_spill] sm:$0xff] }
 0x6a7   :  { %25664 = vmatprep.subr.bf16.mxu0 %v31743_v21  ;;  %25718 = vmatprep.subr.bf16.mxu1 %v31743_v21 }
 0x6a9   :  { %21234 = vmatmul.mubr.f32.vlgmr.msra.gmra.mrb[76].mxu1 %v29644_v20 }
 0x6aa   :  { %25666 = vmatpush3.bf16.msra.mxu0 %v31978_v25  ;;  %25720 = vmatpush3.bf16.msra.mxu1 %v31979_v0  ;;  %v31982_v25 = vld [vmem:[#allocation5_spill] sm:$0xff]  ;;  %v31983_v0 = vld [vmem:[#allocation23_spill] sm:$0xff] }
 0x6ab   :  { %25667 = vmatprep.subr.bf16.mxu0 %v31743_v21  ;;  %25721 = vmatprep.subr.bf16.mxu1 %v31743_v21 }
 0x6ac   :  { %21303 = vmatprep.mubr.msk.f32.mxu1 %vm27646_vm0, %v31741_v56 }
 0x6ae   :  { %25669 = vmatpush3.bf16.msra.mxu0 %v31980_v58  ;;  %25723 = vmatpush3.bf16.msra.mxu1 %v31981_v3  ;;  %v31984_v58 = vld [vmem:[#allocation6_spill] sm:$0xff]  ;;  %v31985_v3 = vld [vmem:[#allocation24_spill] sm:$0xff] }
 0x6af   :  { %25694 = vmatprep.subr.bf16.mxu0 %v31743_v21  ;;  %25724 = vmatprep.subr.bf16.mxu1 %v31743_v21 }
 0x6b1   :  { %21199 = vmatmul.mubr.f32.vlgmr.msra.gmra.mrb[64].mxu0 %v29644_v20 }
 0x6b2   :  { %25696 = vmatpush3.bf16.msra.mxu0 %v31982_v25  ;;  %25726 = vmatpush3.bf16.msra.mxu1 %v31983_v0  ;;  %v31988_v0 = vld [vmem:[#allocation8_spill] sm:$0xff] }
 0x6b3   :  { %25697 = vmatprep.subr.bf16.mxu0 %v31743_v21  ;;  %25727 = vmatprep.subr.bf16.mxu1 %v31743_v21 }
 0x6b4   :  { %21268 = vmatprep.mubr.msk.f32.mxu0 %vm27646_vm0, %v31741_v56 }
 0x6b6   :  { %25699 = vmatpush3.bf16.msra.mxu0 %v31984_v58  ;;  %25729 = vmatpush3.bf16.msra.mxu1 %v31985_v3  ;;  %v31990_v3 = vld [vmem:[#allocation9_spill] sm:$0xff] }
 0x6b7   :  { %25700 = vmatprep.subr.bf16.mxu0 %v31743_v21  ;;  %25730 = vmatprep.subr.bf16.mxu1 %v31743_v21 }
 0x6ba   :  { %25702 = vmatpush3.bf16.msra.mxu0 %v31986_v17  ;;  %25732 = vmatpush3.bf16.msra.mxu1 %v31987_v39  ;;  %v31992_v39 = vld [vmem:[#allocation10_spill] sm:$0xff] }
 0x6bb   :  { %25703 = vmatprep.subr.bf16.mxu0 %v31743_v21  ;;  %25733 = vmatprep.subr.bf16.mxu1 %v31743_v21 }
 0x6be   :  { %25705 = vmatpush3.bf16.msra.mxu0 %v31988_v0  ;;  %25735 = vmatpush3.bf16.msra.mxu1 %v31989_v43  ;;  %v31994_v43 = vld [vmem:[#allocation11_spill] sm:$0xff] }
 0x6bf   :  { %25706 = vmatprep.subr.bf16.mxu0 %v31743_v21  ;;  %25736 = vmatprep.subr.bf16.mxu1 %v31743_v21 }
 0x6c2   :  { %25708 = vmatpush3.bf16.msra.mxu0 %v31990_v3  ;;  %25738 = vmatpush3.bf16.msra.mxu1 %v31991_v22  ;;  %v31995_v22 = vld [vmem:[#allocation12_spill] sm:$0xff] }
 0x6c3   :  { %25709 = vmatprep.subr.bf16.mxu0 %v31743_v21  ;;  %25739 = vmatprep.subr.bf16.mxu1 %v31743_v21 }
 0x6c6   :  { %25711 = vmatpush3.bf16.msra.mxu0 %v31992_v39  ;;  %25741 = vmatpush3.bf16.msra.mxu1 %v31993_v28  ;;  %v31996_v28 = vld [vmem:[#allocation29_spill] sm:$0xff] }
 0x6c7   :  { %25712 = vmatprep.subr.bf16.mxu0 %v31743_v21  ;;  %25766 = vmatprep.subr.bf16.mxu1 %v31743_v21 }
 0x6c9   :  { %21304 = vmatmul.mubr.f32.vlgmr.msra.gmra.mrb[78].mxu1 %v29644_v20 }
 0x6ca   :  { %25714 = vmatpush3.bf16.msra.mxu0 %v31994_v43  ;;  %25768 = vmatpush3.bf16.msra.mxu1 %v31982_v25 }
 0x6cb   :  { %25715 = vmatprep.subr.bf16.mxu0 %v31743_v21  ;;  %25769 = vmatprep.subr.bf16.mxu1 %v31743_v21 }
 0x6cc   :  { %21373 = vmatprep.mubr.msk.f32.mxu1 %vm27646_vm0, %v31741_v56 }
 0x6ce   :  { %25717 = vmatpush3.bf16.msra.mxu0 %v31995_v22  ;;  %25771 = vmatpush3.bf16.msra.mxu1 %v31984_v58 }
 0x6cf   :  { %25742 = vmatprep.subr.bf16.mxu0 %v31743_v21  ;;  %25772 = vmatprep.subr.bf16.mxu1 %v31743_v21 }
 0x6d1   :  { %21269 = vmatmul.mubr.f32.vlgmr.msra.gmra.mrb[66].mxu0 %v29667_v51  ;;  %v31998_v51 = vld [vmem:[#allocation31_spill] sm:$0xff] }
 0x6d2   :  { %25744 = vmatpush3.bf16.msra.mxu0 %v31996_v28  ;;  %25774 = vmatpush3.bf16.msra.mxu1 %v31986_v17 }
 0x6d3   :  { %25745 = vmatprep.subr.bf16.mxu0 %v31743_v21  ;;  %25775 = vmatprep.subr.bf16.mxu1 %v31743_v21 }
 0x6d4   :  { %21338 = vmatprep.mubr.msk.f32.mxu0 %vm27646_vm0, %v31741_v56 }
 0x6d6   :  { %25747 = vmatpush3.bf16.msra.mxu0 %v31997_v12  ;;  %25777 = vmatpush3.bf16.msra.mxu1 %v31988_v0  ;;  %v32000_v12 = vld [vmem:[#allocation33_spill] sm:$0xff] }
 0x6d7   :  { %25748 = vmatprep.subr.bf16.mxu0 %v31743_v21  ;;  %25778 = vmatprep.subr.bf16.mxu1 %v31743_v21 }
 0x6da   :  { %25750 = vmatpush3.bf16.msra.mxu0 %v31998_v51  ;;  %25780 = vmatpush3.bf16.msra.mxu1 %v31990_v3 }
 0x6db   :  { %25751 = vmatprep.subr.bf16.mxu0 %v31743_v21  ;;  %25781 = vmatprep.subr.bf16.mxu1 %v31743_v21 }
 0x6dc   :  { %v6726_v28 = vpop.f32.mrb[66].mxu1 }
 0x6dd   :  { %v20885_v9 = vpop.f32.mrb[67].mxu1 }
 0x6de   :  { %25753 = vmatpush3.bf16.msra.mxu0 %v31999_v10  ;;  %25783 = vmatpush3.bf16.msra.mxu1 %v31992_v39  ;;  %v32001_v9 = vld [vmem:[#allocation34_spill] sm:$0xff]  ;;  %v32011_v10 = vld [vmem:[#allocation57_spill] sm:$0xff] }
 0x6df   :  { %25754 = vmatprep.subr.bf16.mxu0 %v31743_v21  ;;  %25784 = vmatprep.subr.bf16.mxu1 %v31743_v21 }
 0x6e2   :  { %25756 = vmatpush3.bf16.msra.mxu0 %v32000_v12  ;;  %25786 = vmatpush3.bf16.msra.mxu1 %v31994_v43  ;;  %v32002_v12 = vld [vmem:[#allocation35_spill] sm:$0xff] }
 0x6e3   :  { %25757 = vmatprep.subr.bf16.mxu0 %v31743_v21  ;;  %25787 = vmatprep.subr.bf16.mxu1 %v31743_v21 }
 0x6e4   :  { %v6575_v51 = vpop.f32.mrb[54].mxu0 }
 0x6e5   :  { %v6727_v60 = vadd.f32 %v6726_v28, %v6575_v51  ;;  %v20850_v63 = vpop.f32.mrb[55].mxu0  ;;  %v32005_v28 = vld [vmem:[#allocation14_spill] sm:$0xff] }
 0x6e6   :  { %25759 = vmatpush3.bf16.msra.mxu0 %v32001_v9  ;;  %25789 = vmatpush3.bf16.msra.mxu1 %v31995_v22  ;;  %v32003_v63 = vld [vmem:[#allocation36_spill] sm:$0xff] }
 0x6e7   :  { %25760 = vmatprep.subr.bf16.mxu0 %v31743_v21  ;;  %25814 = vmatprep.subr.bf16.mxu1 %v31743_v21 }
 0x6e9   :  { %21374 = vmatmul.mubr.f32.vlgmr.msra.gmra.mrb[80].mxu1 %v29657_v41  ;;  %v32004_v41 = vld [vmem:[#allocation13_spill] sm:$0xff] }
 0x6ea   :  { %25762 = vmatpush3.bf16.msra.mxu0 %v32002_v12  ;;  %25816 = vmatpush3.bf16.msra.mxu1 %v31982_v25 }
 0x6eb   :  { %25763 = vmatprep.subr.bf16.mxu0 %v31743_v21  ;;  %25817 = vmatprep.subr.bf16.mxu1 %v31743_v21 }
 0x6ec   :  { %21443 = vmatprep.mubr.msk.f32.mxu1 %vm27646_vm0, %v31741_v56 }
 0x6ee   :  { %25765 = vmatpush3.bf16.msra.mxu0 %v32003_v63  ;;  %25819 = vmatpush3.bf16.msra.mxu1 %v31984_v58  ;;  %v32007_v63 = vld [vmem:[#allocation16_spill] sm:$0xff] }
 0x6ef   :  { %25790 = vmatprep.subr.bf16.mxu0 %v31743_v21  ;;  %25820 = vmatprep.subr.bf16.mxu1 %v31743_v21 }
 0x6f1   :  { %21339 = vmatmul.mubr.f32.vlgmr.msra.gmra.mrb[68].mxu0 %v29650_v38  ;;  %v32006_v38 = vld [vmem:[#allocation15_spill] sm:$0xff] }
 0x6f2   :  { %25792 = vmatpush3.bf16.msra.mxu0 %v32004_v41  ;;  %25822 = vmatpush3.bf16.msra.mxu1 %v31986_v17 }
 0x6f3   :  { %25793 = vmatprep.subr.bf16.mxu0 %v31743_v21  ;;  %25823 = vmatprep.subr.bf16.mxu1 %v31743_v21 }
 0x6f4   :  { %21408 = vmatprep.mubr.msk.f32.mxu0 %vm27646_vm0, %v31741_v56 }
 0x6f6   :  { %25795 = vmatpush3.bf16.msra.mxu0 %v32005_v28  ;;  %25825 = vmatpush3.bf16.msra.mxu1 %v31988_v0  ;;  %v32008_v28 = vld [vmem:[#allocation17_spill] sm:$0xff] }
 0x6f7   :  { %25796 = vmatprep.subr.bf16.mxu0 %v31743_v21  ;;  %25826 = vmatprep.subr.bf16.mxu1 %v31743_v21 }
 0x6fa   :  { %25798 = vmatpush3.bf16.msra.mxu0 %v32006_v38  ;;  %25828 = vmatpush3.bf16.msra.mxu1 %v31990_v3 }
 0x6fb   :  { %25799 = vmatprep.subr.bf16.mxu0 %v31743_v21  ;;  %25829 = vmatprep.subr.bf16.mxu1 %v31743_v21 }
 0x6fc   :  { %v6919_v51 = vpop.f32.mrb[68].mxu1 }
 0x6fd   :  { %v20955_v41 = vpop.f32.mrb[69].mxu1 }
 0x6fe   :  { %25801 = vmatpush3.bf16.msra.mxu0 %v32007_v63  ;;  %25831 = vmatpush3.bf16.msra.mxu1 %v31992_v39  ;;  %v32009_v41 = vld [vmem:[#allocation18_spill] sm:$0xff] }
 0x6ff   :  { %25802 = vmatprep.subr.bf16.mxu0 %v31743_v21  ;;  %25832 = vmatprep.subr.bf16.mxu1 %v31743_v21 }
 0x702   :  { %25804 = vmatpush3.bf16.msra.mxu0 %v32008_v28  ;;  %25834 = vmatpush3.bf16.msra.mxu1 %v31994_v43  ;;  %v32010_v28 = vld [vmem:[#allocation19_spill] sm:$0xff] }
 0x703   :  { %25805 = vmatprep.subr.bf16.mxu0 %v31743_v21  ;;  %25835 = vmatprep.subr.bf16.mxu1 %v31743_v21 }
 0x704   :  { %v6830_v38 = vpop.f32.mrb[56].mxu0 }
 0x705   :  { %v6831_v12 = vadd.f32 %v6830_v38, %v6727_v60  ;;  %v20920_v9 = vpop.f32.mrb[57].mxu0  ;;  %v32012_v60 = vld [vmem:[#allocation20_spill] sm:$0xff]  ;;  %v32015_v38 = vld [vmem:[#allocation63_spill] sm:$0xff] }
 0x706   :  { %25807 = vmatpush3.bf16.msra.mxu0 %v32009_v41  ;;  %25837 = vmatpush3.bf16.msra.mxu1 %v31995_v22  ;;  %v32013_v9 = vld [vmem:[#allocation58_spill] sm:$0xff] }
 0x707   :  { %25808 = vmatprep.subr.bf16.mxu0 %v31743_v21  ;;  %v6920_v63 = vadd.f32 %v6919_v51, %v6831_v12  ;;  %25862 = vmatprep.subr.bf16.mxu1 %v31743_v21  ;;  %v32014_v12 = vld [vmem:[#allocation61_spill] sm:$0xff] }
 0x709   :  { %21444 = vmatmul.mubr.f32.vlgmr.msra.gmra.mrb[82].mxu1 %v29644_v20 }
 0x70a   :  { %25810 = vmatpush3.bf16.msra.mxu0 %v32010_v28  ;;  %25864 = vmatpush3.bf16.msra.mxu1 %v32011_v10 }
 0x70b   :  { %25811 = vmatprep.subr.bf16.mxu0 %v31743_v21  ;;  %25865 = vmatprep.subr.bf16.mxu1 %v31743_v21 }
 0x70c   :  { %21513 = vmatprep.mubr.msk.f32.mxu1 %vm27646_vm0, %v31741_v56 }
 0x70e   :  { %25813 = vmatpush3.bf16.msra.mxu0 %v32012_v60  ;;  %25867 = vmatpush3.bf16.msra.mxu1 %v32013_v9  ;;  %v32017_v9 = vld [vmem:[#allocation66_spill] sm:$0xff] }
 0x70f   :  { %25838 = vmatprep.subr.bf16.mxu0 %v31743_v21  ;;  %25868 = vmatprep.subr.bf16.mxu1 %v31743_v21 }
 0x711   :  { %21409 = vmatmul.mubr.f32.vlgmr.msra.gmra.mrb[70].mxu0 %v29644_v20  ;;  %v32016_v20 = vld [vmem:[#allocation65_spill] sm:$0xff] }
 0x712   :  { %25840 = vmatpush3.bf16.msra.mxu0 %v31844_v40  ;;  %25870 = vmatpush3.bf16.msra.mxu1 %v32014_v12 }
 0x713   :  { %25841 = vmatprep.subr.bf16.mxu0 %v31743_v21  ;;  %25871 = vmatprep.subr.bf16.mxu1 %v31743_v21 }
 0x714   :  { %21478 = vmatprep.mubr.msk.f32.mxu0 %vm27646_vm0, %v31741_v56 }
 0x716   :  { %25843 = vmatpush3.bf16.msra.mxu0 %v31846_v55  ;;  %25873 = vmatpush3.bf16.msra.mxu1 %v32015_v38  ;;  %v32018_v38 = vld [vmem:[#allocation67_spill] sm:$0xff] }
 0x717   :  { %25844 = vmatprep.subr.bf16.mxu0 %v31743_v21  ;;  %25874 = vmatprep.subr.bf16.mxu1 %v31743_v21 }
 0x71a   :  { %25846 = vmatpush3.bf16.msra.mxu0 %v31848_v37  ;;  %25876 = vmatpush3.bf16.msra.mxu1 %v32016_v20 }
 0x71b   :  { %25847 = vmatprep.subr.bf16.mxu0 %v31743_v21  ;;  %25877 = vmatprep.subr.bf16.mxu1 %v31743_v21 }
 0x71c   :  { %v7125_v51 = vpop.f32.mrb[70].mxu1 }
 0x71d   :  { %v21025_v12 = vpop.f32.mrb[71].mxu1 }
 0x71e   :  { %25849 = vmatpush3.bf16.msra.mxu0 %v31850_v19  ;;  %25879 = vmatpush3.bf16.msra.mxu1 %v32017_v9  ;;  %v32019_v12 = vld [vmem:[#allocation68_spill] sm:$0xff] }
 0x71f   :  { %25850 = vmatprep.subr.bf16.mxu0 %v31743_v21  ;;  %25880 = vmatprep.subr.bf16.mxu1 %v31743_v21 }
 0x722   :  { %25852 = vmatpush3.bf16.msra.mxu0 %v31852_v23  ;;  %25882 = vmatpush3.bf16.msra.mxu1 %v32018_v38 }
 0x723   :  { %25853 = vmatprep.subr.bf16.mxu0 %v31743_v21  ;;  %25883 = vmatprep.subr.bf16.mxu1 %v31743_v21 }
 0x724   :  { %v7038_v20 = vpop.f32.mrb[58].mxu0 }
 0x725   :  { %v7039_v60 = vadd.f32 %v7038_v20, %v6920_v63  ;;  %v20990_v10 = vpop.f32.mrb[59].mxu0 }
 0x726   :  { %25855 = vmatpush3.bf16.msra.mxu0 %v31854_v33  ;;  %25885 = vmatpush3.bf16.msra.mxu1 %v32019_v12 }
 0x727   :  { %v7126_v9 = vadd.f32 %v7125_v51, %v7039_v60  ;;  %25856 = vmatprep.subr.bf16.mxu0 %v31743_v21  ;;  %25910 = vmatprep.subr.bf16.mxu1 %v31743_v21 }
 0x72a   :  { %25858 = vmatpush3.bf16.msra.mxu0 %v31856_v1 }
 0x72b   :  { %25859 = vmatprep.subr.bf16.mxu0 %v31743_v21 }
 0x72e   :  { %25861 = vmatpush3.bf16.msra.mxu0 %v31857_v50 }
 0x72f   :  { %25886 = vmatprep.subr.bf16.mxu0 %v31743_v21 }
 0x73c   :  { %v7367_v38 = vpop.f32.mrb[72].mxu1 }
 0x73d   :  { %v21095_v63 = vpop.f32.mrb[73].mxu1 }
 0x744   :  { %v7216_v10 = vpop.f32.mrb[60].mxu0 }
 0x745   :  { %v7217_v20 = vadd.f32 %v7216_v10, %v7126_v9  ;;  %v21060_v28 = vpop.f32.mrb[61].mxu0 }
 0x747   :  { %v7368_v41 = vadd.f32 %v7367_v38, %v7217_v20 }
 0x75c   :  { %v7560_v12 = vpop.f32.mrb[74].mxu1 }
 0x75d   :  { %v21165_v60 = vpop.f32.mrb[75].mxu1 }
 0x764   :  { %v7471_v51 = vpop.f32.mrb[62].mxu0 }
 0x765   :  { %v7472_v22 = vadd.f32 %v7471_v51, %v7368_v41  ;;  %v21130_v43 = vpop.f32.mrb[63].mxu0 }
 0x767   :  { %v7561_v39 = vadd.f32 %v7560_v12, %v7472_v22 }
 0x77c   :  { %v7766_v3 = vpop.f32.mrb[76].mxu1 }
 0x77d   :  { %v21235_v0 = vpop.f32.mrb[77].mxu1 }
 0x784   :  { %v7679_v17 = vpop.f32.mrb[64].mxu0 }
 0x785   :  { %v7680_v58 = vadd.f32 %v7679_v17, %v7561_v39  ;;  %v21200_v25 = vpop.f32.mrb[65].mxu0 }
 0x787   :  { %v7767_v49 = vadd.f32 %v7766_v3, %v7680_v58 }
 0x789   :  { %v7770_v16 = vadd.f32 %v29530_v54, %v7767_v49 }
 0x78b   :  { %27597 = vtanh.f32 %v7770_v16 }
 0x795   :  { %v27598_v63 = vpop.eup %27597 }
 0x796   :  { %v29891_v53 = vand.u32 4294901760, %v27598_v63 }
 0x798   :  { %21514 = vmatmul.mubr.f32.vlgmr.msra.gmra.mrb[84].mxu1 %v29891_v53  ;;  %v8499_v28 = vsub.f32 %v27598_v63, %v29891_v53 }
 0x799   :  { %25912 = vmatpush3.bf16.msra.mxu1 %v31844_v40  ;;  %21583 = vmatprep.mubr.msk.f32.mxu1 %vm27646_vm0, %v31741_v56 }
 0x79a   :  { %25913 = vmatprep.subr.bf16.mxu1 %v31743_v21  ;;  %v8500_v22 = vand.u32 4294901760, %v8499_v28 }
 0x79c   :  { %v8012_v43 = vpop.f32.mrb[78].mxu1  ;;  %v8501_v39 = vsub.f32 %v8499_v28, %v8500_v22 }
 0x79d   :  { %25915 = vmatpush3.bf16.msra.mxu1 %v31846_v55  ;;  %v21305_v49 = vpop.f32.mrb[79].mxu1 }
 0x79e   :  { %25916 = vmatprep.subr.bf16.mxu1 %v31743_v21  ;;  %v8502_v16 = vand.u32 4294901760, %v8501_v39 }
 0x7a0   :  { %21479 = vmatmul.mubr.f32.vlgmr.msra.gmra.mrb[72].mxu0 %v8502_v16 }
 0x7a1   :  { %25888 = vmatpush3.bf16.msra.mxu0 %v31858_v61  ;;  %25918 = vmatpush3.bf16.msra.mxu1 %v31848_v37 }
 0x7a2   :  { %25889 = vmatprep.subr.bf16.mxu0 %v31743_v21  ;;  %25919 = vmatprep.subr.bf16.mxu1 %v31743_v21 }
 0x7a3   :  { %21548 = vmatprep.mubr.msk.f32.mxu0 %vm27646_vm0, %v31741_v56 }
 0x7a4   :  { %v7861_v54 = vpop.f32.mrb[66].mxu0 }
 0x7a5   :  { %v8013_v17 = vadd.f32 %v8012_v43, %v7861_v54  ;;  %25891 = vmatpush3.bf16.msra.mxu0 %v31859_v46  ;;  %25921 = vmatpush3.bf16.msra.mxu1 %v31850_v19  ;;  %v21270_v3 = vpop.f32.mrb[67].mxu0 }
 0x7a6   :  { %25892 = vmatprep.subr.bf16.mxu0 %v31743_v21  ;;  %25922 = vmatprep.subr.bf16.mxu1 %v31743_v21  ;;  %v32021_v3 = vld [vmem:[#allocation75_spill] sm:$0xff] }
 0x7a9   :  { %25894 = vmatpush3.bf16.msra.mxu0 %v31860_v15  ;;  %25924 = vmatpush3.bf16.msra.mxu1 %v31852_v23 }
 0x7aa   :  { %25895 = vmatprep.subr.bf16.mxu0 %v31743_v21  ;;  %25925 = vmatprep.subr.bf16.mxu1 %v31743_v21 }
 0x7ad   :  { %25897 = vmatpush3.bf16.msra.mxu0 %v31861_v62  ;;  %25927 = vmatpush3.bf16.msra.mxu1 %v31854_v33 }
 0x7ae   :  { %25898 = vmatprep.subr.bf16.mxu0 %v31743_v21  ;;  %25928 = vmatprep.subr.bf16.mxu1 %v31743_v21 }
 0x7b1   :  { %25900 = vmatpush3.bf16.msra.mxu0 %v31862_v4  ;;  %25930 = vmatpush3.bf16.msra.mxu1 %v31856_v1 }
 0x7b2   :  { %25901 = vmatprep.subr.bf16.mxu0 %v31743_v21  ;;  %25931 = vmatprep.subr.bf16.mxu1 %v31743_v21 }
 0x7b5   :  { %25903 = vmatpush3.bf16.msra.mxu0 %v31863_v52  ;;  %25933 = vmatpush3.bf16.msra.mxu1 %v31857_v50 }
 0x7b6   :  { %25904 = vmatprep.subr.bf16.mxu0 %v31743_v21  ;;  %25958 = vmatprep.subr.bf16.mxu1 %v31743_v21 }
 0x7b8   :  { %21584 = vmatmul.mubr.f32.vlgmr.msra.gmra.mrb[86].mxu1 %v8500_v22 }
 0x7b9   :  { %25906 = vmatpush3.bf16.msra.mxu0 %v31864_v35  ;;  %25960 = vmatpush3.bf16.msra.mxu1 %v31844_v40 }
 0x7ba   :  { %25907 = vmatprep.subr.bf16.mxu0 %v31743_v21  ;;  %25961 = vmatprep.subr.bf16.mxu1 %v31743_v21 }
 0x7bb   :  { %21653 = vmatprep.mubr.msk.f32.mxu1 %vm27646_vm0, %v31741_v56 }
 0x7bc   :  { %v8205_v25 = vpop.f32.mrb[80].mxu1 }
 0x7bd   :  { %25909 = vmatpush3.bf16.msra.mxu0 %v31865_v6  ;;  %25963 = vmatpush3.bf16.msra.mxu1 %v31846_v55  ;;  %v21375_v0 = vpop.f32.mrb[81].mxu1 }
 0x7be   :  { %25934 = vmatprep.subr.bf16.mxu0 %v31743_v21  ;;  %25964 = vmatprep.subr.bf16.mxu1 %v31743_v21  ;;  %v32023_v0 = vld [vmem:[#allocation79_spill] sm:$0xff] }
 0x7c0   :  { %21549 = vmatmul.mubr.f32.vlgmr.msra.gmra.mrb[74].mxu0 %v8499_v28 }
 0x7c1   :  { %25936 = vmatpush3.bf16.msra.mxu0 %v31911_v8  ;;  %25966 = vmatpush3.bf16.msra.mxu1 %v31848_v37 }
 0x7c2   :  { %25937 = vmatprep.subr.bf16.mxu0 %v31743_v21  ;;  %25967 = vmatprep.subr.bf16.mxu1 %v31743_v21 }
 0x7c3   :  { %21618 = vmatprep.mubr.msk.f32.mxu0 %vm27646_vm0, %v31741_v56 }
 0x7c4   :  { %v8116_v58 = vpop.f32.mrb[68].mxu0 }
 0x7c5   :  { %v8117_v41 = vadd.f32 %v8116_v58, %v8013_v17  ;;  %25939 = vmatpush3.bf16.msra.mxu0 %v31912_v32  ;;  %25969 = vmatpush3.bf16.msra.mxu1 %v31850_v19  ;;  %v21340_v9 = vpop.f32.mrb[69].mxu0  ;;  %v32020_v17 = vld [vmem:[#allocation74_spill] sm:$0xff]  ;;  %v32024_v58 = vld [vmem:[#allocation81_spill] sm:$0xff] }
 0x7c6   :  { %25940 = vmatprep.subr.bf16.mxu0 %v31743_v21  ;;  %25970 = vmatprep.subr.bf16.mxu1 %v31743_v21  ;;  %v32026_v9 = vld [vmem:[#allocation83_spill] sm:$0xff] }
 0x7c7   :  { %v8206_v38 = vadd.f32 %v8205_v25, %v8117_v41  ;;  %v32022_v25 = vld [vmem:[#allocation77_spill] sm:$0xff]  ;;  %v32025_v41 = vld [vmem:[#allocation82_spill] sm:$0xff] }
 0x7c9   :  { %25942 = vmatpush3.bf16.msra.mxu0 %v31913_v34  ;;  %25972 = vmatpush3.bf16.msra.mxu1 %v31852_v23 }
 0x7ca   :  { %25943 = vmatprep.subr.bf16.mxu0 %v31743_v21  ;;  %25973 = vmatprep.subr.bf16.mxu1 %v31743_v21 }
 0x7cd   :  { %25945 = vmatpush3.bf16.msra.mxu0 %v31914_v31  ;;  %25975 = vmatpush3.bf16.msra.mxu1 %v31854_v33 }
 0x7ce   :  { %25946 = vmatprep.subr.bf16.mxu0 %v31743_v21  ;;  %25976 = vmatprep.subr.bf16.mxu1 %v31743_v21 }
 0x7d1   :  { %25948 = vmatpush3.bf16.msra.mxu0 %v31915_v29  ;;  %25978 = vmatpush3.bf16.msra.mxu1 %v31856_v1 }
 0x7d2   :  { %25949 = vmatprep.subr.bf16.mxu0 %v31743_v21  ;;  %25979 = vmatprep.subr.bf16.mxu1 %v31743_v21 }
 0x7d5   :  { %25951 = vmatpush3.bf16.msra.mxu0 %v31916_v2  ;;  %25981 = vmatpush3.bf16.msra.mxu1 %v31857_v50 }
 0x7d6   :  { %25952 = vmatprep.subr.bf16.mxu0 %v31743_v21  ;;  %26006 = vmatprep.subr.bf16.mxu1 %v31743_v21 }
 0x7d8   :  { %21654 = vmatmul.mubr.f32.vlgmr.msra.gmra.mrb[88].mxu1 %v29891_v53 }
 0x7d9   :  { %25954 = vmatpush3.bf16.msra.mxu0 %v31917_v5  ;;  %26008 = vmatpush3.bf16.msra.mxu1 %v31918_v18 }
 0x7da   :  { %25955 = vmatprep.subr.bf16.mxu0 %v31743_v21  ;;  %26009 = vmatprep.subr.bf16.mxu1 %v31743_v21 }
 0x7db   :  { %21723 = vmatprep.mubr.msk.f32.mxu1 %vm27646_vm0, %v31741_v56 }
 0x7dc   :  { %v8411_v12 = vpop.f32.mrb[82].mxu1 }
 0x7dd   :  { %25957 = vmatpush3.bf16.msra.mxu0 %v31919_v13  ;;  %26011 = vmatpush3.bf16.msra.mxu1 %v31920_v27  ;;  %v21445_v10 = vpop.f32.mrb[83].mxu1 }
 0x7de   :  { %25982 = vmatprep.subr.bf16.mxu0 %v31743_v21  ;;  %26012 = vmatprep.subr.bf16.mxu1 %v31743_v21  ;;  %v32029_v10 = vld [vmem:[#allocation86_spill] sm:$0xff] }
 0x7e0   :  { %21619 = vmatmul.mubr.f32.vlgmr.msra.gmra.mrb[76].mxu0 %v29891_v53  ;;  %v16161_v53 = vld [vmem:[%s31443_s0 + $0x20] sm:$0xff] }
 0x7e1   :  { %25984 = vmatpush3.bf16.msra.mxu0 %v28288_v44  ;;  %26014 = vmatpush3.bf16.msra.mxu1 %v31921_v7 }
 0x7e2   :  { %25985 = vmatprep.subr.bf16.mxu0 %v31743_v21  ;;  %26015 = vmatprep.subr.bf16.mxu1 %v31743_v21 }
 0x7e3   :  { %21688 = vmatprep.mubr.msk.f32.mxu0 %vm27646_vm0, %v31741_v56 }
 0x7e4   :  { %v8324_v20 = vpop.f32.mrb[70].mxu0 }
 0x7e5   :  { %v8325_v60 = vadd.f32 %v8324_v20, %v8206_v38  ;;  %25987 = vmatpush3.bf16.msra.mxu0 %v28291_v11  ;;  %26017 = vmatpush3.bf16.msra.mxu1 %v31877_v42  ;;  %v21410_v51 = vpop.f32.mrb[71].mxu0  ;;  %v32027_v38 = vld [vmem:[#allocation84_spill] sm:$0xff]  ;;  %v32030_v20 = vld [vmem:[#allocation87_spill] sm:$0xff] }
 0x7e6   :  { %25988 = vmatprep.subr.bf16.mxu0 %v31743_v21  ;;  %26018 = vmatprep.subr.bf16.mxu1 %v31743_v21  ;;  %v32032_v51 = vld [vmem:[#allocation89_spill] sm:$0xff] }
 0x7e7   :  { %v8412_v63 = vadd.f32 %v8411_v12, %v8325_v60  ;;  %v32028_v12 = vld [vmem:[#allocation85_spill] sm:$0xff]  ;;  %v32031_v60 = vld [vmem:[#allocation88_spill] sm:$0xff] }
 0x7e9   :  { %v8415_v28 = vadd.f32 %v16161_v53, %v8412_v63  ;;  %25990 = vmatpush3.bf16.msra.mxu0 %v28299_v24  ;;  %26020 = vmatpush3.bf16.msra.mxu1 %v31878_v48  ;;  %v32033_v53 = vld [vmem:[#allocation90_spill] sm:$0xff]  ;;  %v32034_v63 = vld [vmem:[#allocation91_spill] sm:$0xff] }
 0x7ea   :  { %25991 = vmatprep.subr.bf16.mxu0 %v31743_v21  ;;  %26021 = vmatprep.subr.bf16.mxu1 %v31743_v21 }
 0x7eb   :  { %27599 = vtanh.f32 %v8415_v28  ;;  %v32035_v28 = vld [vmem:[#allocation21_spill] sm:$0xff] }
 0x7ed   :  { %25993 = vmatpush3.bf16.msra.mxu0 %v28307_v14  ;;  %26023 = vmatpush3.bf16.msra.mxu1 %v31879_v47 }
 0x7ee   :  { %25994 = vmatprep.subr.bf16.mxu0 %v31743_v21  ;;  %26024 = vmatprep.subr.bf16.mxu1 %v31743_v21 }
 0x7f1   :  { %25996 = vmatpush3.bf16.msra.mxu0 %v28369_v59  ;;  %26026 = vmatpush3.bf16.msra.mxu1 %v31880_v36 }
 0x7f2   :  { %25997 = vmatprep.subr.bf16.mxu0 %v31743_v21  ;;  %26027 = vmatprep.subr.bf16.mxu1 %v31743_v21 }
 0x7f5   :  { %v27600_v22 = vpop.eup %27599  ;;  %25999 = vmatpush3.bf16.msra.mxu0 %v28387_v30  ;;  %26029 = vmatpush3.bf16.msra.mxu1 %v31881_v26 }
 0x7f6   :  { %v30002_v43 = vand.u32 4294901760, %v27600_v22  ;;  %26000 = vmatprep.subr.bf16.mxu0 %v31743_v21  ;;  %26054 = vmatprep.subr.bf16.mxu1 %v31743_v21 }
 0x7f8   :  { %21724 = vmatmul.mubr.f32.vlgmr.msra.gmra.mrb[90].mxu1 %v30002_v43  ;;  %v30008_v39 = vsub.f32 %v27600_v22, %v30002_v43  ;;  %v32036_v22 = vld [vmem:[#allocation92_spill] sm:$0xff] }
 0x7f9   :  { %26002 = vmatpush3.bf16.msra.mxu0 %v28404_v57  ;;  %26056 = vmatpush3.bf16.msra.mxu1 %v28288_v44 }
 0x7fa   :  { %26003 = vmatprep.subr.bf16.mxu0 %v31743_v21  ;;  %26057 = vmatprep.subr.bf16.mxu1 %v31743_v21  ;;  %v30015_v49 = vand.u32 4294901760, %v30008_v39 }
 0x7fb   :  { %21793 = vmatprep.mubr.msk.f32.mxu1 %vm27646_vm0, %v31741_v56 }
 0x7fc   :  { %v9142_v16 = vsub.f32 %v30008_v39, %v30015_v49 }
 0x7fd   :  { %26005 = vmatpush3.bf16.msra.mxu0 %v28421_v45  ;;  %26059 = vmatpush3.bf16.msra.mxu1 %v28291_v11 }
 0x7fe   :  { %26030 = vmatprep.subr.bf16.mxu0 %v31743_v21  ;;  %26060 = vmatprep.subr.bf16.mxu1 %v31743_v21  ;;  %v30025_v54 = vand.u32 4294901760, %v9142_v16  ;;  %v32037_v16 = vld [vmem:[#allocation22_spill] sm:$0xff] }
 0x800   :  { %21689 = vmatmul.mubr.f32.vlgmr.msra.gmra.mrb[78].mxu0 %v30025_v54 }
 0x801   :  { %26032 = vmatpush3.bf16.msra.mxu0 %v32020_v17  ;;  %26062 = vmatpush3.bf16.msra.mxu1 %v28299_v24 }
 0x802   :  { %26033 = vmatprep.subr.bf16.mxu0 %v31743_v21  ;;  %26063 = vmatprep.subr.bf16.mxu1 %v31743_v21 }
 0x803   :  { %21758 = vmatprep.mubr.msk.f32.mxu0 %vm27646_vm0, %v31741_v56 }
 0x805   :  { %26035 = vmatpush3.bf16.msra.mxu0 %v32021_v3  ;;  %26065 = vmatpush3.bf16.msra.mxu1 %v28307_v14 }
 0x806   :  { %26036 = vmatprep.subr.bf16.mxu0 %v31743_v21  ;;  %26066 = vmatprep.subr.bf16.mxu1 %v31743_v21 }
 0x809   :  { %26038 = vmatpush3.bf16.msra.mxu0 %v32022_v25  ;;  %26068 = vmatpush3.bf16.msra.mxu1 %v28369_v59 }
 0x80a   :  { %26039 = vmatprep.subr.bf16.mxu0 %v31743_v21  ;;  %26069 = vmatprep.subr.bf16.mxu1 %v31743_v21 }
 0x80d   :  { %26041 = vmatpush3.bf16.msra.mxu0 %v32023_v0  ;;  %26071 = vmatpush3.bf16.msra.mxu1 %v28387_v30 }
 0x80e   :  { %26042 = vmatprep.subr.bf16.mxu0 %v31743_v21  ;;  %26072 = vmatprep.subr.bf16.mxu1 %v31743_v21 }
 0x811   :  { %26044 = vmatpush3.bf16.msra.mxu0 %v32024_v58  ;;  %26074 = vmatpush3.bf16.msra.mxu1 %v28404_v57 }
 0x812   :  { %26045 = vmatprep.subr.bf16.mxu0 %v31743_v21  ;;  %26075 = vmatprep.subr.bf16.mxu1 %v31743_v21 }
 0x815   :  { %26047 = vmatpush3.bf16.msra.mxu0 %v32025_v41  ;;  %26077 = vmatpush3.bf16.msra.mxu1 %v28421_v45 }
 0x816   :  { %26048 = vmatprep.subr.bf16.mxu0 %v31743_v21  ;;  %26102 = vmatprep.subr.bf16.mxu1 %v31743_v21 }
 0x818   :  { %21794 = vmatmul.mubr.f32.vlgmr.msra.gmra.mrb[92].mxu1 %v30015_v49 }
 0x819   :  { %26050 = vmatpush3.bf16.msra.mxu0 %v32026_v9  ;;  %26104 = vmatpush3.bf16.msra.mxu1 %v28288_v44  ;;  %v32055_v9 = vld [vmem:[#allocation32_spill] sm:$0xff] }
 0x81a   :  { %26051 = vmatprep.subr.bf16.mxu0 %v31743_v21  ;;  %26105 = vmatprep.subr.bf16.mxu1 %v31743_v21 }
 0x81b   :  { %21863 = vmatprep.mubr.msk.f32.mxu1 %vm27646_vm0, %v31741_v56 }
 0x81d   :  { %26053 = vmatpush3.bf16.msra.mxu0 %v32027_v38  ;;  %26107 = vmatpush3.bf16.msra.mxu1 %v28291_v11 }
 0x81e   :  { %26078 = vmatprep.subr.bf16.mxu0 %v31743_v21  ;;  %26108 = vmatprep.subr.bf16.mxu1 %v31743_v21 }
 0x820   :  { %21759 = vmatmul.mubr.f32.vlgmr.msra.gmra.mrb[80].mxu0 %v30008_v39 }
 0x821   :  { %26080 = vmatpush3.bf16.msra.mxu0 %v32028_v12  ;;  %26110 = vmatpush3.bf16.msra.mxu1 %v28299_v24  ;;  %v32053_v12 = vld [vmem:[#allocation30_spill] sm:$0xff] }
 0x822   :  { %26081 = vmatprep.subr.bf16.mxu0 %v31743_v21  ;;  %26111 = vmatprep.subr.bf16.mxu1 %v31743_v21 }
 0x823   :  { %21828 = vmatprep.mubr.msk.f32.mxu0 %vm27646_vm0, %v31741_v56 }
 0x825   :  { %26083 = vmatpush3.bf16.msra.mxu0 %v32029_v10  ;;  %26113 = vmatpush3.bf16.msra.mxu1 %v28307_v14  ;;  %v32049_v10 = vld [vmem:[#allocation28_spill] sm:$0xff] }
 0x826   :  { %26084 = vmatprep.subr.bf16.mxu0 %v31743_v21  ;;  %26114 = vmatprep.subr.bf16.mxu1 %v31743_v21 }
 0x829   :  { %26086 = vmatpush3.bf16.msra.mxu0 %v32030_v20  ;;  %26116 = vmatpush3.bf16.msra.mxu1 %v28369_v59  ;;  %v32047_v20 = vld [vmem:[#allocation27_spill] sm:$0xff] }
 0x82a   :  { %26087 = vmatprep.subr.bf16.mxu0 %v31743_v21  ;;  %26117 = vmatprep.subr.bf16.mxu1 %v31743_v21 }
 0x82d   :  { %26089 = vmatpush3.bf16.msra.mxu0 %v32031_v60  ;;  %26119 = vmatpush3.bf16.msra.mxu1 %v28387_v30  ;;  %v32045_v60 = vld [vmem:[#allocation26_spill] sm:$0xff] }
 0x82e   :  { %26090 = vmatprep.subr.bf16.mxu0 %v31743_v21  ;;  %26120 = vmatprep.subr.bf16.mxu1 %v31743_v21 }
 0x831   :  { %26092 = vmatpush3.bf16.msra.mxu0 %v32032_v51  ;;  %26122 = vmatpush3.bf16.msra.mxu1 %v28404_v57  ;;  %v32043_v51 = vld [vmem:[#allocation25_spill] sm:$0xff] }
 0x832   :  { %26093 = vmatprep.subr.bf16.mxu0 %v31743_v21  ;;  %26123 = vmatprep.subr.bf16.mxu1 %v31743_v21 }
 0x835   :  { %26095 = vmatpush3.bf16.msra.mxu0 %v32033_v53  ;;  %26125 = vmatpush3.bf16.msra.mxu1 %v28421_v45  ;;  %v32042_v53 = vld [vmem:[#allocation7_spill] sm:$0xff] }
 0x836   :  { %26096 = vmatprep.subr.bf16.mxu0 %v31743_v21  ;;  %26150 = vmatprep.subr.bf16.mxu1 %v31743_v21 }
 0x838   :  { %21864 = vmatmul.mubr.f32.vlgmr.msra.gmra.mrb[94].mxu1 %v30002_v43 }
 0x839   :  { %26098 = vmatpush3.bf16.msra.mxu0 %v32034_v63  ;;  %26152 = vmatpush3.bf16.msra.mxu1 %v32035_v28  ;;  %v32038_v63 = vld [vmem:[#allocation5_spill] sm:$0xff]  ;;  %v32039_v28 = vld [vmem:[#allocation23_spill] sm:$0xff] }
 0x83a   :  { %26099 = vmatprep.subr.bf16.mxu0 %v31743_v21  ;;  %26153 = vmatprep.subr.bf16.mxu1 %v31743_v21 }
 0x83b   :  { %21933 = vmatprep.mubr.msk.f32.mxu1 %vm27646_vm0, %v31741_v56 }
 0x83d   :  { %26101 = vmatpush3.bf16.msra.mxu0 %v32036_v22  ;;  %26155 = vmatpush3.bf16.msra.mxu1 %v32037_v16  ;;  %v32040_v22 = vld [vmem:[#allocation6_spill] sm:$0xff]  ;;  %v32041_v16 = vld [vmem:[#allocation24_spill] sm:$0xff] }
 0x83e   :  { %26126 = vmatprep.subr.bf16.mxu0 %v31743_v21  ;;  %26156 = vmatprep.subr.bf16.mxu1 %v31743_v21 }
 0x840   :  { %21829 = vmatmul.mubr.f32.vlgmr.msra.gmra.mrb[82].mxu0 %v30002_v43 }
 0x841   :  { %26128 = vmatpush3.bf16.msra.mxu0 %v32038_v63  ;;  %26158 = vmatpush3.bf16.msra.mxu1 %v32039_v28  ;;  %v32044_v28 = vld [vmem:[#allocation8_spill] sm:$0xff] }
 0x842   :  { %26129 = vmatprep.subr.bf16.mxu0 %v31743_v21  ;;  %26159 = vmatprep.subr.bf16.mxu1 %v31743_v21 }
 0x843   :  { %21898 = vmatprep.mubr.msk.f32.mxu0 %vm27646_vm0, %v31741_v56 }
 0x845   :  { %26131 = vmatpush3.bf16.msra.mxu0 %v32040_v22  ;;  %26161 = vmatpush3.bf16.msra.mxu1 %v32041_v16  ;;  %v32046_v16 = vld [vmem:[#allocation9_spill] sm:$0xff] }
 0x846   :  { %26132 = vmatprep.subr.bf16.mxu0 %v31743_v21  ;;  %26162 = vmatprep.subr.bf16.mxu1 %v31743_v21 }
 0x849   :  { %26134 = vmatpush3.bf16.msra.mxu0 %v32042_v53  ;;  %26164 = vmatpush3.bf16.msra.mxu1 %v32043_v51  ;;  %v32048_v51 = vld [vmem:[#allocation10_spill] sm:$0xff] }
 0x84a   :  { %26135 = vmatprep.subr.bf16.mxu0 %v31743_v21  ;;  %26165 = vmatprep.subr.bf16.mxu1 %v31743_v21 }
 0x84d   :  { %26137 = vmatpush3.bf16.msra.mxu0 %v32044_v28  ;;  %26167 = vmatpush3.bf16.msra.mxu1 %v32045_v60  ;;  %v32050_v60 = vld [vmem:[#allocation11_spill] sm:$0xff] }
 0x84e   :  { %26138 = vmatprep.subr.bf16.mxu0 %v31743_v21  ;;  %26168 = vmatprep.subr.bf16.mxu1 %v31743_v21 }
 0x851   :  { %26140 = vmatpush3.bf16.msra.mxu0 %v32046_v16  ;;  %26170 = vmatpush3.bf16.msra.mxu1 %v32047_v20  ;;  %v32051_v20 = vld [vmem:[#allocation12_spill] sm:$0xff] }
 0x852   :  { %26141 = vmatprep.subr.bf16.mxu0 %v31743_v21  ;;  %26171 = vmatprep.subr.bf16.mxu1 %v31743_v21 }
 0x855   :  { %26143 = vmatpush3.bf16.msra.mxu0 %v32048_v51  ;;  %26173 = vmatpush3.bf16.msra.mxu1 %v32049_v10  ;;  %v32052_v10 = vld [vmem:[#allocation29_spill] sm:$0xff] }
 0x856   :  { %26144 = vmatprep.subr.bf16.mxu0 %v31743_v21  ;;  %26198 = vmatprep.subr.bf16.mxu1 %v31743_v21 }
 0x858   :  { %21934 = vmatmul.mubr.f32.vlgmr.msra.gmra.mrb[96].mxu1 %v30002_v43 }
 0x859   :  { %26146 = vmatpush3.bf16.msra.mxu0 %v32050_v60  ;;  %26200 = vmatpush3.bf16.msra.mxu1 %v32038_v63 }
 0x85a   :  { %26147 = vmatprep.subr.bf16.mxu0 %v31743_v21  ;;  %26201 = vmatprep.subr.bf16.mxu1 %v31743_v21 }
 0x85b   :  { %22003 = vmatprep.mubr.msk.f32.mxu1 %vm27646_vm0, %v31741_v56 }
 0x85d   :  { %26149 = vmatpush3.bf16.msra.mxu0 %v32051_v20  ;;  %26203 = vmatpush3.bf16.msra.mxu1 %v32040_v22 }
 0x85e   :  { %26174 = vmatprep.subr.bf16.mxu0 %v31743_v21  ;;  %26204 = vmatprep.subr.bf16.mxu1 %v31743_v21 }
 0x860   :  { %21899 = vmatmul.mubr.f32.vlgmr.msra.gmra.mrb[84].mxu0 %v30025_v54  ;;  %v32054_v54 = vld [vmem:[#allocation31_spill] sm:$0xff] }
 0x861   :  { %26176 = vmatpush3.bf16.msra.mxu0 %v32052_v10  ;;  %26206 = vmatpush3.bf16.msra.mxu1 %v32042_v53 }
 0x862   :  { %26177 = vmatprep.subr.bf16.mxu0 %v31743_v21  ;;  %26207 = vmatprep.subr.bf16.mxu1 %v31743_v21 }
 0x863   :  { %21968 = vmatprep.mubr.msk.f32.mxu0 %vm27646_vm0, %v31741_v56 }
 0x865   :  { %26179 = vmatpush3.bf16.msra.mxu0 %v32053_v12  ;;  %26209 = vmatpush3.bf16.msra.mxu1 %v32044_v28  ;;  %v32056_v12 = vld [vmem:[#allocation33_spill] sm:$0xff] }
 0x866   :  { %26180 = vmatprep.subr.bf16.mxu0 %v31743_v21  ;;  %26210 = vmatprep.subr.bf16.mxu1 %v31743_v21 }
 0x869   :  { %26182 = vmatpush3.bf16.msra.mxu0 %v32054_v54  ;;  %26212 = vmatpush3.bf16.msra.mxu1 %v32046_v16 }
 0x86a   :  { %26183 = vmatprep.subr.bf16.mxu0 %v31743_v21  ;;  %26213 = vmatprep.subr.bf16.mxu1 %v31743_v21 }
 0x86b   :  { %v8655_v10 = vpop.f32.mrb[84].mxu1 }
 0x86c   :  { %v21515_v38 = vpop.f32.mrb[85].mxu1 }
 0x86d   :  { %26185 = vmatpush3.bf16.msra.mxu0 %v32055_v9  ;;  %26215 = vmatpush3.bf16.msra.mxu1 %v32048_v51  ;;  %v32057_v38 = vld [vmem:[#allocation34_spill] sm:$0xff]  ;;  %v32067_v9 = vld [vmem:[#allocation57_spill] sm:$0xff] }
 0x86e   :  { %26186 = vmatprep.subr.bf16.mxu0 %v31743_v21  ;;  %26216 = vmatprep.subr.bf16.mxu1 %v31743_v21 }
 0x871   :  { %26188 = vmatpush3.bf16.msra.mxu0 %v32056_v12  ;;  %26218 = vmatpush3.bf16.msra.mxu1 %v32050_v60  ;;  %v32058_v12 = vld [vmem:[#allocation35_spill] sm:$0xff] }
 0x872   :  { %26189 = vmatprep.subr.bf16.mxu0 %v31743_v21  ;;  %26219 = vmatprep.subr.bf16.mxu1 %v31743_v21 }
 0x873   :  { %v8504_v54 = vpop.f32.mrb[72].mxu0 }
 0x874   :  { %v8656_v41 = vadd.f32 %v8655_v10, %v8504_v54  ;;  %v21480_v58 = vpop.f32.mrb[73].mxu0  ;;  %v32061_v10 = vld [vmem:[#allocation14_spill] sm:$0xff] }
 0x875   :  { %26191 = vmatpush3.bf16.msra.mxu0 %v32057_v38  ;;  %26221 = vmatpush3.bf16.msra.mxu1 %v32051_v20  ;;  %v32059_v58 = vld [vmem:[#allocation36_spill] sm:$0xff] }
 0x876   :  { %26192 = vmatprep.subr.bf16.mxu0 %v31743_v21  ;;  %26246 = vmatprep.subr.bf16.mxu1 %v31743_v21 }
 0x878   :  { %22004 = vmatmul.mubr.f32.vlgmr.msra.gmra.mrb[98].mxu1 %v30015_v49  ;;  %v32060_v49 = vld [vmem:[#allocation13_spill] sm:$0xff] }
 0x879   :  { %26194 = vmatpush3.bf16.msra.mxu0 %v32058_v12  ;;  %26248 = vmatpush3.bf16.msra.mxu1 %v32038_v63 }
 0x87a   :  { %26195 = vmatprep.subr.bf16.mxu0 %v31743_v21  ;;  %26249 = vmatprep.subr.bf16.mxu1 %v31743_v21 }
 0x87b   :  { %22073 = vmatprep.mubr.msk.f32.mxu1 %vm27646_vm0, %v31741_v56 }
 0x87d   :  { %26197 = vmatpush3.bf16.msra.mxu0 %v32059_v58  ;;  %26251 = vmatpush3.bf16.msra.mxu1 %v32040_v22  ;;  %v32063_v58 = vld [vmem:[#allocation16_spill] sm:$0xff] }
 0x87e   :  { %26222 = vmatprep.subr.bf16.mxu0 %v31743_v21  ;;  %26252 = vmatprep.subr.bf16.mxu1 %v31743_v21 }
 0x880   :  { %21969 = vmatmul.mubr.f32.vlgmr.msra.gmra.mrb[86].mxu0 %v30008_v39  ;;  %v32062_v39 = vld [vmem:[#allocation15_spill] sm:$0xff] }
 0x881   :  { %26224 = vmatpush3.bf16.msra.mxu0 %v32060_v49  ;;  %26254 = vmatpush3.bf16.msra.mxu1 %v32042_v53 }
 0x882   :  { %26225 = vmatprep.subr.bf16.mxu0 %v31743_v21  ;;  %26255 = vmatprep.subr.bf16.mxu1 %v31743_v21 }
 0x883   :  { %22038 = vmatprep.mubr.msk.f32.mxu0 %vm27646_vm0, %v31741_v56 }
 0x885   :  { %26227 = vmatpush3.bf16.msra.mxu0 %v32061_v10  ;;  %26257 = vmatpush3.bf16.msra.mxu1 %v32044_v28  ;;  %v32064_v10 = vld [vmem:[#allocation17_spill] sm:$0xff] }
 0x886   :  { %26228 = vmatprep.subr.bf16.mxu0 %v31743_v21  ;;  %26258 = vmatprep.subr.bf16.mxu1 %v31743_v21 }
 0x889   :  { %26230 = vmatpush3.bf16.msra.mxu0 %v32062_v39  ;;  %26260 = vmatpush3.bf16.msra.mxu1 %v32046_v16 }
 0x88a   :  { %26231 = vmatprep.subr.bf16.mxu0 %v31743_v21  ;;  %26261 = vmatprep.subr.bf16.mxu1 %v31743_v21 }
 0x88b   :  { %v8848_v54 = vpop.f32.mrb[86].mxu1 }
 0x88c   :  { %v21585_v49 = vpop.f32.mrb[87].mxu1 }
 0x88d   :  { %26233 = vmatpush3.bf16.msra.mxu0 %v32063_v58  ;;  %26263 = vmatpush3.bf16.msra.mxu1 %v32048_v51  ;;  %v32065_v49 = vld [vmem:[#allocation18_spill] sm:$0xff] }
 0x88e   :  { %26234 = vmatprep.subr.bf16.mxu0 %v31743_v21  ;;  %26264 = vmatprep.subr.bf16.mxu1 %v31743_v21 }
 0x891   :  { %26236 = vmatpush3.bf16.msra.mxu0 %v32064_v10  ;;  %26266 = vmatpush3.bf16.msra.mxu1 %v32050_v60  ;;  %v32066_v10 = vld [vmem:[#allocation19_spill] sm:$0xff] }
 0x892   :  { %26237 = vmatprep.subr.bf16.mxu0 %v31743_v21  ;;  %26267 = vmatprep.subr.bf16.mxu1 %v31743_v21 }
 0x893   :  { %v8759_v39 = vpop.f32.mrb[74].mxu0 }
 0x894   :  { %v8760_v12 = vadd.f32 %v8759_v39, %v8656_v41  ;;  %v21550_v38 = vpop.f32.mrb[75].mxu0  ;;  %v32068_v41 = vld [vmem:[#allocation20_spill] sm:$0xff]  ;;  %v32071_v39 = vld [vmem:[#allocation63_spill] sm:$0xff] }
 0x895   :  { %26239 = vmatpush3.bf16.msra.mxu0 %v32065_v49  ;;  %26269 = vmatpush3.bf16.msra.mxu1 %v32051_v20  ;;  %v32069_v38 = vld [vmem:[#allocation58_spill] sm:$0xff] }
 0x896   :  { %26240 = vmatprep.subr.bf16.mxu0 %v31743_v21  ;;  %v8849_v58 = vadd.f32 %v8848_v54, %v8760_v12  ;;  %26294 = vmatprep.subr.bf16.mxu1 %v31743_v21  ;;  %v32070_v12 = vld [vmem:[#allocation61_spill] sm:$0xff] }
 0x898   :  { %22074 = vmatmul.mubr.f32.vlgmr.msra.gmra.mrb[100].mxu1 %v30002_v43 }
 0x899   :  { %26242 = vmatpush3.bf16.msra.mxu0 %v32066_v10  ;;  %26296 = vmatpush3.bf16.msra.mxu1 %v32067_v9 }
 0x89a   :  { %26243 = vmatprep.subr.bf16.mxu0 %v31743_v21  ;;  %26297 = vmatprep.subr.bf16.mxu1 %v31743_v21 }
 0x89b   :  { %22143 = vmatprep.mubr.msk.f32.mxu1 %vm27646_vm0, %v31741_v56 }
 0x89d   :  { %26245 = vmatpush3.bf16.msra.mxu0 %v32068_v41  ;;  %26299 = vmatpush3.bf16.msra.mxu1 %v32069_v38  ;;  %v32073_v38 = vld [vmem:[#allocation66_spill] sm:$0xff] }
 0x89e   :  { %26270 = vmatprep.subr.bf16.mxu0 %v31743_v21  ;;  %26300 = vmatprep.subr.bf16.mxu1 %v31743_v21 }
 0x8a0   :  { %22039 = vmatmul.mubr.f32.vlgmr.msra.gmra.mrb[88].mxu0 %v30002_v43  ;;  %v32072_v43 = vld [vmem:[#allocation65_spill] sm:$0xff] }
 0x8a1   :  { %26272 = vmatpush3.bf16.msra.mxu0 %v31844_v40  ;;  %26302 = vmatpush3.bf16.msra.mxu1 %v32070_v12 }
 0x8a2   :  { %26273 = vmatprep.subr.bf16.mxu0 %v31743_v21  ;;  %26303 = vmatprep.subr.bf16.mxu1 %v31743_v21 }
 0x8a3   :  { %22108 = vmatprep.mubr.msk.f32.mxu0 %vm27646_vm0, %v31741_v56 }
 0x8a5   :  { %26275 = vmatpush3.bf16.msra.mxu0 %v31846_v55  ;;  %26305 = vmatpush3.bf16.msra.mxu1 %v32071_v39  ;;  %v32074_v39 = vld [vmem:[#allocation67_spill] sm:$0xff] }
 0x8a6   :  { %26276 = vmatprep.subr.bf16.mxu0 %v31743_v21  ;;  %26306 = vmatprep.subr.bf16.mxu1 %v31743_v21 }
 0x8a9   :  { %26278 = vmatpush3.bf16.msra.mxu0 %v31848_v37  ;;  %26308 = vmatpush3.bf16.msra.mxu1 %v32072_v43 }
 0x8aa   :  { %26279 = vmatprep.subr.bf16.mxu0 %v31743_v21  ;;  %26309 = vmatprep.subr.bf16.mxu1 %v31743_v21 }
 0x8ab   :  { %v9054_v54 = vpop.f32.mrb[88].mxu1 }
 0x8ac   :  { %v21655_v12 = vpop.f32.mrb[89].mxu1 }
 0x8ad   :  { %26281 = vmatpush3.bf16.msra.mxu0 %v31850_v19  ;;  %26311 = vmatpush3.bf16.msra.mxu1 %v32073_v38  ;;  %v32075_v12 = vld [vmem:[#allocation68_spill] sm:$0xff] }
 0x8ae   :  { %26282 = vmatprep.subr.bf16.mxu0 %v31743_v21  ;;  %26312 = vmatprep.subr.bf16.mxu1 %v31743_v21 }
 0x8b1   :  { %26284 = vmatpush3.bf16.msra.mxu0 %v31852_v23  ;;  %26314 = vmatpush3.bf16.msra.mxu1 %v32074_v39 }
 0x8b2   :  { %26285 = vmatprep.subr.bf16.mxu0 %v31743_v21  ;;  %26315 = vmatprep.subr.bf16.mxu1 %v31743_v21 }
 0x8b3   :  { %v8967_v43 = vpop.f32.mrb[76].mxu0 }
 0x8b4   :  { %v8968_v41 = vadd.f32 %v8967_v43, %v8849_v58  ;;  %v21620_v9 = vpop.f32.mrb[77].mxu0 }
 0x8b5   :  { %26287 = vmatpush3.bf16.msra.mxu0 %v31854_v33  ;;  %26317 = vmatpush3.bf16.msra.mxu1 %v32075_v12 }
 0x8b6   :  { %v9055_v38 = vadd.f32 %v9054_v54, %v8968_v41  ;;  %26288 = vmatprep.subr.bf16.mxu0 %v31743_v21  ;;  %26342 = vmatprep.subr.bf16.mxu1 %v31743_v21 }
 0x8b9   :  { %26290 = vmatpush3.bf16.msra.mxu0 %v31856_v1 }
 0x8ba   :  { %26291 = vmatprep.subr.bf16.mxu0 %v31743_v21 }
 0x8bd   :  { %26293 = vmatpush3.bf16.msra.mxu0 %v31857_v50 }
 0x8be   :  { %26318 = vmatprep.subr.bf16.mxu0 %v31743_v21 }
 0x8cb   :  { %v9296_v39 = vpop.f32.mrb[90].mxu1 }
 0x8cc   :  { %v21725_v58 = vpop.f32.mrb[91].mxu1 }
 0x8cd   :  { %v30251_v58 = vld [vmem:[%s31445_s2] ss:$0 sm:$0xff] }
 0x8d3   :  { %v9145_v9 = vpop.f32.mrb[78].mxu0 }
 0x8d4   :  { %v9146_v43 = vadd.f32 %v9145_v9, %v9055_v38  ;;  %v21690_v10 = vpop.f32.mrb[79].mxu0 }
 0x8d6   :  { %v9297_v49 = vadd.f32 %v9296_v39, %v9146_v43 }
 0x8eb   :  { %v9489_v12 = vpop.f32.mrb[92].mxu1 }
 0x8ec   :  { %v21795_v41 = vpop.f32.mrb[93].mxu1 }
 0x8f3   :  { %v9400_v54 = vpop.f32.mrb[80].mxu0 }
 0x8f4   :  { %v9401_v20 = vadd.f32 %v9400_v54, %v9297_v49  ;;  %v21760_v60 = vpop.f32.mrb[81].mxu0 }
 0x8f6   :  { %v9490_v51 = vadd.f32 %v9489_v12, %v9401_v20 }
 0x90b   :  { %v9695_v16 = vpop.f32.mrb[94].mxu1 }
 0x90c   :  { %v21865_v28 = vpop.f32.mrb[95].mxu1 }
 0x913   :  { %v9608_v53 = vpop.f32.mrb[82].mxu0 }
 0x914   :  { %v9609_v22 = vadd.f32 %v9608_v53, %v9490_v51  ;;  %v21830_v63 = vpop.f32.mrb[83].mxu0 }
 0x916   :  { %v9696_v0 = vadd.f32 %v9695_v16, %v9609_v22 }
 0x918   :  { %v9699_v10 = vadd.f32 %v30251_v58, %v9696_v0 }
 0x91a   :  { %27601 = vtanh.f32 %v9699_v10 }
 0x924   :  { %v27602_v38 = vpop.eup %27601 }
 0x925   :  { %v30254_v39 = vand.u32 4294901760, %v27602_v38 }
 0x927   :  { %22144 = vmatmul.mubr.f32.vlgmr.msra.gmra.mrb[102].mxu1 %v30254_v39  ;;  %v10428_v20 = vsub.f32 %v27602_v38, %v30254_v39 }
 0x928   :  { %26344 = vmatpush3.bf16.msra.mxu1 %v31844_v40  ;;  %22213 = vmatprep.mubr.msk.f32.mxu1 %vm27646_vm0, %v31741_v56 }
 0x929   :  { %26345 = vmatprep.subr.bf16.mxu1 %v31743_v21  ;;  %v10429_v60 = vand.u32 4294901760, %v10428_v20 }
 0x92b   :  { %v9941_v51 = vpop.f32.mrb[96].mxu1  ;;  %v10430_v53 = vsub.f32 %v10428_v20, %v10429_v60 }
 0x92c   :  { %26347 = vmatpush3.bf16.msra.mxu1 %v31846_v55  ;;  %v21935_v0 = vpop.f32.mrb[97].mxu1 }
 0x92d   :  { %26348 = vmatprep.subr.bf16.mxu1 %v31743_v21  ;;  %v10431_v63 = vand.u32 4294901760, %v10430_v53 }
 0x92f   :  { %22109 = vmatmul.mubr.f32.vlgmr.msra.gmra.mrb[90].mxu0 %v10431_v63 }
 0x930   :  { %26320 = vmatpush3.bf16.msra.mxu0 %v31858_v61  ;;  %26350 = vmatpush3.bf16.msra.mxu1 %v31848_v37 }
 0x931   :  { %26321 = vmatprep.subr.bf16.mxu0 %v31743_v21  ;;  %26351 = vmatprep.subr.bf16.mxu1 %v31743_v21 }
 0x932   :  { %22178 = vmatprep.mubr.msk.f32.mxu0 %vm27646_vm0, %v31741_v56 }
 0x933   :  { %v9790_v28 = vpop.f32.mrb[84].mxu0 }
 0x934   :  { %v9942_v22 = vadd.f32 %v9941_v51, %v9790_v28  ;;  %26323 = vmatpush3.bf16.msra.mxu0 %v31859_v46  ;;  %26353 = vmatpush3.bf16.msra.mxu1 %v31850_v19  ;;  %v21900_v16 = vpop.f32.mrb[85].mxu0 }
 0x935   :  { %26324 = vmatprep.subr.bf16.mxu0 %v31743_v21  ;;  %26354 = vmatprep.subr.bf16.mxu1 %v31743_v21 }
 0x938   :  { %26326 = vmatpush3.bf16.msra.mxu0 %v31860_v15  ;;  %26356 = vmatpush3.bf16.msra.mxu1 %v31852_v23 }
 0x939   :  { %26327 = vmatprep.subr.bf16.mxu0 %v31743_v21  ;;  %26357 = vmatprep.subr.bf16.mxu1 %v31743_v21 }
 0x93c   :  { %26329 = vmatpush3.bf16.msra.mxu0 %v31861_v62  ;;  %26359 = vmatpush3.bf16.msra.mxu1 %v31854_v33 }
 0x93d   :  { %26330 = vmatprep.subr.bf16.mxu0 %v31743_v21  ;;  %26360 = vmatprep.subr.bf16.mxu1 %v31743_v21 }
 0x940   :  { %26332 = vmatpush3.bf16.msra.mxu0 %v31862_v4  ;;  %26362 = vmatpush3.bf16.msra.mxu1 %v31856_v1 }
 0x941   :  { %26333 = vmatprep.subr.bf16.mxu0 %v31743_v21  ;;  %26363 = vmatprep.subr.bf16.mxu1 %v31743_v21 }
 0x944   :  { %26335 = vmatpush3.bf16.msra.mxu0 %v31863_v52  ;;  %26365 = vmatpush3.bf16.msra.mxu1 %v31857_v50 }
 0x945   :  { %26336 = vmatprep.subr.bf16.mxu0 %v31743_v21  ;;  %26390 = vmatprep.subr.bf16.mxu1 %v31743_v21 }
 0x947   :  { %22214 = vmatmul.mubr.f32.vlgmr.msra.gmra.mrb[104].mxu1 %v10429_v60 }
 0x948   :  { %26338 = vmatpush3.bf16.msra.mxu0 %v31864_v35  ;;  %26392 = vmatpush3.bf16.msra.mxu1 %v31844_v40 }
 0x949   :  { %26339 = vmatprep.subr.bf16.mxu0 %v31743_v21  ;;  %26393 = vmatprep.subr.bf16.mxu1 %v31743_v21 }
 0x94a   :  { %22283 = vmatprep.mubr.msk.f32.mxu1 %vm27646_vm0, %v31741_v56 }
 0x94b   :  { %v10134_v49 = vpop.f32.mrb[98].mxu1 }
 0x94c   :  { %26341 = vmatpush3.bf16.msra.mxu0 %v31865_v6  ;;  %26395 = vmatpush3.bf16.msra.mxu1 %v31846_v55  ;;  %v22005_v12 = vpop.f32.mrb[99].mxu1 }
 0x94d   :  { %26366 = vmatprep.subr.bf16.mxu0 %v31743_v21  ;;  %26396 = vmatprep.subr.bf16.mxu1 %v31743_v21 }
 0x94f   :  { %22179 = vmatmul.mubr.f32.vlgmr.msra.gmra.mrb[92].mxu0 %v10428_v20 }
 0x950   :  { %26368 = vmatpush3.bf16.msra.mxu0 %v31911_v8  ;;  %26398 = vmatpush3.bf16.msra.mxu1 %v31848_v37 }
 0x951   :  { %26369 = vmatprep.subr.bf16.mxu0 %v31743_v21  ;;  %26399 = vmatprep.subr.bf16.mxu1 %v31743_v21 }
 0x952   :  { %22248 = vmatprep.mubr.msk.f32.mxu0 %vm27646_vm0, %v31741_v56 }
 0x953   :  { %v10045_v9 = vpop.f32.mrb[86].mxu0 }
 0x954   :  { %v10046_v43 = vadd.f32 %v10045_v9, %v9942_v22  ;;  %26371 = vmatpush3.bf16.msra.mxu0 %v31912_v32  ;;  %26401 = vmatpush3.bf16.msra.mxu1 %v31850_v19  ;;  %v21970_v41 = vpop.f32.mrb[87].mxu0  ;;  %v32076_v9 = vld [vmem:[#allocation79_spill] sm:$0xff] }
 0x955   :  { %26372 = vmatprep.subr.bf16.mxu0 %v31743_v21  ;;  %26402 = vmatprep.subr.bf16.mxu1 %v31743_v21  ;;  %v32078_v41 = vld [vmem:[#allocation82_spill] sm:$0xff] }
 0x956   :  { %v10135_v54 = vadd.f32 %v10134_v49, %v10046_v43  ;;  %v32077_v43 = vld [vmem:[#allocation81_spill] sm:$0xff] }
 0x958   :  { %26374 = vmatpush3.bf16.msra.mxu0 %v31913_v34  ;;  %26404 = vmatpush3.bf16.msra.mxu1 %v31852_v23 }
 0x959   :  { %26375 = vmatprep.subr.bf16.mxu0 %v31743_v21  ;;  %26405 = vmatprep.subr.bf16.mxu1 %v31743_v21 }
 0x95c   :  { %26377 = vmatpush3.bf16.msra.mxu0 %v31914_v31  ;;  %26407 = vmatpush3.bf16.msra.mxu1 %v31854_v33 }
 0x95d   :  { %26378 = vmatprep.subr.bf16.mxu0 %v31743_v21  ;;  %26408 = vmatprep.subr.bf16.mxu1 %v31743_v21 }
 0x960   :  { %26380 = vmatpush3.bf16.msra.mxu0 %v31915_v29  ;;  %26410 = vmatpush3.bf16.msra.mxu1 %v31856_v1 }
 0x961   :  { %26381 = vmatprep.subr.bf16.mxu0 %v31743_v21  ;;  %26411 = vmatprep.subr.bf16.mxu1 %v31743_v21 }
 0x964   :  { %26383 = vmatpush3.bf16.msra.mxu0 %v31916_v2  ;;  %26413 = vmatpush3.bf16.msra.mxu1 %v31857_v50 }
 0x965   :  { %26384 = vmatprep.subr.bf16.mxu0 %v31743_v21  ;;  %26438 = vmatprep.subr.bf16.mxu1 %v31743_v21 }
 0x967   :  { %22284 = vmatmul.mubr.f32.vlgmr.msra.gmra.mrb[106].mxu1 %v30254_v39 }
 0x968   :  { %26386 = vmatpush3.bf16.msra.mxu0 %v31917_v5  ;;  %26440 = vmatpush3.bf16.msra.mxu1 %v31918_v18 }
 0x969   :  { %26387 = vmatprep.subr.bf16.mxu0 %v31743_v21  ;;  %26441 = vmatprep.subr.bf16.mxu1 %v31743_v21 }
 0x96a   :  { %22353 = vmatprep.mubr.msk.f32.mxu1 %vm27646_vm0, %v31741_v56 }
 0x96b   :  { %v10340_v10 = vpop.f32.mrb[100].mxu1 }
 0x96c   :  { %26389 = vmatpush3.bf16.msra.mxu0 %v31919_v13  ;;  %26443 = vmatpush3.bf16.msra.mxu1 %v31920_v27  ;;  %v22075_v38 = vpop.f32.mrb[101].mxu1 }
 0x96d   :  { %26414 = vmatprep.subr.bf16.mxu0 %v31743_v21  ;;  %26444 = vmatprep.subr.bf16.mxu1 %v31743_v21  ;;  %v32081_v38 = vld [vmem:[#allocation85_spill] sm:$0xff] }
 0x96f   :  { %22249 = vmatmul.mubr.f32.vlgmr.msra.gmra.mrb[94].mxu0 %v30254_v39  ;;  %v16162_v39 = vld [vmem:[%s31443_s0 + $0x28] sm:$0xff] }
 0x970   :  { %26416 = vmatpush3.bf16.msra.mxu0 %v28288_v44  ;;  %26446 = vmatpush3.bf16.msra.mxu1 %v31921_v7 }
 0x971   :  { %26417 = vmatprep.subr.bf16.mxu0 %v31743_v21  ;;  %26447 = vmatprep.subr.bf16.mxu1 %v31743_v21 }
 0x972   :  { %22318 = vmatprep.mubr.msk.f32.mxu0 %vm27646_vm0, %v31741_v56 }
 0x973   :  { %v10253_v20 = vpop.f32.mrb[88].mxu0 }
 0x974   :  { %v10254_v60 = vadd.f32 %v10253_v20, %v10135_v54  ;;  %26419 = vmatpush3.bf16.msra.mxu0 %v28291_v11  ;;  %26449 = vmatpush3.bf16.msra.mxu1 %v31877_v42  ;;  %v22040_v51 = vpop.f32.mrb[89].mxu0  ;;  %v32079_v54 = vld [vmem:[#allocation83_spill] sm:$0xff]  ;;  %v32082_v20 = vld [vmem:[#allocation86_spill] sm:$0xff] }
 0x975   :  { %26420 = vmatprep.subr.bf16.mxu0 %v31743_v21  ;;  %26450 = vmatprep.subr.bf16.mxu1 %v31743_v21  ;;  %v32084_v51 = vld [vmem:[#allocation88_spill] sm:$0xff] }
 0x976   :  { %v10341_v53 = vadd.f32 %v10340_v10, %v10254_v60  ;;  %v32080_v10 = vld [vmem:[#allocation84_spill] sm:$0xff]  ;;  %v32083_v60 = vld [vmem:[#allocation87_spill] sm:$0xff] }
 0x978   :  { %v10344_v0 = vadd.f32 %v16162_v39, %v10341_v53  ;;  %26422 = vmatpush3.bf16.msra.mxu0 %v28299_v24  ;;  %26452 = vmatpush3.bf16.msra.mxu1 %v31878_v48  ;;  %v32085_v39 = vld [vmem:[#allocation89_spill] sm:$0xff]  ;;  %v32086_v53 = vld [vmem:[#allocation90_spill] sm:$0xff] }
 0x979   :  { %26423 = vmatprep.subr.bf16.mxu0 %v31743_v21  ;;  %26453 = vmatprep.subr.bf16.mxu1 %v31743_v21 }
 0x97a   :  { %27603 = vtanh.f32 %v10344_v0  ;;  %v32087_v0 = vld [vmem:[#allocation91_spill] sm:$0xff] }
 0x97c   :  { %26425 = vmatpush3.bf16.msra.mxu0 %v28307_v14  ;;  %26455 = vmatpush3.bf16.msra.mxu1 %v31879_v47 }
 0x97d   :  { %26426 = vmatprep.subr.bf16.mxu0 %v31743_v21  ;;  %26456 = vmatprep.subr.bf16.mxu1 %v31743_v21 }
 0x980   :  { %26428 = vmatpush3.bf16.msra.mxu0 %v28369_v59  ;;  %26458 = vmatpush3.bf16.msra.mxu1 %v31880_v36 }
 0x981   :  { %26429 = vmatprep.subr.bf16.mxu0 %v31743_v21  ;;  %26459 = vmatprep.subr.bf16.mxu1 %v31743_v21 }
 0x984   :  { %v27604_v63 = vpop.eup %27603  ;;  %26431 = vmatpush3.bf16.msra.mxu0 %v28387_v30  ;;  %26461 = vmatpush3.bf16.msra.mxu1 %v31881_v26 }
 0x985   :  { %v30365_v28 = vand.u32 4294901760, %v27604_v63  ;;  %26432 = vmatprep.subr.bf16.mxu0 %v31743_v21  ;;  %26486 = vmatprep.subr.bf16.mxu1 %v31743_v21 }
 0x987   :  { %22354 = vmatmul.mubr.f32.vlgmr.msra.gmra.mrb[108].mxu1 %v30365_v28  ;;  %v30371_v22 = vsub.f32 %v27604_v63, %v30365_v28  ;;  %v32088_v63 = vld [vmem:[#allocation21_spill] sm:$0xff] }
 0x988   :  { %26434 = vmatpush3.bf16.msra.mxu0 %v28404_v57  ;;  %26488 = vmatpush3.bf16.msra.mxu1 %v28288_v44 }
 0x989   :  { %26435 = vmatprep.subr.bf16.mxu0 %v31743_v21  ;;  %26489 = vmatprep.subr.bf16.mxu1 %v31743_v21  ;;  %v30378_v16 = vand.u32 4294901760, %v30371_v22 }
 0x98a   :  { %22423 = vmatprep.mubr.msk.f32.mxu1 %vm27646_vm0, %v31741_v56 }
 0x98b   :  { %v11071_v49 = vsub.f32 %v30371_v22, %v30378_v16 }
 0x98c   :  { %26437 = vmatpush3.bf16.msra.mxu0 %v28421_v45  ;;  %26491 = vmatpush3.bf16.msra.mxu1 %v28291_v11 }
 0x98d   :  { %26462 = vmatprep.subr.bf16.mxu0 %v31743_v21  ;;  %26492 = vmatprep.subr.bf16.mxu1 %v31743_v21  ;;  %v30388_v12 = vand.u32 4294901760, %v11071_v49  ;;  %v32089_v49 = vld [vmem:[#allocation92_spill] sm:$0xff] }
 0x98f   :  { %22319 = vmatmul.mubr.f32.vlgmr.msra.gmra.mrb[96].mxu0 %v30388_v12 }
 0x990   :  { %26464 = vmatpush3.bf16.msra.mxu0 %v32020_v17  ;;  %26494 = vmatpush3.bf16.msra.mxu1 %v28299_v24 }
 0x991   :  { %26465 = vmatprep.subr.bf16.mxu0 %v31743_v21  ;;  %26495 = vmatprep.subr.bf16.mxu1 %v31743_v21 }
 0x992   :  { %22388 = vmatprep.mubr.msk.f32.mxu0 %vm27646_vm0, %v31741_v56 }
 0x994   :  { %26467 = vmatpush3.bf16.msra.mxu0 %v32021_v3  ;;  %26497 = vmatpush3.bf16.msra.mxu1 %v28307_v14 }
 0x995   :  { %26468 = vmatprep.subr.bf16.mxu0 %v31743_v21  ;;  %26498 = vmatprep.subr.bf16.mxu1 %v31743_v21 }
 0x998   :  { %26470 = vmatpush3.bf16.msra.mxu0 %v32022_v25  ;;  %26500 = vmatpush3.bf16.msra.mxu1 %v28369_v59 }
 0x999   :  { %26471 = vmatprep.subr.bf16.mxu0 %v31743_v21  ;;  %26501 = vmatprep.subr.bf16.mxu1 %v31743_v21 }
 0x99c   :  { %26473 = vmatpush3.bf16.msra.mxu0 %v32076_v9  ;;  %26503 = vmatpush3.bf16.msra.mxu1 %v28387_v30 }
 0x99d   :  { %26474 = vmatprep.subr.bf16.mxu0 %v31743_v21  ;;  %26504 = vmatprep.subr.bf16.mxu1 %v31743_v21 }
 0x9a0   :  { %26476 = vmatpush3.bf16.msra.mxu0 %v32077_v43  ;;  %26506 = vmatpush3.bf16.msra.mxu1 %v28404_v57 }
 0x9a1   :  { %26477 = vmatprep.subr.bf16.mxu0 %v31743_v21  ;;  %26507 = vmatprep.subr.bf16.mxu1 %v31743_v21 }
 0x9a4   :  { %26479 = vmatpush3.bf16.msra.mxu0 %v32078_v41  ;;  %26509 = vmatpush3.bf16.msra.mxu1 %v28421_v45  ;;  %v32108_v41 = vld [vmem:[#allocation32_spill] sm:$0xff] }
 0x9a5   :  { %26480 = vmatprep.subr.bf16.mxu0 %v31743_v21  ;;  %26534 = vmatprep.subr.bf16.mxu1 %v31743_v21 }
 0x9a7   :  { %22424 = vmatmul.mubr.f32.vlgmr.msra.gmra.mrb[110].mxu1 %v30378_v16 }
 0x9a8   :  { %26482 = vmatpush3.bf16.msra.mxu0 %v32079_v54  ;;  %26536 = vmatpush3.bf16.msra.mxu1 %v28288_v44 }
 0x9a9   :  { %26483 = vmatprep.subr.bf16.mxu0 %v31743_v21  ;;  %26537 = vmatprep.subr.bf16.mxu1 %v31743_v21 }
 0x9aa   :  { %22493 = vmatprep.mubr.msk.f32.mxu1 %vm27646_vm0, %v31741_v56 }
 0x9ac   :  { %26485 = vmatpush3.bf16.msra.mxu0 %v32080_v10  ;;  %26539 = vmatpush3.bf16.msra.mxu1 %v28291_v11  ;;  %v32106_v10 = vld [vmem:[#allocation30_spill] sm:$0xff] }
 0x9ad   :  { %26510 = vmatprep.subr.bf16.mxu0 %v31743_v21  ;;  %26540 = vmatprep.subr.bf16.mxu1 %v31743_v21 }
 0x9af   :  { %22389 = vmatmul.mubr.f32.vlgmr.msra.gmra.mrb[98].mxu0 %v30371_v22 }
 0x9b0   :  { %26512 = vmatpush3.bf16.msra.mxu0 %v32081_v38  ;;  %26542 = vmatpush3.bf16.msra.mxu1 %v28299_v24  ;;  %v32102_v38 = vld [vmem:[#allocation28_spill] sm:$0xff] }
 0x9b1   :  { %26513 = vmatprep.subr.bf16.mxu0 %v31743_v21  ;;  %26543 = vmatprep.subr.bf16.mxu1 %v31743_v21 }
 0x9b2   :  { %22458 = vmatprep.mubr.msk.f32.mxu0 %vm27646_vm0, %v31741_v56 }
 0x9b4   :  { %26515 = vmatpush3.bf16.msra.mxu0 %v32082_v20  ;;  %26545 = vmatpush3.bf16.msra.mxu1 %v28307_v14  ;;  %v32100_v20 = vld [vmem:[#allocation27_spill] sm:$0xff] }
 0x9b5   :  { %26516 = vmatprep.subr.bf16.mxu0 %v31743_v21  ;;  %26546 = vmatprep.subr.bf16.mxu1 %v31743_v21 }
 0x9b8   :  { %26518 = vmatpush3.bf16.msra.mxu0 %v32083_v60  ;;  %26548 = vmatpush3.bf16.msra.mxu1 %v28369_v59  ;;  %v32098_v60 = vld [vmem:[#allocation26_spill] sm:$0xff] }
 0x9b9   :  { %26519 = vmatprep.subr.bf16.mxu0 %v31743_v21  ;;  %26549 = vmatprep.subr.bf16.mxu1 %v31743_v21 }
 0x9bc   :  { %26521 = vmatpush3.bf16.msra.mxu0 %v32084_v51  ;;  %26551 = vmatpush3.bf16.msra.mxu1 %v28387_v30  ;;  %v32096_v51 = vld [vmem:[#allocation25_spill] sm:$0xff] }
 0x9bd   :  { %26522 = vmatprep.subr.bf16.mxu0 %v31743_v21  ;;  %26552 = vmatprep.subr.bf16.mxu1 %v31743_v21 }
 0x9c0   :  { %26524 = vmatpush3.bf16.msra.mxu0 %v32085_v39  ;;  %26554 = vmatpush3.bf16.msra.mxu1 %v28404_v57  ;;  %v32095_v39 = vld [vmem:[#allocation7_spill] sm:$0xff] }
 0x9c1   :  { %26525 = vmatprep.subr.bf16.mxu0 %v31743_v21  ;;  %26555 = vmatprep.subr.bf16.mxu1 %v31743_v21 }
 0x9c4   :  { %26527 = vmatpush3.bf16.msra.mxu0 %v32086_v53  ;;  %26557 = vmatpush3.bf16.msra.mxu1 %v28421_v45  ;;  %v32090_v53 = vld [vmem:[#allocation22_spill] sm:$0xff] }
 0x9c5   :  { %26528 = vmatprep.subr.bf16.mxu0 %v31743_v21  ;;  %26582 = vmatprep.subr.bf16.mxu1 %v31743_v21 }
 0x9c7   :  { %22494 = vmatmul.mubr.f32.vlgmr.msra.gmra.mrb[112].mxu1 %v30365_v28 }
 0x9c8   :  { %26530 = vmatpush3.bf16.msra.mxu0 %v32087_v0  ;;  %26584 = vmatpush3.bf16.msra.mxu1 %v32088_v63  ;;  %v32091_v0 = vld [vmem:[#allocation5_spill] sm:$0xff]  ;;  %v32092_v63 = vld [vmem:[#allocation23_spill] sm:$0xff] }
 0x9c9   :  { %26531 = vmatprep.subr.bf16.mxu0 %v31743_v21  ;;  %26585 = vmatprep.subr.bf16.mxu1 %v31743_v21 }
 0x9ca   :  { %22563 = vmatprep.mubr.msk.f32.mxu1 %vm27646_vm0, %v31741_v56 }
 0x9cc   :  { %26533 = vmatpush3.bf16.msra.mxu0 %v32089_v49  ;;  %26587 = vmatpush3.bf16.msra.mxu1 %v32090_v53  ;;  %v32093_v49 = vld [vmem:[#allocation6_spill] sm:$0xff]  ;;  %v32094_v53 = vld [vmem:[#allocation24_spill] sm:$0xff] }
 0x9cd   :  { %26558 = vmatprep.subr.bf16.mxu0 %v31743_v21  ;;  %26588 = vmatprep.subr.bf16.mxu1 %v31743_v21 }
 0x9cf   :  { %22459 = vmatmul.mubr.f32.vlgmr.msra.gmra.mrb[100].mxu0 %v30365_v28 }
 0x9d0   :  { %26560 = vmatpush3.bf16.msra.mxu0 %v32091_v0  ;;  %26590 = vmatpush3.bf16.msra.mxu1 %v32092_v63  ;;  %v32097_v63 = vld [vmem:[#allocation8_spill] sm:$0xff] }
 0x9d1   :  { %26561 = vmatprep.subr.bf16.mxu0 %v31743_v21  ;;  %26591 = vmatprep.subr.bf16.mxu1 %v31743_v21 }
 0x9d2   :  { %22528 = vmatprep.mubr.msk.f32.mxu0 %vm27646_vm0, %v31741_v56 }
 0x9d4   :  { %26563 = vmatpush3.bf16.msra.mxu0 %v32093_v49  ;;  %26593 = vmatpush3.bf16.msra.mxu1 %v32094_v53  ;;  %v32099_v53 = vld [vmem:[#allocation9_spill] sm:$0xff] }
 0x9d5   :  { %26564 = vmatprep.subr.bf16.mxu0 %v31743_v21  ;;  %26594 = vmatprep.subr.bf16.mxu1 %v31743_v21 }
 0x9d8   :  { %26566 = vmatpush3.bf16.msra.mxu0 %v32095_v39  ;;  %26596 = vmatpush3.bf16.msra.mxu1 %v32096_v51  ;;  %v32101_v51 = vld [vmem:[#allocation10_spill] sm:$0xff] }
 0x9d9   :  { %26567 = vmatprep.subr.bf16.mxu0 %v31743_v21  ;;  %26597 = vmatprep.subr.bf16.mxu1 %v31743_v21 }
 0x9dc   :  { %26569 = vmatpush3.bf16.msra.mxu0 %v32097_v63  ;;  %26599 = vmatpush3.bf16.msra.mxu1 %v32098_v60  ;;  %v32103_v60 = vld [vmem:[#allocation11_spill] sm:$0xff] }
 0x9dd   :  { %26570 = vmatprep.subr.bf16.mxu0 %v31743_v21  ;;  %26600 = vmatprep.subr.bf16.mxu1 %v31743_v21 }
 0x9e0   :  { %26572 = vmatpush3.bf16.msra.mxu0 %v32099_v53  ;;  %26602 = vmatpush3.bf16.msra.mxu1 %v32100_v20  ;;  %v32104_v20 = vld [vmem:[#allocation12_spill] sm:$0xff] }
 0x9e1   :  { %26573 = vmatprep.subr.bf16.mxu0 %v31743_v21  ;;  %26603 = vmatprep.subr.bf16.mxu1 %v31743_v21 }
 0x9e4   :  { %26575 = vmatpush3.bf16.msra.mxu0 %v32101_v51  ;;  %26605 = vmatpush3.bf16.msra.mxu1 %v32102_v38  ;;  %v32105_v38 = vld [vmem:[#allocation29_spill] sm:$0xff] }
 0x9e5   :  { %26576 = vmatprep.subr.bf16.mxu0 %v31743_v21  ;;  %26630 = vmatprep.subr.bf16.mxu1 %v31743_v21 }
 0x9e7   :  { %22564 = vmatmul.mubr.f32.vlgmr.msra.gmra.mrb[114].mxu1 %v30365_v28 }
 0x9e8   :  { %26578 = vmatpush3.bf16.msra.mxu0 %v32103_v60  ;;  %26632 = vmatpush3.bf16.msra.mxu1 %v32091_v0 }
 0x9e9   :  { %26579 = vmatprep.subr.bf16.mxu0 %v31743_v21  ;;  %26633 = vmatprep.subr.bf16.mxu1 %v31743_v21 }
 0x9ea   :  { %22633 = vmatprep.mubr.msk.f32.mxu1 %vm27646_vm0, %v31741_v56 }
 0x9ec   :  { %26581 = vmatpush3.bf16.msra.mxu0 %v32104_v20  ;;  %26635 = vmatpush3.bf16.msra.mxu1 %v32093_v49 }
 0x9ed   :  { %26606 = vmatprep.subr.bf16.mxu0 %v31743_v21  ;;  %26636 = vmatprep.subr.bf16.mxu1 %v31743_v21 }
 0x9ef   :  { %22529 = vmatmul.mubr.f32.vlgmr.msra.gmra.mrb[102].mxu0 %v30388_v12  ;;  %v32107_v12 = vld [vmem:[#allocation31_spill] sm:$0xff] }
 0x9f0   :  { %26608 = vmatpush3.bf16.msra.mxu0 %v32105_v38  ;;  %26638 = vmatpush3.bf16.msra.mxu1 %v32095_v39 }
 0x9f1   :  { %26609 = vmatprep.subr.bf16.mxu0 %v31743_v21  ;;  %26639 = vmatprep.subr.bf16.mxu1 %v31743_v21 }
 0x9f2   :  { %22598 = vmatprep.mubr.msk.f32.mxu0 %vm27646_vm0, %v31741_v56 }
 0x9f4   :  { %26611 = vmatpush3.bf16.msra.mxu0 %v32106_v10  ;;  %26641 = vmatpush3.bf16.msra.mxu1 %v32097_v63  ;;  %v32109_v10 = vld [vmem:[#allocation33_spill] sm:$0xff] }
 0x9f5   :  { %26612 = vmatprep.subr.bf16.mxu0 %v31743_v21  ;;  %26642 = vmatprep.subr.bf16.mxu1 %v31743_v21 }
 0x9f8   :  { %26614 = vmatpush3.bf16.msra.mxu0 %v32107_v12  ;;  %26644 = vmatpush3.bf16.msra.mxu1 %v32099_v53 }
 0x9f9   :  { %26615 = vmatprep.subr.bf16.mxu0 %v31743_v21  ;;  %26645 = vmatprep.subr.bf16.mxu1 %v31743_v21 }
 0x9fa   :  { %v10584_v38 = vpop.f32.mrb[102].mxu1 }
 0x9fb   :  { %v22145_v54 = vpop.f32.mrb[103].mxu1 }
 0x9fc   :  { %26617 = vmatpush3.bf16.msra.mxu0 %v32108_v41  ;;  %26647 = vmatpush3.bf16.msra.mxu1 %v32101_v51  ;;  %v32110_v54 = vld [vmem:[#allocation34_spill] sm:$0xff]  ;;  %v32120_v41 = vld [vmem:[#allocation57_spill] sm:$0xff] }
 0x9fd   :  { %26618 = vmatprep.subr.bf16.mxu0 %v31743_v21  ;;  %26648 = vmatprep.subr.bf16.mxu1 %v31743_v21 }
 0xa00   :  { %26620 = vmatpush3.bf16.msra.mxu0 %v32109_v10  ;;  %26650 = vmatpush3.bf16.msra.mxu1 %v32103_v60  ;;  %v32111_v10 = vld [vmem:[#allocation35_spill] sm:$0xff] }
 0xa01   :  { %26621 = vmatprep.subr.bf16.mxu0 %v31743_v21  ;;  %26651 = vmatprep.subr.bf16.mxu1 %v31743_v21 }
 0xa02   :  { %v10433_v12 = vpop.f32.mrb[90].mxu0 }
 0xa03   :  { %v10585_v43 = vadd.f32 %v10584_v38, %v10433_v12  ;;  %v22110_v9 = vpop.f32.mrb[91].mxu0  ;;  %v32114_v38 = vld [vmem:[#allocation14_spill] sm:$0xff] }
 0xa04   :  { %26623 = vmatpush3.bf16.msra.mxu0 %v32110_v54  ;;  %26653 = vmatpush3.bf16.msra.mxu1 %v32104_v20  ;;  %v32112_v9 = vld [vmem:[#allocation36_spill] sm:$0xff] }
 0xa05   :  { %26624 = vmatprep.subr.bf16.mxu0 %v31743_v21  ;;  %26678 = vmatprep.subr.bf16.mxu1 %v31743_v21 }
 0xa07   :  { %22634 = vmatmul.mubr.f32.vlgmr.msra.gmra.mrb[116].mxu1 %v30378_v16  ;;  %v32113_v16 = vld [vmem:[#allocation13_spill] sm:$0xff] }
 0xa08   :  { %26626 = vmatpush3.bf16.msra.mxu0 %v32111_v10  ;;  %26680 = vmatpush3.bf16.msra.mxu1 %v32091_v0 }
 0xa09   :  { %26627 = vmatprep.subr.bf16.mxu0 %v31743_v21  ;;  %26681 = vmatprep.subr.bf16.mxu1 %v31743_v21 }
 0xa0a   :  { %22703 = vmatprep.mubr.msk.f32.mxu1 %vm27646_vm0, %v31741_v56 }
 0xa0c   :  { %26629 = vmatpush3.bf16.msra.mxu0 %v32112_v9  ;;  %26683 = vmatpush3.bf16.msra.mxu1 %v32093_v49  ;;  %v32116_v9 = vld [vmem:[#allocation16_spill] sm:$0xff] }
 0xa0d   :  { %26654 = vmatprep.subr.bf16.mxu0 %v31743_v21  ;;  %26684 = vmatprep.subr.bf16.mxu1 %v31743_v21 }
 0xa0f   :  { %22599 = vmatmul.mubr.f32.vlgmr.msra.gmra.mrb[104].mxu0 %v30371_v22  ;;  %v32115_v22 = vld [vmem:[#allocation15_spill] sm:$0xff] }
 0xa10   :  { %26656 = vmatpush3.bf16.msra.mxu0 %v32113_v16  ;;  %26686 = vmatpush3.bf16.msra.mxu1 %v32095_v39 }
 0xa11   :  { %26657 = vmatprep.subr.bf16.mxu0 %v31743_v21  ;;  %26687 = vmatprep.subr.bf16.mxu1 %v31743_v21 }
 0xa12   :  { %22668 = vmatprep.mubr.msk.f32.mxu0 %vm27646_vm0, %v31741_v56 }
 0xa14   :  { %26659 = vmatpush3.bf16.msra.mxu0 %v32114_v38  ;;  %26689 = vmatpush3.bf16.msra.mxu1 %v32097_v63  ;;  %v32117_v38 = vld [vmem:[#allocation17_spill] sm:$0xff] }
 0xa15   :  { %26660 = vmatprep.subr.bf16.mxu0 %v31743_v21  ;;  %26690 = vmatprep.subr.bf16.mxu1 %v31743_v21 }
 0xa18   :  { %26662 = vmatpush3.bf16.msra.mxu0 %v32115_v22  ;;  %26692 = vmatpush3.bf16.msra.mxu1 %v32099_v53 }
 0xa19   :  { %26663 = vmatprep.subr.bf16.mxu0 %v31743_v21  ;;  %26693 = vmatprep.subr.bf16.mxu1 %v31743_v21 }
 0xa1a   :  { %v10777_v12 = vpop.f32.mrb[104].mxu1 }
 0xa1b   :  { %v22215_v16 = vpop.f32.mrb[105].mxu1 }
 0xa1c   :  { %26665 = vmatpush3.bf16.msra.mxu0 %v32116_v9  ;;  %26695 = vmatpush3.bf16.msra.mxu1 %v32101_v51  ;;  %v32118_v16 = vld [vmem:[#allocation18_spill] sm:$0xff] }
 0xa1d   :  { %26666 = vmatprep.subr.bf16.mxu0 %v31743_v21  ;;  %26696 = vmatprep.subr.bf16.mxu1 %v31743_v21 }
 0xa20   :  { %26668 = vmatpush3.bf16.msra.mxu0 %v32117_v38  ;;  %26698 = vmatpush3.bf16.msra.mxu1 %v32103_v60  ;;  %v32119_v38 = vld [vmem:[#allocation19_spill] sm:$0xff] }
 0xa21   :  { %26669 = vmatprep.subr.bf16.mxu0 %v31743_v21  ;;  %26699 = vmatprep.subr.bf16.mxu1 %v31743_v21 }
 0xa22   :  { %v10688_v22 = vpop.f32.mrb[92].mxu0 }
 0xa23   :  { %v10689_v10 = vadd.f32 %v10688_v22, %v10585_v43  ;;  %v22180_v54 = vpop.f32.mrb[93].mxu0  ;;  %v32121_v43 = vld [vmem:[#allocation20_spill] sm:$0xff]  ;;  %v32124_v22 = vld [vmem:[#allocation63_spill] sm:$0xff] }
 0xa24   :  { %26671 = vmatpush3.bf16.msra.mxu0 %v32118_v16  ;;  %26701 = vmatpush3.bf16.msra.mxu1 %v32104_v20  ;;  %v32122_v54 = vld [vmem:[#allocation58_spill] sm:$0xff] }
 0xa25   :  { %26672 = vmatprep.subr.bf16.mxu0 %v31743_v21  ;;  %v10778_v9 = vadd.f32 %v10777_v12, %v10689_v10  ;;  %26726 = vmatprep.subr.bf16.mxu1 %v31743_v21  ;;  %v32123_v10 = vld [vmem:[#allocation61_spill] sm:$0xff] }
 0xa27   :  { %22704 = vmatmul.mubr.f32.vlgmr.msra.gmra.mrb[118].mxu1 %v30365_v28 }
 0xa28   :  { %26674 = vmatpush3.bf16.msra.mxu0 %v32119_v38  ;;  %26728 = vmatpush3.bf16.msra.mxu1 %v32120_v41 }
 0xa29   :  { %26675 = vmatprep.subr.bf16.mxu0 %v31743_v21  ;;  %26729 = vmatprep.subr.bf16.mxu1 %v31743_v21 }
 0xa2a   :  { %22773 = vmatprep.mubr.msk.f32.mxu1 %vm27646_vm0, %v31741_v56 }
 0xa2c   :  { %26677 = vmatpush3.bf16.msra.mxu0 %v32121_v43  ;;  %26731 = vmatpush3.bf16.msra.mxu1 %v32122_v54  ;;  %v32126_v54 = vld [vmem:[#allocation66_spill] sm:$0xff] }
 0xa2d   :  { %26702 = vmatprep.subr.bf16.mxu0 %v31743_v21  ;;  %26732 = vmatprep.subr.bf16.mxu1 %v31743_v21 }
 0xa2f   :  { %22669 = vmatmul.mubr.f32.vlgmr.msra.gmra.mrb[106].mxu0 %v30365_v28  ;;  %v32125_v28 = vld [vmem:[#allocation65_spill] sm:$0xff] }
 0xa30   :  { %26704 = vmatpush3.bf16.msra.mxu0 %v31844_v40  ;;  %26734 = vmatpush3.bf16.msra.mxu1 %v32123_v10 }
 0xa31   :  { %26705 = vmatprep.subr.bf16.mxu0 %v31743_v21  ;;  %26735 = vmatprep.subr.bf16.mxu1 %v31743_v21 }
 0xa32   :  { %22738 = vmatprep.mubr.msk.f32.mxu0 %vm27646_vm0, %v31741_v56 }
 0xa34   :  { %26707 = vmatpush3.bf16.msra.mxu0 %v31846_v55  ;;  %26737 = vmatpush3.bf16.msra.mxu1 %v32124_v22  ;;  %v32127_v22 = vld [vmem:[#allocation67_spill] sm:$0xff] }
 0xa35   :  { %26708 = vmatprep.subr.bf16.mxu0 %v31743_v21  ;;  %26738 = vmatprep.subr.bf16.mxu1 %v31743_v21 }
 0xa38   :  { %26710 = vmatpush3.bf16.msra.mxu0 %v31848_v37  ;;  %26740 = vmatpush3.bf16.msra.mxu1 %v32125_v28 }
 0xa39   :  { %26711 = vmatprep.subr.bf16.mxu0 %v31743_v21  ;;  %26741 = vmatprep.subr.bf16.mxu1 %v31743_v21 }
 0xa3a   :  { %v10983_v12 = vpop.f32.mrb[106].mxu1 }
 0xa3b   :  { %v22285_v10 = vpop.f32.mrb[107].mxu1 }
 0xa3c   :  { %26713 = vmatpush3.bf16.msra.mxu0 %v31850_v19  ;;  %26743 = vmatpush3.bf16.msra.mxu1 %v32126_v54  ;;  %v32128_v10 = vld [vmem:[#allocation68_spill] sm:$0xff] }
 0xa3d   :  { %26714 = vmatprep.subr.bf16.mxu0 %v31743_v21  ;;  %26744 = vmatprep.subr.bf16.mxu1 %v31743_v21 }
 0xa40   :  { %26716 = vmatpush3.bf16.msra.mxu0 %v31852_v23  ;;  %26746 = vmatpush3.bf16.msra.mxu1 %v32127_v22 }
 0xa41   :  { %26717 = vmatprep.subr.bf16.mxu0 %v31743_v21  ;;  %26747 = vmatprep.subr.bf16.mxu1 %v31743_v21 }
 0xa42   :  { %v10896_v28 = vpop.f32.mrb[94].mxu0 }
 0xa43   :  { %v10897_v43 = vadd.f32 %v10896_v28, %v10778_v9  ;;  %v22250_v41 = vpop.f32.mrb[95].mxu0 }
 0xa44   :  { %26719 = vmatpush3.bf16.msra.mxu0 %v31854_v33  ;;  %26749 = vmatpush3.bf16.msra.mxu1 %v32128_v10 }
 0xa45   :  { %v10984_v54 = vadd.f32 %v10983_v12, %v10897_v43  ;;  %26720 = vmatprep.subr.bf16.mxu0 %v31743_v21  ;;  %26774 = vmatprep.subr.bf16.mxu1 %v31743_v21 }
 0xa48   :  { %26722 = vmatpush3.bf16.msra.mxu0 %v31856_v1 }
 0xa49   :  { %26723 = vmatprep.subr.bf16.mxu0 %v31743_v21 }
 0xa4c   :  { %26725 = vmatpush3.bf16.msra.mxu0 %v31857_v50 }
 0xa4d   :  { %26750 = vmatprep.subr.bf16.mxu0 %v31743_v21 }
 0xa5a   :  { %v11225_v22 = vpop.f32.mrb[108].mxu1 }
 0xa5b   :  { %v22355_v9 = vpop.f32.mrb[109].mxu1 }
 0xa62   :  { %v11074_v41 = vpop.f32.mrb[96].mxu0 }
 0xa63   :  { %v11075_v28 = vadd.f32 %v11074_v41, %v10984_v54  ;;  %v22320_v38 = vpop.f32.mrb[97].mxu0 }
 0xa65   :  { %v11226_v16 = vadd.f32 %v11225_v22, %v11075_v28 }
 0xa7a   :  { %v11418_v10 = vpop.f32.mrb[110].mxu1 }
 0xa7b   :  { %v22425_v43 = vpop.f32.mrb[111].mxu1 }
 0xa82   :  { %v11329_v12 = vpop.f32.mrb[98].mxu0 }
 0xa83   :  { %v11330_v20 = vadd.f32 %v11329_v12, %v11226_v16  ;;  %v22390_v60 = vpop.f32.mrb[99].mxu0 }
 0xa85   :  { %v11419_v51 = vadd.f32 %v11418_v10, %v11330_v20 }
 0xa9a   :  { %v11624_v53 = vpop.f32.mrb[112].mxu1 }
 0xa9b   :  { %v22495_v63 = vpop.f32.mrb[113].mxu1 }
 0xaa2   :  { %v11537_v39 = vpop.f32.mrb[100].mxu0 }
 0xaa3   :  { %v11538_v49 = vadd.f32 %v11537_v39, %v11419_v51  ;;  %v22460_v0 = vpop.f32.mrb[101].mxu0 }
 0xaa5   :  { %v11625_v25 = vadd.f32 %v11624_v53, %v11538_v49 }
 0xaa7   :  { %v11628_v3 = vadd.f32 %v30251_v58, %v11625_v25 }
 0xaa9   :  { %27605 = vtanh.f32 %v11628_v3 }
 0xab3   :  { %v27606_v9 = vpop.eup %27605 }
 0xab4   :  { %v30612_v17 = vand.u32 4294901760, %v27606_v9 }
 0xab6   :  { %22774 = vmatmul.mubr.f32.vlgmr.msra.gmra.mrb[120].mxu1 %v30612_v17  ;;  %v12357_v38 = vsub.f32 %v27606_v9, %v30612_v17 }
 0xab7   :  { %26776 = vmatpush3.bf16.msra.mxu1 %v31844_v40  ;;  %22843 = vmatprep.mubr.msk.f32.mxu1 %vm27646_vm0, %v31741_v56 }
 0xab8   :  { %26777 = vmatprep.subr.bf16.mxu1 %v31743_v21  ;;  %v12358_v20 = vand.u32 4294901760, %v12357_v38 }
 0xaba   :  { %v11870_v60 = vpop.f32.mrb[114].mxu1  ;;  %v12359_v51 = vsub.f32 %v12357_v38, %v12358_v20 }
 0xabb   :  { %26779 = vmatpush3.bf16.msra.mxu1 %v31846_v55  ;;  %v22565_v3 = vpop.f32.mrb[115].mxu1 }
 0xabc   :  { %26780 = vmatprep.subr.bf16.mxu1 %v31743_v21  ;;  %v12360_v25 = vand.u32 4294901760, %v12359_v51 }
 0xabe   :  { %22739 = vmatmul.mubr.f32.vlgmr.msra.gmra.mrb[108].mxu0 %v12360_v25 }
 0xabf   :  { %26752 = vmatpush3.bf16.msra.mxu0 %v31858_v61  ;;  %26782 = vmatpush3.bf16.msra.mxu1 %v31848_v37 }
 0xac0   :  { %26753 = vmatprep.subr.bf16.mxu0 %v31743_v21  ;;  %26783 = vmatprep.subr.bf16.mxu1 %v31743_v21 }
 0xac1   :  { %22808 = vmatprep.mubr.msk.f32.mxu0 %vm27646_vm0, %v31741_v56 }
 0xac2   :  { %v11719_v58 = vpop.f32.mrb[102].mxu0 }
 0xac3   :  { %v11871_v39 = vadd.f32 %v11870_v60, %v11719_v58  ;;  %26755 = vmatpush3.bf16.msra.mxu0 %v31859_v46  ;;  %26785 = vmatpush3.bf16.msra.mxu1 %v31850_v19  ;;  %v22530_v53 = vpop.f32.mrb[103].mxu0 }
 0xac4   :  { %26756 = vmatprep.subr.bf16.mxu0 %v31743_v21  ;;  %26786 = vmatprep.subr.bf16.mxu1 %v31743_v21  ;;  %v32130_v53 = vld [vmem:[#allocation75_spill] sm:$0xff] }
 0xac7   :  { %26758 = vmatpush3.bf16.msra.mxu0 %v31860_v15  ;;  %26788 = vmatpush3.bf16.msra.mxu1 %v31852_v23 }
 0xac8   :  { %26759 = vmatprep.subr.bf16.mxu0 %v31743_v21  ;;  %26789 = vmatprep.subr.bf16.mxu1 %v31743_v21 }
 0xacb   :  { %26761 = vmatpush3.bf16.msra.mxu0 %v31861_v62  ;;  %26791 = vmatpush3.bf16.msra.mxu1 %v31854_v33 }
 0xacc   :  { %26762 = vmatprep.subr.bf16.mxu0 %v31743_v21  ;;  %26792 = vmatprep.subr.bf16.mxu1 %v31743_v21 }
 0xacf   :  { %26764 = vmatpush3.bf16.msra.mxu0 %v31862_v4  ;;  %26794 = vmatpush3.bf16.msra.mxu1 %v31856_v1 }
 0xad0   :  { %26765 = vmatprep.subr.bf16.mxu0 %v31743_v21  ;;  %26795 = vmatprep.subr.bf16.mxu1 %v31743_v21 }
 0xad3   :  { %26767 = vmatpush3.bf16.msra.mxu0 %v31863_v52  ;;  %26797 = vmatpush3.bf16.msra.mxu1 %v31857_v50 }
 0xad4   :  { %26768 = vmatprep.subr.bf16.mxu0 %v31743_v21  ;;  %26822 = vmatprep.subr.bf16.mxu1 %v31743_v21 }
 0xad6   :  { %22844 = vmatmul.mubr.f32.vlgmr.msra.gmra.mrb[122].mxu1 %v12358_v20 }
 0xad7   :  { %26770 = vmatpush3.bf16.msra.mxu0 %v31864_v35  ;;  %26824 = vmatpush3.bf16.msra.mxu1 %v31844_v40 }
 0xad8   :  { %26771 = vmatprep.subr.bf16.mxu0 %v31743_v21  ;;  %26825 = vmatprep.subr.bf16.mxu1 %v31743_v21 }
 0xad9   :  { %22913 = vmatprep.mubr.msk.f32.mxu1 %vm27646_vm0, %v31741_v56 }
 0xada   :  { %v12063_v0 = vpop.f32.mrb[116].mxu1 }
 0xadb   :  { %26773 = vmatpush3.bf16.msra.mxu0 %v31865_v6  ;;  %26827 = vmatpush3.bf16.msra.mxu1 %v31846_v55  ;;  %v22635_v63 = vpop.f32.mrb[117].mxu1 }
 0xadc   :  { %26798 = vmatprep.subr.bf16.mxu0 %v31743_v21  ;;  %26828 = vmatprep.subr.bf16.mxu1 %v31743_v21  ;;  %v32132_v63 = vld [vmem:[#allocation79_spill] sm:$0xff] }
 0xade   :  { %22809 = vmatmul.mubr.f32.vlgmr.msra.gmra.mrb[110].mxu0 %v12357_v38 }
 0xadf   :  { %26800 = vmatpush3.bf16.msra.mxu0 %v31911_v8  ;;  %26830 = vmatpush3.bf16.msra.mxu1 %v31848_v37 }
 0xae0   :  { %26801 = vmatprep.subr.bf16.mxu0 %v31743_v21  ;;  %26831 = vmatprep.subr.bf16.mxu1 %v31743_v21 }
 0xae1   :  { %22878 = vmatprep.mubr.msk.f32.mxu0 %vm27646_vm0, %v31741_v56 }
 0xae2   :  { %v11974_v49 = vpop.f32.mrb[104].mxu0 }
 0xae3   :  { %v11975_v16 = vadd.f32 %v11974_v49, %v11871_v39  ;;  %26803 = vmatpush3.bf16.msra.mxu0 %v31912_v32  ;;  %26833 = vmatpush3.bf16.msra.mxu1 %v31850_v19  ;;  %v22600_v54 = vpop.f32.mrb[105].mxu0  ;;  %v32129_v39 = vld [vmem:[#allocation74_spill] sm:$0xff]  ;;  %v32133_v49 = vld [vmem:[#allocation81_spill] sm:$0xff] }
 0xae4   :  { %26804 = vmatprep.subr.bf16.mxu0 %v31743_v21  ;;  %26834 = vmatprep.subr.bf16.mxu1 %v31743_v21  ;;  %v32135_v54 = vld [vmem:[#allocation83_spill] sm:$0xff] }
 0xae5   :  { %v12064_v22 = vadd.f32 %v12063_v0, %v11975_v16  ;;  %v32131_v0 = vld [vmem:[#allocation77_spill] sm:$0xff]  ;;  %v32134_v16 = vld [vmem:[#allocation82_spill] sm:$0xff] }
 0xae7   :  { %26806 = vmatpush3.bf16.msra.mxu0 %v31913_v34  ;;  %26836 = vmatpush3.bf16.msra.mxu1 %v31852_v23 }
 0xae8   :  { %26807 = vmatprep.subr.bf16.mxu0 %v31743_v21  ;;  %26837 = vmatprep.subr.bf16.mxu1 %v31743_v21 }
 0xaeb   :  { %26809 = vmatpush3.bf16.msra.mxu0 %v31914_v31  ;;  %26839 = vmatpush3.bf16.msra.mxu1 %v31854_v33 }
 0xaec   :  { %26810 = vmatprep.subr.bf16.mxu0 %v31743_v21  ;;  %26840 = vmatprep.subr.bf16.mxu1 %v31743_v21 }
 0xaef   :  { %26812 = vmatpush3.bf16.msra.mxu0 %v31915_v29  ;;  %26842 = vmatpush3.bf16.msra.mxu1 %v31856_v1 }
 0xaf0   :  { %26813 = vmatprep.subr.bf16.mxu0 %v31743_v21  ;;  %26843 = vmatprep.subr.bf16.mxu1 %v31743_v21 }
 0xaf3   :  { %26815 = vmatpush3.bf16.msra.mxu0 %v31916_v2  ;;  %26845 = vmatpush3.bf16.msra.mxu1 %v31857_v50 }
 0xaf4   :  { %26816 = vmatprep.subr.bf16.mxu0 %v31743_v21  ;;  %26870 = vmatprep.subr.bf16.mxu1 %v31743_v21 }
 0xaf6   :  { %22914 = vmatmul.mubr.f32.vlgmr.msra.gmra.mrb[124].mxu1 %v30612_v17 }
 0xaf7   :  { %26818 = vmatpush3.bf16.msra.mxu0 %v31917_v5  ;;  %26872 = vmatpush3.bf16.msra.mxu1 %v31918_v18 }
 0xaf8   :  { %26819 = vmatprep.subr.bf16.mxu0 %v31743_v21  ;;  %26873 = vmatprep.subr.bf16.mxu1 %v31743_v21 }
 0xaf9   :  { %22983 = vmatprep.mubr.msk.f32.mxu1 %vm27646_vm0, %v31741_v56 }
 0xafa   :  { %v12269_v10 = vpop.f32.mrb[118].mxu1 }
 0xafb   :  { %26821 = vmatpush3.bf16.msra.mxu0 %v31919_v13  ;;  %26875 = vmatpush3.bf16.msra.mxu1 %v31920_v27  ;;  %v22705_v41 = vpop.f32.mrb[119].mxu1 }
 0xafc   :  { %26846 = vmatprep.subr.bf16.mxu0 %v31743_v21  ;;  %26876 = vmatprep.subr.bf16.mxu1 %v31743_v21  ;;  %v32138_v41 = vld [vmem:[#allocation86_spill] sm:$0xff] }
 0xafe   :  { %22879 = vmatmul.mubr.f32.vlgmr.msra.gmra.mrb[112].mxu0 %v30612_v17  ;;  %v16163_v17 = vld [vmem:[%s31443_s0 + $0x30] sm:$0xff] }
 0xaff   :  { %26848 = vmatpush3.bf16.msra.mxu0 %v28288_v44  ;;  %26878 = vmatpush3.bf16.msra.mxu1 %v31921_v7 }
 0xb00   :  { %26849 = vmatprep.subr.bf16.mxu0 %v31743_v21  ;;  %26879 = vmatprep.subr.bf16.mxu1 %v31743_v21 }
 0xb01   :  { %22948 = vmatprep.mubr.msk.f32.mxu0 %vm27646_vm0, %v31741_v56 }
 0xb02   :  { %v12182_v28 = vpop.f32.mrb[106].mxu0 }
 0xb03   :  { %v12183_v43 = vadd.f32 %v12182_v28, %v12064_v22  ;;  %26851 = vmatpush3.bf16.msra.mxu0 %v28291_v11  ;;  %26881 = vmatpush3.bf16.msra.mxu1 %v31877_v42  ;;  %v22670_v12 = vpop.f32.mrb[107].mxu0  ;;  %v32136_v22 = vld [vmem:[#allocation84_spill] sm:$0xff]  ;;  %v32139_v28 = vld [vmem:[#allocation87_spill] sm:$0xff] }
 0xb04   :  { %26852 = vmatprep.subr.bf16.mxu0 %v31743_v21  ;;  %26882 = vmatprep.subr.bf16.mxu1 %v31743_v21  ;;  %v32141_v12 = vld [vmem:[#allocation89_spill] sm:$0xff] }
 0xb05   :  { %v12270_v9 = vadd.f32 %v12269_v10, %v12183_v43  ;;  %v32137_v10 = vld [vmem:[#allocation85_spill] sm:$0xff]  ;;  %v32140_v43 = vld [vmem:[#allocation88_spill] sm:$0xff] }
 0xb07   :  { %v12273_v38 = vadd.f32 %v16163_v17, %v12270_v9  ;;  %26854 = vmatpush3.bf16.msra.mxu0 %v28299_v24  ;;  %26884 = vmatpush3.bf16.msra.mxu1 %v31878_v48  ;;  %v32142_v17 = vld [vmem:[#allocation90_spill] sm:$0xff]  ;;  %v32143_v9 = vld [vmem:[#allocation91_spill] sm:$0xff] }
 0xb08   :  { %26855 = vmatprep.subr.bf16.mxu0 %v31743_v21  ;;  %26885 = vmatprep.subr.bf16.mxu1 %v31743_v21 }
 0xb09   :  { %27607 = vtanh.f32 %v12273_v38  ;;  %v32144_v38 = vld [vmem:[#allocation21_spill] sm:$0xff] }
 0xb0b   :  { %26857 = vmatpush3.bf16.msra.mxu0 %v28307_v14  ;;  %26887 = vmatpush3.bf16.msra.mxu1 %v31879_v47 }
 0xb0c   :  { %26858 = vmatprep.subr.bf16.mxu0 %v31743_v21  ;;  %26888 = vmatprep.subr.bf16.mxu1 %v31743_v21 }
 0xb0f   :  { %26860 = vmatpush3.bf16.msra.mxu0 %v28369_v59  ;;  %26890 = vmatpush3.bf16.msra.mxu1 %v31880_v36 }
 0xb10   :  { %26861 = vmatprep.subr.bf16.mxu0 %v31743_v21  ;;  %26891 = vmatprep.subr.bf16.mxu1 %v31743_v21 }
 0xb13   :  { %v27608_v20 = vpop.eup %27607  ;;  %26863 = vmatpush3.bf16.msra.mxu0 %v28387_v30  ;;  %26893 = vmatpush3.bf16.msra.mxu1 %v31881_v26 }
 0xb14   :  { %v30723_v60 = vand.u32 4294901760, %v27608_v20  ;;  %26864 = vmatprep.subr.bf16.mxu0 %v31743_v21  ;;  %26918 = vmatprep.subr.bf16.mxu1 %v31743_v21 }
 0xb16   :  { %22984 = vmatmul.mubr.f32.vlgmr.msra.gmra.mrb[126].mxu1 %v30723_v60  ;;  %v30729_v51 = vsub.f32 %v27608_v20, %v30723_v60  ;;  %v32145_v20 = vld [vmem:[#allocation92_spill] sm:$0xff] }
 0xb17   :  { %26866 = vmatpush3.bf16.msra.mxu0 %v28404_v57  ;;  %26920 = vmatpush3.bf16.msra.mxu1 %v28288_v44 }
 0xb18   :  { %26867 = vmatprep.subr.bf16.mxu0 %v31743_v21  ;;  %26921 = vmatprep.subr.bf16.mxu1 %v31743_v21  ;;  %v30736_v3 = vand.u32 4294901760, %v30729_v51 }
 0xb19   :  { %23053 = vmatprep.mubr.msk.f32.mxu1 %vm27646_vm0, %v31741_v56 }
 0xb1a   :  { %v13000_v25 = vsub.f32 %v30729_v51, %v30736_v3 }
 0xb1b   :  { %26869 = vmatpush3.bf16.msra.mxu0 %v28421_v45  ;;  %26923 = vmatpush3.bf16.msra.mxu1 %v28291_v11 }
 0xb1c   :  { %26894 = vmatprep.subr.bf16.mxu0 %v31743_v21  ;;  %26924 = vmatprep.subr.bf16.mxu1 %v31743_v21  ;;  %v30746_v58 = vand.u32 4294901760, %v13000_v25  ;;  %v32146_v25 = vld [vmem:[#allocation22_spill] sm:$0xff] }
 0xb1e   :  { %22949 = vmatmul.mubr.f32.vlgmr.msra.gmra.mrb[114].mxu0 %v30746_v58 }
 0xb1f   :  { %26896 = vmatpush3.bf16.msra.mxu0 %v32129_v39  ;;  %26926 = vmatpush3.bf16.msra.mxu1 %v28299_v24 }
 0xb20   :  { %26897 = vmatprep.subr.bf16.mxu0 %v31743_v21  ;;  %26927 = vmatprep.subr.bf16.mxu1 %v31743_v21 }
 0xb21   :  { %23018 = vmatprep.mubr.msk.f32.mxu0 %vm27646_vm0, %v31741_v56 }
 0xb23   :  { %26899 = vmatpush3.bf16.msra.mxu0 %v32130_v53  ;;  %26929 = vmatpush3.bf16.msra.mxu1 %v28307_v14 }
 0xb24   :  { %26900 = vmatprep.subr.bf16.mxu0 %v31743_v21  ;;  %26930 = vmatprep.subr.bf16.mxu1 %v31743_v21 }
 0xb27   :  { %26902 = vmatpush3.bf16.msra.mxu0 %v32131_v0  ;;  %26932 = vmatpush3.bf16.msra.mxu1 %v28369_v59 }
 0xb28   :  { %26903 = vmatprep.subr.bf16.mxu0 %v31743_v21  ;;  %26933 = vmatprep.subr.bf16.mxu1 %v31743_v21 }
 0xb2b   :  { %26905 = vmatpush3.bf16.msra.mxu0 %v32132_v63  ;;  %26935 = vmatpush3.bf16.msra.mxu1 %v28387_v30 }
 0xb2c   :  { %26906 = vmatprep.subr.bf16.mxu0 %v31743_v21  ;;  %26936 = vmatprep.subr.bf16.mxu1 %v31743_v21 }
 0xb2f   :  { %26908 = vmatpush3.bf16.msra.mxu0 %v32133_v49  ;;  %26938 = vmatpush3.bf16.msra.mxu1 %v28404_v57 }
 0xb30   :  { %26909 = vmatprep.subr.bf16.mxu0 %v31743_v21  ;;  %26939 = vmatprep.subr.bf16.mxu1 %v31743_v21 }
 0xb33   :  { %26911 = vmatpush3.bf16.msra.mxu0 %v32134_v16  ;;  %26941 = vmatpush3.bf16.msra.mxu1 %v28421_v45 }
 0xb34   :  { %26912 = vmatprep.subr.bf16.mxu0 %v31743_v21  ;;  %26966 = vmatprep.subr.bf16.mxu1 %v31743_v21 }
 0xb36   :  { %23054 = vmatmul.mubr.f32.vlgmr.msra.gmra.mrb[128].mxu1 %v30736_v3 }
 0xb37   :  { %26914 = vmatpush3.bf16.msra.mxu0 %v32135_v54  ;;  %26968 = vmatpush3.bf16.msra.mxu1 %v28288_v44  ;;  %v32164_v54 = vld [vmem:[#allocation32_spill] sm:$0xff] }
 0xb38   :  { %26915 = vmatprep.subr.bf16.mxu0 %v31743_v21  ;;  %26969 = vmatprep.subr.bf16.mxu1 %v31743_v21 }
 0xb39   :  { %23123 = vmatprep.mubr.msk.f32.mxu1 %vm27646_vm0, %v31741_v56 }
 0xb3b   :  { %26917 = vmatpush3.bf16.msra.mxu0 %v32136_v22  ;;  %26971 = vmatpush3.bf16.msra.mxu1 %v28291_v11 }
 0xb3c   :  { %26942 = vmatprep.subr.bf16.mxu0 %v31743_v21  ;;  %26972 = vmatprep.subr.bf16.mxu1 %v31743_v21 }
 0xb3e   :  { %23019 = vmatmul.mubr.f32.vlgmr.msra.gmra.mrb[116].mxu0 %v30729_v51 }
 0xb3f   :  { %26944 = vmatpush3.bf16.msra.mxu0 %v32137_v10  ;;  %26974 = vmatpush3.bf16.msra.mxu1 %v28299_v24  ;;  %v32162_v10 = vld [vmem:[#allocation30_spill] sm:$0xff] }
 0xb40   :  { %26945 = vmatprep.subr.bf16.mxu0 %v31743_v21  ;;  %26975 = vmatprep.subr.bf16.mxu1 %v31743_v21 }
 0xb41   :  { %23088 = vmatprep.mubr.msk.f32.mxu0 %vm27646_vm0, %v31741_v56 }
 0xb43   :  { %26947 = vmatpush3.bf16.msra.mxu0 %v32138_v41  ;;  %26977 = vmatpush3.bf16.msra.mxu1 %v28307_v14  ;;  %v32158_v41 = vld [vmem:[#allocation28_spill] sm:$0xff] }
 0xb44   :  { %26948 = vmatprep.subr.bf16.mxu0 %v31743_v21  ;;  %26978 = vmatprep.subr.bf16.mxu1 %v31743_v21 }
 0xb47   :  { %26950 = vmatpush3.bf16.msra.mxu0 %v32139_v28  ;;  %26980 = vmatpush3.bf16.msra.mxu1 %v28369_v59  ;;  %v32156_v28 = vld [vmem:[#allocation27_spill] sm:$0xff] }
 0xb48   :  { %26951 = vmatprep.subr.bf16.mxu0 %v31743_v21  ;;  %26981 = vmatprep.subr.bf16.mxu1 %v31743_v21 }
 0xb4b   :  { %26953 = vmatpush3.bf16.msra.mxu0 %v32140_v43  ;;  %26983 = vmatpush3.bf16.msra.mxu1 %v28387_v30  ;;  %v32154_v43 = vld [vmem:[#allocation26_spill] sm:$0xff] }
 0xb4c   :  { %26954 = vmatprep.subr.bf16.mxu0 %v31743_v21  ;;  %26984 = vmatprep.subr.bf16.mxu1 %v31743_v21 }
 0xb4f   :  { %26956 = vmatpush3.bf16.msra.mxu0 %v32141_v12  ;;  %26986 = vmatpush3.bf16.msra.mxu1 %v28404_v57  ;;  %v32152_v12 = vld [vmem:[#allocation25_spill] sm:$0xff] }
 0xb50   :  { %26957 = vmatprep.subr.bf16.mxu0 %v31743_v21  ;;  %26987 = vmatprep.subr.bf16.mxu1 %v31743_v21 }
 0xb53   :  { %26959 = vmatpush3.bf16.msra.mxu0 %v32142_v17  ;;  %26989 = vmatpush3.bf16.msra.mxu1 %v28421_v45  ;;  %v32151_v17 = vld [vmem:[#allocation7_spill] sm:$0xff] }
 0xb54   :  { %26960 = vmatprep.subr.bf16.mxu0 %v31743_v21  ;;  %27014 = vmatprep.subr.bf16.mxu1 %v31743_v21 }
 0xb56   :  { %23124 = vmatmul.mubr.f32.vlgmr.msra.gmra.mrb[130].mxu1 %v30723_v60 }
 0xb57   :  { %26962 = vmatpush3.bf16.msra.mxu0 %v32143_v9  ;;  %27016 = vmatpush3.bf16.msra.mxu1 %v32144_v38  ;;  %v32147_v9 = vld [vmem:[#allocation5_spill] sm:$0xff]  ;;  %v32148_v38 = vld [vmem:[#allocation23_spill] sm:$0xff] }
 0xb58   :  { %26963 = vmatprep.subr.bf16.mxu0 %v31743_v21  ;;  %27017 = vmatprep.subr.bf16.mxu1 %v31743_v21 }
 0xb59   :  { %23193 = vmatprep.mubr.msk.f32.mxu1 %vm27646_vm0, %v31741_v56 }
 0xb5b   :  { %26965 = vmatpush3.bf16.msra.mxu0 %v32145_v20  ;;  %27019 = vmatpush3.bf16.msra.mxu1 %v32146_v25  ;;  %v32149_v20 = vld [vmem:[#allocation6_spill] sm:$0xff]  ;;  %v32150_v25 = vld [vmem:[#allocation24_spill] sm:$0xff] }
 0xb5c   :  { %26990 = vmatprep.subr.bf16.mxu0 %v31743_v21  ;;  %27020 = vmatprep.subr.bf16.mxu1 %v31743_v21 }
 0xb5e   :  { %23089 = vmatmul.mubr.f32.vlgmr.msra.gmra.mrb[118].mxu0 %v30723_v60 }
 0xb5f   :  { %26992 = vmatpush3.bf16.msra.mxu0 %v32147_v9  ;;  %27022 = vmatpush3.bf16.msra.mxu1 %v32148_v38  ;;  %v32153_v38 = vld [vmem:[#allocation8_spill] sm:$0xff] }
 0xb60   :  { %26993 = vmatprep.subr.bf16.mxu0 %v31743_v21  ;;  %27023 = vmatprep.subr.bf16.mxu1 %v31743_v21 }
 0xb61   :  { %23158 = vmatprep.mubr.msk.f32.mxu0 %vm27646_vm0, %v31741_v56 }
 0xb63   :  { %26995 = vmatpush3.bf16.msra.mxu0 %v32149_v20  ;;  %27025 = vmatpush3.bf16.msra.mxu1 %v32150_v25  ;;  %v32155_v25 = vld [vmem:[#allocation9_spill] sm:$0xff] }
 0xb64   :  { %26996 = vmatprep.subr.bf16.mxu0 %v31743_v21  ;;  %27026 = vmatprep.subr.bf16.mxu1 %v31743_v21 }
 0xb67   :  { %26998 = vmatpush3.bf16.msra.mxu0 %v32151_v17  ;;  %27028 = vmatpush3.bf16.msra.mxu1 %v32152_v12  ;;  %v32157_v12 = vld [vmem:[#allocation10_spill] sm:$0xff] }
 0xb68   :  { %26999 = vmatprep.subr.bf16.mxu0 %v31743_v21  ;;  %27029 = vmatprep.subr.bf16.mxu1 %v31743_v21 }
 0xb6b   :  { %27001 = vmatpush3.bf16.msra.mxu0 %v32153_v38  ;;  %27031 = vmatpush3.bf16.msra.mxu1 %v32154_v43  ;;  %v32159_v43 = vld [vmem:[#allocation11_spill] sm:$0xff] }
 0xb6c   :  { %27002 = vmatprep.subr.bf16.mxu0 %v31743_v21  ;;  %27032 = vmatprep.subr.bf16.mxu1 %v31743_v21 }
 0xb6f   :  { %27004 = vmatpush3.bf16.msra.mxu0 %v32155_v25  ;;  %27034 = vmatpush3.bf16.msra.mxu1 %v32156_v28  ;;  %v32160_v28 = vld [vmem:[#allocation12_spill] sm:$0xff] }
 0xb70   :  { %27005 = vmatprep.subr.bf16.mxu0 %v31743_v21  ;;  %27035 = vmatprep.subr.bf16.mxu1 %v31743_v21 }
 0xb73   :  { %27007 = vmatpush3.bf16.msra.mxu0 %v32157_v12  ;;  %27037 = vmatpush3.bf16.msra.mxu1 %v32158_v41  ;;  %v32161_v41 = vld [vmem:[#allocation29_spill] sm:$0xff] }
 0xb74   :  { %27008 = vmatprep.subr.bf16.mxu0 %v31743_v21  ;;  %27062 = vmatprep.subr.bf16.mxu1 %v31743_v21 }
 0xb76   :  { %23194 = vmatmul.mubr.f32.vlgmr.msra.gmra.mrb[132].mxu1 %v30723_v60 }
 0xb77   :  { %27010 = vmatpush3.bf16.msra.mxu0 %v32159_v43  ;;  %27064 = vmatpush3.bf16.msra.mxu1 %v32147_v9 }
 0xb78   :  { %27011 = vmatprep.subr.bf16.mxu0 %v31743_v21  ;;  %27065 = vmatprep.subr.bf16.mxu1 %v31743_v21 }
 0xb79   :  { %23263 = vmatprep.mubr.msk.f32.mxu1 %vm27646_vm0, %v31741_v56 }
 0xb7b   :  { %27013 = vmatpush3.bf16.msra.mxu0 %v32160_v28  ;;  %27067 = vmatpush3.bf16.msra.mxu1 %v32149_v20 }
 0xb7c   :  { %27038 = vmatprep.subr.bf16.mxu0 %v31743_v21  ;;  %27068 = vmatprep.subr.bf16.mxu1 %v31743_v21 }
 0xb7e   :  { %23159 = vmatmul.mubr.f32.vlgmr.msra.gmra.mrb[120].mxu0 %v30746_v58  ;;  %v32163_v58 = vld [vmem:[#allocation31_spill] sm:$0xff] }
 0xb7f   :  { %27040 = vmatpush3.bf16.msra.mxu0 %v32161_v41  ;;  %27070 = vmatpush3.bf16.msra.mxu1 %v32151_v17 }
 0xb80   :  { %27041 = vmatprep.subr.bf16.mxu0 %v31743_v21  ;;  %27071 = vmatprep.subr.bf16.mxu1 %v31743_v21 }
 0xb81   :  { %23228 = vmatprep.mubr.msk.f32.mxu0 %vm27646_vm0, %v31741_v56 }
 0xb83   :  { %27043 = vmatpush3.bf16.msra.mxu0 %v32162_v10  ;;  %27073 = vmatpush3.bf16.msra.mxu1 %v32153_v38  ;;  %v32165_v10 = vld [vmem:[#allocation33_spill] sm:$0xff] }
 0xb84   :  { %27044 = vmatprep.subr.bf16.mxu0 %v31743_v21  ;;  %27074 = vmatprep.subr.bf16.mxu1 %v31743_v21 }
 0xb87   :  { %27046 = vmatpush3.bf16.msra.mxu0 %v32163_v58  ;;  %27076 = vmatpush3.bf16.msra.mxu1 %v32155_v25 }
 0xb88   :  { %27047 = vmatprep.subr.bf16.mxu0 %v31743_v21  ;;  %27077 = vmatprep.subr.bf16.mxu1 %v31743_v21 }
 0xb89   :  { %v12513_v41 = vpop.f32.mrb[120].mxu1 }
 0xb8a   :  { %v22775_v22 = vpop.f32.mrb[121].mxu1 }
 0xb8b   :  { %27049 = vmatpush3.bf16.msra.mxu0 %v32164_v54  ;;  %27079 = vmatpush3.bf16.msra.mxu1 %v32157_v12  ;;  %v32166_v22 = vld [vmem:[#allocation34_spill] sm:$0xff]  ;;  %v32167_v54 = vld [vmem:[#allocation35_spill] sm:$0xff] }
 0xb8c   :  { %27050 = vmatprep.subr.bf16.mxu0 %v31743_v21  ;;  %27080 = vmatprep.subr.bf16.mxu1 %v31743_v21 }
 0xb8f   :  { %27052 = vmatpush3.bf16.msra.mxu0 %v32165_v10  ;;  %27082 = vmatpush3.bf16.msra.mxu1 %v32159_v43 }
 0xb90   :  { %27053 = vmatprep.subr.bf16.mxu0 %v31743_v21  ;;  %27083 = vmatprep.subr.bf16.mxu1 %v31743_v21 }
 0xb91   :  { %v12362_v58 = vpop.f32.mrb[108].mxu0 }
 0xb92   :  { %v12514_v16 = vadd.f32 %v12513_v41, %v12362_v58  ;;  %v22740_v49 = vpop.f32.mrb[109].mxu0  ;;  %v32172_v41 = vld [vmem:[#allocation16_spill] sm:$0xff] }
 0xb93   :  { %27055 = vmatpush3.bf16.msra.mxu0 %v32166_v22  ;;  %27085 = vmatpush3.bf16.msra.mxu1 %v32160_v28  ;;  %v32168_v49 = vld [vmem:[#allocation36_spill] sm:$0xff]  ;;  %v32174_v22 = vld [vmem:[#allocation18_spill] sm:$0xff] }
 0xb94   :  { %27056 = vmatprep.subr.bf16.mxu0 %v31743_v21  ;;  %27110 = vmatprep.subr.bf16.mxu1 %v31743_v21 }
 0xb96   :  { %23264 = vmatmul.mubr.f32.vlgmr.msra.gmra.mrb[134].mxu1 %v30736_v3  ;;  %v32169_v3 = vld [vmem:[#allocation13_spill] sm:$0xff] }
 0xb97   :  { %27058 = vmatpush3.bf16.msra.mxu0 %v32167_v54  ;;  %27112 = vmatpush3.bf16.msra.mxu1 %v32147_v9  ;;  %v32170_v9 = vld [vmem:[#allocation14_spill] sm:$0xff]  ;;  %v32175_v54 = vld [vmem:[#allocation19_spill] sm:$0xff] }
 0xb98   :  { %27059 = vmatprep.subr.bf16.mxu0 %v31743_v21  ;;  %27113 = vmatprep.subr.bf16.mxu1 %v31743_v21 }
 0xb99   :  { %23333 = vmatprep.mubr.msk.f32.mxu1 %vm27646_vm0, %v31741_v56 }
 0xb9b   :  { %27061 = vmatpush3.bf16.msra.mxu0 %v32168_v49  ;;  %27115 = vmatpush3.bf16.msra.mxu1 %v32149_v20  ;;  %v32179_v49 = vld [vmem:[#allocation61_spill] sm:$0xff] }
 0xb9c   :  { %27086 = vmatprep.subr.bf16.mxu0 %v31743_v21  ;;  %27116 = vmatprep.subr.bf16.mxu1 %v31743_v21 }
 0xb9e   :  { %23229 = vmatmul.mubr.f32.vlgmr.msra.gmra.mrb[122].mxu0 %v30729_v51  ;;  %v32171_v51 = vld [vmem:[#allocation15_spill] sm:$0xff] }
 0xb9f   :  { %27088 = vmatpush3.bf16.msra.mxu0 %v32169_v3  ;;  %27118 = vmatpush3.bf16.msra.mxu1 %v32151_v17  ;;  %v32180_v3 = vld [vmem:[#allocation63_spill] sm:$0xff] }
 0xba0   :  { %27089 = vmatprep.subr.bf16.mxu0 %v31743_v21  ;;  %27119 = vmatprep.subr.bf16.mxu1 %v31743_v21 }
 0xba1   :  { %23298 = vmatprep.mubr.msk.f32.mxu0 %vm27646_vm0, %v31741_v56 }
 0xba3   :  { %27091 = vmatpush3.bf16.msra.mxu0 %v32170_v9  ;;  %27121 = vmatpush3.bf16.msra.mxu1 %v32153_v38  ;;  %v32173_v38 = vld [vmem:[#allocation17_spill] sm:$0xff] }
 0xba4   :  { %27092 = vmatprep.subr.bf16.mxu0 %v31743_v21  ;;  %27122 = vmatprep.subr.bf16.mxu1 %v31743_v21 }
 0xba7   :  { %27094 = vmatpush3.bf16.msra.mxu0 %v32171_v51  ;;  %27124 = vmatpush3.bf16.msra.mxu1 %v32155_v25 }
 0xba8   :  { %27095 = vmatprep.subr.bf16.mxu0 %v31743_v21  ;;  %27125 = vmatprep.subr.bf16.mxu1 %v31743_v21 }
 0xba9   :  { %v12706_v17 = vpop.f32.mrb[122].mxu1 }
 0xbaa   :  { %v22845_v20 = vpop.f32.mrb[123].mxu1 }
 0xbab   :  { %27097 = vmatpush3.bf16.msra.mxu0 %v32172_v41  ;;  %27127 = vmatpush3.bf16.msra.mxu1 %v32157_v12  ;;  %v32183_v20 = vld [vmem:[#allocation67_spill] sm:$0xff] }
 0xbac   :  { %27098 = vmatprep.subr.bf16.mxu0 %v31743_v21  ;;  %27128 = vmatprep.subr.bf16.mxu1 %v31743_v21 }
 0xbaf   :  { %27100 = vmatpush3.bf16.msra.mxu0 %v32173_v38  ;;  %27130 = vmatpush3.bf16.msra.mxu1 %v32159_v43  ;;  %v32176_v43 = vld [vmem:[#allocation57_spill] sm:$0xff] }
 0xbb0   :  { %27101 = vmatprep.subr.bf16.mxu0 %v31743_v21  ;;  %27131 = vmatprep.subr.bf16.mxu1 %v31743_v21 }
 0xbb1   :  { %v12617_v25 = vpop.f32.mrb[110].mxu0 }
 0xbb2   :  { %v12618_v10 = vadd.f32 %v12617_v25, %v12514_v16  ;;  %v22810_v58 = vpop.f32.mrb[111].mxu0  ;;  %v32177_v16 = vld [vmem:[#allocation20_spill] sm:$0xff] }
 0xbb3   :  { %27103 = vmatpush3.bf16.msra.mxu0 %v32174_v22  ;;  %27133 = vmatpush3.bf16.msra.mxu1 %v32160_v28  ;;  %v32178_v28 = vld [vmem:[#allocation58_spill] sm:$0xff] }
 0xbb4   :  { %27104 = vmatprep.subr.bf16.mxu0 %v31743_v21  ;;  %v12707_v12 = vadd.f32 %v12706_v17, %v12618_v10  ;;  %27158 = vmatprep.subr.bf16.mxu1 %v31743_v21  ;;  %v32182_v17 = vld [vmem:[#allocation66_spill] sm:$0xff]  ;;  %v32184_v10 = vld [vmem:[#allocation68_spill] sm:$0xff] }
 0xbb6   :  { %23334 = vmatmul.mubr.f32.vlgmr.msra.gmra.mrb[136].mxu1 %v30723_v60 }
 0xbb7   :  { %27106 = vmatpush3.bf16.msra.mxu0 %v32175_v54  ;;  %27160 = vmatpush3.bf16.msra.mxu1 %v32176_v43 }
 0xbb8   :  { %27107 = vmatprep.subr.bf16.mxu0 %v31743_v21  ;;  %27161 = vmatprep.subr.bf16.mxu1 %v31743_v21 }
 0xbb9   :  { %23403 = vmatprep.mubr.msk.f32.mxu1 %vm27646_vm0, %v31741_v56 }
 0xbbb   :  { %27109 = vmatpush3.bf16.msra.mxu0 %v32177_v16  ;;  %27163 = vmatpush3.bf16.msra.mxu1 %v32178_v28 }
 0xbbc   :  { %27134 = vmatprep.subr.bf16.mxu0 %v31743_v21  ;;  %27164 = vmatprep.subr.bf16.mxu1 %v31743_v21 }
 0xbbe   :  { %23299 = vmatmul.mubr.f32.vlgmr.msra.gmra.mrb[124].mxu0 %v30723_v60  ;;  %v32181_v60 = vld [vmem:[#allocation65_spill] sm:$0xff] }
 0xbbf   :  { %27136 = vmatpush3.bf16.msra.mxu0 %v31844_v40  ;;  %27166 = vmatpush3.bf16.msra.mxu1 %v32179_v49 }
 0xbc0   :  { %27137 = vmatprep.subr.bf16.mxu0 %v31743_v21  ;;  %27167 = vmatprep.subr.bf16.mxu1 %v31743_v21 }
 0xbc1   :  { %23368 = vmatprep.mubr.msk.f32.mxu0 %vm27646_vm0, %v31741_v56 }
 0xbc3   :  { %27139 = vmatpush3.bf16.msra.mxu0 %v31846_v55  ;;  %27169 = vmatpush3.bf16.msra.mxu1 %v32180_v3 }
 0xbc4   :  { %27140 = vmatprep.subr.bf16.mxu0 %v31743_v21  ;;  %27170 = vmatprep.subr.bf16.mxu1 %v31743_v21 }
 0xbc7   :  { %27142 = vmatpush3.bf16.msra.mxu0 %v31848_v37  ;;  %27172 = vmatpush3.bf16.msra.mxu1 %v32181_v60 }
 0xbc8   :  { %27143 = vmatprep.subr.bf16.mxu0 %v31743_v21  ;;  %27173 = vmatprep.subr.bf16.mxu1 %v31743_v21 }
 0xbc9   :  { %v12912_v9 = vpop.f32.mrb[124].mxu1 }
 0xbca   :  { %v22915_v51 = vpop.f32.mrb[125].mxu1 }
 0xbcb   :  { %27145 = vmatpush3.bf16.msra.mxu0 %v31850_v19  ;;  %27175 = vmatpush3.bf16.msra.mxu1 %v32182_v17 }
 0xbcc   :  { %27146 = vmatprep.subr.bf16.mxu0 %v31743_v21  ;;  %27176 = vmatprep.subr.bf16.mxu1 %v31743_v21 }
 0xbcf   :  { %27148 = vmatpush3.bf16.msra.mxu0 %v31852_v23  ;;  %27178 = vmatpush3.bf16.msra.mxu1 %v32183_v20 }
 0xbd0   :  { %27149 = vmatprep.subr.bf16.mxu0 %v31743_v21  ;;  %27179 = vmatprep.subr.bf16.mxu1 %v31743_v21 }
 0xbd1   :  { %v12825_v41 = vpop.f32.mrb[112].mxu0 }
 0xbd2   :  { %v12826_v38 = vadd.f32 %v12825_v41, %v12707_v12  ;;  %v22880_v25 = vpop.f32.mrb[113].mxu0 }
 0xbd3   :  { %27151 = vmatpush3.bf16.msra.mxu0 %v31854_v33  ;;  %27181 = vmatpush3.bf16.msra.mxu1 %v32184_v10 }
 0xbd4   :  { %v12913_v58 = vadd.f32 %v12912_v9, %v12826_v38  ;;  %27152 = vmatprep.subr.bf16.mxu0 %v31743_v21  ;;  %27206 = vmatprep.subr.bf16.mxu1 %v31743_v21 }
 0xbd7   :  { %27154 = vmatpush3.bf16.msra.mxu0 %v31856_v1 }
 0xbd8   :  { %27155 = vmatprep.subr.bf16.mxu0 %v31743_v21 }
 0xbdb   :  { %27157 = vmatpush3.bf16.msra.mxu0 %v31857_v50 }
 0xbdc   :  { %27182 = vmatprep.subr.bf16.mxu0 %v31743_v21 }
 0xbe9   :  { %v13154_v22 = vpop.f32.mrb[126].mxu1 }
 0xbea   :  { %v22985_v12 = vpop.f32.mrb[127].mxu1 }
 0xbeb   :  { %v30972_v12 = vld [vmem:[%s31445_s2] ss:$0 sm:$0xff] }
 0xbf1   :  { %v13003_v54 = vpop.f32.mrb[114].mxu0 }
 0xbf2   :  { %v13004_v43 = vadd.f32 %v13003_v54, %v12913_v58  ;;  %v22950_v16 = vpop.f32.mrb[115].mxu0 }
 0xbf4   :  { %v13155_v28 = vadd.f32 %v13154_v22, %v13004_v43 }
 0xc09   :  { %v13347_v49 = vpop.f32.mrb[128].mxu1 }
 0xc0a   :  { %v23055_v3 = vpop.f32.mrb[129].mxu1 }
 0xc11   :  { %v13258_v60 = vpop.f32.mrb[116].mxu0 }
 0xc12   :  { %v13259_v9 = vadd.f32 %v13258_v60, %v13155_v28  ;;  %v23020_v51 = vpop.f32.mrb[117].mxu0 }
 0xc14   :  { %v13348_v17 = vadd.f32 %v13347_v49, %v13259_v9 }
 0xc29   :  { %v13553_v20 = vpop.f32.mrb[130].mxu1 }
 0xc2a   :  { %v23125_v41 = vpop.f32.mrb[131].mxu1 }
 0xc31   :  { %v13466_v38 = vpop.f32.mrb[118].mxu0 }
 0xc32   :  { %v13467_v25 = vadd.f32 %v13466_v38, %v13348_v17  ;;  %v23090_v10 = vpop.f32.mrb[119].mxu0 }
 0xc33   :  { %v15492_v10 = vld [vmem:[#allocation2 + $0x198] sm:$0xff] }
 0xc34   :  { %v13554_v63 = vadd.f32 %v13553_v20, %v13467_v25  ;;  %v15491_v25 = vld [vmem:[#allocation2 + $0x190] sm:$0xff] }
 0xc36   :  { %v13557_v58 = vadd.f32 %v30972_v12, %v13554_v63 }
 0xc38   :  { %27609 = vtanh.f32 %v13557_v58  ;;  %v15517_v58 = vand.u32 4294901760, %v15491_v25 }
 0xc42   :  { %v27610_v22 = vpop.eup %27609 }
 0xc43   :  { %v30975_v54 = vand.u32 4294901760, %v27610_v22 }
 0xc45   :  { %23404 = vmatmul.mubr.f32.vlgmr.msra.gmra.mrb[138].mxu1 %v30975_v54  ;;  %v14286_v43 = vsub.f32 %v27610_v22, %v30975_v54  ;;  %v15520_v22 = vand.u32 4294901760, %v15492_v10 }
 0xc46   :  { %27208 = vmatpush3.bf16.msra.mxu1 %v31844_v40  ;;  %23473 = vmatprep.mubr.msk.f32.mxu1 %vm27646_vm0, %v31741_v56 }
 0xc47   :  { %27209 = vmatprep.subr.bf16.mxu1 %v31743_v21  ;;  %v14287_v16 = vand.u32 4294901760, %v14286_v43 }
 0xc49   :  { %v13799_v28 = vpop.f32.mrb[132].mxu1  ;;  %v14288_v49 = vsub.f32 %v14286_v43, %v14287_v16 }
 0xc4a   :  { %27211 = vmatpush3.bf16.msra.mxu1 %v31846_v55  ;;  %v23195_v63 = vpop.f32.mrb[133].mxu1 }
 0xc4b   :  { %27212 = vmatprep.subr.bf16.mxu1 %v31743_v21  ;;  %v14289_v3 = vand.u32 4294901760, %v14288_v49 }
 0xc4d   :  { %23369 = vmatmul.mubr.f32.vlgmr.msra.gmra.mrb[126].mxu0 %v14289_v3 }
 0xc4e   :  { %27184 = vmatpush3.bf16.msra.mxu0 %v31858_v61  ;;  %27214 = vmatpush3.bf16.msra.mxu1 %v31848_v37 }
 0xc4f   :  { %27185 = vmatprep.subr.bf16.mxu0 %v31743_v21  ;;  %27215 = vmatprep.subr.bf16.mxu1 %v31743_v21 }
 0xc50   :  { %23438 = vmatprep.mubr.msk.f32.mxu0 %vm27646_vm0, %v31741_v56 }
 0xc51   :  { %v13648_v60 = vpop.f32.mrb[120].mxu0 }
 0xc52   :  { %v13800_v9 = vadd.f32 %v13799_v28, %v13648_v60  ;;  %27187 = vmatpush3.bf16.msra.mxu0 %v31859_v46  ;;  %27217 = vmatpush3.bf16.msra.mxu1 %v31850_v19  ;;  %v23160_v51 = vpop.f32.mrb[121].mxu0 }
 0xc53   :  { %27188 = vmatprep.subr.bf16.mxu0 %v31743_v21  ;;  %27218 = vmatprep.subr.bf16.mxu1 %v31743_v21 }
 0xc56   :  { %27190 = vmatpush3.bf16.msra.mxu0 %v31860_v15  ;;  %27220 = vmatpush3.bf16.msra.mxu1 %v31852_v23 }
 0xc57   :  { %27191 = vmatprep.subr.bf16.mxu0 %v31743_v21  ;;  %27221 = vmatprep.subr.bf16.mxu1 %v31743_v21 }
 0xc5a   :  { %27193 = vmatpush3.bf16.msra.mxu0 %v31861_v62  ;;  %27223 = vmatpush3.bf16.msra.mxu1 %v31854_v33 }
 0xc5b   :  { %27194 = vmatprep.subr.bf16.mxu0 %v31743_v21  ;;  %27224 = vmatprep.subr.bf16.mxu1 %v31743_v21 }
 0xc5e   :  { %27196 = vmatpush3.bf16.msra.mxu0 %v31862_v4  ;;  %27226 = vmatpush3.bf16.msra.mxu1 %v31856_v1 }
 0xc5f   :  { %27197 = vmatprep.subr.bf16.mxu0 %v31743_v21  ;;  %27227 = vmatprep.subr.bf16.mxu1 %v31743_v21 }
 0xc62   :  { %27199 = vmatpush3.bf16.msra.mxu0 %v31863_v52  ;;  %27229 = vmatpush3.bf16.msra.mxu1 %v31857_v50 }
 0xc63   :  { %27200 = vmatprep.subr.bf16.mxu0 %v31743_v21  ;;  %27254 = vmatprep.subr.bf16.mxu1 %v31743_v21 }
 0xc65   :  { %23474 = vmatmul.mubr.f32.vlgmr.msra.gmra.mrb[140].mxu1 %v14287_v16  ;;  %v15494_v16 = vld [vmem:[#allocation2 + $0x1a8] sm:$0xff] }
 0xc66   :  { %27202 = vmatpush3.bf16.msra.mxu0 %v31864_v35  ;;  %27256 = vmatpush3.bf16.msra.mxu1 %v31844_v40  ;;  %v15526_v63 = vand.u32 4294901760, %v15494_v16 }
 0xc67   :  { %27203 = vmatprep.subr.bf16.mxu0 %v31743_v21  ;;  %27257 = vmatprep.subr.bf16.mxu1 %v31743_v21 }
 0xc68   :  { %23543 = vmatprep.mubr.msk.f32.mxu1 %vm27646_vm0, %v31741_v56 }
 0xc69   :  { %v13992_v61 = vpop.f32.mrb[134].mxu1 }
 0xc6a   :  { %27205 = vmatpush3.bf16.msra.mxu0 %v31865_v6  ;;  %27259 = vmatpush3.bf16.msra.mxu1 %v31846_v55  ;;  %v23265_v46 = vpop.f32.mrb[135].mxu1 }
 0xc6b   :  { %27230 = vmatprep.subr.bf16.mxu0 %v31743_v21  ;;  %27260 = vmatprep.subr.bf16.mxu1 %v31743_v21  ;;  %v15496_v46 = vld [vmem:[#allocation2 + $0x1b8] sm:$0xff] }
 0xc6d   :  { %23439 = vmatmul.mubr.f32.vlgmr.msra.gmra.mrb[128].mxu0 %v14286_v43  ;;  %v15493_v43 = vld [vmem:[#allocation2 + $0x1a0] sm:$0xff] }
 0xc6e   :  { %27232 = vmatpush3.bf16.msra.mxu0 %v31911_v8  ;;  %27262 = vmatpush3.bf16.msra.mxu1 %v31848_v37  ;;  %v16164_v37 = vld [vmem:[%s31443_s0 + $0x38] sm:$0xff]  ;;  %v32186_v8 = vld [vmem:[#allocation81_spill] sm:$0xff]  ;;  %v15523_v49 = vand.u32 4294901760, %v15493_v43 }
 0xc6f   :  { %27233 = vmatprep.subr.bf16.mxu0 %v31743_v21  ;;  %27263 = vmatprep.subr.bf16.mxu1 %v31743_v21 }
 0xc70   :  { %23508 = vmatprep.mubr.msk.f32.mxu0 %vm27646_vm0, %v31741_v56 }
 0xc71   :  { %v13903_v40 = vpop.f32.mrb[122].mxu0 }
 0xc72   :  { %v13904_v15 = vadd.f32 %v13903_v40, %v13800_v9  ;;  %27235 = vmatpush3.bf16.msra.mxu0 %v31912_v32  ;;  %27265 = vmatpush3.bf16.msra.mxu1 %v31850_v19  ;;  %v23230_v55 = vpop.f32.mrb[123].mxu0  ;;  %v32187_v32 = vld [vmem:[#allocation82_spill] sm:$0xff]  ;;  %v31183_v9 = vpack.c.bf16 %v15526_v63, %v15523_v49 }
 0xc73   :  { %27236 = vmatprep.subr.bf16.mxu0 %v31743_v21  ;;  %27266 = vmatprep.subr.bf16.mxu1 %v31743_v21 }
 0xc74   :  { %v13993_v62 = vadd.f32 %v13992_v61, %v13904_v15  ;;  %v15495_v61 = vld [vmem:[#allocation2 + $0x1b0] sm:$0xff]  ;;  %v15532_v15 = vand.u32 4294901760, %v15496_v46 }
 0xc75   :  { %v15529_v40 = vand.u32 4294901760, %v15495_v61 }
 0xc76   :  { %27238 = vmatpush3.bf16.msra.mxu0 %v31913_v34  ;;  %27268 = vmatpush3.bf16.msra.mxu1 %v31852_v23  ;;  %v32188_v34 = vld [vmem:[#allocation83_spill] sm:$0xff] }
 0xc77   :  { %27239 = vmatprep.subr.bf16.mxu0 %v31743_v21  ;;  %27269 = vmatprep.subr.bf16.mxu1 %v31743_v21  ;;  %v31189_v55 = vpack.c.bf16 %v15532_v15, %v15529_v40 }
 0xc7a   :  { %27241 = vmatpush3.bf16.msra.mxu0 %v31914_v31  ;;  %27271 = vmatpush3.bf16.msra.mxu1 %v31854_v33  ;;  %v32189_v31 = vld [vmem:[#allocation84_spill] sm:$0xff] }
 0xc7b   :  { %27242 = vmatprep.subr.bf16.mxu0 %v31743_v21  ;;  %27272 = vmatprep.subr.bf16.mxu1 %v31743_v21 }
 0xc7e   :  { %27244 = vmatpush3.bf16.msra.mxu0 %v31915_v29  ;;  %27274 = vmatpush3.bf16.msra.mxu1 %v31856_v1  ;;  %v32190_v29 = vld [vmem:[#allocation85_spill] sm:$0xff] }
 0xc7f   :  { %27245 = vmatprep.subr.bf16.mxu0 %v31743_v21  ;;  %27275 = vmatprep.subr.bf16.mxu1 %v31743_v21 }
 0xc82   :  { %27247 = vmatpush3.bf16.msra.mxu0 %v31916_v2  ;;  %27277 = vmatpush3.bf16.msra.mxu1 %v31857_v50  ;;  %v32197_v2 = vld [vmem:[#allocation92_spill] sm:$0xff] }
 0xc83   :  { %27248 = vmatprep.subr.bf16.mxu0 %v31743_v21  ;;  %27302 = vmatprep.subr.bf16.mxu1 %v31743_v21 }
 0xc85   :  { %23544 = vmatmul.mubr.f32.vlgmr.msra.gmra.mrb[142].mxu1 %v30975_v54 }
 0xc86   :  { %27250 = vmatpush3.bf16.msra.mxu0 %v31917_v5  ;;  %27304 = vmatpush3.bf16.msra.mxu1 %v31918_v18 }
 0xc87   :  { %27251 = vmatprep.subr.bf16.mxu0 %v31743_v21  ;;  %27305 = vmatprep.subr.bf16.mxu1 %v31743_v21 }
 0xc88   :  { %23613 = vmatprep.mubr.msk.f32.mxu1 %vm27646_vm0, %v31741_v56 }
 0xc89   :  { %v14198_v1 = vpop.f32.mrb[136].mxu1 }
 0xc8a   :  { %27253 = vmatpush3.bf16.msra.mxu0 %v31919_v13  ;;  %27307 = vmatpush3.bf16.msra.mxu1 %v31920_v27  ;;  %v23335_v50 = vpop.f32.mrb[137].mxu1  ;;  %v15489_v27 = vld [vmem:[#allocation2 + $0x180] sm:$0xff] }
 0xc8b   :  { %27278 = vmatprep.subr.bf16.mxu0 %v31743_v21  ;;  %27308 = vmatprep.subr.bf16.mxu1 %v31743_v21 }
 0xc8d   :  { %23509 = vmatmul.mubr.f32.vlgmr.msra.gmra.mrb[130].mxu0 %v30975_v54  ;;  %v31179_v54 = vpack.c.bf16 %v15520_v22, %v15517_v58 }
 0xc8e   :  { %27280 = vmatpush3.bf16.msra.mxu0 %v28288_v44  ;;  %27310 = vmatpush3.bf16.msra.mxu1 %v31921_v7  ;;  %v15490_v7 = vld [vmem:[#allocation2 + $0x188] sm:$0xff] }
 0xc8f   :  { %27281 = vmatprep.subr.bf16.mxu0 %v31743_v21  ;;  %27311 = vmatprep.subr.bf16.mxu1 %v31743_v21 }
 0xc90   :  { %23578 = vmatprep.mubr.msk.f32.mxu0 %vm27646_vm0, %v31741_v56 }
 0xc91   :  { %v14111_v33 = vpop.f32.mrb[124].mxu0 }
 0xc92   :  { %v14112_v23 = vadd.f32 %v14111_v33, %v13993_v62  ;;  %27283 = vmatpush3.bf16.msra.mxu0 %v28291_v11  ;;  %27313 = vmatpush3.bf16.msra.mxu1 %v31877_v42  ;;  %v23300_v19 = vpop.f32.mrb[125].mxu0  ;;  %v15497_v62 = vld [vmem:[#allocation2 + $0x1c0] sm:$0xff] }
 0xc93   :  { %27284 = vmatprep.subr.bf16.mxu0 %v31743_v21  ;;  %27314 = vmatprep.subr.bf16.mxu1 %v31743_v21  ;;  %v15535_v50 = vand.u32 4294901760, %v15497_v62  ;;  %v15499_v19 = vld [vmem:[#allocation2 + $0x1d0] sm:$0xff] }
 0xc94   :  { %v14199_v4 = vadd.f32 %v14198_v1, %v14112_v23  ;;  %v15498_v1 = vld [vmem:[#allocation2 + $0x1c8] sm:$0xff] }
 0xc95   :  { %v15538_v33 = vand.u32 4294901760, %v15498_v1 }
 0xc96   :  { %v14202_v52 = vadd.f32 %v16164_v37, %v14199_v4  ;;  %27286 = vmatpush3.bf16.msra.mxu0 %v28299_v24  ;;  %27316 = vmatpush3.bf16.msra.mxu1 %v31878_v48  ;;  %v15500_v37 = vld [vmem:[#allocation2 + $0x1d8] sm:$0xff]  ;;  %v15541_v4 = vand.u32 4294901760, %v15499_v19 }
 0xc97   :  { %27287 = vmatprep.subr.bf16.mxu0 %v31743_v21  ;;  %27317 = vmatprep.subr.bf16.mxu1 %v31743_v21  ;;  %v31193_v23 = vpack.c.bf16 %v15538_v33, %v15535_v50 }
 0xc98   :  { %27611 = vtanh.f32 %v14202_v52  ;;  %v15544_v52 = vand.u32 4294901760, %v15500_v37 }
 0xc9a   :  { %27289 = vmatpush3.bf16.msra.mxu0 %v28307_v14  ;;  %27319 = vmatpush3.bf16.msra.mxu1 %v31879_v47 }
 0xc9b   :  { %27290 = vmatprep.subr.bf16.mxu0 %v31743_v21  ;;  %27320 = vmatprep.subr.bf16.mxu1 %v31743_v21 }
 0xc9e   :  { %27292 = vmatpush3.bf16.msra.mxu0 %v28369_v59  ;;  %27322 = vmatpush3.bf16.msra.mxu1 %v31880_v36 }
 0xc9f   :  { %27293 = vmatprep.subr.bf16.mxu0 %v31743_v21  ;;  %27323 = vmatprep.subr.bf16.mxu1 %v31743_v21 }
 0xca2   :  { %v27612_v35 = vpop.eup %27611  ;;  %27295 = vmatpush3.bf16.msra.mxu0 %v28387_v30  ;;  %27325 = vmatpush3.bf16.msra.mxu1 %v31881_v26  ;;  %v32185_v26 = vld [vmem:[#allocation79_spill] sm:$0xff] }
 0xca3   :  { %27296 = vmatprep.subr.bf16.mxu0 %v31743_v21  ;;  %27350 = vmatprep.subr.bf16.mxu1 %v31743_v21  ;;  %v31088_v6 = vand.u32 4294901760, %v27612_v35 }
 0xca5   :  { %23614 = vmatmul.mubr.f32.vlgmr.msra.gmra.mrb[144].mxu1 %v31088_v6  ;;  %v14927_v48 = vsub.f32 %v27612_v35, %v31088_v6  ;;  %v31197_v35 = vpack.c.bf16 %v15544_v52, %v15541_v4 }
 0xca6   :  { %27298 = vmatpush3.bf16.msra.mxu0 %v28404_v57  ;;  %27352 = vmatpush3.bf16.msra.mxu1 %v28288_v44 }
 0xca7   :  { %27299 = vmatprep.subr.bf16.mxu0 %v31743_v21  ;;  %27353 = vmatprep.subr.bf16.mxu1 %v31743_v21  ;;  %v14928_v42 = vand.u32 4294901760, %v14927_v48 }
 0xca8   :  { %23683 = vmatprep.mubr.msk.f32.mxu1 %vm27646_vm0, %v31741_v56 }
 0xca9   :  { %v14929_v47 = vsub.f32 %v14927_v48, %v14928_v42 }
 0xcaa   :  { %27301 = vmatpush3.bf16.msra.mxu0 %v28421_v45  ;;  %27355 = vmatpush3.bf16.msra.mxu1 %v28291_v11 }
 0xcab   :  { %27326 = vmatprep.subr.bf16.mxu0 %v31743_v21  ;;  %27356 = vmatprep.subr.bf16.mxu1 %v31743_v21  ;;  %v14930_v36 = vand.u32 4294901760, %v14929_v47 }
 0xcad   :  { %23579 = vmatmul.mubr.f32.vlgmr.msra.gmra.mrb[132].mxu0 %v14930_v36  ;;  %v31201_v36 = vsub.f32 %v15491_v25, %v15517_v58 }
 0xcae   :  { %27328 = vmatpush3.bf16.msra.mxu0 %v32129_v39  ;;  %27358 = vmatpush3.bf16.msra.mxu1 %v28299_v24 }
 0xcaf   :  { %27329 = vmatprep.subr.bf16.mxu0 %v31743_v21  ;;  %27359 = vmatprep.subr.bf16.mxu1 %v31743_v21  ;;  %v31697_v58 = vand.u32 4294901760, %v31201_v36 }
 0xcb0   :  { %23648 = vmatprep.mubr.msk.f32.mxu0 %vm27646_vm0, %v31741_v56 }
 0xcb2   :  { %27331 = vmatpush3.bf16.msra.mxu0 %v32130_v53  ;;  %27361 = vmatpush3.bf16.msra.mxu1 %v28307_v14  ;;  %v15511_v53 = vand.u32 4294901760, %v15489_v27 }
 0xcb3   :  { %27332 = vmatprep.subr.bf16.mxu0 %v31743_v21  ;;  %27362 = vmatprep.subr.bf16.mxu1 %v31743_v21 }
 0xcb4   :  { %v31173_v41 = vsub.f32 %v15489_v27, %v15511_v53 }
 0xcb6   :  { %27334 = vmatpush3.bf16.msra.mxu0 %v32131_v0  ;;  %27364 = vmatpush3.bf16.msra.mxu1 %v28369_v59  ;;  %v15514_v0 = vand.u32 4294901760, %v15490_v7 }
 0xcb7   :  { %27335 = vmatprep.subr.bf16.mxu0 %v31743_v21  ;;  %27365 = vmatprep.subr.bf16.mxu1 %v31743_v21 }
 0xcb8   :  { %v31171_v20 = vpack.c.bf16 %v15514_v0, %v15511_v53  ;;  %v31175_v38 = vsub.f32 %v15490_v7, %v15514_v0 }
 0xcba   :  { %27337 = vmatpush3.bf16.msra.mxu0 %v32185_v26  ;;  %27367 = vmatpush3.bf16.msra.mxu1 %v28387_v30  ;;  %v31203_v26 = vsub.f32 %v15492_v10, %v15520_v22 }
 0xcbb   :  { %27338 = vmatprep.subr.bf16.mxu0 %v31743_v21  ;;  %27368 = vmatprep.subr.bf16.mxu1 %v31743_v21 }
 0xcbc   :  { %v31696_v22 = vand.u32 4294901760, %v31203_v26 }
 0xcbe   :  { %27340 = vmatpush3.bf16.msra.mxu0 %v32186_v8  ;;  %27370 = vmatpush3.bf16.msra.mxu1 %v28404_v57  ;;  %v31205_v8 = vsub.f32 %v15493_v43, %v15523_v49 }
 0xcbf   :  { %27341 = vmatprep.subr.bf16.mxu0 %v31743_v21  ;;  %27371 = vmatprep.subr.bf16.mxu1 %v31743_v21 }
 0xcc2   :  { %27343 = vmatpush3.bf16.msra.mxu0 %v32187_v32  ;;  %27373 = vmatpush3.bf16.msra.mxu1 %v28421_v45  ;;  %v31207_v32 = vsub.f32 %v15494_v16, %v15526_v63  ;;  %v15619_v16 = vsub.f32 %v31201_v36, %v31697_v58 }
 0xcc3   :  { %27344 = vmatprep.subr.bf16.mxu0 %v31743_v21  ;;  %27398 = vmatprep.subr.bf16.mxu1 %v31743_v21 }
 0xcc4   :  { %v15620_v63 = vand.u32 4294901760, %v15619_v16 }
 0xcc5   :  { %23684 = vmatmul.mubr.f32.vlgmr.msra.gmra.mrb[146].mxu1 %v14928_v42 }
 0xcc6   :  { %27346 = vmatpush3.bf16.msra.mxu0 %v32188_v34  ;;  %27400 = vmatpush3.bf16.msra.mxu1 %v28288_v44  ;;  %v32191_v44 = vld [vmem:[#allocation86_spill] sm:$0xff]  ;;  %v15503_v34 = vld [vmem:[#allocation2 + $0x1f0] sm:$0xff] }
 0xcc7   :  { %27347 = vmatprep.subr.bf16.mxu0 %v31743_v21  ;;  %27401 = vmatprep.subr.bf16.mxu1 %v31743_v21 }
 0xcc8   :  { %23753 = vmatprep.mubr.msk.f32.mxu1 %vm27646_vm0, %v31741_v56 }
 0xcca   :  { %27349 = vmatpush3.bf16.msra.mxu0 %v32189_v31  ;;  %27403 = vmatpush3.bf16.msra.mxu1 %v28291_v11  ;;  %v32192_v11 = vld [vmem:[#allocation87_spill] sm:$0xff]  ;;  %v15504_v31 = vld [vmem:[#allocation2 + $0x1f8] sm:$0xff] }
 0xccb   :  { %27374 = vmatprep.subr.bf16.mxu0 %v31743_v21  ;;  %27404 = vmatprep.subr.bf16.mxu1 %v31743_v21 }
 0xccd   :  { %23649 = vmatmul.mubr.f32.vlgmr.msra.gmra.mrb[134].mxu0 %v14927_v48  ;;  %v15502_v48 = vld [vmem:[#allocation2 + $0x1e8] sm:$0xff] }
 0xcce   :  { %27376 = vmatpush3.bf16.msra.mxu0 %v32190_v29  ;;  %27406 = vmatpush3.bf16.msra.mxu1 %v28299_v24  ;;  %v32193_v24 = vld [vmem:[#allocation88_spill] sm:$0xff]  ;;  %v15550_v47 = vand.u32 4294901760, %v15502_v48  ;;  %v31209_v29 = vsub.f32 %v15495_v61, %v15529_v40  ;;  %v31694_v61 = vand.u32 4294901760, %v31207_v32 }
 0xccf   :  { %27377 = vmatprep.subr.bf16.mxu0 %v31743_v21  ;;  %27407 = vmatprep.subr.bf16.mxu1 %v31743_v21 }
 0xcd0   :  { %23718 = vmatprep.mubr.msk.f32.mxu0 %vm27646_vm0, %v31741_v56 }
 0xcd2   :  { %27379 = vmatpush3.bf16.msra.mxu0 %v32191_v44  ;;  %27409 = vmatpush3.bf16.msra.mxu1 %v28307_v14  ;;  %v32194_v14 = vld [vmem:[#allocation89_spill] sm:$0xff]  ;;  %v31211_v44 = vsub.f32 %v15496_v46, %v15532_v15  ;;  %v15640_v15 = vsub.f32 %v31207_v32, %v31694_v61 }
 0xcd3   :  { %27380 = vmatprep.subr.bf16.mxu0 %v31743_v21  ;;  %27410 = vmatprep.subr.bf16.mxu1 %v31743_v21 }
 0xcd6   :  { %27382 = vmatpush3.bf16.msra.mxu0 %v32192_v11  ;;  %27412 = vmatpush3.bf16.msra.mxu1 %v28369_v59  ;;  %v32195_v59 = vld [vmem:[#allocation90_spill] sm:$0xff]  ;;  %v31213_v11 = vsub.f32 %v15497_v62, %v15535_v50 }
 0xcd7   :  { %27383 = vmatprep.subr.bf16.mxu0 %v31743_v21  ;;  %27413 = vmatprep.subr.bf16.mxu1 %v31743_v21 }
 0xcda   :  { %27385 = vmatpush3.bf16.msra.mxu0 %v32193_v24  ;;  %27415 = vmatpush3.bf16.msra.mxu1 %v28387_v30  ;;  %v32196_v30 = vld [vmem:[#allocation91_spill] sm:$0xff]  ;;  %v31215_v24 = vsub.f32 %v15498_v1, %v15538_v33 }
 0xcdb   :  { %27386 = vmatprep.subr.bf16.mxu0 %v31743_v21  ;;  %27416 = vmatprep.subr.bf16.mxu1 %v31743_v21 }
 0xcde   :  { %27388 = vmatpush3.bf16.msra.mxu0 %v32194_v14  ;;  %27418 = vmatpush3.bf16.msra.mxu1 %v28404_v57  ;;  %v31217_v14 = vsub.f32 %v15499_v19, %v15541_v4  ;;  %v15641_v19 = vand.u32 4294901760, %v15640_v15  ;;  %v31692_v4 = vand.u32 4294901760, %v31211_v44 }
 0xcdf   :  { %27389 = vmatprep.subr.bf16.mxu0 %v31743_v21  ;;  %27419 = vmatprep.subr.bf16.mxu1 %v31743_v21 }
 0xce2   :  { %27391 = vmatpush3.bf16.msra.mxu0 %v32195_v59  ;;  %27421 = vmatpush3.bf16.msra.mxu1 %v28421_v45  ;;  %v31219_v59 = vsub.f32 %v15500_v37, %v15544_v52  ;;  %v31693_v37 = vand.u32 4294901760, %v31209_v29 }
 0xce3   :  { %27392 = vmatprep.subr.bf16.mxu0 %v31743_v21 }
 0xce5   :  { %23754 = vmatmul.mubr.f32.vlgmr.msra.gmra.mrb[148].mxu1 %v31088_v6 }
 0xce6   :  { %27394 = vmatpush3.bf16.msra.mxu0 %v32196_v30 }
 0xce7   :  { %27395 = vmatprep.subr.bf16.mxu0 %v31743_v21 }
 0xcea   :  { %27397 = vmatpush3.bf16.msra.mxu0 %v32197_v2 }
 0xceb   :  { %27422 = vmatprep.subr.bf16.mxu0 %v31743_v21 }
 0xced   :  { %23719 = vmatmul.mubr.f32.vlgmr.msra.gmra.mrb[136].mxu0 %v31088_v6  ;;  %v15501_v6 = vld [vmem:[#allocation2 + $0x1e0] sm:$0xff] }
 0xcee   :  { %23788 = vmatprep.mubr.msk.f32.mxu0 %vm27646_vm0, %v31741_v56  ;;  %27424 = vmatpush3.bf16.msra.mxu0 %v31171_v20  ;;  %v15547_v42 = vand.u32 4294901760, %v15501_v6 }
 0xcef   :  { %27425 = vmatprep.subr.bf16.mxu0 %v31743_v21 }
 0xcf0   :  { %v31221_v30 = vpack.c.bf16 %v15550_v47, %v15547_v42  ;;  %v31223_v2 = vsub.f32 %v15501_v6, %v15547_v42  ;;  %v15654_v42 = vsub.f32 %v31211_v44, %v31692_v4 }
 0xcf2   :  { %27427 = vmatpush3.bf16.msra.mxu0 %v31179_v54 }
 0xcf3   :  { %27428 = vmatprep.subr.bf16.mxu0 %v31743_v21 }
 0xcf6   :  { %27430 = vmatpush3.bf16.msra.mxu0 %v31183_v9 }
 0xcf7   :  { %27431 = vmatprep.subr.bf16.mxu0 %v31743_v21 }
 0xcfa   :  { %27433 = vmatpush3.bf16.msra.mxu0 %v31189_v55 }
 0xcfb   :  { %27434 = vmatprep.subr.bf16.mxu0 %v31743_v21 }
 0xcfe   :  { %27436 = vmatpush3.bf16.msra.mxu0 %v31193_v23 }
 0xcff   :  { %27437 = vmatprep.subr.bf16.mxu0 %v31743_v21 }
 0xd02   :  { %27439 = vmatpush3.bf16.msra.mxu0 %v31197_v35 }
 0xd03   :  { %27440 = vmatprep.subr.bf16.mxu0 %v31743_v21 }
 0xd06   :  { %27442 = vmatpush3.bf16.msra.mxu0 %v31221_v30 }
 0xd07   :  { %27443 = vmatprep.subr.bf16.mxu0 %v31743_v21 }
 0xd18   :  { %v14442_v57 = vpop.f32.mrb[138].mxu1 }
 0xd19   :  { %v23405_v5 = vpop.f32.mrb[139].mxu1 }
 0xd1a   :  { %v15553_v5 = vand.u32 4294901760, %v15503_v34 }
 0xd1c   :  { %v31233_v7 = vsub.f32 %v15503_v34, %v15553_v5  ;;  %v31690_v34 = vand.u32 4294901760, %v31215_v24 }
 0xd20   :  { %v14291_v45 = vpop.f32.mrb[126].mxu0 }
 0xd21   :  { %v14443_v18 = vadd.f32 %v14442_v57, %v14291_v45  ;;  %v23370_v13 = vpop.f32.mrb[127].mxu0  ;;  %v31225_v57 = vsub.f32 %v15502_v48, %v15550_v47  ;;  %v15556_v45 = vand.u32 4294901760, %v15504_v31  ;;  %v15647_v48 = vsub.f32 %v31209_v29, %v31693_v37 }
 0xd22   :  { %v15611_v13 = vand.u32 4294901760, %v31175_v38 }
 0xd23   :  { %v31231_v27 = vpack.c.bf16 %v15556_v45, %v15553_v5  ;;  %v15648_v47 = vand.u32 4294901760, %v15647_v48  ;;  %v31686_v15 = vand.u32 4294901760, %v31225_v57  ;;  %v31684_v48 = vand.u32 4294901760, %v31233_v7 }
 0xd25   :  { %27445 = vmatpush3.bf16.msra.mxu0 %v31231_v27 }
 0xd26   :  { %27446 = vmatprep.subr.bf16.mxu0 %v31743_v21 }
 0xd38   :  { %v14635_v39 = vpop.f32.mrb[140].mxu1 }
 0xd39   :  { %v23475_v17 = vpop.f32.mrb[141].mxu1 }
 0xd3a   :  { %v15612_v17 = vsub.f32 %v31175_v38, %v15611_v13 }
 0xd3c   :  { %v15613_v43 = vand.u32 4294901760, %v15612_v17 }
 0xd40   :  { %v14546_v28 = vpop.f32.mrb[128].mxu0 }
 0xd41   :  { %v14547_v3 = vadd.f32 %v14546_v28, %v14443_v18  ;;  %v23440_v60 = vpop.f32.mrb[129].mxu0  ;;  %v15604_v18 = vand.u32 4294901760, %v31173_v41  ;;  %v15626_v28 = vsub.f32 %v31203_v26, %v31696_v22 }
 0xd42   :  { %v31695_v60 = vand.u32 4294901760, %v31205_v8 }
 0xd43   :  { %v31185_v51 = vadd.f32 %v14635_v39, %v14547_v3  ;;  %v31235_v39 = vsub.f32 %v15504_v31, %v15556_v45  ;;  %v15605_v53 = vsub.f32 %v31173_v41, %v15604_v18  ;;  %v15627_v3 = vand.u32 4294901760, %v15626_v28 }
 0xd44   :  { %v15633_v40 = vsub.f32 %v31205_v8, %v31695_v60  ;;  %v15655_v31 = vand.u32 4294901760, %v15654_v42  ;;  %v15668_v45 = vsub.f32 %v31215_v24, %v31690_v34 }
 0xd45   :  { %v15606_v10 = vand.u32 4294901760, %v15605_v53  ;;  %v31257_v46 = vpack.c.bf16 %v15627_v3, %v15620_v63  ;;  %v31685_v42 = vand.u32 4294901760, %v31235_v39 }
 0xd46   :  { %v15634_v33 = vand.u32 4294901760, %v15633_v40  ;;  %v31284_v53 = vpack.c.bf16 %v15655_v31, %v15648_v47  ;;  %v15669_v17 = vand.u32 4294901760, %v15668_v45  ;;  %v31687_v40 = vand.u32 4294901760, %v31223_v2 }
 0xd47   :  { %v31253_v49 = vpack.c.bf16 %v15613_v43, %v15606_v10  ;;  %v31688_v10 = vand.u32 4294901760, %v31219_v59  ;;  %v15703_v31 = vsub.f32 %v31233_v7, %v31684_v48 }
 0xd48   :  { %v31268_v6 = vpack.c.bf16 %v15641_v19, %v15634_v33 }
 0xd49   :  { %v15682_v28 = vsub.f32 %v31219_v59, %v31688_v10  ;;  %v15704_v45 = vand.u32 4294901760, %v15703_v31  ;;  %v27480_v31 = vpack.c.bf16 %v31211_v44, %v31209_v29 }
 0xd4b   :  { %v15683_v3 = vand.u32 4294901760, %v15682_v28 }
 0xd58   :  { %v14841_v0 = vpop.f32.mrb[142].mxu1 }
 0xd59   :  { %v23545_v25 = vpop.f32.mrb[143].mxu1 }
 0xd5a   :  { %v31689_v25 = vand.u32 4294901760, %v31217_v14 }
 0xd5c   :  { %v15675_v16 = vsub.f32 %v31217_v14, %v31689_v25 }
 0xd5e   :  { %v15676_v63 = vand.u32 4294901760, %v15675_v16 }
 0xd60   :  { %v14754_v62 = vpop.f32.mrb[130].mxu0 }
 0xd61   :  { %v14755_v1 = vadd.f32 %v14754_v62, %v31185_v51  ;;  %v23510_v50 = vpop.f32.mrb[131].mxu0  ;;  %v31691_v51 = vand.u32 4294901760, %v31213_v11  ;;  %v27462_v62 = vpack.c.bf16 %v15683_v3, %v15676_v63  ;;  %v27471_v63 = vpack.c.bf16 %v31175_v38, %v31173_v41 }
 0xd62   :  { %v15696_v50 = vsub.f32 %v31225_v57, %v31686_v15  ;;  %v27474_v3 = vpack.c.bf16 %v31203_v26, %v31201_v36  ;;  %v32200_v41 = vand.u32 4294901760, %v31205_v8  ;;  %v32201_v38 = vand.u32 4294901760, %v31207_v32 }
 0xd63   :  { %v14842_v52 = vadd.f32 %v14841_v0, %v14755_v1  ;;  %v15661_v5 = vsub.f32 %v31213_v11, %v31691_v51  ;;  %v15689_v1 = vsub.f32 %v31223_v2, %v31687_v40 }
 0xd64   :  { %v15697_v19 = vand.u32 4294901760, %v15696_v50 }
 0xd65   :  { %v15662_v0 = vand.u32 4294901760, %v15661_v5  ;;  %v15690_v33 = vand.u32 4294901760, %v15689_v1  ;;  %v15710_v5 = vsub.f32 %v31235_v39, %v31685_v42 }
 0xd67   :  { %v31288_v43 = vpack.c.bf16 %v15669_v17, %v15662_v0  ;;  %v27465_v47 = vpack.c.bf16 %v15697_v19, %v15690_v33  ;;  %v15711_v0 = vand.u32 4294901760, %v15710_v5  ;;  %v27477_v19 = vpack.c.bf16 %v31207_v32, %v31205_v8 }
 0xd68   :  { %v27483_v5 = vpack.c.bf16 %v31215_v24, %v31213_v11  ;;  %v32206_v8 = vand.u32 4294901760, %v31217_v14  ;;  %v32207_v32 = vand.u32 4294901760, %v31219_v59 }
 0xd69   :  { %v27468_v17 = vpack.c.bf16 %v15711_v0, %v15704_v45  ;;  %v27486_v45 = vpack.c.bf16 %v31219_v59, %v31217_v14  ;;  %v27489_v0 = vpack.c.bf16 %v31225_v57, %v31223_v2 }
 0xd78   :  { %v15083_v16 = vpop.f32.mrb[144].mxu1 }
 0xd79   :  { %v23615_v28 = vpop.f32.mrb[145].mxu1 }
 0xd80   :  { %v14932_v1 = vpop.f32.mrb[132].mxu0 }
 0xd81   :  { %v14933_v50 = vadd.f32 %v14932_v1, %v14842_v52  ;;  %v23580_v33 = vpop.f32.mrb[133].mxu0  ;;  %v27492_v52 = vpack.c.bf16 %v31235_v39, %v31233_v7 }
 0xd83   :  { %v15084_v48 = vadd.f32 %v15083_v16, %v14933_v50 }
 0xd98   :  { %v15276_v28 = vpop.f32.mrb[146].mxu1 }
 0xd99   :  { %v23685_v1 = vpop.f32.mrb[147].mxu1 }
 0xda0   :  { %v15187_v33 = vpop.f32.mrb[134].mxu0 }
 0xda1   :  { %v15188_v42 = vadd.f32 %v15187_v33, %v15084_v48  ;;  %v23650_v16 = vpop.f32.mrb[135].mxu0 }
 0xda3   :  { %v15277_v50 = vadd.f32 %v15276_v28, %v15188_v42 }
 0xdb8   :  { %v15482_v15 = vpop.f32.mrb[148].mxu1 }
 0xdb9   :  { %v23755_v40 = vpop.f32.mrb[149].mxu1 }
 0xdc0   :  { %v15395_v10 = vpop.f32.mrb[136].mxu0 }
 0xdc1   :  { %v15396_v25 = vadd.f32 %v15395_v10, %v15277_v50  ;;  %v23720_v34 = vpop.f32.mrb[137].mxu0 }
 0xdc3   :  { %v15483_v51 = vadd.f32 %v15482_v15, %v15396_v25 }
 0xdc5   :  { %v15486_v4 = vadd.f32 %v30972_v12, %v15483_v51  ;;  %v27519_v12 = vpack.c.bf16 %v15611_v13, %v15604_v18  ;;  %v27525_v18 = vpack.c.bf16 %v32201_v38, %v32200_v41  ;;  %v32202_v13 = vand.u32 4294901760, %v31209_v29 }
 0xdc6   :  { %v32208_v29 = vand.u32 4294901760, %v31223_v2 }
 0xdc7   :  { %27613 = vtanh.f32 %v15486_v4  ;;  %v27534_v4 = vpack.c.bf16 %v32207_v32, %v32206_v8 }
 0xdd1   :  { %v27614_v37 = vpop.eup %27613 }
 0xdd2   :  { %v31329_v61 = vand.u32 4294901760, %v27614_v37 }
 0xdd4   :  { %v15592_v60 = vsub.f32 %v27614_v37, %v31329_v61 }
 0xdd6   :  { %v15593_v22 = vand.u32 4294901760, %v15592_v60 }
 0xdd8   :  { %v15594_v1 = vsub.f32 %v15592_v60, %v15593_v22 }
 0xdda   :  { %v15595_v58 = vand.u32 4294901760, %v15594_v1 }
 0xddc   :  { %23789 = vmatmul.mubr.f32.vlgmr.msra.gmra.mrb[138].mxu0 %v15595_v58  ;;  %v32198_v58 = vand.u32 4294901760, %v31201_v36  ;;  %v32203_v36 = vand.u32 4294901760, %v31211_v44  ;;  %v32209_v44 = vand.u32 4294901760, %v31225_v57 }
 0xddd   :  { %27448 = vmatpush3.bf16.msra.mxu0 %v31253_v49  ;;  %23823 = vmatprep.mubr.msk.f32.mxu0 %vm27646_vm0, %v31741_v56  ;;  %v32199_v49 = vand.u32 4294901760, %v31203_v26 }
 0xdde   :  { %27449 = vmatprep.subr.bf16.mxu0 %v31743_v21  ;;  %v27528_v26 = vpack.c.bf16 %v32203_v36, %v32202_v13 }
 0xde1   :  { %27451 = vmatpush3.bf16.msra.mxu0 %v31257_v46  ;;  %v32205_v46 = vand.u32 4294901760, %v31215_v24  ;;  %v32211_v24 = vand.u32 4294901760, %v31235_v39 }
 0xde2   :  { %27452 = vmatprep.subr.bf16.mxu0 %v31743_v21 }
 0xde5   :  { %27454 = vmatpush3.bf16.msra.mxu0 %v31268_v6  ;;  %v27537_v6 = vpack.c.bf16 %v32209_v44, %v32208_v29 }
 0xde6   :  { %27455 = vmatprep.subr.bf16.mxu0 %v31743_v21 }
 0xde9   :  { %27457 = vmatpush3.bf16.msra.mxu0 %v31284_v53 }
 0xdea   :  { %27458 = vmatprep.subr.bf16.mxu0 %v31743_v21 }
 0xded   :  { %27460 = vmatpush3.bf16.msra.mxu0 %v31288_v43 }
 0xdee   :  { %27461 = vmatprep.subr.bf16.mxu0 %v31743_v21 }
 0xdf1   :  { %27463 = vmatpush3.bf16.msra.mxu0 %v27462_v62 }
 0xdf2   :  { %27464 = vmatprep.subr.bf16.mxu0 %v31743_v21 }
 0xdf5   :  { %27466 = vmatpush3.bf16.msra.mxu0 %v27465_v47 }
 0xdf6   :  { %27467 = vmatprep.subr.bf16.mxu0 %v31743_v21 }
 0xdf9   :  { %27469 = vmatpush3.bf16.msra.mxu0 %v27468_v17 }
 0xdfa   :  { %27470 = vmatprep.subr.bf16.mxu0 %v31743_v21 }
 0xdfc   :  { %23824 = vmatmul.mubr.f32.vlgmr.msra.gmra.mrb[138].mxu0 %v31329_v61 }
 0xdfd   :  { %27472 = vmatpush3.bf16.msra.mxu0 %v27471_v63  ;;  %23858 = vmatprep.mubr.msk.f32.mxu0 %vm27646_vm0, %v31741_v56 }
 0xdfe   :  { %27473 = vmatprep.subr.bf16.mxu0 %v31743_v21 }
 0xe01   :  { %27475 = vmatpush3.bf16.msra.mxu0 %v27474_v3 }
 0xe02   :  { %27476 = vmatprep.subr.bf16.mxu0 %v31743_v21 }
 0xe05   :  { %27478 = vmatpush3.bf16.msra.mxu0 %v27477_v19 }
 0xe06   :  { %27479 = vmatprep.subr.bf16.mxu0 %v31743_v21 }
 0xe09   :  { %27481 = vmatpush3.bf16.msra.mxu0 %v27480_v31 }
 0xe0a   :  { %27482 = vmatprep.subr.bf16.mxu0 %v31743_v21 }
 0xe0d   :  { %27484 = vmatpush3.bf16.msra.mxu0 %v27483_v5 }
 0xe0e   :  { %27485 = vmatprep.subr.bf16.mxu0 %v31743_v21 }
 0xe11   :  { %27487 = vmatpush3.bf16.msra.mxu0 %v27486_v45 }
 0xe12   :  { %27488 = vmatprep.subr.bf16.mxu0 %v31743_v21 }
 0xe15   :  { %27490 = vmatpush3.bf16.msra.mxu0 %v27489_v0 }
 0xe16   :  { %27491 = vmatprep.subr.bf16.mxu0 %v31743_v21 }
 0xe19   :  { %27493 = vmatpush3.bf16.msra.mxu0 %v27492_v52 }
 0xe1a   :  { %27494 = vmatprep.subr.bf16.mxu0 %v31743_v21 }
 0xe1c   :  { %23859 = vmatmul.mubr.f32.vlgmr.msra.gmra.mrb[138].mxu0 %v15592_v60  ;;  %v27522_v60 = vpack.c.bf16 %v32199_v49, %v32198_v58 }
 0xe1d   :  { %27496 = vmatpush3.bf16.msra.mxu0 %v31171_v20  ;;  %23893 = vmatprep.mubr.msk.f32.mxu0 %vm27646_vm0, %v31741_v56 }
 0xe1e   :  { %27497 = vmatprep.subr.bf16.mxu0 %v31743_v21 }
 0xe21   :  { %27499 = vmatpush3.bf16.msra.mxu0 %v31179_v54 }
 0xe22   :  { %27500 = vmatprep.subr.bf16.mxu0 %v31743_v21 }
 0xe25   :  { %27502 = vmatpush3.bf16.msra.mxu0 %v31183_v9 }
 0xe26   :  { %27503 = vmatprep.subr.bf16.mxu0 %v31743_v21 }
 0xe29   :  { %27505 = vmatpush3.bf16.msra.mxu0 %v31189_v55 }
 0xe2a   :  { %27506 = vmatprep.subr.bf16.mxu0 %v31743_v21 }
 0xe2d   :  { %27508 = vmatpush3.bf16.msra.mxu0 %v31193_v23 }
 0xe2e   :  { %27509 = vmatprep.subr.bf16.mxu0 %v31743_v21 }
 0xe31   :  { %27511 = vmatpush3.bf16.msra.mxu0 %v31197_v35 }
 0xe32   :  { %27512 = vmatprep.subr.bf16.mxu0 %v31743_v21 }
 0xe35   :  { %27514 = vmatpush3.bf16.msra.mxu0 %v31221_v30 }
 0xe36   :  { %27515 = vmatprep.subr.bf16.mxu0 %v31743_v21 }
 0xe39   :  { %27517 = vmatpush3.bf16.msra.mxu0 %v31231_v27 }
 0xe3a   :  { %27518 = vmatprep.subr.bf16.mxu0 %v31743_v21 }
 0xe3c   :  { %23894 = vmatmul.mubr.f32.vlgmr.msra.gmra.mrb[138].mxu0 %v15593_v22  ;;  %v32204_v22 = vand.u32 4294901760, %v31213_v11  ;;  %v32210_v11 = vand.u32 4294901760, %v31233_v7 }
 0xe3d   :  { %27520 = vmatpush3.bf16.msra.mxu0 %v27519_v12  ;;  %23928 = vmatprep.mubr.msk.f32.mxu0 %vm27646_vm0, %v31741_v56 }
 0xe3e   :  { %27521 = vmatprep.subr.bf16.mxu0 %v31743_v21  ;;  %v27531_v37 = vpack.c.bf16 %v32205_v46, %v32204_v22  ;;  %v27540_v51 = vpack.c.bf16 %v32211_v24, %v32210_v11 }
 0xe41   :  { %27523 = vmatpush3.bf16.msra.mxu0 %v27522_v60 }
 0xe42   :  { %27524 = vmatprep.subr.bf16.mxu0 %v31743_v21 }
 0xe45   :  { %27526 = vmatpush3.bf16.msra.mxu0 %v27525_v18 }
 0xe46   :  { %27527 = vmatprep.subr.bf16.mxu0 %v31743_v21 }
 0xe49   :  { %27529 = vmatpush3.bf16.msra.mxu0 %v27528_v26 }
 0xe4a   :  { %27530 = vmatprep.subr.bf16.mxu0 %v31743_v21 }
 0xe4d   :  { %27532 = vmatpush3.bf16.msra.mxu0 %v27531_v37 }
 0xe4e   :  { %27533 = vmatprep.subr.bf16.mxu0 %v31743_v21 }
 0xe51   :  { %27535 = vmatpush3.bf16.msra.mxu0 %v27534_v4 }
 0xe52   :  { %27536 = vmatprep.subr.bf16.mxu0 %v31743_v21 }
 0xe55   :  { %27538 = vmatpush3.bf16.msra.mxu0 %v27537_v6 }
 0xe56   :  { %27539 = vmatprep.subr.bf16.mxu0 %v31743_v21 }
 0xe59   :  { %27541 = vmatpush3.bf16.msra.mxu0 %v27540_v51 }
 0xe5a   :  { %27542 = vmatprep.subr.bf16.mxu0 %v31743_v21 }
 0xe5c   :  { %23929 = vmatmul.mubr.f32.vlgmr.msra.gmra.mrb[138].mxu0 %v31329_v61 }
 0xe5d   :  { %27544 = vmatpush3.bf16.msra.mxu0 %v31171_v20  ;;  %23963 = vmatprep.mubr.msk.f32.mxu0 %vm27646_vm0, %v31741_v56  ;;  %v16165_v56 = vld [vmem:[%s31445_s2 + $0x1] ss:$0 sm:$0xff] }
 0xe5e   :  { %27545 = vmatprep.subr.bf16.mxu0 %v31743_v21 }
 0xe61   :  { %27547 = vmatpush3.bf16.msra.mxu0 %v31179_v54 }
 0xe62   :  { %27548 = vmatprep.subr.bf16.mxu0 %v31743_v21 }
 0xe65   :  { %27550 = vmatpush3.bf16.msra.mxu0 %v31183_v9 }
 0xe66   :  { %27551 = vmatprep.subr.bf16.mxu0 %v31743_v21 }
 0xe69   :  { %27553 = vmatpush3.bf16.msra.mxu0 %v31189_v55 }
 0xe6a   :  { %27554 = vmatprep.subr.bf16.mxu0 %v31743_v21 }
 0xe6d   :  { %27556 = vmatpush3.bf16.msra.mxu0 %v31193_v23 }
 0xe6e   :  { %27557 = vmatprep.subr.bf16.mxu0 %v31743_v21 }
 0xe71   :  { %27559 = vmatpush3.bf16.msra.mxu0 %v31197_v35 }
 0xe72   :  { %27560 = vmatprep.subr.bf16.mxu0 %v31743_v21 }
 0xe75   :  { %27562 = vmatpush3.bf16.msra.mxu0 %v31221_v30 }
 0xe76   :  { %27563 = vmatprep.subr.bf16.mxu0 %v31743_v21 }
 0xe79   :  { %27565 = vmatpush3.bf16.msra.mxu0 %v31231_v27 }
 0xe7c   :  { %23964 = vmatmul.mubr.f32.vlgmr.msra.gmra.mrb[138].mxu0 %v31329_v61 }
 0xf4f   :  { %v16147_v20 = vpop.f32.mrb[138].mxu0 }
 0xf50   :  { %v27566_v54 = vadd.f32 %v16165_v56, %v16147_v20  ;;  %v23965_v9 = vpop.f32.mrb[139].mxu0 }
 0xf52   :  { %16151 = vst [vmem:[%s31446_s3] sm:$0xff] %v27566_v54 }
 0xf53   :  { %16156 = vsyncpa [#allocation3], 1 }

</bundles_post_ra>
